<compile_context>
chip_gen: v5e
topology: v5e:2x2
jax: 0.10.0
libtpu: 0.0.40
codegen_flags: <defaults>
</compile_context>

<pallas_src>
import jax
import jax.numpy as jnp
import numpy as np
from jax import lax
from jax.experimental import pallas as pl
from jax.experimental.pallas import tpu as pltpu  # noqa: F401 (not needed at these shapes)


# ------------------------------ Pallas kernel --------------------------------

def make_encoder_kernel(L, T):
    """Build the fused encoder kernel for L GRU layers and T timesteps."""

    def kernel(*refs):
        # ---- parse the flat ref list (inputs..., outputs) ----
        idx = 0
        embds_ref = refs[idx]; idx += 1                        # (T, B, E)
        gru = []
        for l in range(L):
            dirs = []
            for _d in range(2):                                # 0 = forward, 1 = backward
                n_slab = 1 if l == 0 else 2                    # layer>=1: fwd/bwd input slabs
                wi_slabs = [refs[idx + k] for k in range(n_slab)]; idx += n_slab
                wh, bi, bh = refs[idx], refs[idx + 1], refs[idx + 2]; idx += 3
                dirs.append((wi_slabs, wh, bi, bh))
            gru.append(dirs)
        hm_w1f, hm_w1b, hm_b1, hm_w2, hm_b2 = refs[idx:idx + 5]; idx += 5
        om_w1f, om_w1b, om_b1, om_w2, om_b2 = refs[idx:idx + 5]; idx += 5
        out_seq_ref, out_hid_ref = refs[idx], refs[idx + 1]    # (T,B,H), (B,H)

        B = embds_ref.shape[1]
        H = out_hid_ref.shape[-1]

        def sigmoid(x):
            # tanh-based sigmoid -> transcendental runs on the EUP slot.
            return 0.5 * (jnp.tanh(0.5 * x) + 1.0)

        def load_dir(wi_slabs, wh, bi, bh):
            # Hoist all weight/bias loads out of the time loop (per-gate views).
            return ([[w[g] for g in range(3)] for w in wi_slabs],
                    [wh[g] for g in range(3)],
                    [bi[g] for g in range(3)],
                    [bh[g] for g in range(3)])

        def cell(x_parts, h, wv):
            # PyTorch GRU cell, gate order (r, z, n); each gate is a lane-aligned
            # (B, H) tile thanks to the gate-stacked weight layout.
            wi_v, wh_v, bi_v, bh_v = wv

            def gi(g):
                acc = bi_v[g]
                for xp, wslab in zip(x_parts, wi_v):
                    acc = acc + jnp.dot(xp, wslab[g], preferred_element_type=jnp.float32)
                return acc

            def gh(g):
                return jnp.dot(h, wh_v[g], preferred_element_type=jnp.float32) + bh_v[g]

            r = sigmoid(gi(0) + gh(0))
            z = sigmoid(gi(1) + gh(1))
            n = jnp.tanh(gi(2) + r * gh(2))
            return (1.0 - z) * n + z * h

        # Layer 0 input: one slab per timestep (the embedding vector).
        layer_in = [[embds_ref[t]] for t in range(T)]
        h0 = jnp.zeros((B, H), jnp.float32)
        h_f = h_b = h0

        for l in range(L):
            wv_f = load_dir(*gru[l][0])
            wv_b = load_dir(*gru[l][1])

            fwd = [None] * T
            bwd = [None] * T

            h_f = h0
            for t in range(T):                    # forward direction (static unroll)
                h_f = cell(layer_in[t], h_f, wv_f)
                fwd[t] = h_f

            h_b = h0
            for t in range(T - 1, -1, -1):        # backward direction (static unroll)
                h_b = cell(layer_in[t], h_b, wv_b)
                bwd[t] = h_b

            # TODO(synk): inter-layer GRU dropout skipped (inactive at inference).
            layer_in = [[fwd[t], bwd[t]] for t in range(T)]

        # ---- hidden_map( cat(h_fwd_last, h_bwd_last) ) : Linear -> ReLU -> Linear
        hm1 = jnp.maximum(
            jnp.dot(h_f, hm_w1f[...], preferred_element_type=jnp.float32)
            + jnp.dot(h_b, hm_w1b[...], preferred_element_type=jnp.float32)
            + hm_b1[...], 0.0)
        out_hid_ref[...] = (jnp.dot(hm1, hm_w2[...], preferred_element_type=jnp.float32)
                            + hm_b2[...])

        # ---- output_map(context) : Linear -> ReLU -> Linear, per timestep ----
        om_w1f_v, om_w1b_v, om_b1_v = om_w1f[...], om_w1b[...], om_b1[...]
        om_w2_v, om_b2_v = om_w2[...], om_b2[...]
        for t in range(T):
            xf, xb = layer_in[t]                  # last layer fwd/bwd at timestep t
            o1 = jnp.maximum(
                jnp.dot(xf, om_w1f_v, preferred_element_type=jnp.float32)
                + jnp.dot(xb, om_w1b_v, preferred_element_type=jnp.float32)
                + om_b1_v, 0.0)
            out_seq_ref[t] = (jnp.dot(o1, om_w2_v, preferred_element_type=jnp.float32)
                              + om_b2_v)

        # TODO(synk): nn.Dropout in hidden_map/output_map and on embeddings is
        # treated as inference-time identity.

    return kernel


# ------------------------------ Param prep -----------------------------------

def _gate_stack(wt, H):
    """(d_in, 3H) transposed weight -> (3, d_in, H) gate-stacked slabs (r, z, n)."""
    d = wt.shape[0]
    return wt.reshape(d, 3, H).transpose(1, 0, 2)


def prep_encoder_params(params):
    """One-time conversion of PyTorch-layout weights into kernel layout."""
    H = params["gru"][0][0][1].shape[1]            # W_hh: (3H, H)
    flat = []
    for l, layer in enumerate(params["gru"]):
        for (W_ih, W_hh, b_ih, b_hh) in layer:     # (fwd, bwd)
            WiT = W_ih.T                           # (d_in, 3H)
            slabs = [WiT] if l == 0 else [WiT[:H], WiT[H:]]   # split fwd/bwd features
            for s in slabs:
                flat.append(_gate_stack(s, H))
            flat.append(_gate_stack(W_hh.T, H))
            flat.append(b_ih.reshape(3, 1, H))
            flat.append(b_hh.reshape(3, 1, H))
    for key in ("hidden_map", "output_map"):
        W1, b1, W2, b2 = params[key]
        W1T = W1.T                                 # (2H, F)
        flat += [W1T[:H], W1T[H:], b1.reshape(1, -1), W2.T, b2.reshape(1, -1)]
    return {
        "embedding": params["embedding"],
        "num_layers": len(params["gru"]),
        "hidden": H,
        "flat": tuple(flat),
    }


# ------------------------------ Wrapper ---------------------------------------

def encoder_forward(prepped, x_tok):
    """Mirrors Encoder.forward. Returns (to_decoder_output (B,T,H), to_decoder_hidden (B,H))."""
    embds = prepped["embedding"][x_tok]            # (B, T, E) -- data-dependent gather in JAX
    B, T, _E = embds.shape
    H = prepped["hidden"]
    L = prepped["num_layers"]

    embds_tbe = jnp.transpose(embds, (1, 0, 2)).astype(jnp.float32)   # (T, B, E)

    out_seq, out_hid = pl.pallas_call(
        make_encoder_kernel(L, T),
        out_shape=(jax.ShapeDtypeStruct((T, B, H), jnp.float32),
                   jax.ShapeDtypeStruct((B, H), jnp.float32)),
    )(embds_tbe, *prepped["flat"])

    return jnp.transpose(out_seq, (1, 0, 2)), out_hid


# --------------------------- Pure-JAX reference --------------------------------

def encoder_reference(params, x_tok):
    embds = params["embedding"][x_tok]             # (B, T, E)
    B, T, _E = embds.shape
    L = len(params["gru"])
    H = params["gru"][0][0][1].shape[1]

    def gru_dir(inp, W_ih, W_hh, b_ih, b_hh, reverse):
        def cell(h, x):
            gi = x @ W_ih.T + b_ih
            gh = h @ W_hh.T + b_hh
            r = jax.nn.sigmoid(gi[:, :H] + gh[:, :H])
            z = jax.nn.sigmoid(gi[:, H:2 * H] + gh[:, H:2 * H])
            n = jnp.tanh(gi[:, 2 * H:] + r * gh[:, 2 * H:])
            h_new = (1.0 - z) * n + z * h
            return h_new, h_new
        xs = jnp.transpose(inp, (1, 0, 2))         # (T, B, d)
        if reverse:
            xs = xs[::-1]
        h_last, ys = lax.scan(cell, jnp.zeros((B, H), jnp.float32), xs)
        if reverse:
            ys = ys[::-1]
        return jnp.transpose(ys, (1, 0, 2)), h_last

    layer_in = embds
    hf = hb = None
    for l in range(L):
        (Wif, Whf, bif, bhf) = params["gru"][l][0]
        (Wib, Whb, bib, bhb) = params["gru"][l][1]
        yf, hf = gru_dir(layer_in, Wif, Whf, bif, bhf, False)
        yb, hb = gru_dir(layer_in, Wib, Whb, bib, bhb, True)
        layer_in = jnp.concatenate([yf, yb], axis=-1)          # (B, T, 2H)
    last_hidden = jnp.concatenate([hf, hb], axis=-1)            # (B, 2H)

    W1h, b1h, W2h, b2h = params["hidden_map"]
    to_hid = jnp.maximum(last_hidden @ W1h.T + b1h, 0.0) @ W2h.T + b2h
    W1o, b1o, W2o, b2o = params["output_map"]
    to_out = jnp.maximum(layer_in @ W1o.T + b1o, 0.0) @ W2o.T + b2o
    return to_out, to_hid


# ------------------------------ Param init -------------------------------------

def init_params(key, vocab, E, H, F, L):
    def u(k, shape, scale=0.1):
        return jax.random.uniform(k, shape, jnp.float32, -scale, scale)

    n_keys = 1 + 4 * 2 * L + 8
    ks = iter(jax.random.split(key, n_keys))

    params = {"embedding": u(next(ks), (vocab, E))}
    gru = []
    for l in range(L):
        d_in = E if l == 0 else 2 * H
        dirs = []
        for _ in range(2):                          # forward, backward
            dirs.append((u(next(ks), (3 * H, d_in)),
                         u(next(ks), (3 * H, H)),
                         u(next(ks), (3 * H,)),
                         u(next(ks), (3 * H,))))
        gru.append(dirs)
    params["gru"] = gru
    params["hidden_map"] = (u(next(ks), (F, 2 * H)), u(next(ks), (F,)),
                            u(next(ks), (H, F)), u(next(ks), (H,)))
    params["output_map"] = (u(next(ks), (F, 2 * H)), u(next(ks), (F,)),
                            u(next(ks), (H, F)), u(next(ks), (H,)))
    return params


# --------------------------------- Main -----------------------------------------

if __name__ == "__main__":
    B, T = 2, 8
    vocab, E, H, F, L = 50, 16, 32, 64, 2

    key = jax.random.PRNGKey(0)
    kp, kx = jax.random.split(key)
    params = init_params(kp, vocab, E, H, F, L)
    x_tok = jax.random.randint(kx, (B, T), 0, vocab)

    prepped = prep_encoder_params(params)           # one-time transpose/split/stack
    out, hid = encoder_forward(prepped, x_tok)
    jax.block_until_ready((out, hid))

    ref_out, ref_hid = encoder_reference(params, x_tok)
    np.testing.assert_allclose(np.asarray(out), np.asarray(ref_out), rtol=1e-4, atol=1e-4)
    np.testing.assert_allclose(np.asarray(hid), np.asarray(ref_hid), rtol=1e-4, atol=1e-4)

    assert out.shape == (B, T, H) and hid.shape == (B, H)
    print("KERNEL_OK")
</pallas_src>

<mosaic_0001>
module attributes {stable_mosaic.version = 11 : i64} {
  func.func @kernel(%arg0: memref<8x2x16xf32, #tpu.memory_space<vmem>>, %arg1: memref<3x16x32xf32, #tpu.memory_space<vmem>>, %arg2: memref<3x32x32xf32, #tpu.memory_space<vmem>>, %arg3: memref<3x1x32xf32, #tpu.memory_space<vmem>>, %arg4: memref<3x1x32xf32, #tpu.memory_space<vmem>>, %arg5: memref<3x16x32xf32, #tpu.memory_space<vmem>>, %arg6: memref<3x32x32xf32, #tpu.memory_space<vmem>>, %arg7: memref<3x1x32xf32, #tpu.memory_space<vmem>>, %arg8: memref<3x1x32xf32, #tpu.memory_space<vmem>>, %arg9: memref<3x32x32xf32, #tpu.memory_space<vmem>>, %arg10: memref<3x32x32xf32, #tpu.memory_space<vmem>>, %arg11: memref<3x32x32xf32, #tpu.memory_space<vmem>>, %arg12: memref<3x1x32xf32, #tpu.memory_space<vmem>>, %arg13: memref<3x1x32xf32, #tpu.memory_space<vmem>>, %arg14: memref<3x32x32xf32, #tpu.memory_space<vmem>>, %arg15: memref<3x32x32xf32, #tpu.memory_space<vmem>>, %arg16: memref<3x32x32xf32, #tpu.memory_space<vmem>>, %arg17: memref<3x1x32xf32, #tpu.memory_space<vmem>>, %arg18: memref<3x1x32xf32, #tpu.memory_space<vmem>>, %arg19: memref<32x64xf32, #tpu.memory_space<vmem>>, %arg20: memref<32x64xf32, #tpu.memory_space<vmem>>, %arg21: memref<1x64xf32, #tpu.memory_space<vmem>>, %arg22: memref<64x32xf32, #tpu.memory_space<vmem>>, %arg23: memref<1x32xf32, #tpu.memory_space<vmem>>, %arg24: memref<32x64xf32, #tpu.memory_space<vmem>>, %arg25: memref<32x64xf32, #tpu.memory_space<vmem>>, %arg26: memref<1x64xf32, #tpu.memory_space<vmem>>, %arg27: memref<64x32xf32, #tpu.memory_space<vmem>>, %arg28: memref<1x32xf32, #tpu.memory_space<vmem>>, %arg29: memref<8x2x32xf32, #tpu.memory_space<vmem>>, %arg30: memref<2x32xf32, #tpu.memory_space<vmem>>) attributes {dimension_semantics = [], scalar_prefetch = 0 : i64, scratch_operands = 0 : i64, tpu.core_type = #tpu.core_type<tc>} {
    %c0 = arith.constant 0 : index
    %c0_0 = arith.constant 0 : index
    %c0_1 = arith.constant 0 : index
    %0 = vector.load %arg0[%c0, %c0_0, %c0_1] : memref<8x2x16xf32, #tpu.memory_space<vmem>>, vector<1x2x16xf32>
    %1 = vector.shape_cast %0 : vector<1x2x16xf32> to vector<2x16xf32>
    %c1 = arith.constant 1 : index
    %c0_2 = arith.constant 0 : index
    %c0_3 = arith.constant 0 : index
    %2 = vector.load %arg0[%c1, %c0_2, %c0_3] : memref<8x2x16xf32, #tpu.memory_space<vmem>>, vector<1x2x16xf32>
    %3 = vector.shape_cast %2 : vector<1x2x16xf32> to vector<2x16xf32>
    %c2 = arith.constant 2 : index
    %c0_4 = arith.constant 0 : index
    %c0_5 = arith.constant 0 : index
    %4 = vector.load %arg0[%c2, %c0_4, %c0_5] : memref<8x2x16xf32, #tpu.memory_space<vmem>>, vector<1x2x16xf32>
    %5 = vector.shape_cast %4 : vector<1x2x16xf32> to vector<2x16xf32>
    %c3 = arith.constant 3 : index
    %c0_6 = arith.constant 0 : index
    %c0_7 = arith.constant 0 : index
    %6 = vector.load %arg0[%c3, %c0_6, %c0_7] : memref<8x2x16xf32, #tpu.memory_space<vmem>>, vector<1x2x16xf32>
    %7 = vector.shape_cast %6 : vector<1x2x16xf32> to vector<2x16xf32>
    %c4 = arith.constant 4 : index
    %c0_8 = arith.constant 0 : index
    %c0_9 = arith.constant 0 : index
    %8 = vector.load %arg0[%c4, %c0_8, %c0_9] : memref<8x2x16xf32, #tpu.memory_space<vmem>>, vector<1x2x16xf32>
    %9 = vector.shape_cast %8 : vector<1x2x16xf32> to vector<2x16xf32>
    %c5 = arith.constant 5 : index
    %c0_10 = arith.constant 0 : index
    %c0_11 = arith.constant 0 : index
    %10 = vector.load %arg0[%c5, %c0_10, %c0_11] : memref<8x2x16xf32, #tpu.memory_space<vmem>>, vector<1x2x16xf32>
    %11 = vector.shape_cast %10 : vector<1x2x16xf32> to vector<2x16xf32>
    %c6 = arith.constant 6 : index
    %c0_12 = arith.constant 0 : index
    %c0_13 = arith.constant 0 : index
    %12 = vector.load %arg0[%c6, %c0_12, %c0_13] : memref<8x2x16xf32, #tpu.memory_space<vmem>>, vector<1x2x16xf32>
    %13 = vector.shape_cast %12 : vector<1x2x16xf32> to vector<2x16xf32>
    %c7 = arith.constant 7 : index
    %c0_14 = arith.constant 0 : index
    %c0_15 = arith.constant 0 : index
    %14 = vector.load %arg0[%c7, %c0_14, %c0_15] : memref<8x2x16xf32, #tpu.memory_space<vmem>>, vector<1x2x16xf32>
    %15 = vector.shape_cast %14 : vector<1x2x16xf32> to vector<2x16xf32>
    %cst = arith.constant 0.000000e+00 : f32
    %16 = vector.broadcast %cst : f32 to vector<2x32xf32>
    %c0_16 = arith.constant 0 : index
    %c0_17 = arith.constant 0 : index
    %c0_18 = arith.constant 0 : index
    %17 = vector.load %arg1[%c0_16, %c0_17, %c0_18] : memref<3x16x32xf32, #tpu.memory_space<vmem>>, vector<1x16x32xf32>
    %18 = vector.shape_cast %17 : vector<1x16x32xf32> to vector<16x32xf32>
    %c1_19 = arith.constant 1 : index
    %c0_20 = arith.constant 0 : index
    %c0_21 = arith.constant 0 : index
    %19 = vector.load %arg1[%c1_19, %c0_20, %c0_21] : memref<3x16x32xf32, #tpu.memory_space<vmem>>, vector<1x16x32xf32>
    %20 = vector.shape_cast %19 : vector<1x16x32xf32> to vector<16x32xf32>
    %c2_22 = arith.constant 2 : index
    %c0_23 = arith.constant 0 : index
    %c0_24 = arith.constant 0 : index
    %21 = vector.load %arg1[%c2_22, %c0_23, %c0_24] : memref<3x16x32xf32, #tpu.memory_space<vmem>>, vector<1x16x32xf32>
    %22 = vector.shape_cast %21 : vector<1x16x32xf32> to vector<16x32xf32>
    %c0_25 = arith.constant 0 : index
    %c0_26 = arith.constant 0 : index
    %c0_27 = arith.constant 0 : index
    %23 = vector.load %arg2[%c0_25, %c0_26, %c0_27] : memref<3x32x32xf32, #tpu.memory_space<vmem>>, vector<1x32x32xf32>
    %24 = vector.shape_cast %23 : vector<1x32x32xf32> to vector<32x32xf32>
    %c1_28 = arith.constant 1 : index
    %c0_29 = arith.constant 0 : index
    %c0_30 = arith.constant 0 : index
    %25 = vector.load %arg2[%c1_28, %c0_29, %c0_30] : memref<3x32x32xf32, #tpu.memory_space<vmem>>, vector<1x32x32xf32>
    %26 = vector.shape_cast %25 : vector<1x32x32xf32> to vector<32x32xf32>
    %c2_31 = arith.constant 2 : index
    %c0_32 = arith.constant 0 : index
    %c0_33 = arith.constant 0 : index
    %27 = vector.load %arg2[%c2_31, %c0_32, %c0_33] : memref<3x32x32xf32, #tpu.memory_space<vmem>>, vector<1x32x32xf32>
    %28 = vector.shape_cast %27 : vector<1x32x32xf32> to vector<32x32xf32>
    %c0_34 = arith.constant 0 : index
    %c0_35 = arith.constant 0 : index
    %c0_36 = arith.constant 0 : index
    %29 = vector.load %arg3[%c0_34, %c0_35, %c0_36] : memref<3x1x32xf32, #tpu.memory_space<vmem>>, vector<1x1x32xf32>
    %30 = vector.shape_cast %29 : vector<1x1x32xf32> to vector<1x32xf32>
    %c1_37 = arith.constant 1 : index
    %c0_38 = arith.constant 0 : index
    %c0_39 = arith.constant 0 : index
    %31 = vector.load %arg3[%c1_37, %c0_38, %c0_39] : memref<3x1x32xf32, #tpu.memory_space<vmem>>, vector<1x1x32xf32>
    %32 = vector.shape_cast %31 : vector<1x1x32xf32> to vector<1x32xf32>
    %c2_40 = arith.constant 2 : index
    %c0_41 = arith.constant 0 : index
    %c0_42 = arith.constant 0 : index
    %33 = vector.load %arg3[%c2_40, %c0_41, %c0_42] : memref<3x1x32xf32, #tpu.memory_space<vmem>>, vector<1x1x32xf32>
    %34 = vector.shape_cast %33 : vector<1x1x32xf32> to vector<1x32xf32>
    %c0_43 = arith.constant 0 : index
    %c0_44 = arith.constant 0 : index
    %c0_45 = arith.constant 0 : index
    %35 = vector.load %arg4[%c0_43, %c0_44, %c0_45] : memref<3x1x32xf32, #tpu.memory_space<vmem>>, vector<1x1x32xf32>
    %36 = vector.shape_cast %35 : vector<1x1x32xf32> to vector<1x32xf32>
    %c1_46 = arith.constant 1 : index
    %c0_47 = arith.constant 0 : index
    %c0_48 = arith.constant 0 : index
    %37 = vector.load %arg4[%c1_46, %c0_47, %c0_48] : memref<3x1x32xf32, #tpu.memory_space<vmem>>, vector<1x1x32xf32>
    %38 = vector.shape_cast %37 : vector<1x1x32xf32> to vector<1x32xf32>
    %c2_49 = arith.constant 2 : index
    %c0_50 = arith.constant 0 : index
    %c0_51 = arith.constant 0 : index
    %39 = vector.load %arg4[%c2_49, %c0_50, %c0_51] : memref<3x1x32xf32, #tpu.memory_space<vmem>>, vector<1x1x32xf32>
    %40 = vector.shape_cast %39 : vector<1x1x32xf32> to vector<1x32xf32>
    %c0_52 = arith.constant 0 : index
    %c0_53 = arith.constant 0 : index
    %c0_54 = arith.constant 0 : index
    %41 = vector.load %arg5[%c0_52, %c0_53, %c0_54] : memref<3x16x32xf32, #tpu.memory_space<vmem>>, vector<1x16x32xf32>
    %42 = vector.shape_cast %41 : vector<1x16x32xf32> to vector<16x32xf32>
    %c1_55 = arith.constant 1 : index
    %c0_56 = arith.constant 0 : index
    %c0_57 = arith.constant 0 : index
    %43 = vector.load %arg5[%c1_55, %c0_56, %c0_57] : memref<3x16x32xf32, #tpu.memory_space<vmem>>, vector<1x16x32xf32>
    %44 = vector.shape_cast %43 : vector<1x16x32xf32> to vector<16x32xf32>
    %c2_58 = arith.constant 2 : index
    %c0_59 = arith.constant 0 : index
    %c0_60 = arith.constant 0 : index
    %45 = vector.load %arg5[%c2_58, %c0_59, %c0_60] : memref<3x16x32xf32, #tpu.memory_space<vmem>>, vector<1x16x32xf32>
    %46 = vector.shape_cast %45 : vector<1x16x32xf32> to vector<16x32xf32>
    %c0_61 = arith.constant 0 : index
    %c0_62 = arith.constant 0 : index
    %c0_63 = arith.constant 0 : index
    %47 = vector.load %arg6[%c0_61, %c0_62, %c0_63] : memref<3x32x32xf32, #tpu.memory_space<vmem>>, vector<1x32x32xf32>
    %48 = vector.shape_cast %47 : vector<1x32x32xf32> to vector<32x32xf32>
    %c1_64 = arith.constant 1 : index
    %c0_65 = arith.constant 0 : index
    %c0_66 = arith.constant 0 : index
    %49 = vector.load %arg6[%c1_64, %c0_65, %c0_66] : memref<3x32x32xf32, #tpu.memory_space<vmem>>, vector<1x32x32xf32>
    %50 = vector.shape_cast %49 : vector<1x32x32xf32> to vector<32x32xf32>
    %c2_67 = arith.constant 2 : index
    %c0_68 = arith.constant 0 : index
    %c0_69 = arith.constant 0 : index
    %51 = vector.load %arg6[%c2_67, %c0_68, %c0_69] : memref<3x32x32xf32, #tpu.memory_space<vmem>>, vector<1x32x32xf32>
    %52 = vector.shape_cast %51 : vector<1x32x32xf32> to vector<32x32xf32>
    %c0_70 = arith.constant 0 : index
    %c0_71 = arith.constant 0 : index
    %c0_72 = arith.constant 0 : index
    %53 = vector.load %arg7[%c0_70, %c0_71, %c0_72] : memref<3x1x32xf32, #tpu.memory_space<vmem>>, vector<1x1x32xf32>
    %54 = vector.shape_cast %53 : vector<1x1x32xf32> to vector<1x32xf32>
    %c1_73 = arith.constant 1 : index
    %c0_74 = arith.constant 0 : index
    %c0_75 = arith.constant 0 : index
    %55 = vector.load %arg7[%c1_73, %c0_74, %c0_75] : memref<3x1x32xf32, #tpu.memory_space<vmem>>, vector<1x1x32xf32>
    %56 = vector.shape_cast %55 : vector<1x1x32xf32> to vector<1x32xf32>
    %c2_76 = arith.constant 2 : index
    %c0_77 = arith.constant 0 : index
    %c0_78 = arith.constant 0 : index
    %57 = vector.load %arg7[%c2_76, %c0_77, %c0_78] : memref<3x1x32xf32, #tpu.memory_space<vmem>>, vector<1x1x32xf32>
    %58 = vector.shape_cast %57 : vector<1x1x32xf32> to vector<1x32xf32>
    %c0_79 = arith.constant 0 : index
    %c0_80 = arith.constant 0 : index
    %c0_81 = arith.constant 0 : index
    %59 = vector.load %arg8[%c0_79, %c0_80, %c0_81] : memref<3x1x32xf32, #tpu.memory_space<vmem>>, vector<1x1x32xf32>
    %60 = vector.shape_cast %59 : vector<1x1x32xf32> to vector<1x32xf32>
    %c1_82 = arith.constant 1 : index
    %c0_83 = arith.constant 0 : index
    %c0_84 = arith.constant 0 : index
    %61 = vector.load %arg8[%c1_82, %c0_83, %c0_84] : memref<3x1x32xf32, #tpu.memory_space<vmem>>, vector<1x1x32xf32>
    %62 = vector.shape_cast %61 : vector<1x1x32xf32> to vector<1x32xf32>
    %c2_85 = arith.constant 2 : index
    %c0_86 = arith.constant 0 : index
    %c0_87 = arith.constant 0 : index
    %63 = vector.load %arg8[%c2_85, %c0_86, %c0_87] : memref<3x1x32xf32, #tpu.memory_space<vmem>>, vector<1x1x32xf32>
    %64 = vector.shape_cast %63 : vector<1x1x32xf32> to vector<1x32xf32>
    %cst_88 = arith.constant dense<0.000000e+00> : vector<2x32xf32>
    %65 = tpu.matmul %1, %18, %cst_88 {dimension_numbers = #tpu.dot_dimension_numbers<[1], [0], [0], [1], [0, 0, 1, 1], [], []>} : vector<2x16xf32>, vector<16x32xf32>, vector<2x32xf32> -> vector<2x32xf32>
    %66 = vector.broadcast %30 : vector<1x32xf32> to vector<2x32xf32>
    %67 = arith.addf %66, %65 : vector<2x32xf32>
    %cst_89 = arith.constant dense<0.000000e+00> : vector<2x32xf32>
    %68 = tpu.matmul %16, %24, %cst_89 {dimension_numbers = #tpu.dot_dimension_numbers<[1], [0], [0], [1], [0, 0, 1, 1], [], []>} : vector<2x32xf32>, vector<32x32xf32>, vector<2x32xf32> -> vector<2x32xf32>
    %69 = vector.broadcast %36 : vector<1x32xf32> to vector<2x32xf32>
    %70 = arith.addf %68, %69 : vector<2x32xf32>
    %71 = arith.addf %67, %70 : vector<2x32xf32>
    %cst_90 = arith.constant 5.000000e-01 : f32
    %72 = vector.broadcast %cst_90 : f32 to vector<2x32xf32>
    %73 = arith.mulf %72, %71 : vector<2x32xf32>
    %74 = math.tanh %73 : vector<2x32xf32>
    %cst_91 = arith.constant 1.000000e+00 : f32
    %75 = vector.broadcast %cst_91 : f32 to vector<2x32xf32>
    %76 = arith.addf %74, %75 : vector<2x32xf32>
    %cst_92 = arith.constant 5.000000e-01 : f32
    %77 = vector.broadcast %cst_92 : f32 to vector<2x32xf32>
    %78 = arith.mulf %77, %76 : vector<2x32xf32>
    %cst_93 = arith.constant dense<0.000000e+00> : vector<2x32xf32>
    %79 = tpu.matmul %1, %20, %cst_93 {dimension_numbers = #tpu.dot_dimension_numbers<[1], [0], [0], [1], [0, 0, 1, 1], [], []>} : vector<2x16xf32>, vector<16x32xf32>, vector<2x32xf32> -> vector<2x32xf32>
    %80 = vector.broadcast %32 : vector<1x32xf32> to vector<2x32xf32>
    %81 = arith.addf %80, %79 : vector<2x32xf32>
    %cst_94 = arith.constant dense<0.000000e+00> : vector<2x32xf32>
    %82 = tpu.matmul %16, %26, %cst_94 {dimension_numbers = #tpu.dot_dimension_numbers<[1], [0], [0], [1], [0, 0, 1, 1], [], []>} : vector<2x32xf32>, vector<32x32xf32>, vector<2x32xf32> -> vector<2x32xf32>
    %83 = vector.broadcast %38 : vector<1x32xf32> to vector<2x32xf32>
    %84 = arith.addf %82, %83 : vector<2x32xf32>
    %85 = arith.addf %81, %84 : vector<2x32xf32>
    %cst_95 = arith.constant 5.000000e-01 : f32
    %86 = vector.broadcast %cst_95 : f32 to vector<2x32xf32>
    %87 = arith.mulf %86, %85 : vector<2x32xf32>
    %88 = math.tanh %87 : vector<2x32xf32>
    %cst_96 = arith.constant 1.000000e+00 : f32
    %89 = vector.broadcast %cst_96 : f32 to vector<2x32xf32>
    %90 = arith.addf %88, %89 : vector<2x32xf32>
    %cst_97 = arith.constant 5.000000e-01 : f32
    %91 = vector.broadcast %cst_97 : f32 to vector<2x32xf32>
    %92 = arith.mulf %91, %90 : vector<2x32xf32>
    %cst_98 = arith.constant dense<0.000000e+00> : vector<2x32xf32>
    %93 = tpu.matmul %1, %22, %cst_98 {dimension_numbers = #tpu.dot_dimension_numbers<[1], [0], [0], [1], [0, 0, 1, 1], [], []>} : vector<2x16xf32>, vector<16x32xf32>, vector<2x32xf32> -> vector<2x32xf32>
    %94 = vector.broadcast %34 : vector<1x32xf32> to vector<2x32xf32>
    %95 = arith.addf %94, %93 : vector<2x32xf32>
    %cst_99 = arith.constant dense<0.000000e+00> : vector<2x32xf32>
    %96 = tpu.matmul %16, %28, %cst_99 {dimension_numbers = #tpu.dot_dimension_numbers<[1], [0], [0], [1], [0, 0, 1, 1], [], []>} : vector<2x32xf32>, vector<32x32xf32>, vector<2x32xf32> -> vector<2x32xf32>
    %97 = vector.broadcast %40 : vector<1x32xf32> to vector<2x32xf32>
    %98 = arith.addf %96, %97 : vector<2x32xf32>
    %99 = arith.mulf %78, %98 : vector<2x32xf32>
    %100 = arith.addf %95, %99 : vector<2x32xf32>
    %101 = math.tanh %100 : vector<2x32xf32>
    %cst_100 = arith.constant 1.000000e+00 : f32
    %102 = vector.broadcast %cst_100 : f32 to vector<2x32xf32>
    %103 = arith.subf %102, %92 : vector<2x32xf32>
    %104 = arith.mulf %103, %101 : vector<2x32xf32>
    %105 = arith.mulf %92, %16 : vector<2x32xf32>
    %106 = arith.addf %104, %105 : vector<2x32xf32>
    %cst_101 = arith.constant dense<0.000000e+00> : vector<2x32xf32>
    %107 = tpu.matmul %3, %18, %cst_101 {dimension_numbers = #tpu.dot_dimension_numbers<[1], [0], [0], [1], [0, 0, 1, 1], [], []>} : vector<2x16xf32>, vector<16x32xf32>, vector<2x32xf32> -> vector<2x32xf32>
    %108 = vector.broadcast %30 : vector<1x32xf32> to vector<2x32xf32>
    %109 = arith.addf %108, %107 : vector<2x32xf32>
    %cst_102 = arith.constant dense<0.000000e+00> : vector<2x32xf32>
    %110 = tpu.matmul %106, %24, %cst_102 {dimension_numbers = #tpu.dot_dimension_numbers<[1], [0], [0], [1], [0, 0, 1, 1], [], []>} : vector<2x32xf32>, vector<32x32xf32>, vector<2x32xf32> -> vector<2x32xf32>
    %111 = vector.broadcast %36 : vector<1x32xf32> to vector<2x32xf32>
    %112 = arith.addf %110, %111 : vector<2x32xf32>
    %113 = arith.addf %109, %112 : vector<2x32xf32>
    %cst_103 = arith.constant 5.000000e-01 : f32
    %114 = vector.broadcast %cst_103 : f32 to vector<2x32xf32>
    %115 = arith.mulf %114, %113 : vector<2x32xf32>
    %116 = math.tanh %115 : vector<2x32xf32>
    %cst_104 = arith.constant 1.000000e+00 : f32
    %117 = vector.broadcast %cst_104 : f32 to vector<2x32xf32>
    %118 = arith.addf %116, %117 : vector<2x32xf32>
    %cst_105 = arith.constant 5.000000e-01 : f32
    %119 = vector.broadcast %cst_105 : f32 to vector<2x32xf32>
    %120 = arith.mulf %119, %118 : vector<2x32xf32>
    %cst_106 = arith.constant dense<0.000000e+00> : vector<2x32xf32>
    %121 = tpu.matmul %3, %20, %cst_106 {dimension_numbers = #tpu.dot_dimension_numbers<[1], [0], [0], [1], [0, 0, 1, 1], [], []>} : vector<2x16xf32>, vector<16x32xf32>, vector<2x32xf32> -> vector<2x32xf32>
    %122 = vector.broadcast %32 : vector<1x32xf32> to vector<2x32xf32>
    %123 = arith.addf %122, %121 : vector<2x32xf32>
    %cst_107 = arith.constant dense<0.000000e+00> : vector<2x32xf32>
    %124 = tpu.matmul %106, %26, %cst_107 {dimension_numbers = #tpu.dot_dimension_numbers<[1], [0], [0], [1], [0, 0, 1, 1], [], []>} : vector<2x32xf32>, vector<32x32xf32>, vector<2x32xf32> -> vector<2x32xf32>
    %125 = vector.broadcast %38 : vector<1x32xf32> to vector<2x32xf32>
    %126 = arith.addf %124, %125 : vector<2x32xf32>
    %127 = arith.addf %123, %126 : vector<2x32xf32>
    %cst_108 = arith.constant 5.000000e-01 : f32
    %128 = vector.broadcast %cst_108 : f32 to vector<2x32xf32>
    %129 = arith.mulf %128, %127 : vector<2x32xf32>
    %130 = math.tanh %129 : vector<2x32xf32>
    %cst_109 = arith.constant 1.000000e+00 : f32
    %131 = vector.broadcast %cst_109 : f32 to vector<2x32xf32>
    %132 = arith.addf %130, %131 : vector<2x32xf32>
    %cst_110 = arith.constant 5.000000e-01 : f32
    %133 = vector.broadcast %cst_110 : f32 to vector<2x32xf32>
    %134 = arith.mulf %133, %132 : vector<2x32xf32>
    %cst_111 = arith.constant dense<0.000000e+00> : vector<2x32xf32>
    %135 = tpu.matmul %3, %22, %cst_111 {dimension_numbers = #tpu.dot_dimension_numbers<[1], [0], [0], [1], [0, 0, 1, 1], [], []>} : vector<2x16xf32>, vector<16x32xf32>, vector<2x32xf32> -> vector<2x32xf32>
    %136 = vector.broadcast %34 : vector<1x32xf32> to vector<2x32xf32>
    %137 = arith.addf %136, %135 : vector<2x32xf32>
    %cst_112 = arith.constant dense<0.000000e+00> : vector<2x32xf32>
    %138 = tpu.matmul %106, %28, %cst_112 {dimension_numbers = #tpu.dot_dimension_numbers<[1], [0], [0], [1], [0, 0, 1, 1], [], []>} : vector<2x32xf32>, vector<32x32xf32>, vector<2x32xf32> -> vector<2x32xf32>
    %139 = vector.broadcast %40 : vector<1x32xf32> to vector<2x32xf32>
    %140 = arith.addf %138, %139 : vector<2x32xf32>
    %141 = arith.mulf %120, %140 : vector<2x32xf32>
    %142 = arith.addf %137, %141 : vector<2x32xf32>
    %143 = math.tanh %142 : vector<2x32xf32>
    %cst_113 = arith.constant 1.000000e+00 : f32
    %144 = vector.broadcast %cst_113 : f32 to vector<2x32xf32>
    %145 = arith.subf %144, %134 : vector<2x32xf32>
    %146 = arith.mulf %145, %143 : vector<2x32xf32>
    %147 = arith.mulf %134, %106 : vector<2x32xf32>
    %148 = arith.addf %146, %147 : vector<2x32xf32>
    %cst_114 = arith.constant dense<0.000000e+00> : vector<2x32xf32>
    %149 = tpu.matmul %5, %18, %cst_114 {dimension_numbers = #tpu.dot_dimension_numbers<[1], [0], [0], [1], [0, 0, 1, 1], [], []>} : vector<2x16xf32>, vector<16x32xf32>, vector<2x32xf32> -> vector<2x32xf32>
    %150 = vector.broadcast %30 : vector<1x32xf32> to vector<2x32xf32>
    %151 = arith.addf %150, %149 : vector<2x32xf32>
    %cst_115 = arith.constant dense<0.000000e+00> : vector<2x32xf32>
    %152 = tpu.matmul %148, %24, %cst_115 {dimension_numbers = #tpu.dot_dimension_numbers<[1], [0], [0], [1], [0, 0, 1, 1], [], []>} : vector<2x32xf32>, vector<32x32xf32>, vector<2x32xf32> -> vector<2x32xf32>
    %153 = vector.broadcast %36 : vector<1x32xf32> to vector<2x32xf32>
    %154 = arith.addf %152, %153 : vector<2x32xf32>
    %155 = arith.addf %151, %154 : vector<2x32xf32>
    %cst_116 = arith.constant 5.000000e-01 : f32
    %156 = vector.broadcast %cst_116 : f32 to vector<2x32xf32>
    %157 = arith.mulf %156, %155 : vector<2x32xf32>
    %158 = math.tanh %157 : vector<2x32xf32>
    %cst_117 = arith.constant 1.000000e+00 : f32
    %159 = vector.broadcast %cst_117 : f32 to vector<2x32xf32>
    %160 = arith.addf %158, %159 : vector<2x32xf32>
    %cst_118 = arith.constant 5.000000e-01 : f32
    %161 = vector.broadcast %cst_118 : f32 to vector<2x32xf32>
    %162 = arith.mulf %161, %160 : vector<2x32xf32>
    %cst_119 = arith.constant dense<0.000000e+00> : vector<2x32xf32>
    %163 = tpu.matmul %5, %20, %cst_119 {dimension_numbers = #tpu.dot_dimension_numbers<[1], [0], [0], [1], [0, 0, 1, 1], [], []>} : vector<2x16xf32>, vector<16x32xf32>, vector<2x32xf32> -> vector<2x32xf32>
    %164 = vector.broadcast %32 : vector<1x32xf32> to vector<2x32xf32>
    %165 = arith.addf %164, %163 : vector<2x32xf32>
    %cst_120 = arith.constant dense<0.000000e+00> : vector<2x32xf32>
    %166 = tpu.matmul %148, %26, %cst_120 {dimension_numbers = #tpu.dot_dimension_numbers<[1], [0], [0], [1], [0, 0, 1, 1], [], []>} : vector<2x32xf32>, vector<32x32xf32>, vector<2x32xf32> -> vector<2x32xf32>
    %167 = vector.broadcast %38 : vector<1x32xf32> to vector<2x32xf32>
    %168 = arith.addf %166, %167 : vector<2x32xf32>
    %169 = arith.addf %165, %168 : vector<2x32xf32>
    %cst_121 = arith.constant 5.000000e-01 : f32
    %170 = vector.broadcast %cst_121 : f32 to vector<2x32xf32>
    %171 = arith.mulf %170, %169 : vector<2x32xf32>
    %172 = math.tanh %171 : vector<2x32xf32>
    %cst_122 = arith.constant 1.000000e+00 : f32
    %173 = vector.broadcast %cst_122 : f32 to vector<2x32xf32>
    %174 = arith.addf %172, %173 : vector<2x32xf32>
    %cst_123 = arith.constant 5.000000e-01 : f32
    %175 = vector.broadcast %cst_123 : f32 to vector<2x32xf32>
    %176 = arith.mulf %175, %174 : vector<2x32xf32>
    %cst_124 = arith.constant dense<0.000000e+00> : vector<2x32xf32>
    %177 = tpu.matmul %5, %22, %cst_124 {dimension_numbers = #tpu.dot_dimension_numbers<[1], [0], [0], [1], [0, 0, 1, 1], [], []>} : vector<2x16xf32>, vector<16x32xf32>, vector<2x32xf32> -> vector<2x32xf32>
    %178 = vector.broadcast %34 : vector<1x32xf32> to vector<2x32xf32>
    %179 = arith.addf %178, %177 : vector<2x32xf32>
    %cst_125 = arith.constant dense<0.000000e+00> : vector<2x32xf32>
    %180 = tpu.matmul %148, %28, %cst_125 {dimension_numbers = #tpu.dot_dimension_numbers<[1], [0], [0], [1], [0, 0, 1, 1], [], []>} : vector<2x32xf32>, vector<32x32xf32>, vector<2x32xf32> -> vector<2x32xf32>
    %181 = vector.broadcast %40 : vector<1x32xf32> to vector<2x32xf32>
    %182 = arith.addf %180, %181 : vector<2x32xf32>
    %183 = arith.mulf %162, %182 : vector<2x32xf32>
    %184 = arith.addf %179, %183 : vector<2x32xf32>
    %185 = math.tanh %184 : vector<2x32xf32>
    %cst_126 = arith.constant 1.000000e+00 : f32
    %186 = vector.broadcast %cst_126 : f32 to vector<2x32xf32>
    %187 = arith.subf %186, %176 : vector<2x32xf32>
    %188 = arith.mulf %187, %185 : vector<2x32xf32>
    %189 = arith.mulf %176, %148 : vector<2x32xf32>
    %190 = arith.addf %188, %189 : vector<2x32xf32>
    %cst_127 = arith.constant dense<0.000000e+00> : vector<2x32xf32>
    %191 = tpu.matmul %7, %18, %cst_127 {dimension_numbers = #tpu.dot_dimension_numbers<[1], [0], [0], [1], [0, 0, 1, 1], [], []>} : vector<2x16xf32>, vector<16x32xf32>, vector<2x32xf32> -> vector<2x32xf32>
    %192 = vector.broadcast %30 : vector<1x32xf32> to vector<2x32xf32>
    %193 = arith.addf %192, %191 : vector<2x32xf32>
    %cst_128 = arith.constant dense<0.000000e+00> : vector<2x32xf32>
    %194 = tpu.matmul %190, %24, %cst_128 {dimension_numbers = #tpu.dot_dimension_numbers<[1], [0], [0], [1], [0, 0, 1, 1], [], []>} : vector<2x32xf32>, vector<32x32xf32>, vector<2x32xf32> -> vector<2x32xf32>
    %195 = vector.broadcast %36 : vector<1x32xf32> to vector<2x32xf32>
    %196 = arith.addf %194, %195 : vector<2x32xf32>
    %197 = arith.addf %193, %196 : vector<2x32xf32>
    %cst_129 = arith.constant 5.000000e-01 : f32
    %198 = vector.broadcast %cst_129 : f32 to vector<2x32xf32>
    %199 = arith.mulf %198, %197 : vector<2x32xf32>
    %200 = math.tanh %199 : vector<2x32xf32>
    %cst_130 = arith.constant 1.000000e+00 : f32
    %201 = vector.broadcast %cst_130 : f32 to vector<2x32xf32>
    %202 = arith.addf %200, %201 : vector<2x32xf32>
    %cst_131 = arith.constant 5.000000e-01 : f32
    %203 = vector.broadcast %cst_131 : f32 to vector<2x32xf32>
    %204 = arith.mulf %203, %202 : vector<2x32xf32>
    %cst_132 = arith.constant dense<0.000000e+00> : vector<2x32xf32>
    %205 = tpu.matmul %7, %20, %cst_132 {dimension_numbers = #tpu.dot_dimension_numbers<[1], [0], [0], [1], [0, 0, 1, 1], [], []>} : vector<2x16xf32>, vector<16x32xf32>, vector<2x32xf32> -> vector<2x32xf32>
    %206 = vector.broadcast %32 : vector<1x32xf32> to vector<2x32xf32>
    %207 = arith.addf %206, %205 : vector<2x32xf32>
    %cst_133 = arith.constant dense<0.000000e+00> : vector<2x32xf32>
    %208 = tpu.matmul %190, %26, %cst_133 {dimension_numbers = #tpu.dot_dimension_numbers<[1], [0], [0], [1], [0, 0, 1, 1], [], []>} : vector<2x32xf32>, vector<32x32xf32>, vector<2x32xf32> -> vector<2x32xf32>
    %209 = vector.broadcast %38 : vector<1x32xf32> to vector<2x32xf32>
    %210 = arith.addf %208, %209 : vector<2x32xf32>
    %211 = arith.addf %207, %210 : vector<2x32xf32>
    %cst_134 = arith.constant 5.000000e-01 : f32
    %212 = vector.broadcast %cst_134 : f32 to vector<2x32xf32>
    %213 = arith.mulf %212, %211 : vector<2x32xf32>
    %214 = math.tanh %213 : vector<2x32xf32>
    %cst_135 = arith.constant 1.000000e+00 : f32
    %215 = vector.broadcast %cst_135 : f32 to vector<2x32xf32>
    %216 = arith.addf %214, %215 : vector<2x32xf32>
    %cst_136 = arith.constant 5.000000e-01 : f32
    %217 = vector.broadcast %cst_136 : f32 to vector<2x32xf32>
    %218 = arith.mulf %217, %216 : vector<2x32xf32>
    %cst_137 = arith.constant dense<0.000000e+00> : vector<2x32xf32>
    %219 = tpu.matmul %7, %22, %cst_137 {dimension_numbers = #tpu.dot_dimension_numbers<[1], [0], [0], [1], [0, 0, 1, 1], [], []>} : vector<2x16xf32>, vector<16x32xf32>, vector<2x32xf32> -> vector<2x32xf32>
    %220 = vector.broadcast %34 : vector<1x32xf32> to vector<2x32xf32>
    %221 = arith.addf %220, %219 : vector<2x32xf32>
    %cst_138 = arith.constant dense<0.000000e+00> : vector<2x32xf32>
    %222 = tpu.matmul %190, %28, %cst_138 {dimension_numbers = #tpu.dot_dimension_numbers<[1], [0], [0], [1], [0, 0, 1, 1], [], []>} : vector<2x32xf32>, vector<32x32xf32>, vector<2x32xf32> -> vector<2x32xf32>
    %223 = vector.broadcast %40 : vector<1x32xf32> to vector<2x32xf32>
    %224 = arith.addf %222, %223 : vector<2x32xf32>
    %225 = arith.mulf %204, %224 : vector<2x32xf32>
    %226 = arith.addf %221, %225 : vector<2x32xf32>
    %227 = math.tanh %226 : vector<2x32xf32>
    %cst_139 = arith.constant 1.000000e+00 : f32
    %228 = vector.broadcast %cst_139 : f32 to vector<2x32xf32>
    %229 = arith.subf %228, %218 : vector<2x32xf32>
    %230 = arith.mulf %229, %227 : vector<2x32xf32>
    %231 = arith.mulf %218, %190 : vector<2x32xf32>
    %232 = arith.addf %230, %231 : vector<2x32xf32>
    %cst_140 = arith.constant dense<0.000000e+00> : vector<2x32xf32>
    %233 = tpu.matmul %9, %18, %cst_140 {dimension_numbers = #tpu.dot_dimension_numbers<[1], [0], [0], [1], [0, 0, 1, 1], [], []>} : vector<2x16xf32>, vector<16x32xf32>, vector<2x32xf32> -> vector<2x32xf32>
    %234 = vector.broadcast %30 : vector<1x32xf32> to vector<2x32xf32>
    %235 = arith.addf %234, %233 : vector<2x32xf32>
    %cst_141 = arith.constant dense<0.000000e+00> : vector<2x32xf32>
    %236 = tpu.matmul %232, %24, %cst_141 {dimension_numbers = #tpu.dot_dimension_numbers<[1], [0], [0], [1], [0, 0, 1, 1], [], []>} : vector<2x32xf32>, vector<32x32xf32>, vector<2x32xf32> -> vector<2x32xf32>
    %237 = vector.broadcast %36 : vector<1x32xf32> to vector<2x32xf32>
    %238 = arith.addf %236, %237 : vector<2x32xf32>
    %239 = arith.addf %235, %238 : vector<2x32xf32>
    %cst_142 = arith.constant 5.000000e-01 : f32
    %240 = vector.broadcast %cst_142 : f32 to vector<2x32xf32>
    %241 = arith.mulf %240, %239 : vector<2x32xf32>
    %242 = math.tanh %241 : vector<2x32xf32>
    %cst_143 = arith.constant 1.000000e+00 : f32
    %243 = vector.broadcast %cst_143 : f32 to vector<2x32xf32>
    %244 = arith.addf %242, %243 : vector<2x32xf32>
    %cst_144 = arith.constant 5.000000e-01 : f32
    %245 = vector.broadcast %cst_144 : f32 to vector<2x32xf32>
    %246 = arith.mulf %245, %244 : vector<2x32xf32>
    %cst_145 = arith.constant dense<0.000000e+00> : vector<2x32xf32>
    %247 = tpu.matmul %9, %20, %cst_145 {dimension_numbers = #tpu.dot_dimension_numbers<[1], [0], [0], [1], [0, 0, 1, 1], [], []>} : vector<2x16xf32>, vector<16x32xf32>, vector<2x32xf32> -> vector<2x32xf32>
    %248 = vector.broadcast %32 : vector<1x32xf32> to vector<2x32xf32>
    %249 = arith.addf %248, %247 : vector<2x32xf32>
    %cst_146 = arith.constant dense<0.000000e+00> : vector<2x32xf32>
    %250 = tpu.matmul %232, %26, %cst_146 {dimension_numbers = #tpu.dot_dimension_numbers<[1], [0], [0], [1], [0, 0, 1, 1], [], []>} : vector<2x32xf32>, vector<32x32xf32>, vector<2x32xf32> -> vector<2x32xf32>
    %251 = vector.broadcast %38 : vector<1x32xf32> to vector<2x32xf32>
    %252 = arith.addf %250, %251 : vector<2x32xf32>
    %253 = arith.addf %249, %252 : vector<2x32xf32>
    %cst_147 = arith.constant 5.000000e-01 : f32
    %254 = vector.broadcast %cst_147 : f32 to vector<2x32xf32>
    %255 = arith.mulf %254, %253 : vector<2x32xf32>
    %256 = math.tanh %255 : vector<2x32xf32>
    %cst_148 = arith.constant 1.000000e+00 : f32
    %257 = vector.broadcast %cst_148 : f32 to vector<2x32xf32>
    %258 = arith.addf %256, %257 : vector<2x32xf32>
    %cst_149 = arith.constant 5.000000e-01 : f32
    %259 = vector.broadcast %cst_149 : f32 to vector<2x32xf32>
    %260 = arith.mulf %259, %258 : vector<2x32xf32>
    %cst_150 = arith.constant dense<0.000000e+00> : vector<2x32xf32>
    %261 = tpu.matmul %9, %22, %cst_150 {dimension_numbers = #tpu.dot_dimension_numbers<[1], [0], [0], [1], [0, 0, 1, 1], [], []>} : vector<2x16xf32>, vector<16x32xf32>, vector<2x32xf32> -> vector<2x32xf32>
    %262 = vector.broadcast %34 : vector<1x32xf32> to vector<2x32xf32>
    %263 = arith.addf %262, %261 : vector<2x32xf32>
    %cst_151 = arith.constant dense<0.000000e+00> : vector<2x32xf32>
    %264 = tpu.matmul %232, %28, %cst_151 {dimension_numbers = #tpu.dot_dimension_numbers<[1], [0], [0], [1], [0, 0, 1, 1], [], []>} : vector<2x32xf32>, vector<32x32xf32>, vector<2x32xf32> -> vector<2x32xf32>
    %265 = vector.broadcast %40 : vector<1x32xf32> to vector<2x32xf32>
    %266 = arith.addf %264, %265 : vector<2x32xf32>
    %267 = arith.mulf %246, %266 : vector<2x32xf32>
    %268 = arith.addf %263, %267 : vector<2x32xf32>
    %269 = math.tanh %268 : vector<2x32xf32>
    %cst_152 = arith.constant 1.000000e+00 : f32
    %270 = vector.broadcast %cst_152 : f32 to vector<2x32xf32>
    %271 = arith.subf %270, %260 : vector<2x32xf32>
    %272 = arith.mulf %271, %269 : vector<2x32xf32>
    %273 = arith.mulf %260, %232 : vector<2x32xf32>
    %274 = arith.addf %272, %273 : vector<2x32xf32>
    %cst_153 = arith.constant dense<0.000000e+00> : vector<2x32xf32>
    %275 = tpu.matmul %11, %18, %cst_153 {dimension_numbers = #tpu.dot_dimension_numbers<[1], [0], [0], [1], [0, 0, 1, 1], [], []>} : vector<2x16xf32>, vector<16x32xf32>, vector<2x32xf32> -> vector<2x32xf32>
    %276 = vector.broadcast %30 : vector<1x32xf32> to vector<2x32xf32>
    %277 = arith.addf %276, %275 : vector<2x32xf32>
    %cst_154 = arith.constant dense<0.000000e+00> : vector<2x32xf32>
    %278 = tpu.matmul %274, %24, %cst_154 {dimension_numbers = #tpu.dot_dimension_numbers<[1], [0], [0], [1], [0, 0, 1, 1], [], []>} : vector<2x32xf32>, vector<32x32xf32>, vector<2x32xf32> -> vector<2x32xf32>
    %279 = vector.broadcast %36 : vector<1x32xf32> to vector<2x32xf32>
    %280 = arith.addf %278, %279 : vector<2x32xf32>
    %281 = arith.addf %277, %280 : vector<2x32xf32>
    %cst_155 = arith.constant 5.000000e-01 : f32
    %282 = vector.broadcast %cst_155 : f32 to vector<2x32xf32>
    %283 = arith.mulf %282, %281 : vector<2x32xf32>
    %284 = math.tanh %283 : vector<2x32xf32>
    %cst_156 = arith.constant 1.000000e+00 : f32
    %285 = vector.broadcast %cst_156 : f32 to vector<2x32xf32>
    %286 = arith.addf %284, %285 : vector<2x32xf32>
    %cst_157 = arith.constant 5.000000e-01 : f32
    %287 = vector.broadcast %cst_157 : f32 to vector<2x32xf32>
    %288 = arith.mulf %287, %286 : vector<2x32xf32>
    %cst_158 = arith.constant dense<0.000000e+00> : vector<2x32xf32>
    %289 = tpu.matmul %11, %20, %cst_158 {dimension_numbers = #tpu.dot_dimension_numbers<[1], [0], [0], [1], [0, 0, 1, 1], [], []>} : vector<2x16xf32>, vector<16x32xf32>, vector<2x32xf32> -> vector<2x32xf32>
    %290 = vector.broadcast %32 : vector<1x32xf32> to vector<2x32xf32>
    %291 = arith.addf %290, %289 : vector<2x32xf32>
    %cst_159 = arith.constant dense<0.000000e+00> : vector<2x32xf32>
    %292 = tpu.matmul %274, %26, %cst_159 {dimension_numbers = #tpu.dot_dimension_numbers<[1], [0], [0], [1], [0, 0, 1, 1], [], []>} : vector<2x32xf32>, vector<32x32xf32>, vector<2x32xf32> -> vector<2x32xf32>
    %293 = vector.broadcast %38 : vector<1x32xf32> to vector<2x32xf32>
    %294 = arith.addf %292, %293 : vector<2x32xf32>
    %295 = arith.addf %291, %294 : vector<2x32xf32>
    %cst_160 = arith.constant 5.000000e-01 : f32
    %296 = vector.broadcast %cst_160 : f32 to vector<2x32xf32>
    %297 = arith.mulf %296, %295 : vector<2x32xf32>
    %298 = math.tanh %297 : vector<2x32xf32>
    %cst_161 = arith.constant 1.000000e+00 : f32
    %299 = vector.broadcast %cst_161 : f32 to vector<2x32xf32>
    %300 = arith.addf %298, %299 : vector<2x32xf32>
    %cst_162 = arith.constant 5.000000e-01 : f32
    %301 = vector.broadcast %cst_162 : f32 to vector<2x32xf32>
    %302 = arith.mulf %301, %300 : vector<2x32xf32>
    %cst_163 = arith.constant dense<0.000000e+00> : vector<2x32xf32>
    %303 = tpu.matmul %11, %22, %cst_163 {dimension_numbers = #tpu.dot_dimension_numbers<[1], [0], [0], [1], [0, 0, 1, 1], [], []>} : vector<2x16xf32>, vector<16x32xf32>, vector<2x32xf32> -> vector<2x32xf32>
    %304 = vector.broadcast %34 : vector<1x32xf32> to vector<2x32xf32>
    %305 = arith.addf %304, %303 : vector<2x32xf32>
    %cst_164 = arith.constant dense<0.000000e+00> : vector<2x32xf32>
    %306 = tpu.matmul %274, %28, %cst_164 {dimension_numbers = #tpu.dot_dimension_numbers<[1], [0], [0], [1], [0, 0, 1, 1], [], []>} : vector<2x32xf32>, vector<32x32xf32>, vector<2x32xf32> -> vector<2x32xf32>
    %307 = vector.broadcast %40 : vector<1x32xf32> to vector<2x32xf32>
    %308 = arith.addf %306, %307 : vector<2x32xf32>
    %309 = arith.mulf %288, %308 : vector<2x32xf32>
    %310 = arith.addf %305, %309 : vector<2x32xf32>
    %311 = math.tanh %310 : vector<2x32xf32>
    %cst_165 = arith.constant 1.000000e+00 : f32
    %312 = vector.broadcast %cst_165 : f32 to vector<2x32xf32>
    %313 = arith.subf %312, %302 : vector<2x32xf32>
    %314 = arith.mulf %313, %311 : vector<2x32xf32>
    %315 = arith.mulf %302, %274 : vector<2x32xf32>
    %316 = arith.addf %314, %315 : vector<2x32xf32>
    %cst_166 = arith.constant dense<0.000000e+00> : vector<2x32xf32>
    %317 = tpu.matmul %13, %18, %cst_166 {dimension_numbers = #tpu.dot_dimension_numbers<[1], [0], [0], [1], [0, 0, 1, 1], [], []>} : vector<2x16xf32>, vector<16x32xf32>, vector<2x32xf32> -> vector<2x32xf32>
    %318 = vector.broadcast %30 : vector<1x32xf32> to vector<2x32xf32>
    %319 = arith.addf %318, %317 : vector<2x32xf32>
    %cst_167 = arith.constant dense<0.000000e+00> : vector<2x32xf32>
    %320 = tpu.matmul %316, %24, %cst_167 {dimension_numbers = #tpu.dot_dimension_numbers<[1], [0], [0], [1], [0, 0, 1, 1], [], []>} : vector<2x32xf32>, vector<32x32xf32>, vector<2x32xf32> -> vector<2x32xf32>
    %321 = vector.broadcast %36 : vector<1x32xf32> to vector<2x32xf32>
    %322 = arith.addf %320, %321 : vector<2x32xf32>
    %323 = arith.addf %319, %322 : vector<2x32xf32>
    %cst_168 = arith.constant 5.000000e-01 : f32
    %324 = vector.broadcast %cst_168 : f32 to vector<2x32xf32>
    %325 = arith.mulf %324, %323 : vector<2x32xf32>
    %326 = math.tanh %325 : vector<2x32xf32>
    %cst_169 = arith.constant 1.000000e+00 : f32
    %327 = vector.broadcast %cst_169 : f32 to vector<2x32xf32>
    %328 = arith.addf %326, %327 : vector<2x32xf32>
    %cst_170 = arith.constant 5.000000e-01 : f32
    %329 = vector.broadcast %cst_170 : f32 to vector<2x32xf32>
    %330 = arith.mulf %329, %328 : vector<2x32xf32>
    %cst_171 = arith.constant dense<0.000000e+00> : vector<2x32xf32>
    %331 = tpu.matmul %13, %20, %cst_171 {dimension_numbers = #tpu.dot_dimension_numbers<[1], [0], [0], [1], [0, 0, 1, 1], [], []>} : vector<2x16xf32>, vector<16x32xf32>, vector<2x32xf32> -> vector<2x32xf32>
    %332 = vector.broadcast %32 : vector<1x32xf32> to vector<2x32xf32>
    %333 = arith.addf %332, %331 : vector<2x32xf32>
    %cst_172 = arith.constant dense<0.000000e+00> : vector<2x32xf32>
    %334 = tpu.matmul %316, %26, %cst_172 {dimension_numbers = #tpu.dot_dimension_numbers<[1], [0], [0], [1], [0, 0, 1, 1], [], []>} : vector<2x32xf32>, vector<32x32xf32>, vector<2x32xf32> -> vector<2x32xf32>
    %335 = vector.broadcast %38 : vector<1x32xf32> to vector<2x32xf32>
    %336 = arith.addf %334, %335 : vector<2x32xf32>
    %337 = arith.addf %333, %336 : vector<2x32xf32>
    %cst_173 = arith.constant 5.000000e-01 : f32
    %338 = vector.broadcast %cst_173 : f32 to vector<2x32xf32>
    %339 = arith.mulf %338, %337 : vector<2x32xf32>
    %340 = math.tanh %339 : vector<2x32xf32>
    %cst_174 = arith.constant 1.000000e+00 : f32
    %341 = vector.broadcast %cst_174 : f32 to vector<2x32xf32>
    %342 = arith.addf %340, %341 : vector<2x32xf32>
    %cst_175 = arith.constant 5.000000e-01 : f32
    %343 = vector.broadcast %cst_175 : f32 to vector<2x32xf32>
    %344 = arith.mulf %343, %342 : vector<2x32xf32>
    %cst_176 = arith.constant dense<0.000000e+00> : vector<2x32xf32>
    %345 = tpu.matmul %13, %22, %cst_176 {dimension_numbers = #tpu.dot_dimension_numbers<[1], [0], [0], [1], [0, 0, 1, 1], [], []>} : vector<2x16xf32>, vector<16x32xf32>, vector<2x32xf32> -> vector<2x32xf32>
    %346 = vector.broadcast %34 : vector<1x32xf32> to vector<2x32xf32>
    %347 = arith.addf %346, %345 : vector<2x32xf32>
    %cst_177 = arith.constant dense<0.000000e+00> : vector<2x32xf32>
    %348 = tpu.matmul %316, %28, %cst_177 {dimension_numbers = #tpu.dot_dimension_numbers<[1], [0], [0], [1], [0, 0, 1, 1], [], []>} : vector<2x32xf32>, vector<32x32xf32>, vector<2x32xf32> -> vector<2x32xf32>
    %349 = vector.broadcast %40 : vector<1x32xf32> to vector<2x32xf32>
    %350 = arith.addf %348, %349 : vector<2x32xf32>
    %351 = arith.mulf %330, %350 : vector<2x32xf32>
    %352 = arith.addf %347, %351 : vector<2x32xf32>
    %353 = math.tanh %352 : vector<2x32xf32>
    %cst_178 = arith.constant 1.000000e+00 : f32
    %354 = vector.broadcast %cst_178 : f32 to vector<2x32xf32>
    %355 = arith.subf %354, %344 : vector<2x32xf32>
    %356 = arith.mulf %355, %353 : vector<2x32xf32>
    %357 = arith.mulf %344, %316 : vector<2x32xf32>
    %358 = arith.addf %356, %357 : vector<2x32xf32>
    %cst_179 = arith.constant dense<0.000000e+00> : vector<2x32xf32>
    %359 = tpu.matmul %15, %18, %cst_179 {dimension_numbers = #tpu.dot_dimension_numbers<[1], [0], [0], [1], [0, 0, 1, 1], [], []>} : vector<2x16xf32>, vector<16x32xf32>, vector<2x32xf32> -> vector<2x32xf32>
    %360 = vector.broadcast %30 : vector<1x32xf32> to vector<2x32xf32>
    %361 = arith.addf %360, %359 : vector<2x32xf32>
    %cst_180 = arith.constant dense<0.000000e+00> : vector<2x32xf32>
    %362 = tpu.matmul %358, %24, %cst_180 {dimension_numbers = #tpu.dot_dimension_numbers<[1], [0], [0], [1], [0, 0, 1, 1], [], []>} : vector<2x32xf32>, vector<32x32xf32>, vector<2x32xf32> -> vector<2x32xf32>
    %363 = vector.broadcast %36 : vector<1x32xf32> to vector<2x32xf32>
    %364 = arith.addf %362, %363 : vector<2x32xf32>
    %365 = arith.addf %361, %364 : vector<2x32xf32>
    %cst_181 = arith.constant 5.000000e-01 : f32
    %366 = vector.broadcast %cst_181 : f32 to vector<2x32xf32>
    %367 = arith.mulf %366, %365 : vector<2x32xf32>
    %368 = math.tanh %367 : vector<2x32xf32>
    %cst_182 = arith.constant 1.000000e+00 : f32
    %369 = vector.broadcast %cst_182 : f32 to vector<2x32xf32>
    %370 = arith.addf %368, %369 : vector<2x32xf32>
    %cst_183 = arith.constant 5.000000e-01 : f32
    %371 = vector.broadcast %cst_183 : f32 to vector<2x32xf32>
    %372 = arith.mulf %371, %370 : vector<2x32xf32>
    %cst_184 = arith.constant dense<0.000000e+00> : vector<2x32xf32>
    %373 = tpu.matmul %15, %20, %cst_184 {dimension_numbers = #tpu.dot_dimension_numbers<[1], [0], [0], [1], [0, 0, 1, 1], [], []>} : vector<2x16xf32>, vector<16x32xf32>, vector<2x32xf32> -> vector<2x32xf32>
    %374 = vector.broadcast %32 : vector<1x32xf32> to vector<2x32xf32>
    %375 = arith.addf %374, %373 : vector<2x32xf32>
    %cst_185 = arith.constant dense<0.000000e+00> : vector<2x32xf32>
    %376 = tpu.matmul %358, %26, %cst_185 {dimension_numbers = #tpu.dot_dimension_numbers<[1], [0], [0], [1], [0, 0, 1, 1], [], []>} : vector<2x32xf32>, vector<32x32xf32>, vector<2x32xf32> -> vector<2x32xf32>
    %377 = vector.broadcast %38 : vector<1x32xf32> to vector<2x32xf32>
    %378 = arith.addf %376, %377 : vector<2x32xf32>
    %379 = arith.addf %375, %378 : vector<2x32xf32>
    %cst_186 = arith.constant 5.000000e-01 : f32
    %380 = vector.broadcast %cst_186 : f32 to vector<2x32xf32>
    %381 = arith.mulf %380, %379 : vector<2x32xf32>
    %382 = math.tanh %381 : vector<2x32xf32>
    %cst_187 = arith.constant 1.000000e+00 : f32
    %383 = vector.broadcast %cst_187 : f32 to vector<2x32xf32>
    %384 = arith.addf %382, %383 : vector<2x32xf32>
    %cst_188 = arith.constant 5.000000e-01 : f32
    %385 = vector.broadcast %cst_188 : f32 to vector<2x32xf32>
    %386 = arith.mulf %385, %384 : vector<2x32xf32>
    %cst_189 = arith.constant dense<0.000000e+00> : vector<2x32xf32>
    %387 = tpu.matmul %15, %22, %cst_189 {dimension_numbers = #tpu.dot_dimension_numbers<[1], [0], [0], [1], [0, 0, 1, 1], [], []>} : vector<2x16xf32>, vector<16x32xf32>, vector<2x32xf32> -> vector<2x32xf32>
    %388 = vector.broadcast %34 : vector<1x32xf32> to vector<2x32xf32>
    %389 = arith.addf %388, %387 : vector<2x32xf32>
    %cst_190 = arith.constant dense<0.000000e+00> : vector<2x32xf32>
    %390 = tpu.matmul %358, %28, %cst_190 {dimension_numbers = #tpu.dot_dimension_numbers<[1], [0], [0], [1], [0, 0, 1, 1], [], []>} : vector<2x32xf32>, vector<32x32xf32>, vector<2x32xf32> -> vector<2x32xf32>
    %391 = vector.broadcast %40 : vector<1x32xf32> to vector<2x32xf32>
    %392 = arith.addf %390, %391 : vector<2x32xf32>
    %393 = arith.mulf %372, %392 : vector<2x32xf32>
    %394 = arith.addf %389, %393 : vector<2x32xf32>
    %395 = math.tanh %394 : vector<2x32xf32>
    %cst_191 = arith.constant 1.000000e+00 : f32
    %396 = vector.broadcast %cst_191 : f32 to vector<2x32xf32>
    %397 = arith.subf %396, %386 : vector<2x32xf32>
    %398 = arith.mulf %397, %395 : vector<2x32xf32>
    %399 = arith.mulf %386, %358 : vector<2x32xf32>
    %400 = arith.addf %398, %399 : vector<2x32xf32>
    %cst_192 = arith.constant dense<0.000000e+00> : vector<2x32xf32>
    %401 = tpu.matmul %15, %42, %cst_192 {dimension_numbers = #tpu.dot_dimension_numbers<[1], [0], [0], [1], [0, 0, 1, 1], [], []>} : vector<2x16xf32>, vector<16x32xf32>, vector<2x32xf32> -> vector<2x32xf32>
    %402 = vector.broadcast %54 : vector<1x32xf32> to vector<2x32xf32>
    %403 = arith.addf %402, %401 : vector<2x32xf32>
    %cst_193 = arith.constant dense<0.000000e+00> : vector<2x32xf32>
    %404 = tpu.matmul %16, %48, %cst_193 {dimension_numbers = #tpu.dot_dimension_numbers<[1], [0], [0], [1], [0, 0, 1, 1], [], []>} : vector<2x32xf32>, vector<32x32xf32>, vector<2x32xf32> -> vector<2x32xf32>
    %405 = vector.broadcast %60 : vector<1x32xf32> to vector<2x32xf32>
    %406 = arith.addf %404, %405 : vector<2x32xf32>
    %407 = arith.addf %403, %406 : vector<2x32xf32>
    %cst_194 = arith.constant 5.000000e-01 : f32
    %408 = vector.broadcast %cst_194 : f32 to vector<2x32xf32>
    %409 = arith.mulf %408, %407 : vector<2x32xf32>
    %410 = math.tanh %409 : vector<2x32xf32>
    %cst_195 = arith.constant 1.000000e+00 : f32
    %411 = vector.broadcast %cst_195 : f32 to vector<2x32xf32>
    %412 = arith.addf %410, %411 : vector<2x32xf32>
    %cst_196 = arith.constant 5.000000e-01 : f32
    %413 = vector.broadcast %cst_196 : f32 to vector<2x32xf32>
    %414 = arith.mulf %413, %412 : vector<2x32xf32>
    %cst_197 = arith.constant dense<0.000000e+00> : vector<2x32xf32>
    %415 = tpu.matmul %15, %44, %cst_197 {dimension_numbers = #tpu.dot_dimension_numbers<[1], [0], [0], [1], [0, 0, 1, 1], [], []>} : vector<2x16xf32>, vector<16x32xf32>, vector<2x32xf32> -> vector<2x32xf32>
    %416 = vector.broadcast %56 : vector<1x32xf32> to vector<2x32xf32>
    %417 = arith.addf %416, %415 : vector<2x32xf32>
    %cst_198 = arith.constant dense<0.000000e+00> : vector<2x32xf32>
    %418 = tpu.matmul %16, %50, %cst_198 {dimension_numbers = #tpu.dot_dimension_numbers<[1], [0], [0], [1], [0, 0, 1, 1], [], []>} : vector<2x32xf32>, vector<32x32xf32>, vector<2x32xf32> -> vector<2x32xf32>
    %419 = vector.broadcast %62 : vector<1x32xf32> to vector<2x32xf32>
    %420 = arith.addf %418, %419 : vector<2x32xf32>
    %421 = arith.addf %417, %420 : vector<2x32xf32>
    %cst_199 = arith.constant 5.000000e-01 : f32
    %422 = vector.broadcast %cst_199 : f32 to vector<2x32xf32>
    %423 = arith.mulf %422, %421 : vector<2x32xf32>
    %424 = math.tanh %423 : vector<2x32xf32>
    %cst_200 = arith.constant 1.000000e+00 : f32
    %425 = vector.broadcast %cst_200 : f32 to vector<2x32xf32>
    %426 = arith.addf %424, %425 : vector<2x32xf32>
    %cst_201 = arith.constant 5.000000e-01 : f32
    %427 = vector.broadcast %cst_201 : f32 to vector<2x32xf32>
    %428 = arith.mulf %427, %426 : vector<2x32xf32>
    %cst_202 = arith.constant dense<0.000000e+00> : vector<2x32xf32>
    %429 = tpu.matmul %15, %46, %cst_202 {dimension_numbers = #tpu.dot_dimension_numbers<[1], [0], [0], [1], [0, 0, 1, 1], [], []>} : vector<2x16xf32>, vector<16x32xf32>, vector<2x32xf32> -> vector<2x32xf32>
    %430 = vector.broadcast %58 : vector<1x32xf32> to vector<2x32xf32>
    %431 = arith.addf %430, %429 : vector<2x32xf32>
    %cst_203 = arith.constant dense<0.000000e+00> : vector<2x32xf32>
    %432 = tpu.matmul %16, %52, %cst_203 {dimension_numbers = #tpu.dot_dimension_numbers<[1], [0], [0], [1], [0, 0, 1, 1], [], []>} : vector<2x32xf32>, vector<32x32xf32>, vector<2x32xf32> -> vector<2x32xf32>
    %433 = vector.broadcast %64 : vector<1x32xf32> to vector<2x32xf32>
    %434 = arith.addf %432, %433 : vector<2x32xf32>
    %435 = arith.mulf %414, %434 : vector<2x32xf32>
    %436 = arith.addf %431, %435 : vector<2x32xf32>
    %437 = math.tanh %436 : vector<2x32xf32>
    %cst_204 = arith.constant 1.000000e+00 : f32
    %438 = vector.broadcast %cst_204 : f32 to vector<2x32xf32>
    %439 = arith.subf %438, %428 : vector<2x32xf32>
    %440 = arith.mulf %439, %437 : vector<2x32xf32>
    %441 = arith.mulf %428, %16 : vector<2x32xf32>
    %442 = arith.addf %440, %441 : vector<2x32xf32>
    %cst_205 = arith.constant dense<0.000000e+00> : vector<2x32xf32>
    %443 = tpu.matmul %13, %42, %cst_205 {dimension_numbers = #tpu.dot_dimension_numbers<[1], [0], [0], [1], [0, 0, 1, 1], [], []>} : vector<2x16xf32>, vector<16x32xf32>, vector<2x32xf32> -> vector<2x32xf32>
    %444 = vector.broadcast %54 : vector<1x32xf32> to vector<2x32xf32>
    %445 = arith.addf %444, %443 : vector<2x32xf32>
    %cst_206 = arith.constant dense<0.000000e+00> : vector<2x32xf32>
    %446 = tpu.matmul %442, %48, %cst_206 {dimension_numbers = #tpu.dot_dimension_numbers<[1], [0], [0], [1], [0, 0, 1, 1], [], []>} : vector<2x32xf32>, vector<32x32xf32>, vector<2x32xf32> -> vector<2x32xf32>
    %447 = vector.broadcast %60 : vector<1x32xf32> to vector<2x32xf32>
    %448 = arith.addf %446, %447 : vector<2x32xf32>
    %449 = arith.addf %445, %448 : vector<2x32xf32>
    %cst_207 = arith.constant 5.000000e-01 : f32
    %450 = vector.broadcast %cst_207 : f32 to vector<2x32xf32>
    %451 = arith.mulf %450, %449 : vector<2x32xf32>
    %452 = math.tanh %451 : vector<2x32xf32>
    %cst_208 = arith.constant 1.000000e+00 : f32
    %453 = vector.broadcast %cst_208 : f32 to vector<2x32xf32>
    %454 = arith.addf %452, %453 : vector<2x32xf32>
    %cst_209 = arith.constant 5.000000e-01 : f32
    %455 = vector.broadcast %cst_209 : f32 to vector<2x32xf32>
    %456 = arith.mulf %455, %454 : vector<2x32xf32>
    %cst_210 = arith.constant dense<0.000000e+00> : vector<2x32xf32>
    %457 = tpu.matmul %13, %44, %cst_210 {dimension_numbers = #tpu.dot_dimension_numbers<[1], [0], [0], [1], [0, 0, 1, 1], [], []>} : vector<2x16xf32>, vector<16x32xf32>, vector<2x32xf32> -> vector<2x32xf32>
    %458 = vector.broadcast %56 : vector<1x32xf32> to vector<2x32xf32>
    %459 = arith.addf %458, %457 : vector<2x32xf32>
    %cst_211 = arith.constant dense<0.000000e+00> : vector<2x32xf32>
    %460 = tpu.matmul %442, %50, %cst_211 {dimension_numbers = #tpu.dot_dimension_numbers<[1], [0], [0], [1], [0, 0, 1, 1], [], []>} : vector<2x32xf32>, vector<32x32xf32>, vector<2x32xf32> -> vector<2x32xf32>
    %461 = vector.broadcast %62 : vector<1x32xf32> to vector<2x32xf32>
    %462 = arith.addf %460, %461 : vector<2x32xf32>
    %463 = arith.addf %459, %462 : vector<2x32xf32>
    %cst_212 = arith.constant 5.000000e-01 : f32
    %464 = vector.broadcast %cst_212 : f32 to vector<2x32xf32>
    %465 = arith.mulf %464, %463 : vector<2x32xf32>
    %466 = math.tanh %465 : vector<2x32xf32>
    %cst_213 = arith.constant 1.000000e+00 : f32
    %467 = vector.broadcast %cst_213 : f32 to vector<2x32xf32>
    %468 = arith.addf %466, %467 : vector<2x32xf32>
    %cst_214 = arith.constant 5.000000e-01 : f32
    %469 = vector.broadcast %cst_214 : f32 to vector<2x32xf32>
    %470 = arith.mulf %469, %468 : vector<2x32xf32>
    %cst_215 = arith.constant dense<0.000000e+00> : vector<2x32xf32>
    %471 = tpu.matmul %13, %46, %cst_215 {dimension_numbers = #tpu.dot_dimension_numbers<[1], [0], [0], [1], [0, 0, 1, 1], [], []>} : vector<2x16xf32>, vector<16x32xf32>, vector<2x32xf32> -> vector<2x32xf32>
    %472 = vector.broadcast %58 : vector<1x32xf32> to vector<2x32xf32>
    %473 = arith.addf %472, %471 : vector<2x32xf32>
    %cst_216 = arith.constant dense<0.000000e+00> : vector<2x32xf32>
    %474 = tpu.matmul %442, %52, %cst_216 {dimension_numbers = #tpu.dot_dimension_numbers<[1], [0], [0], [1], [0, 0, 1, 1], [], []>} : vector<2x32xf32>, vector<32x32xf32>, vector<2x32xf32> -> vector<2x32xf32>
    %475 = vector.broadcast %64 : vector<1x32xf32> to vector<2x32xf32>
    %476 = arith.addf %474, %475 : vector<2x32xf32>
    %477 = arith.mulf %456, %476 : vector<2x32xf32>
    %478 = arith.addf %473, %477 : vector<2x32xf32>
    %479 = math.tanh %478 : vector<2x32xf32>
    %cst_217 = arith.constant 1.000000e+00 : f32
    %480 = vector.broadcast %cst_217 : f32 to vector<2x32xf32>
    %481 = arith.subf %480, %470 : vector<2x32xf32>
    %482 = arith.mulf %481, %479 : vector<2x32xf32>
    %483 = arith.mulf %470, %442 : vector<2x32xf32>
    %484 = arith.addf %482, %483 : vector<2x32xf32>
    %cst_218 = arith.constant dense<0.000000e+00> : vector<2x32xf32>
    %485 = tpu.matmul %11, %42, %cst_218 {dimension_numbers = #tpu.dot_dimension_numbers<[1], [0], [0], [1], [0, 0, 1, 1], [], []>} : vector<2x16xf32>, vector<16x32xf32>, vector<2x32xf32> -> vector<2x32xf32>
    %486 = vector.broadcast %54 : vector<1x32xf32> to vector<2x32xf32>
    %487 = arith.addf %486, %485 : vector<2x32xf32>
    %cst_219 = arith.constant dense<0.000000e+00> : vector<2x32xf32>
    %488 = tpu.matmul %484, %48, %cst_219 {dimension_numbers = #tpu.dot_dimension_numbers<[1], [0], [0], [1], [0, 0, 1, 1], [], []>} : vector<2x32xf32>, vector<32x32xf32>, vector<2x32xf32> -> vector<2x32xf32>
    %489 = vector.broadcast %60 : vector<1x32xf32> to vector<2x32xf32>
    %490 = arith.addf %488, %489 : vector<2x32xf32>
    %491 = arith.addf %487, %490 : vector<2x32xf32>
    %cst_220 = arith.constant 5.000000e-01 : f32
    %492 = vector.broadcast %cst_220 : f32 to vector<2x32xf32>
    %493 = arith.mulf %492, %491 : vector<2x32xf32>
    %494 = math.tanh %493 : vector<2x32xf32>
    %cst_221 = arith.constant 1.000000e+00 : f32
    %495 = vector.broadcast %cst_221 : f32 to vector<2x32xf32>
    %496 = arith.addf %494, %495 : vector<2x32xf32>
    %cst_222 = arith.constant 5.000000e-01 : f32
    %497 = vector.broadcast %cst_222 : f32 to vector<2x32xf32>
    %498 = arith.mulf %497, %496 : vector<2x32xf32>
    %cst_223 = arith.constant dense<0.000000e+00> : vector<2x32xf32>
    %499 = tpu.matmul %11, %44, %cst_223 {dimension_numbers = #tpu.dot_dimension_numbers<[1], [0], [0], [1], [0, 0, 1, 1], [], []>} : vector<2x16xf32>, vector<16x32xf32>, vector<2x32xf32> -> vector<2x32xf32>
    %500 = vector.broadcast %56 : vector<1x32xf32> to vector<2x32xf32>
    %501 = arith.addf %500, %499 : vector<2x32xf32>
    %cst_224 = arith.constant dense<0.000000e+00> : vector<2x32xf32>
    %502 = tpu.matmul %484, %50, %cst_224 {dimension_numbers = #tpu.dot_dimension_numbers<[1], [0], [0], [1], [0, 0, 1, 1], [], []>} : vector<2x32xf32>, vector<32x32xf32>, vector<2x32xf32> -> vector<2x32xf32>
    %503 = vector.broadcast %62 : vector<1x32xf32> to vector<2x32xf32>
    %504 = arith.addf %502, %503 : vector<2x32xf32>
    %505 = arith.addf %501, %504 : vector<2x32xf32>
    %cst_225 = arith.constant 5.000000e-01 : f32
    %506 = vector.broadcast %cst_225 : f32 to vector<2x32xf32>
    %507 = arith.mulf %506, %505 : vector<2x32xf32>
    %508 = math.tanh %507 : vector<2x32xf32>
    %cst_226 = arith.constant 1.000000e+00 : f32
    %509 = vector.broadcast %cst_226 : f32 to vector<2x32xf32>
    %510 = arith.addf %508, %509 : vector<2x32xf32>
    %cst_227 = arith.constant 5.000000e-01 : f32
    %511 = vector.broadcast %cst_227 : f32 to vector<2x32xf32>
    %512 = arith.mulf %511, %510 : vector<2x32xf32>
    %cst_228 = arith.constant dense<0.000000e+00> : vector<2x32xf32>
    %513 = tpu.matmul %11, %46, %cst_228 {dimension_numbers = #tpu.dot_dimension_numbers<[1], [0], [0], [1], [0, 0, 1, 1], [], []>} : vector<2x16xf32>, vector<16x32xf32>, vector<2x32xf32> -> vector<2x32xf32>
    %514 = vector.broadcast %58 : vector<1x32xf32> to vector<2x32xf32>
    %515 = arith.addf %514, %513 : vector<2x32xf32>
    %cst_229 = arith.constant dense<0.000000e+00> : vector<2x32xf32>
    %516 = tpu.matmul %484, %52, %cst_229 {dimension_numbers = #tpu.dot_dimension_numbers<[1], [0], [0], [1], [0, 0, 1, 1], [], []>} : vector<2x32xf32>, vector<32x32xf32>, vector<2x32xf32> -> vector<2x32xf32>
    %517 = vector.broadcast %64 : vector<1x32xf32> to vector<2x32xf32>
    %518 = arith.addf %516, %517 : vector<2x32xf32>
    %519 = arith.mulf %498, %518 : vector<2x32xf32>
    %520 = arith.addf %515, %519 : vector<2x32xf32>
    %521 = math.tanh %520 : vector<2x32xf32>
    %cst_230 = arith.constant 1.000000e+00 : f32
    %522 = vector.broadcast %cst_230 : f32 to vector<2x32xf32>
    %523 = arith.subf %522, %512 : vector<2x32xf32>
    %524 = arith.mulf %523, %521 : vector<2x32xf32>
    %525 = arith.mulf %512, %484 : vector<2x32xf32>
    %526 = arith.addf %524, %525 : vector<2x32xf32>
    %cst_231 = arith.constant dense<0.000000e+00> : vector<2x32xf32>
    %527 = tpu.matmul %9, %42, %cst_231 {dimension_numbers = #tpu.dot_dimension_numbers<[1], [0], [0], [1], [0, 0, 1, 1], [], []>} : vector<2x16xf32>, vector<16x32xf32>, vector<2x32xf32> -> vector<2x32xf32>
    %528 = vector.broadcast %54 : vector<1x32xf32> to vector<2x32xf32>
    %529 = arith.addf %528, %527 : vector<2x32xf32>
    %cst_232 = arith.constant dense<0.000000e+00> : vector<2x32xf32>
    %530 = tpu.matmul %526, %48, %cst_232 {dimension_numbers = #tpu.dot_dimension_numbers<[1], [0], [0], [1], [0, 0, 1, 1], [], []>} : vector<2x32xf32>, vector<32x32xf32>, vector<2x32xf32> -> vector<2x32xf32>
    %531 = vector.broadcast %60 : vector<1x32xf32> to vector<2x32xf32>
    %532 = arith.addf %530, %531 : vector<2x32xf32>
    %533 = arith.addf %529, %532 : vector<2x32xf32>
    %cst_233 = arith.constant 5.000000e-01 : f32
    %534 = vector.broadcast %cst_233 : f32 to vector<2x32xf32>
    %535 = arith.mulf %534, %533 : vector<2x32xf32>
    %536 = math.tanh %535 : vector<2x32xf32>
    %cst_234 = arith.constant 1.000000e+00 : f32
    %537 = vector.broadcast %cst_234 : f32 to vector<2x32xf32>
    %538 = arith.addf %536, %537 : vector<2x32xf32>
    %cst_235 = arith.constant 5.000000e-01 : f32
    %539 = vector.broadcast %cst_235 : f32 to vector<2x32xf32>
    %540 = arith.mulf %539, %538 : vector<2x32xf32>
    %cst_236 = arith.constant dense<0.000000e+00> : vector<2x32xf32>
    %541 = tpu.matmul %9, %44, %cst_236 {dimension_numbers = #tpu.dot_dimension_numbers<[1], [0], [0], [1], [0, 0, 1, 1], [], []>} : vector<2x16xf32>, vector<16x32xf32>, vector<2x32xf32> -> vector<2x32xf32>
    %542 = vector.broadcast %56 : vector<1x32xf32> to vector<2x32xf32>
    %543 = arith.addf %542, %541 : vector<2x32xf32>
    %cst_237 = arith.constant dense<0.000000e+00> : vector<2x32xf32>
    %544 = tpu.matmul %526, %50, %cst_237 {dimension_numbers = #tpu.dot_dimension_numbers<[1], [0], [0], [1], [0, 0, 1, 1], [], []>} : vector<2x32xf32>, vector<32x32xf32>, vector<2x32xf32> -> vector<2x32xf32>
    %545 = vector.broadcast %62 : vector<1x32xf32> to vector<2x32xf32>
    %546 = arith.addf %544, %545 : vector<2x32xf32>
    %547 = arith.addf %543, %546 : vector<2x32xf32>
    %cst_238 = arith.constant 5.000000e-01 : f32
    %548 = vector.broadcast %cst_238 : f32 to vector<2x32xf32>
    %549 = arith.mulf %548, %547 : vector<2x32xf32>
    %550 = math.tanh %549 : vector<2x32xf32>
    %cst_239 = arith.constant 1.000000e+00 : f32
    %551 = vector.broadcast %cst_239 : f32 to vector<2x32xf32>
    %552 = arith.addf %550, %551 : vector<2x32xf32>
    %cst_240 = arith.constant 5.000000e-01 : f32
    %553 = vector.broadcast %cst_240 : f32 to vector<2x32xf32>
    %554 = arith.mulf %553, %552 : vector<2x32xf32>
    %cst_241 = arith.constant dense<0.000000e+00> : vector<2x32xf32>
    %555 = tpu.matmul %9, %46, %cst_241 {dimension_numbers = #tpu.dot_dimension_numbers<[1], [0], [0], [1], [0, 0, 1, 1], [], []>} : vector<2x16xf32>, vector<16x32xf32>, vector<2x32xf32> -> vector<2x32xf32>
    %556 = vector.broadcast %58 : vector<1x32xf32> to vector<2x32xf32>
    %557 = arith.addf %556, %555 : vector<2x32xf32>
    %cst_242 = arith.constant dense<0.000000e+00> : vector<2x32xf32>
    %558 = tpu.matmul %526, %52, %cst_242 {dimension_numbers = #tpu.dot_dimension_numbers<[1], [0], [0], [1], [0, 0, 1, 1], [], []>} : vector<2x32xf32>, vector<32x32xf32>, vector<2x32xf32> -> vector<2x32xf32>
    %559 = vector.broadcast %64 : vector<1x32xf32> to vector<2x32xf32>
    %560 = arith.addf %558, %559 : vector<2x32xf32>
    %561 = arith.mulf %540, %560 : vector<2x32xf32>
    %562 = arith.addf %557, %561 : vector<2x32xf32>
    %563 = math.tanh %562 : vector<2x32xf32>
    %cst_243 = arith.constant 1.000000e+00 : f32
    %564 = vector.broadcast %cst_243 : f32 to vector<2x32xf32>
    %565 = arith.subf %564, %554 : vector<2x32xf32>
    %566 = arith.mulf %565, %563 : vector<2x32xf32>
    %567 = arith.mulf %554, %526 : vector<2x32xf32>
    %568 = arith.addf %566, %567 : vector<2x32xf32>
    %cst_244 = arith.constant dense<0.000000e+00> : vector<2x32xf32>
    %569 = tpu.matmul %7, %42, %cst_244 {dimension_numbers = #tpu.dot_dimension_numbers<[1], [0], [0], [1], [0, 0, 1, 1], [], []>} : vector<2x16xf32>, vector<16x32xf32>, vector<2x32xf32> -> vector<2x32xf32>
    %570 = vector.broadcast %54 : vector<1x32xf32> to vector<2x32xf32>
    %571 = arith.addf %570, %569 : vector<2x32xf32>
    %cst_245 = arith.constant dense<0.000000e+00> : vector<2x32xf32>
    %572 = tpu.matmul %568, %48, %cst_245 {dimension_numbers = #tpu.dot_dimension_numbers<[1], [0], [0], [1], [0, 0, 1, 1], [], []>} : vector<2x32xf32>, vector<32x32xf32>, vector<2x32xf32> -> vector<2x32xf32>
    %573 = vector.broadcast %60 : vector<1x32xf32> to vector<2x32xf32>
    %574 = arith.addf %572, %573 : vector<2x32xf32>
    %575 = arith.addf %571, %574 : vector<2x32xf32>
    %cst_246 = arith.constant 5.000000e-01 : f32
    %576 = vector.broadcast %cst_246 : f32 to vector<2x32xf32>
    %577 = arith.mulf %576, %575 : vector<2x32xf32>
    %578 = math.tanh %577 : vector<2x32xf32>
    %cst_247 = arith.constant 1.000000e+00 : f32
    %579 = vector.broadcast %cst_247 : f32 to vector<2x32xf32>
    %580 = arith.addf %578, %579 : vector<2x32xf32>
    %cst_248 = arith.constant 5.000000e-01 : f32
    %581 = vector.broadcast %cst_248 : f32 to vector<2x32xf32>
    %582 = arith.mulf %581, %580 : vector<2x32xf32>
    %cst_249 = arith.constant dense<0.000000e+00> : vector<2x32xf32>
    %583 = tpu.matmul %7, %44, %cst_249 {dimension_numbers = #tpu.dot_dimension_numbers<[1], [0], [0], [1], [0, 0, 1, 1], [], []>} : vector<2x16xf32>, vector<16x32xf32>, vector<2x32xf32> -> vector<2x32xf32>
    %584 = vector.broadcast %56 : vector<1x32xf32> to vector<2x32xf32>
    %585 = arith.addf %584, %583 : vector<2x32xf32>
    %cst_250 = arith.constant dense<0.000000e+00> : vector<2x32xf32>
    %586 = tpu.matmul %568, %50, %cst_250 {dimension_numbers = #tpu.dot_dimension_numbers<[1], [0], [0], [1], [0, 0, 1, 1], [], []>} : vector<2x32xf32>, vector<32x32xf32>, vector<2x32xf32> -> vector<2x32xf32>
    %587 = vector.broadcast %62 : vector<1x32xf32> to vector<2x32xf32>
    %588 = arith.addf %586, %587 : vector<2x32xf32>
    %589 = arith.addf %585, %588 : vector<2x32xf32>
    %cst_251 = arith.constant 5.000000e-01 : f32
    %590 = vector.broadcast %cst_251 : f32 to vector<2x32xf32>
    %591 = arith.mulf %590, %589 : vector<2x32xf32>
    %592 = math.tanh %591 : vector<2x32xf32>
    %cst_252 = arith.constant 1.000000e+00 : f32
    %593 = vector.broadcast %cst_252 : f32 to vector<2x32xf32>
    %594 = arith.addf %592, %593 : vector<2x32xf32>
    %cst_253 = arith.constant 5.000000e-01 : f32
    %595 = vector.broadcast %cst_253 : f32 to vector<2x32xf32>
    %596 = arith.mulf %595, %594 : vector<2x32xf32>
    %cst_254 = arith.constant dense<0.000000e+00> : vector<2x32xf32>
    %597 = tpu.matmul %7, %46, %cst_254 {dimension_numbers = #tpu.dot_dimension_numbers<[1], [0], [0], [1], [0, 0, 1, 1], [], []>} : vector<2x16xf32>, vector<16x32xf32>, vector<2x32xf32> -> vector<2x32xf32>
    %598 = vector.broadcast %58 : vector<1x32xf32> to vector<2x32xf32>
    %599 = arith.addf %598, %597 : vector<2x32xf32>
    %cst_255 = arith.constant dense<0.000000e+00> : vector<2x32xf32>
    %600 = tpu.matmul %568, %52, %cst_255 {dimension_numbers = #tpu.dot_dimension_numbers<[1], [0], [0], [1], [0, 0, 1, 1], [], []>} : vector<2x32xf32>, vector<32x32xf32>, vector<2x32xf32> -> vector<2x32xf32>
    %601 = vector.broadcast %64 : vector<1x32xf32> to vector<2x32xf32>
    %602 = arith.addf %600, %601 : vector<2x32xf32>
    %603 = arith.mulf %582, %602 : vector<2x32xf32>
    %604 = arith.addf %599, %603 : vector<2x32xf32>
    %605 = math.tanh %604 : vector<2x32xf32>
    %cst_256 = arith.constant 1.000000e+00 : f32
    %606 = vector.broadcast %cst_256 : f32 to vector<2x32xf32>
    %607 = arith.subf %606, %596 : vector<2x32xf32>
    %608 = arith.mulf %607, %605 : vector<2x32xf32>
    %609 = arith.mulf %596, %568 : vector<2x32xf32>
    %610 = arith.addf %608, %609 : vector<2x32xf32>
    %cst_257 = arith.constant dense<0.000000e+00> : vector<2x32xf32>
    %611 = tpu.matmul %5, %42, %cst_257 {dimension_numbers = #tpu.dot_dimension_numbers<[1], [0], [0], [1], [0, 0, 1, 1], [], []>} : vector<2x16xf32>, vector<16x32xf32>, vector<2x32xf32> -> vector<2x32xf32>
    %612 = vector.broadcast %54 : vector<1x32xf32> to vector<2x32xf32>
    %613 = arith.addf %612, %611 : vector<2x32xf32>
    %cst_258 = arith.constant dense<0.000000e+00> : vector<2x32xf32>
    %614 = tpu.matmul %610, %48, %cst_258 {dimension_numbers = #tpu.dot_dimension_numbers<[1], [0], [0], [1], [0, 0, 1, 1], [], []>} : vector<2x32xf32>, vector<32x32xf32>, vector<2x32xf32> -> vector<2x32xf32>
    %615 = vector.broadcast %60 : vector<1x32xf32> to vector<2x32xf32>
    %616 = arith.addf %614, %615 : vector<2x32xf32>
    %617 = arith.addf %613, %616 : vector<2x32xf32>
    %cst_259 = arith.constant 5.000000e-01 : f32
    %618 = vector.broadcast %cst_259 : f32 to vector<2x32xf32>
    %619 = arith.mulf %618, %617 : vector<2x32xf32>
    %620 = math.tanh %619 : vector<2x32xf32>
    %cst_260 = arith.constant 1.000000e+00 : f32
    %621 = vector.broadcast %cst_260 : f32 to vector<2x32xf32>
    %622 = arith.addf %620, %621 : vector<2x32xf32>
    %cst_261 = arith.constant 5.000000e-01 : f32
    %623 = vector.broadcast %cst_261 : f32 to vector<2x32xf32>
    %624 = arith.mulf %623, %622 : vector<2x32xf32>
    %cst_262 = arith.constant dense<0.000000e+00> : vector<2x32xf32>
    %625 = tpu.matmul %5, %44, %cst_262 {dimension_numbers = #tpu.dot_dimension_numbers<[1], [0], [0], [1], [0, 0, 1, 1], [], []>} : vector<2x16xf32>, vector<16x32xf32>, vector<2x32xf32> -> vector<2x32xf32>
    %626 = vector.broadcast %56 : vector<1x32xf32> to vector<2x32xf32>
    %627 = arith.addf %626, %625 : vector<2x32xf32>
    %cst_263 = arith.constant dense<0.000000e+00> : vector<2x32xf32>
    %628 = tpu.matmul %610, %50, %cst_263 {dimension_numbers = #tpu.dot_dimension_numbers<[1], [0], [0], [1], [0, 0, 1, 1], [], []>} : vector<2x32xf32>, vector<32x32xf32>, vector<2x32xf32> -> vector<2x32xf32>
    %629 = vector.broadcast %62 : vector<1x32xf32> to vector<2x32xf32>
    %630 = arith.addf %628, %629 : vector<2x32xf32>
    %631 = arith.addf %627, %630 : vector<2x32xf32>
    %cst_264 = arith.constant 5.000000e-01 : f32
    %632 = vector.broadcast %cst_264 : f32 to vector<2x32xf32>
    %633 = arith.mulf %632, %631 : vector<2x32xf32>
    %634 = math.tanh %633 : vector<2x32xf32>
    %cst_265 = arith.constant 1.000000e+00 : f32
    %635 = vector.broadcast %cst_265 : f32 to vector<2x32xf32>
    %636 = arith.addf %634, %635 : vector<2x32xf32>
    %cst_266 = arith.constant 5.000000e-01 : f32
    %637 = vector.broadcast %cst_266 : f32 to vector<2x32xf32>
    %638 = arith.mulf %637, %636 : vector<2x32xf32>
    %cst_267 = arith.constant dense<0.000000e+00> : vector<2x32xf32>
    %639 = tpu.matmul %5, %46, %cst_267 {dimension_numbers = #tpu.dot_dimension_numbers<[1], [0], [0], [1], [0, 0, 1, 1], [], []>} : vector<2x16xf32>, vector<16x32xf32>, vector<2x32xf32> -> vector<2x32xf32>
    %640 = vector.broadcast %58 : vector<1x32xf32> to vector<2x32xf32>
    %641 = arith.addf %640, %639 : vector<2x32xf32>
    %cst_268 = arith.constant dense<0.000000e+00> : vector<2x32xf32>
    %642 = tpu.matmul %610, %52, %cst_268 {dimension_numbers = #tpu.dot_dimension_numbers<[1], [0], [0], [1], [0, 0, 1, 1], [], []>} : vector<2x32xf32>, vector<32x32xf32>, vector<2x32xf32> -> vector<2x32xf32>
    %643 = vector.broadcast %64 : vector<1x32xf32> to vector<2x32xf32>
    %644 = arith.addf %642, %643 : vector<2x32xf32>
    %645 = arith.mulf %624, %644 : vector<2x32xf32>
    %646 = arith.addf %641, %645 : vector<2x32xf32>
    %647 = math.tanh %646 : vector<2x32xf32>
    %cst_269 = arith.constant 1.000000e+00 : f32
    %648 = vector.broadcast %cst_269 : f32 to vector<2x32xf32>
    %649 = arith.subf %648, %638 : vector<2x32xf32>
    %650 = arith.mulf %649, %647 : vector<2x32xf32>
    %651 = arith.mulf %638, %610 : vector<2x32xf32>
    %652 = arith.addf %650, %651 : vector<2x32xf32>
    %cst_270 = arith.constant dense<0.000000e+00> : vector<2x32xf32>
    %653 = tpu.matmul %3, %42, %cst_270 {dimension_numbers = #tpu.dot_dimension_numbers<[1], [0], [0], [1], [0, 0, 1, 1], [], []>} : vector<2x16xf32>, vector<16x32xf32>, vector<2x32xf32> -> vector<2x32xf32>
    %654 = vector.broadcast %54 : vector<1x32xf32> to vector<2x32xf32>
    %655 = arith.addf %654, %653 : vector<2x32xf32>
    %cst_271 = arith.constant dense<0.000000e+00> : vector<2x32xf32>
    %656 = tpu.matmul %652, %48, %cst_271 {dimension_numbers = #tpu.dot_dimension_numbers<[1], [0], [0], [1], [0, 0, 1, 1], [], []>} : vector<2x32xf32>, vector<32x32xf32>, vector<2x32xf32> -> vector<2x32xf32>
    %657 = vector.broadcast %60 : vector<1x32xf32> to vector<2x32xf32>
    %658 = arith.addf %656, %657 : vector<2x32xf32>
    %659 = arith.addf %655, %658 : vector<2x32xf32>
    %cst_272 = arith.constant 5.000000e-01 : f32
    %660 = vector.broadcast %cst_272 : f32 to vector<2x32xf32>
    %661 = arith.mulf %660, %659 : vector<2x32xf32>
    %662 = math.tanh %661 : vector<2x32xf32>
    %cst_273 = arith.constant 1.000000e+00 : f32
    %663 = vector.broadcast %cst_273 : f32 to vector<2x32xf32>
    %664 = arith.addf %662, %663 : vector<2x32xf32>
    %cst_274 = arith.constant 5.000000e-01 : f32
    %665 = vector.broadcast %cst_274 : f32 to vector<2x32xf32>
    %666 = arith.mulf %665, %664 : vector<2x32xf32>
    %cst_275 = arith.constant dense<0.000000e+00> : vector<2x32xf32>
    %667 = tpu.matmul %3, %44, %cst_275 {dimension_numbers = #tpu.dot_dimension_numbers<[1], [0], [0], [1], [0, 0, 1, 1], [], []>} : vector<2x16xf32>, vector<16x32xf32>, vector<2x32xf32> -> vector<2x32xf32>
    %668 = vector.broadcast %56 : vector<1x32xf32> to vector<2x32xf32>
    %669 = arith.addf %668, %667 : vector<2x32xf32>
    %cst_276 = arith.constant dense<0.000000e+00> : vector<2x32xf32>
    %670 = tpu.matmul %652, %50, %cst_276 {dimension_numbers = #tpu.dot_dimension_numbers<[1], [0], [0], [1], [0, 0, 1, 1], [], []>} : vector<2x32xf32>, vector<32x32xf32>, vector<2x32xf32> -> vector<2x32xf32>
    %671 = vector.broadcast %62 : vector<1x32xf32> to vector<2x32xf32>
    %672 = arith.addf %670, %671 : vector<2x32xf32>
    %673 = arith.addf %669, %672 : vector<2x32xf32>
    %cst_277 = arith.constant 5.000000e-01 : f32
    %674 = vector.broadcast %cst_277 : f32 to vector<2x32xf32>
    %675 = arith.mulf %674, %673 : vector<2x32xf32>
    %676 = math.tanh %675 : vector<2x32xf32>
    %cst_278 = arith.constant 1.000000e+00 : f32
    %677 = vector.broadcast %cst_278 : f32 to vector<2x32xf32>
    %678 = arith.addf %676, %677 : vector<2x32xf32>
    %cst_279 = arith.constant 5.000000e-01 : f32
    %679 = vector.broadcast %cst_279 : f32 to vector<2x32xf32>
    %680 = arith.mulf %679, %678 : vector<2x32xf32>
    %cst_280 = arith.constant dense<0.000000e+00> : vector<2x32xf32>
    %681 = tpu.matmul %3, %46, %cst_280 {dimension_numbers = #tpu.dot_dimension_numbers<[1], [0], [0], [1], [0, 0, 1, 1], [], []>} : vector<2x16xf32>, vector<16x32xf32>, vector<2x32xf32> -> vector<2x32xf32>
    %682 = vector.broadcast %58 : vector<1x32xf32> to vector<2x32xf32>
    %683 = arith.addf %682, %681 : vector<2x32xf32>
    %cst_281 = arith.constant dense<0.000000e+00> : vector<2x32xf32>
    %684 = tpu.matmul %652, %52, %cst_281 {dimension_numbers = #tpu.dot_dimension_numbers<[1], [0], [0], [1], [0, 0, 1, 1], [], []>} : vector<2x32xf32>, vector<32x32xf32>, vector<2x32xf32> -> vector<2x32xf32>
    %685 = vector.broadcast %64 : vector<1x32xf32> to vector<2x32xf32>
    %686 = arith.addf %684, %685 : vector<2x32xf32>
    %687 = arith.mulf %666, %686 : vector<2x32xf32>
    %688 = arith.addf %683, %687 : vector<2x32xf32>
    %689 = math.tanh %688 : vector<2x32xf32>
    %cst_282 = arith.constant 1.000000e+00 : f32
    %690 = vector.broadcast %cst_282 : f32 to vector<2x32xf32>
    %691 = arith.subf %690, %680 : vector<2x32xf32>
    %692 = arith.mulf %691, %689 : vector<2x32xf32>
    %693 = arith.mulf %680, %652 : vector<2x32xf32>
    %694 = arith.addf %692, %693 : vector<2x32xf32>
    %cst_283 = arith.constant dense<0.000000e+00> : vector<2x32xf32>
    %695 = tpu.matmul %1, %42, %cst_283 {dimension_numbers = #tpu.dot_dimension_numbers<[1], [0], [0], [1], [0, 0, 1, 1], [], []>} : vector<2x16xf32>, vector<16x32xf32>, vector<2x32xf32> -> vector<2x32xf32>
    %696 = vector.broadcast %54 : vector<1x32xf32> to vector<2x32xf32>
    %697 = arith.addf %696, %695 : vector<2x32xf32>
    %cst_284 = arith.constant dense<0.000000e+00> : vector<2x32xf32>
    %698 = tpu.matmul %694, %48, %cst_284 {dimension_numbers = #tpu.dot_dimension_numbers<[1], [0], [0], [1], [0, 0, 1, 1], [], []>} : vector<2x32xf32>, vector<32x32xf32>, vector<2x32xf32> -> vector<2x32xf32>
    %699 = vector.broadcast %60 : vector<1x32xf32> to vector<2x32xf32>
    %700 = arith.addf %698, %699 : vector<2x32xf32>
    %701 = arith.addf %697, %700 : vector<2x32xf32>
    %cst_285 = arith.constant 5.000000e-01 : f32
    %702 = vector.broadcast %cst_285 : f32 to vector<2x32xf32>
    %703 = arith.mulf %702, %701 : vector<2x32xf32>
    %704 = math.tanh %703 : vector<2x32xf32>
    %cst_286 = arith.constant 1.000000e+00 : f32
    %705 = vector.broadcast %cst_286 : f32 to vector<2x32xf32>
    %706 = arith.addf %704, %705 : vector<2x32xf32>
    %cst_287 = arith.constant 5.000000e-01 : f32
    %707 = vector.broadcast %cst_287 : f32 to vector<2x32xf32>
    %708 = arith.mulf %707, %706 : vector<2x32xf32>
    %cst_288 = arith.constant dense<0.000000e+00> : vector<2x32xf32>
    %709 = tpu.matmul %1, %44, %cst_288 {dimension_numbers = #tpu.dot_dimension_numbers<[1], [0], [0], [1], [0, 0, 1, 1], [], []>} : vector<2x16xf32>, vector<16x32xf32>, vector<2x32xf32> -> vector<2x32xf32>
    %710 = vector.broadcast %56 : vector<1x32xf32> to vector<2x32xf32>
    %711 = arith.addf %710, %709 : vector<2x32xf32>
    %cst_289 = arith.constant dense<0.000000e+00> : vector<2x32xf32>
    %712 = tpu.matmul %694, %50, %cst_289 {dimension_numbers = #tpu.dot_dimension_numbers<[1], [0], [0], [1], [0, 0, 1, 1], [], []>} : vector<2x32xf32>, vector<32x32xf32>, vector<2x32xf32> -> vector<2x32xf32>
    %713 = vector.broadcast %62 : vector<1x32xf32> to vector<2x32xf32>
    %714 = arith.addf %712, %713 : vector<2x32xf32>
    %715 = arith.addf %711, %714 : vector<2x32xf32>
    %cst_290 = arith.constant 5.000000e-01 : f32
    %716 = vector.broadcast %cst_290 : f32 to vector<2x32xf32>
    %717 = arith.mulf %716, %715 : vector<2x32xf32>
    %718 = math.tanh %717 : vector<2x32xf32>
    %cst_291 = arith.constant 1.000000e+00 : f32
    %719 = vector.broadcast %cst_291 : f32 to vector<2x32xf32>
    %720 = arith.addf %718, %719 : vector<2x32xf32>
    %cst_292 = arith.constant 5.000000e-01 : f32
    %721 = vector.broadcast %cst_292 : f32 to vector<2x32xf32>
    %722 = arith.mulf %721, %720 : vector<2x32xf32>
    %cst_293 = arith.constant dense<0.000000e+00> : vector<2x32xf32>
    %723 = tpu.matmul %1, %46, %cst_293 {dimension_numbers = #tpu.dot_dimension_numbers<[1], [0], [0], [1], [0, 0, 1, 1], [], []>} : vector<2x16xf32>, vector<16x32xf32>, vector<2x32xf32> -> vector<2x32xf32>
    %724 = vector.broadcast %58 : vector<1x32xf32> to vector<2x32xf32>
    %725 = arith.addf %724, %723 : vector<2x32xf32>
    %cst_294 = arith.constant dense<0.000000e+00> : vector<2x32xf32>
    %726 = tpu.matmul %694, %52, %cst_294 {dimension_numbers = #tpu.dot_dimension_numbers<[1], [0], [0], [1], [0, 0, 1, 1], [], []>} : vector<2x32xf32>, vector<32x32xf32>, vector<2x32xf32> -> vector<2x32xf32>
    %727 = vector.broadcast %64 : vector<1x32xf32> to vector<2x32xf32>
    %728 = arith.addf %726, %727 : vector<2x32xf32>
    %729 = arith.mulf %708, %728 : vector<2x32xf32>
    %730 = arith.addf %725, %729 : vector<2x32xf32>
    %731 = math.tanh %730 : vector<2x32xf32>
    %cst_295 = arith.constant 1.000000e+00 : f32
    %732 = vector.broadcast %cst_295 : f32 to vector<2x32xf32>
    %733 = arith.subf %732, %722 : vector<2x32xf32>
    %734 = arith.mulf %733, %731 : vector<2x32xf32>
    %735 = arith.mulf %722, %694 : vector<2x32xf32>
    %736 = arith.addf %734, %735 : vector<2x32xf32>
    %c0_296 = arith.constant 0 : index
    %c0_297 = arith.constant 0 : index
    %c0_298 = arith.constant 0 : index
    %737 = vector.load %arg9[%c0_296, %c0_297, %c0_298] : memref<3x32x32xf32, #tpu.memory_space<vmem>>, vector<1x32x32xf32>
    %738 = vector.shape_cast %737 : vector<1x32x32xf32> to vector<32x32xf32>
    %c1_299 = arith.constant 1 : index
    %c0_300 = arith.constant 0 : index
    %c0_301 = arith.constant 0 : index
    %739 = vector.load %arg9[%c1_299, %c0_300, %c0_301] : memref<3x32x32xf32, #tpu.memory_space<vmem>>, vector<1x32x32xf32>
    %740 = vector.shape_cast %739 : vector<1x32x32xf32> to vector<32x32xf32>
    %c2_302 = arith.constant 2 : index
    %c0_303 = arith.constant 0 : index
    %c0_304 = arith.constant 0 : index
    %741 = vector.load %arg9[%c2_302, %c0_303, %c0_304] : memref<3x32x32xf32, #tpu.memory_space<vmem>>, vector<1x32x32xf32>
    %742 = vector.shape_cast %741 : vector<1x32x32xf32> to vector<32x32xf32>
    %c0_305 = arith.constant 0 : index
    %c0_306 = arith.constant 0 : index
    %c0_307 = arith.constant 0 : index
    %743 = vector.load %arg10[%c0_305, %c0_306, %c0_307] : memref<3x32x32xf32, #tpu.memory_space<vmem>>, vector<1x32x32xf32>
    %744 = vector.shape_cast %743 : vector<1x32x32xf32> to vector<32x32xf32>
    %c1_308 = arith.constant 1 : index
    %c0_309 = arith.constant 0 : index
    %c0_310 = arith.constant 0 : index
    %745 = vector.load %arg10[%c1_308, %c0_309, %c0_310] : memref<3x32x32xf32, #tpu.memory_space<vmem>>, vector<1x32x32xf32>
    %746 = vector.shape_cast %745 : vector<1x32x32xf32> to vector<32x32xf32>
    %c2_311 = arith.constant 2 : index
    %c0_312 = arith.constant 0 : index
    %c0_313 = arith.constant 0 : index
    %747 = vector.load %arg10[%c2_311, %c0_312, %c0_313] : memref<3x32x32xf32, #tpu.memory_space<vmem>>, vector<1x32x32xf32>
    %748 = vector.shape_cast %747 : vector<1x32x32xf32> to vector<32x32xf32>
    %c0_314 = arith.constant 0 : index
    %c0_315 = arith.constant 0 : index
    %c0_316 = arith.constant 0 : index
    %749 = vector.load %arg11[%c0_314, %c0_315, %c0_316] : memref<3x32x32xf32, #tpu.memory_space<vmem>>, vector<1x32x32xf32>
    %750 = vector.shape_cast %749 : vector<1x32x32xf32> to vector<32x32xf32>
    %c1_317 = arith.constant 1 : index
    %c0_318 = arith.constant 0 : index
    %c0_319 = arith.constant 0 : index
    %751 = vector.load %arg11[%c1_317, %c0_318, %c0_319] : memref<3x32x32xf32, #tpu.memory_space<vmem>>, vector<1x32x32xf32>
    %752 = vector.shape_cast %751 : vector<1x32x32xf32> to vector<32x32xf32>
    %c2_320 = arith.constant 2 : index
    %c0_321 = arith.constant 0 : index
    %c0_322 = arith.constant 0 : index
    %753 = vector.load %arg11[%c2_320, %c0_321, %c0_322] : memref<3x32x32xf32, #tpu.memory_space<vmem>>, vector<1x32x32xf32>
    %754 = vector.shape_cast %753 : vector<1x32x32xf32> to vector<32x32xf32>
    %c0_323 = arith.constant 0 : index
    %c0_324 = arith.constant 0 : index
    %c0_325 = arith.constant 0 : index
    %755 = vector.load %arg12[%c0_323, %c0_324, %c0_325] : memref<3x1x32xf32, #tpu.memory_space<vmem>>, vector<1x1x32xf32>
    %756 = vector.shape_cast %755 : vector<1x1x32xf32> to vector<1x32xf32>
    %c1_326 = arith.constant 1 : index
    %c0_327 = arith.constant 0 : index
    %c0_328 = arith.constant 0 : index
    %757 = vector.load %arg12[%c1_326, %c0_327, %c0_328] : memref<3x1x32xf32, #tpu.memory_space<vmem>>, vector<1x1x32xf32>
    %758 = vector.shape_cast %757 : vector<1x1x32xf32> to vector<1x32xf32>
    %c2_329 = arith.constant 2 : index
    %c0_330 = arith.constant 0 : index
    %c0_331 = arith.constant 0 : index
    %759 = vector.load %arg12[%c2_329, %c0_330, %c0_331] : memref<3x1x32xf32, #tpu.memory_space<vmem>>, vector<1x1x32xf32>
    %760 = vector.shape_cast %759 : vector<1x1x32xf32> to vector<1x32xf32>
    %c0_332 = arith.constant 0 : index
    %c0_333 = arith.constant 0 : index
    %c0_334 = arith.constant 0 : index
    %761 = vector.load %arg13[%c0_332, %c0_333, %c0_334] : memref<3x1x32xf32, #tpu.memory_space<vmem>>, vector<1x1x32xf32>
    %762 = vector.shape_cast %761 : vector<1x1x32xf32> to vector<1x32xf32>
    %c1_335 = arith.constant 1 : index
    %c0_336 = arith.constant 0 : index
    %c0_337 = arith.constant 0 : index
    %763 = vector.load %arg13[%c1_335, %c0_336, %c0_337] : memref<3x1x32xf32, #tpu.memory_space<vmem>>, vector<1x1x32xf32>
    %764 = vector.shape_cast %763 : vector<1x1x32xf32> to vector<1x32xf32>
    %c2_338 = arith.constant 2 : index
    %c0_339 = arith.constant 0 : index
    %c0_340 = arith.constant 0 : index
    %765 = vector.load %arg13[%c2_338, %c0_339, %c0_340] : memref<3x1x32xf32, #tpu.memory_space<vmem>>, vector<1x1x32xf32>
    %766 = vector.shape_cast %765 : vector<1x1x32xf32> to vector<1x32xf32>
    %c0_341 = arith.constant 0 : index
    %c0_342 = arith.constant 0 : index
    %c0_343 = arith.constant 0 : index
    %767 = vector.load %arg14[%c0_341, %c0_342, %c0_343] : memref<3x32x32xf32, #tpu.memory_space<vmem>>, vector<1x32x32xf32>
    %768 = vector.shape_cast %767 : vector<1x32x32xf32> to vector<32x32xf32>
    %c1_344 = arith.constant 1 : index
    %c0_345 = arith.constant 0 : index
    %c0_346 = arith.constant 0 : index
    %769 = vector.load %arg14[%c1_344, %c0_345, %c0_346] : memref<3x32x32xf32, #tpu.memory_space<vmem>>, vector<1x32x32xf32>
    %770 = vector.shape_cast %769 : vector<1x32x32xf32> to vector<32x32xf32>
    %c2_347 = arith.constant 2 : index
    %c0_348 = arith.constant 0 : index
    %c0_349 = arith.constant 0 : index
    %771 = vector.load %arg14[%c2_347, %c0_348, %c0_349] : memref<3x32x32xf32, #tpu.memory_space<vmem>>, vector<1x32x32xf32>
    %772 = vector.shape_cast %771 : vector<1x32x32xf32> to vector<32x32xf32>
    %c0_350 = arith.constant 0 : index
    %c0_351 = arith.constant 0 : index
    %c0_352 = arith.constant 0 : index
    %773 = vector.load %arg15[%c0_350, %c0_351, %c0_352] : memref<3x32x32xf32, #tpu.memory_space<vmem>>, vector<1x32x32xf32>
    %774 = vector.shape_cast %773 : vector<1x32x32xf32> to vector<32x32xf32>
    %c1_353 = arith.constant 1 : index
    %c0_354 = arith.constant 0 : index
    %c0_355 = arith.constant 0 : index
    %775 = vector.load %arg15[%c1_353, %c0_354, %c0_355] : memref<3x32x32xf32, #tpu.memory_space<vmem>>, vector<1x32x32xf32>
    %776 = vector.shape_cast %775 : vector<1x32x32xf32> to vector<32x32xf32>
    %c2_356 = arith.constant 2 : index
    %c0_357 = arith.constant 0 : index
    %c0_358 = arith.constant 0 : index
    %777 = vector.load %arg15[%c2_356, %c0_357, %c0_358] : memref<3x32x32xf32, #tpu.memory_space<vmem>>, vector<1x32x32xf32>
    %778 = vector.shape_cast %777 : vector<1x32x32xf32> to vector<32x32xf32>
    %c0_359 = arith.constant 0 : index
    %c0_360 = arith.constant 0 : index
    %c0_361 = arith.constant 0 : index
    %779 = vector.load %arg16[%c0_359, %c0_360, %c0_361] : memref<3x32x32xf32, #tpu.memory_space<vmem>>, vector<1x32x32xf32>
    %780 = vector.shape_cast %779 : vector<1x32x32xf32> to vector<32x32xf32>
    %c1_362 = arith.constant 1 : index
    %c0_363 = arith.constant 0 : index
    %c0_364 = arith.constant 0 : index
    %781 = vector.load %arg16[%c1_362, %c0_363, %c0_364] : memref<3x32x32xf32, #tpu.memory_space<vmem>>, vector<1x32x32xf32>
    %782 = vector.shape_cast %781 : vector<1x32x32xf32> to vector<32x32xf32>
    %c2_365 = arith.constant 2 : index
    %c0_366 = arith.constant 0 : index
    %c0_367 = arith.constant 0 : index
    %783 = vector.load %arg16[%c2_365, %c0_366, %c0_367] : memref<3x32x32xf32, #tpu.memory_space<vmem>>, vector<1x32x32xf32>
    %784 = vector.shape_cast %783 : vector<1x32x32xf32> to vector<32x32xf32>
    %c0_368 = arith.constant 0 : index
    %c0_369 = arith.constant 0 : index
    %c0_370 = arith.constant 0 : index
    %785 = vector.load %arg17[%c0_368, %c0_369, %c0_370] : memref<3x1x32xf32, #tpu.memory_space<vmem>>, vector<1x1x32xf32>
    %786 = vector.shape_cast %785 : vector<1x1x32xf32> to vector<1x32xf32>
    %c1_371 = arith.constant 1 : index
    %c0_372 = arith.constant 0 : index
    %c0_373 = arith.constant 0 : index
    %787 = vector.load %arg17[%c1_371, %c0_372, %c0_373] : memref<3x1x32xf32, #tpu.memory_space<vmem>>, vector<1x1x32xf32>
    %788 = vector.shape_cast %787 : vector<1x1x32xf32> to vector<1x32xf32>
    %c2_374 = arith.constant 2 : index
    %c0_375 = arith.constant 0 : index
    %c0_376 = arith.constant 0 : index
    %789 = vector.load %arg17[%c2_374, %c0_375, %c0_376] : memref<3x1x32xf32, #tpu.memory_space<vmem>>, vector<1x1x32xf32>
    %790 = vector.shape_cast %789 : vector<1x1x32xf32> to vector<1x32xf32>
    %c0_377 = arith.constant 0 : index
    %c0_378 = arith.constant 0 : index
    %c0_379 = arith.constant 0 : index
    %791 = vector.load %arg18[%c0_377, %c0_378, %c0_379] : memref<3x1x32xf32, #tpu.memory_space<vmem>>, vector<1x1x32xf32>
    %792 = vector.shape_cast %791 : vector<1x1x32xf32> to vector<1x32xf32>
    %c1_380 = arith.constant 1 : index
    %c0_381 = arith.constant 0 : index
    %c0_382 = arith.constant 0 : index
    %793 = vector.load %arg18[%c1_380, %c0_381, %c0_382] : memref<3x1x32xf32, #tpu.memory_space<vmem>>, vector<1x1x32xf32>
    %794 = vector.shape_cast %793 : vector<1x1x32xf32> to vector<1x32xf32>
    %c2_383 = arith.constant 2 : index
    %c0_384 = arith.constant 0 : index
    %c0_385 = arith.constant 0 : index
    %795 = vector.load %arg18[%c2_383, %c0_384, %c0_385] : memref<3x1x32xf32, #tpu.memory_space<vmem>>, vector<1x1x32xf32>
    %796 = vector.shape_cast %795 : vector<1x1x32xf32> to vector<1x32xf32>
    %cst_386 = arith.constant dense<0.000000e+00> : vector<2x32xf32>
    %797 = tpu.matmul %106, %738, %cst_386 {dimension_numbers = #tpu.dot_dimension_numbers<[1], [0], [0], [1], [0, 0, 1, 1], [], []>} : vector<2x32xf32>, vector<32x32xf32>, vector<2x32xf32> -> vector<2x32xf32>
    %798 = vector.broadcast %756 : vector<1x32xf32> to vector<2x32xf32>
    %799 = arith.addf %798, %797 : vector<2x32xf32>
    %cst_387 = arith.constant dense<0.000000e+00> : vector<2x32xf32>
    %800 = tpu.matmul %736, %744, %cst_387 {dimension_numbers = #tpu.dot_dimension_numbers<[1], [0], [0], [1], [0, 0, 1, 1], [], []>} : vector<2x32xf32>, vector<32x32xf32>, vector<2x32xf32> -> vector<2x32xf32>
    %801 = arith.addf %799, %800 : vector<2x32xf32>
    %cst_388 = arith.constant dense<0.000000e+00> : vector<2x32xf32>
    %802 = tpu.matmul %16, %750, %cst_388 {dimension_numbers = #tpu.dot_dimension_numbers<[1], [0], [0], [1], [0, 0, 1, 1], [], []>} : vector<2x32xf32>, vector<32x32xf32>, vector<2x32xf32> -> vector<2x32xf32>
    %803 = vector.broadcast %762 : vector<1x32xf32> to vector<2x32xf32>
    %804 = arith.addf %802, %803 : vector<2x32xf32>
    %805 = arith.addf %801, %804 : vector<2x32xf32>
    %cst_389 = arith.constant 5.000000e-01 : f32
    %806 = vector.broadcast %cst_389 : f32 to vector<2x32xf32>
    %807 = arith.mulf %806, %805 : vector<2x32xf32>
    %808 = math.tanh %807 : vector<2x32xf32>
    %cst_390 = arith.constant 1.000000e+00 : f32
    %809 = vector.broadcast %cst_390 : f32 to vector<2x32xf32>
    %810 = arith.addf %808, %809 : vector<2x32xf32>
    %cst_391 = arith.constant 5.000000e-01 : f32
    %811 = vector.broadcast %cst_391 : f32 to vector<2x32xf32>
    %812 = arith.mulf %811, %810 : vector<2x32xf32>
    %cst_392 = arith.constant dense<0.000000e+00> : vector<2x32xf32>
    %813 = tpu.matmul %106, %740, %cst_392 {dimension_numbers = #tpu.dot_dimension_numbers<[1], [0], [0], [1], [0, 0, 1, 1], [], []>} : vector<2x32xf32>, vector<32x32xf32>, vector<2x32xf32> -> vector<2x32xf32>
    %814 = vector.broadcast %758 : vector<1x32xf32> to vector<2x32xf32>
    %815 = arith.addf %814, %813 : vector<2x32xf32>
    %cst_393 = arith.constant dense<0.000000e+00> : vector<2x32xf32>
    %816 = tpu.matmul %736, %746, %cst_393 {dimension_numbers = #tpu.dot_dimension_numbers<[1], [0], [0], [1], [0, 0, 1, 1], [], []>} : vector<2x32xf32>, vector<32x32xf32>, vector<2x32xf32> -> vector<2x32xf32>
    %817 = arith.addf %815, %816 : vector<2x32xf32>
    %cst_394 = arith.constant dense<0.000000e+00> : vector<2x32xf32>
    %818 = tpu.matmul %16, %752, %cst_394 {dimension_numbers = #tpu.dot_dimension_numbers<[1], [0], [0], [1], [0, 0, 1, 1], [], []>} : vector<2x32xf32>, vector<32x32xf32>, vector<2x32xf32> -> vector<2x32xf32>
    %819 = vector.broadcast %764 : vector<1x32xf32> to vector<2x32xf32>
    %820 = arith.addf %818, %819 : vector<2x32xf32>
    %821 = arith.addf %817, %820 : vector<2x32xf32>
    %cst_395 = arith.constant 5.000000e-01 : f32
    %822 = vector.broadcast %cst_395 : f32 to vector<2x32xf32>
    %823 = arith.mulf %822, %821 : vector<2x32xf32>
    %824 = math.tanh %823 : vector<2x32xf32>
    %cst_396 = arith.constant 1.000000e+00 : f32
    %825 = vector.broadcast %cst_396 : f32 to vector<2x32xf32>
    %826 = arith.addf %824, %825 : vector<2x32xf32>
    %cst_397 = arith.constant 5.000000e-01 : f32
    %827 = vector.broadcast %cst_397 : f32 to vector<2x32xf32>
    %828 = arith.mulf %827, %826 : vector<2x32xf32>
    %cst_398 = arith.constant dense<0.000000e+00> : vector<2x32xf32>
    %829 = tpu.matmul %106, %742, %cst_398 {dimension_numbers = #tpu.dot_dimension_numbers<[1], [0], [0], [1], [0, 0, 1, 1], [], []>} : vector<2x32xf32>, vector<32x32xf32>, vector<2x32xf32> -> vector<2x32xf32>
    %830 = vector.broadcast %760 : vector<1x32xf32> to vector<2x32xf32>
    %831 = arith.addf %830, %829 : vector<2x32xf32>
    %cst_399 = arith.constant dense<0.000000e+00> : vector<2x32xf32>
    %832 = tpu.matmul %736, %748, %cst_399 {dimension_numbers = #tpu.dot_dimension_numbers<[1], [0], [0], [1], [0, 0, 1, 1], [], []>} : vector<2x32xf32>, vector<32x32xf32>, vector<2x32xf32> -> vector<2x32xf32>
    %833 = arith.addf %831, %832 : vector<2x32xf32>
    %cst_400 = arith.constant dense<0.000000e+00> : vector<2x32xf32>
    %834 = tpu.matmul %16, %754, %cst_400 {dimension_numbers = #tpu.dot_dimension_numbers<[1], [0], [0], [1], [0, 0, 1, 1], [], []>} : vector<2x32xf32>, vector<32x32xf32>, vector<2x32xf32> -> vector<2x32xf32>
    %835 = vector.broadcast %766 : vector<1x32xf32> to vector<2x32xf32>
    %836 = arith.addf %834, %835 : vector<2x32xf32>
    %837 = arith.mulf %812, %836 : vector<2x32xf32>
    %838 = arith.addf %833, %837 : vector<2x32xf32>
    %839 = math.tanh %838 : vector<2x32xf32>
    %cst_401 = arith.constant 1.000000e+00 : f32
    %840 = vector.broadcast %cst_401 : f32 to vector<2x32xf32>
    %841 = arith.subf %840, %828 : vector<2x32xf32>
    %842 = arith.mulf %841, %839 : vector<2x32xf32>
    %843 = arith.mulf %828, %16 : vector<2x32xf32>
    %844 = arith.addf %842, %843 : vector<2x32xf32>
    %cst_402 = arith.constant dense<0.000000e+00> : vector<2x32xf32>
    %845 = tpu.matmul %148, %738, %cst_402 {dimension_numbers = #tpu.dot_dimension_numbers<[1], [0], [0], [1], [0, 0, 1, 1], [], []>} : vector<2x32xf32>, vector<32x32xf32>, vector<2x32xf32> -> vector<2x32xf32>
    %846 = vector.broadcast %756 : vector<1x32xf32> to vector<2x32xf32>
    %847 = arith.addf %846, %845 : vector<2x32xf32>
    %cst_403 = arith.constant dense<0.000000e+00> : vector<2x32xf32>
    %848 = tpu.matmul %694, %744, %cst_403 {dimension_numbers = #tpu.dot_dimension_numbers<[1], [0], [0], [1], [0, 0, 1, 1], [], []>} : vector<2x32xf32>, vector<32x32xf32>, vector<2x32xf32> -> vector<2x32xf32>
    %849 = arith.addf %847, %848 : vector<2x32xf32>
    %cst_404 = arith.constant dense<0.000000e+00> : vector<2x32xf32>
    %850 = tpu.matmul %844, %750, %cst_404 {dimension_numbers = #tpu.dot_dimension_numbers<[1], [0], [0], [1], [0, 0, 1, 1], [], []>} : vector<2x32xf32>, vector<32x32xf32>, vector<2x32xf32> -> vector<2x32xf32>
    %851 = vector.broadcast %762 : vector<1x32xf32> to vector<2x32xf32>
    %852 = arith.addf %850, %851 : vector<2x32xf32>
    %853 = arith.addf %849, %852 : vector<2x32xf32>
    %cst_405 = arith.constant 5.000000e-01 : f32
    %854 = vector.broadcast %cst_405 : f32 to vector<2x32xf32>
    %855 = arith.mulf %854, %853 : vector<2x32xf32>
    %856 = math.tanh %855 : vector<2x32xf32>
    %cst_406 = arith.constant 1.000000e+00 : f32
    %857 = vector.broadcast %cst_406 : f32 to vector<2x32xf32>
    %858 = arith.addf %856, %857 : vector<2x32xf32>
    %cst_407 = arith.constant 5.000000e-01 : f32
    %859 = vector.broadcast %cst_407 : f32 to vector<2x32xf32>
    %860 = arith.mulf %859, %858 : vector<2x32xf32>
    %cst_408 = arith.constant dense<0.000000e+00> : vector<2x32xf32>
    %861 = tpu.matmul %148, %740, %cst_408 {dimension_numbers = #tpu.dot_dimension_numbers<[1], [0], [0], [1], [0, 0, 1, 1], [], []>} : vector<2x32xf32>, vector<32x32xf32>, vector<2x32xf32> -> vector<2x32xf32>
    %862 = vector.broadcast %758 : vector<1x32xf32> to vector<2x32xf32>
    %863 = arith.addf %862, %861 : vector<2x32xf32>
    %cst_409 = arith.constant dense<0.000000e+00> : vector<2x32xf32>
    %864 = tpu.matmul %694, %746, %cst_409 {dimension_numbers = #tpu.dot_dimension_numbers<[1], [0], [0], [1], [0, 0, 1, 1], [], []>} : vector<2x32xf32>, vector<32x32xf32>, vector<2x32xf32> -> vector<2x32xf32>
    %865 = arith.addf %863, %864 : vector<2x32xf32>
    %cst_410 = arith.constant dense<0.000000e+00> : vector<2x32xf32>
    %866 = tpu.matmul %844, %752, %cst_410 {dimension_numbers = #tpu.dot_dimension_numbers<[1], [0], [0], [1], [0, 0, 1, 1], [], []>} : vector<2x32xf32>, vector<32x32xf32>, vector<2x32xf32> -> vector<2x32xf32>
    %867 = vector.broadcast %764 : vector<1x32xf32> to vector<2x32xf32>
    %868 = arith.addf %866, %867 : vector<2x32xf32>
    %869 = arith.addf %865, %868 : vector<2x32xf32>
    %cst_411 = arith.constant 5.000000e-01 : f32
    %870 = vector.broadcast %cst_411 : f32 to vector<2x32xf32>
    %871 = arith.mulf %870, %869 : vector<2x32xf32>
    %872 = math.tanh %871 : vector<2x32xf32>
    %cst_412 = arith.constant 1.000000e+00 : f32
    %873 = vector.broadcast %cst_412 : f32 to vector<2x32xf32>
    %874 = arith.addf %872, %873 : vector<2x32xf32>
    %cst_413 = arith.constant 5.000000e-01 : f32
    %875 = vector.broadcast %cst_413 : f32 to vector<2x32xf32>
    %876 = arith.mulf %875, %874 : vector<2x32xf32>
    %cst_414 = arith.constant dense<0.000000e+00> : vector<2x32xf32>
    %877 = tpu.matmul %148, %742, %cst_414 {dimension_numbers = #tpu.dot_dimension_numbers<[1], [0], [0], [1], [0, 0, 1, 1], [], []>} : vector<2x32xf32>, vector<32x32xf32>, vector<2x32xf32> -> vector<2x32xf32>
    %878 = vector.broadcast %760 : vector<1x32xf32> to vector<2x32xf32>
    %879 = arith.addf %878, %877 : vector<2x32xf32>
    %cst_415 = arith.constant dense<0.000000e+00> : vector<2x32xf32>
    %880 = tpu.matmul %694, %748, %cst_415 {dimension_numbers = #tpu.dot_dimension_numbers<[1], [0], [0], [1], [0, 0, 1, 1], [], []>} : vector<2x32xf32>, vector<32x32xf32>, vector<2x32xf32> -> vector<2x32xf32>
    %881 = arith.addf %879, %880 : vector<2x32xf32>
    %cst_416 = arith.constant dense<0.000000e+00> : vector<2x32xf32>
    %882 = tpu.matmul %844, %754, %cst_416 {dimension_numbers = #tpu.dot_dimension_numbers<[1], [0], [0], [1], [0, 0, 1, 1], [], []>} : vector<2x32xf32>, vector<32x32xf32>, vector<2x32xf32> -> vector<2x32xf32>
    %883 = vector.broadcast %766 : vector<1x32xf32> to vector<2x32xf32>
    %884 = arith.addf %882, %883 : vector<2x32xf32>
    %885 = arith.mulf %860, %884 : vector<2x32xf32>
    %886 = arith.addf %881, %885 : vector<2x32xf32>
    %887 = math.tanh %886 : vector<2x32xf32>
    %cst_417 = arith.constant 1.000000e+00 : f32
    %888 = vector.broadcast %cst_417 : f32 to vector<2x32xf32>
    %889 = arith.subf %888, %876 : vector<2x32xf32>
    %890 = arith.mulf %889, %887 : vector<2x32xf32>
    %891 = arith.mulf %876, %844 : vector<2x32xf32>
    %892 = arith.addf %890, %891 : vector<2x32xf32>
    %cst_418 = arith.constant dense<0.000000e+00> : vector<2x32xf32>
    %893 = tpu.matmul %190, %738, %cst_418 {dimension_numbers = #tpu.dot_dimension_numbers<[1], [0], [0], [1], [0, 0, 1, 1], [], []>} : vector<2x32xf32>, vector<32x32xf32>, vector<2x32xf32> -> vector<2x32xf32>
    %894 = vector.broadcast %756 : vector<1x32xf32> to vector<2x32xf32>
    %895 = arith.addf %894, %893 : vector<2x32xf32>
    %cst_419 = arith.constant dense<0.000000e+00> : vector<2x32xf32>
    %896 = tpu.matmul %652, %744, %cst_419 {dimension_numbers = #tpu.dot_dimension_numbers<[1], [0], [0], [1], [0, 0, 1, 1], [], []>} : vector<2x32xf32>, vector<32x32xf32>, vector<2x32xf32> -> vector<2x32xf32>
    %897 = arith.addf %895, %896 : vector<2x32xf32>
    %cst_420 = arith.constant dense<0.000000e+00> : vector<2x32xf32>
    %898 = tpu.matmul %892, %750, %cst_420 {dimension_numbers = #tpu.dot_dimension_numbers<[1], [0], [0], [1], [0, 0, 1, 1], [], []>} : vector<2x32xf32>, vector<32x32xf32>, vector<2x32xf32> -> vector<2x32xf32>
    %899 = vector.broadcast %762 : vector<1x32xf32> to vector<2x32xf32>
    %900 = arith.addf %898, %899 : vector<2x32xf32>
    %901 = arith.addf %897, %900 : vector<2x32xf32>
    %cst_421 = arith.constant 5.000000e-01 : f32
    %902 = vector.broadcast %cst_421 : f32 to vector<2x32xf32>
    %903 = arith.mulf %902, %901 : vector<2x32xf32>
    %904 = math.tanh %903 : vector<2x32xf32>
    %cst_422 = arith.constant 1.000000e+00 : f32
    %905 = vector.broadcast %cst_422 : f32 to vector<2x32xf32>
    %906 = arith.addf %904, %905 : vector<2x32xf32>
    %cst_423 = arith.constant 5.000000e-01 : f32
    %907 = vector.broadcast %cst_423 : f32 to vector<2x32xf32>
    %908 = arith.mulf %907, %906 : vector<2x32xf32>
    %cst_424 = arith.constant dense<0.000000e+00> : vector<2x32xf32>
    %909 = tpu.matmul %190, %740, %cst_424 {dimension_numbers = #tpu.dot_dimension_numbers<[1], [0], [0], [1], [0, 0, 1, 1], [], []>} : vector<2x32xf32>, vector<32x32xf32>, vector<2x32xf32> -> vector<2x32xf32>
    %910 = vector.broadcast %758 : vector<1x32xf32> to vector<2x32xf32>
    %911 = arith.addf %910, %909 : vector<2x32xf32>
    %cst_425 = arith.constant dense<0.000000e+00> : vector<2x32xf32>
    %912 = tpu.matmul %652, %746, %cst_425 {dimension_numbers = #tpu.dot_dimension_numbers<[1], [0], [0], [1], [0, 0, 1, 1], [], []>} : vector<2x32xf32>, vector<32x32xf32>, vector<2x32xf32> -> vector<2x32xf32>
    %913 = arith.addf %911, %912 : vector<2x32xf32>
    %cst_426 = arith.constant dense<0.000000e+00> : vector<2x32xf32>
    %914 = tpu.matmul %892, %752, %cst_426 {dimension_numbers = #tpu.dot_dimension_numbers<[1], [0], [0], [1], [0, 0, 1, 1], [], []>} : vector<2x32xf32>, vector<32x32xf32>, vector<2x32xf32> -> vector<2x32xf32>
    %915 = vector.broadcast %764 : vector<1x32xf32> to vector<2x32xf32>
    %916 = arith.addf %914, %915 : vector<2x32xf32>
    %917 = arith.addf %913, %916 : vector<2x32xf32>
    %cst_427 = arith.constant 5.000000e-01 : f32
    %918 = vector.broadcast %cst_427 : f32 to vector<2x32xf32>
    %919 = arith.mulf %918, %917 : vector<2x32xf32>
    %920 = math.tanh %919 : vector<2x32xf32>
    %cst_428 = arith.constant 1.000000e+00 : f32
    %921 = vector.broadcast %cst_428 : f32 to vector<2x32xf32>
    %922 = arith.addf %920, %921 : vector<2x32xf32>
    %cst_429 = arith.constant 5.000000e-01 : f32
    %923 = vector.broadcast %cst_429 : f32 to vector<2x32xf32>
    %924 = arith.mulf %923, %922 : vector<2x32xf32>
    %cst_430 = arith.constant dense<0.000000e+00> : vector<2x32xf32>
    %925 = tpu.matmul %190, %742, %cst_430 {dimension_numbers = #tpu.dot_dimension_numbers<[1], [0], [0], [1], [0, 0, 1, 1], [], []>} : vector<2x32xf32>, vector<32x32xf32>, vector<2x32xf32> -> vector<2x32xf32>
    %926 = vector.broadcast %760 : vector<1x32xf32> to vector<2x32xf32>
    %927 = arith.addf %926, %925 : vector<2x32xf32>
    %cst_431 = arith.constant dense<0.000000e+00> : vector<2x32xf32>
    %928 = tpu.matmul %652, %748, %cst_431 {dimension_numbers = #tpu.dot_dimension_numbers<[1], [0], [0], [1], [0, 0, 1, 1], [], []>} : vector<2x32xf32>, vector<32x32xf32>, vector<2x32xf32> -> vector<2x32xf32>
    %929 = arith.addf %927, %928 : vector<2x32xf32>
    %cst_432 = arith.constant dense<0.000000e+00> : vector<2x32xf32>
    %930 = tpu.matmul %892, %754, %cst_432 {dimension_numbers = #tpu.dot_dimension_numbers<[1], [0], [0], [1], [0, 0, 1, 1], [], []>} : vector<2x32xf32>, vector<32x32xf32>, vector<2x32xf32> -> vector<2x32xf32>
    %931 = vector.broadcast %766 : vector<1x32xf32> to vector<2x32xf32>
    %932 = arith.addf %930, %931 : vector<2x32xf32>
    %933 = arith.mulf %908, %932 : vector<2x32xf32>
    %934 = arith.addf %929, %933 : vector<2x32xf32>
    %935 = math.tanh %934 : vector<2x32xf32>
    %cst_433 = arith.constant 1.000000e+00 : f32
    %936 = vector.broadcast %cst_433 : f32 to vector<2x32xf32>
    %937 = arith.subf %936, %924 : vector<2x32xf32>
    %938 = arith.mulf %937, %935 : vector<2x32xf32>
    %939 = arith.mulf %924, %892 : vector<2x32xf32>
    %940 = arith.addf %938, %939 : vector<2x32xf32>
    %cst_434 = arith.constant dense<0.000000e+00> : vector<2x32xf32>
    %941 = tpu.matmul %232, %738, %cst_434 {dimension_numbers = #tpu.dot_dimension_numbers<[1], [0], [0], [1], [0, 0, 1, 1], [], []>} : vector<2x32xf32>, vector<32x32xf32>, vector<2x32xf32> -> vector<2x32xf32>
    %942 = vector.broadcast %756 : vector<1x32xf32> to vector<2x32xf32>
    %943 = arith.addf %942, %941 : vector<2x32xf32>
    %cst_435 = arith.constant dense<0.000000e+00> : vector<2x32xf32>
    %944 = tpu.matmul %610, %744, %cst_435 {dimension_numbers = #tpu.dot_dimension_numbers<[1], [0], [0], [1], [0, 0, 1, 1], [], []>} : vector<2x32xf32>, vector<32x32xf32>, vector<2x32xf32> -> vector<2x32xf32>
    %945 = arith.addf %943, %944 : vector<2x32xf32>
    %cst_436 = arith.constant dense<0.000000e+00> : vector<2x32xf32>
    %946 = tpu.matmul %940, %750, %cst_436 {dimension_numbers = #tpu.dot_dimension_numbers<[1], [0], [0], [1], [0, 0, 1, 1], [], []>} : vector<2x32xf32>, vector<32x32xf32>, vector<2x32xf32> -> vector<2x32xf32>
    %947 = vector.broadcast %762 : vector<1x32xf32> to vector<2x32xf32>
    %948 = arith.addf %946, %947 : vector<2x32xf32>
    %949 = arith.addf %945, %948 : vector<2x32xf32>
    %cst_437 = arith.constant 5.000000e-01 : f32
    %950 = vector.broadcast %cst_437 : f32 to vector<2x32xf32>
    %951 = arith.mulf %950, %949 : vector<2x32xf32>
    %952 = math.tanh %951 : vector<2x32xf32>
    %cst_438 = arith.constant 1.000000e+00 : f32
    %953 = vector.broadcast %cst_438 : f32 to vector<2x32xf32>
    %954 = arith.addf %952, %953 : vector<2x32xf32>
    %cst_439 = arith.constant 5.000000e-01 : f32
    %955 = vector.broadcast %cst_439 : f32 to vector<2x32xf32>
    %956 = arith.mulf %955, %954 : vector<2x32xf32>
    %cst_440 = arith.constant dense<0.000000e+00> : vector<2x32xf32>
    %957 = tpu.matmul %232, %740, %cst_440 {dimension_numbers = #tpu.dot_dimension_numbers<[1], [0], [0], [1], [0, 0, 1, 1], [], []>} : vector<2x32xf32>, vector<32x32xf32>, vector<2x32xf32> -> vector<2x32xf32>
    %958 = vector.broadcast %758 : vector<1x32xf32> to vector<2x32xf32>
    %959 = arith.addf %958, %957 : vector<2x32xf32>
    %cst_441 = arith.constant dense<0.000000e+00> : vector<2x32xf32>
    %960 = tpu.matmul %610, %746, %cst_441 {dimension_numbers = #tpu.dot_dimension_numbers<[1], [0], [0], [1], [0, 0, 1, 1], [], []>} : vector<2x32xf32>, vector<32x32xf32>, vector<2x32xf32> -> vector<2x32xf32>
    %961 = arith.addf %959, %960 : vector<2x32xf32>
    %cst_442 = arith.constant dense<0.000000e+00> : vector<2x32xf32>
    %962 = tpu.matmul %940, %752, %cst_442 {dimension_numbers = #tpu.dot_dimension_numbers<[1], [0], [0], [1], [0, 0, 1, 1], [], []>} : vector<2x32xf32>, vector<32x32xf32>, vector<2x32xf32> -> vector<2x32xf32>
    %963 = vector.broadcast %764 : vector<1x32xf32> to vector<2x32xf32>
    %964 = arith.addf %962, %963 : vector<2x32xf32>
    %965 = arith.addf %961, %964 : vector<2x32xf32>
    %cst_443 = arith.constant 5.000000e-01 : f32
    %966 = vector.broadcast %cst_443 : f32 to vector<2x32xf32>
    %967 = arith.mulf %966, %965 : vector<2x32xf32>
    %968 = math.tanh %967 : vector<2x32xf32>
    %cst_444 = arith.constant 1.000000e+00 : f32
    %969 = vector.broadcast %cst_444 : f32 to vector<2x32xf32>
    %970 = arith.addf %968, %969 : vector<2x32xf32>
    %cst_445 = arith.constant 5.000000e-01 : f32
    %971 = vector.broadcast %cst_445 : f32 to vector<2x32xf32>
    %972 = arith.mulf %971, %970 : vector<2x32xf32>
    %cst_446 = arith.constant dense<0.000000e+00> : vector<2x32xf32>
    %973 = tpu.matmul %232, %742, %cst_446 {dimension_numbers = #tpu.dot_dimension_numbers<[1], [0], [0], [1], [0, 0, 1, 1], [], []>} : vector<2x32xf32>, vector<32x32xf32>, vector<2x32xf32> -> vector<2x32xf32>
    %974 = vector.broadcast %760 : vector<1x32xf32> to vector<2x32xf32>
    %975 = arith.addf %974, %973 : vector<2x32xf32>
    %cst_447 = arith.constant dense<0.000000e+00> : vector<2x32xf32>
    %976 = tpu.matmul %610, %748, %cst_447 {dimension_numbers = #tpu.dot_dimension_numbers<[1], [0], [0], [1], [0, 0, 1, 1], [], []>} : vector<2x32xf32>, vector<32x32xf32>, vector<2x32xf32> -> vector<2x32xf32>
    %977 = arith.addf %975, %976 : vector<2x32xf32>
    %cst_448 = arith.constant dense<0.000000e+00> : vector<2x32xf32>
    %978 = tpu.matmul %940, %754, %cst_448 {dimension_numbers = #tpu.dot_dimension_numbers<[1], [0], [0], [1], [0, 0, 1, 1], [], []>} : vector<2x32xf32>, vector<32x32xf32>, vector<2x32xf32> -> vector<2x32xf32>
    %979 = vector.broadcast %766 : vector<1x32xf32> to vector<2x32xf32>
    %980 = arith.addf %978, %979 : vector<2x32xf32>
    %981 = arith.mulf %956, %980 : vector<2x32xf32>
    %982 = arith.addf %977, %981 : vector<2x32xf32>
    %983 = math.tanh %982 : vector<2x32xf32>
    %cst_449 = arith.constant 1.000000e+00 : f32
    %984 = vector.broadcast %cst_449 : f32 to vector<2x32xf32>
    %985 = arith.subf %984, %972 : vector<2x32xf32>
    %986 = arith.mulf %985, %983 : vector<2x32xf32>
    %987 = arith.mulf %972, %940 : vector<2x32xf32>
    %988 = arith.addf %986, %987 : vector<2x32xf32>
    %cst_450 = arith.constant dense<0.000000e+00> : vector<2x32xf32>
    %989 = tpu.matmul %274, %738, %cst_450 {dimension_numbers = #tpu.dot_dimension_numbers<[1], [0], [0], [1], [0, 0, 1, 1], [], []>} : vector<2x32xf32>, vector<32x32xf32>, vector<2x32xf32> -> vector<2x32xf32>
    %990 = vector.broadcast %756 : vector<1x32xf32> to vector<2x32xf32>
    %991 = arith.addf %990, %989 : vector<2x32xf32>
    %cst_451 = arith.constant dense<0.000000e+00> : vector<2x32xf32>
    %992 = tpu.matmul %568, %744, %cst_451 {dimension_numbers = #tpu.dot_dimension_numbers<[1], [0], [0], [1], [0, 0, 1, 1], [], []>} : vector<2x32xf32>, vector<32x32xf32>, vector<2x32xf32> -> vector<2x32xf32>
    %993 = arith.addf %991, %992 : vector<2x32xf32>
    %cst_452 = arith.constant dense<0.000000e+00> : vector<2x32xf32>
    %994 = tpu.matmul %988, %750, %cst_452 {dimension_numbers = #tpu.dot_dimension_numbers<[1], [0], [0], [1], [0, 0, 1, 1], [], []>} : vector<2x32xf32>, vector<32x32xf32>, vector<2x32xf32> -> vector<2x32xf32>
    %995 = vector.broadcast %762 : vector<1x32xf32> to vector<2x32xf32>
    %996 = arith.addf %994, %995 : vector<2x32xf32>
    %997 = arith.addf %993, %996 : vector<2x32xf32>
    %cst_453 = arith.constant 5.000000e-01 : f32
    %998 = vector.broadcast %cst_453 : f32 to vector<2x32xf32>
    %999 = arith.mulf %998, %997 : vector<2x32xf32>
    %1000 = math.tanh %999 : vector<2x32xf32>
    %cst_454 = arith.constant 1.000000e+00 : f32
    %1001 = vector.broadcast %cst_454 : f32 to vector<2x32xf32>
    %1002 = arith.addf %1000, %1001 : vector<2x32xf32>
    %cst_455 = arith.constant 5.000000e-01 : f32
    %1003 = vector.broadcast %cst_455 : f32 to vector<2x32xf32>
    %1004 = arith.mulf %1003, %1002 : vector<2x32xf32>
    %cst_456 = arith.constant dense<0.000000e+00> : vector<2x32xf32>
    %1005 = tpu.matmul %274, %740, %cst_456 {dimension_numbers = #tpu.dot_dimension_numbers<[1], [0], [0], [1], [0, 0, 1, 1], [], []>} : vector<2x32xf32>, vector<32x32xf32>, vector<2x32xf32> -> vector<2x32xf32>
    %1006 = vector.broadcast %758 : vector<1x32xf32> to vector<2x32xf32>
    %1007 = arith.addf %1006, %1005 : vector<2x32xf32>
    %cst_457 = arith.constant dense<0.000000e+00> : vector<2x32xf32>
    %1008 = tpu.matmul %568, %746, %cst_457 {dimension_numbers = #tpu.dot_dimension_numbers<[1], [0], [0], [1], [0, 0, 1, 1], [], []>} : vector<2x32xf32>, vector<32x32xf32>, vector<2x32xf32> -> vector<2x32xf32>
    %1009 = arith.addf %1007, %1008 : vector<2x32xf32>
    %cst_458 = arith.constant dense<0.000000e+00> : vector<2x32xf32>
    %1010 = tpu.matmul %988, %752, %cst_458 {dimension_numbers = #tpu.dot_dimension_numbers<[1], [0], [0], [1], [0, 0, 1, 1], [], []>} : vector<2x32xf32>, vector<32x32xf32>, vector<2x32xf32> -> vector<2x32xf32>
    %1011 = vector.broadcast %764 : vector<1x32xf32> to vector<2x32xf32>
    %1012 = arith.addf %1010, %1011 : vector<2x32xf32>
    %1013 = arith.addf %1009, %1012 : vector<2x32xf32>
    %cst_459 = arith.constant 5.000000e-01 : f32
    %1014 = vector.broadcast %cst_459 : f32 to vector<2x32xf32>
    %1015 = arith.mulf %1014, %1013 : vector<2x32xf32>
    %1016 = math.tanh %1015 : vector<2x32xf32>
    %cst_460 = arith.constant 1.000000e+00 : f32
    %1017 = vector.broadcast %cst_460 : f32 to vector<2x32xf32>
    %1018 = arith.addf %1016, %1017 : vector<2x32xf32>
    %cst_461 = arith.constant 5.000000e-01 : f32
    %1019 = vector.broadcast %cst_461 : f32 to vector<2x32xf32>
    %1020 = arith.mulf %1019, %1018 : vector<2x32xf32>
    %cst_462 = arith.constant dense<0.000000e+00> : vector<2x32xf32>
    %1021 = tpu.matmul %274, %742, %cst_462 {dimension_numbers = #tpu.dot_dimension_numbers<[1], [0], [0], [1], [0, 0, 1, 1], [], []>} : vector<2x32xf32>, vector<32x32xf32>, vector<2x32xf32> -> vector<2x32xf32>
    %1022 = vector.broadcast %760 : vector<1x32xf32> to vector<2x32xf32>
    %1023 = arith.addf %1022, %1021 : vector<2x32xf32>
    %cst_463 = arith.constant dense<0.000000e+00> : vector<2x32xf32>
    %1024 = tpu.matmul %568, %748, %cst_463 {dimension_numbers = #tpu.dot_dimension_numbers<[1], [0], [0], [1], [0, 0, 1, 1], [], []>} : vector<2x32xf32>, vector<32x32xf32>, vector<2x32xf32> -> vector<2x32xf32>
    %1025 = arith.addf %1023, %1024 : vector<2x32xf32>
    %cst_464 = arith.constant dense<0.000000e+00> : vector<2x32xf32>
    %1026 = tpu.matmul %988, %754, %cst_464 {dimension_numbers = #tpu.dot_dimension_numbers<[1], [0], [0], [1], [0, 0, 1, 1], [], []>} : vector<2x32xf32>, vector<32x32xf32>, vector<2x32xf32> -> vector<2x32xf32>
    %1027 = vector.broadcast %766 : vector<1x32xf32> to vector<2x32xf32>
    %1028 = arith.addf %1026, %1027 : vector<2x32xf32>
    %1029 = arith.mulf %1004, %1028 : vector<2x32xf32>
    %1030 = arith.addf %1025, %1029 : vector<2x32xf32>
    %1031 = math.tanh %1030 : vector<2x32xf32>
    %cst_465 = arith.constant 1.000000e+00 : f32
    %1032 = vector.broadcast %cst_465 : f32 to vector<2x32xf32>
    %1033 = arith.subf %1032, %1020 : vector<2x32xf32>
    %1034 = arith.mulf %1033, %1031 : vector<2x32xf32>
    %1035 = arith.mulf %1020, %988 : vector<2x32xf32>
    %1036 = arith.addf %1034, %1035 : vector<2x32xf32>
    %cst_466 = arith.constant dense<0.000000e+00> : vector<2x32xf32>
    %1037 = tpu.matmul %316, %738, %cst_466 {dimension_numbers = #tpu.dot_dimension_numbers<[1], [0], [0], [1], [0, 0, 1, 1], [], []>} : vector<2x32xf32>, vector<32x32xf32>, vector<2x32xf32> -> vector<2x32xf32>
    %1038 = vector.broadcast %756 : vector<1x32xf32> to vector<2x32xf32>
    %1039 = arith.addf %1038, %1037 : vector<2x32xf32>
    %cst_467 = arith.constant dense<0.000000e+00> : vector<2x32xf32>
    %1040 = tpu.matmul %526, %744, %cst_467 {dimension_numbers = #tpu.dot_dimension_numbers<[1], [0], [0], [1], [0, 0, 1, 1], [], []>} : vector<2x32xf32>, vector<32x32xf32>, vector<2x32xf32> -> vector<2x32xf32>
    %1041 = arith.addf %1039, %1040 : vector<2x32xf32>
    %cst_468 = arith.constant dense<0.000000e+00> : vector<2x32xf32>
    %1042 = tpu.matmul %1036, %750, %cst_468 {dimension_numbers = #tpu.dot_dimension_numbers<[1], [0], [0], [1], [0, 0, 1, 1], [], []>} : vector<2x32xf32>, vector<32x32xf32>, vector<2x32xf32> -> vector<2x32xf32>
    %1043 = vector.broadcast %762 : vector<1x32xf32> to vector<2x32xf32>
    %1044 = arith.addf %1042, %1043 : vector<2x32xf32>
    %1045 = arith.addf %1041, %1044 : vector<2x32xf32>
    %cst_469 = arith.constant 5.000000e-01 : f32
    %1046 = vector.broadcast %cst_469 : f32 to vector<2x32xf32>
    %1047 = arith.mulf %1046, %1045 : vector<2x32xf32>
    %1048 = math.tanh %1047 : vector<2x32xf32>
    %cst_470 = arith.constant 1.000000e+00 : f32
    %1049 = vector.broadcast %cst_470 : f32 to vector<2x32xf32>
    %1050 = arith.addf %1048, %1049 : vector<2x32xf32>
    %cst_471 = arith.constant 5.000000e-01 : f32
    %1051 = vector.broadcast %cst_471 : f32 to vector<2x32xf32>
    %1052 = arith.mulf %1051, %1050 : vector<2x32xf32>
    %cst_472 = arith.constant dense<0.000000e+00> : vector<2x32xf32>
    %1053 = tpu.matmul %316, %740, %cst_472 {dimension_numbers = #tpu.dot_dimension_numbers<[1], [0], [0], [1], [0, 0, 1, 1], [], []>} : vector<2x32xf32>, vector<32x32xf32>, vector<2x32xf32> -> vector<2x32xf32>
    %1054 = vector.broadcast %758 : vector<1x32xf32> to vector<2x32xf32>
    %1055 = arith.addf %1054, %1053 : vector<2x32xf32>
    %cst_473 = arith.constant dense<0.000000e+00> : vector<2x32xf32>
    %1056 = tpu.matmul %526, %746, %cst_473 {dimension_numbers = #tpu.dot_dimension_numbers<[1], [0], [0], [1], [0, 0, 1, 1], [], []>} : vector<2x32xf32>, vector<32x32xf32>, vector<2x32xf32> -> vector<2x32xf32>
    %1057 = arith.addf %1055, %1056 : vector<2x32xf32>
    %cst_474 = arith.constant dense<0.000000e+00> : vector<2x32xf32>
    %1058 = tpu.matmul %1036, %752, %cst_474 {dimension_numbers = #tpu.dot_dimension_numbers<[1], [0], [0], [1], [0, 0, 1, 1], [], []>} : vector<2x32xf32>, vector<32x32xf32>, vector<2x32xf32> -> vector<2x32xf32>
    %1059 = vector.broadcast %764 : vector<1x32xf32> to vector<2x32xf32>
    %1060 = arith.addf %1058, %1059 : vector<2x32xf32>
    %1061 = arith.addf %1057, %1060 : vector<2x32xf32>
    %cst_475 = arith.constant 5.000000e-01 : f32
    %1062 = vector.broadcast %cst_475 : f32 to vector<2x32xf32>
    %1063 = arith.mulf %1062, %1061 : vector<2x32xf32>
    %1064 = math.tanh %1063 : vector<2x32xf32>
    %cst_476 = arith.constant 1.000000e+00 : f32
    %1065 = vector.broadcast %cst_476 : f32 to vector<2x32xf32>
    %1066 = arith.addf %1064, %1065 : vector<2x32xf32>
    %cst_477 = arith.constant 5.000000e-01 : f32
    %1067 = vector.broadcast %cst_477 : f32 to vector<2x32xf32>
    %1068 = arith.mulf %1067, %1066 : vector<2x32xf32>
    %cst_478 = arith.constant dense<0.000000e+00> : vector<2x32xf32>
    %1069 = tpu.matmul %316, %742, %cst_478 {dimension_numbers = #tpu.dot_dimension_numbers<[1], [0], [0], [1], [0, 0, 1, 1], [], []>} : vector<2x32xf32>, vector<32x32xf32>, vector<2x32xf32> -> vector<2x32xf32>
    %1070 = vector.broadcast %760 : vector<1x32xf32> to vector<2x32xf32>
    %1071 = arith.addf %1070, %1069 : vector<2x32xf32>
    %cst_479 = arith.constant dense<0.000000e+00> : vector<2x32xf32>
    %1072 = tpu.matmul %526, %748, %cst_479 {dimension_numbers = #tpu.dot_dimension_numbers<[1], [0], [0], [1], [0, 0, 1, 1], [], []>} : vector<2x32xf32>, vector<32x32xf32>, vector<2x32xf32> -> vector<2x32xf32>
    %1073 = arith.addf %1071, %1072 : vector<2x32xf32>
    %cst_480 = arith.constant dense<0.000000e+00> : vector<2x32xf32>
    %1074 = tpu.matmul %1036, %754, %cst_480 {dimension_numbers = #tpu.dot_dimension_numbers<[1], [0], [0], [1], [0, 0, 1, 1], [], []>} : vector<2x32xf32>, vector<32x32xf32>, vector<2x32xf32> -> vector<2x32xf32>
    %1075 = vector.broadcast %766 : vector<1x32xf32> to vector<2x32xf32>
    %1076 = arith.addf %1074, %1075 : vector<2x32xf32>
    %1077 = arith.mulf %1052, %1076 : vector<2x32xf32>
    %1078 = arith.addf %1073, %1077 : vector<2x32xf32>
    %1079 = math.tanh %1078 : vector<2x32xf32>
    %cst_481 = arith.constant 1.000000e+00 : f32
    %1080 = vector.broadcast %cst_481 : f32 to vector<2x32xf32>
    %1081 = arith.subf %1080, %1068 : vector<2x32xf32>
    %1082 = arith.mulf %1081, %1079 : vector<2x32xf32>
    %1083 = arith.mulf %1068, %1036 : vector<2x32xf32>
    %1084 = arith.addf %1082, %1083 : vector<2x32xf32>
    %cst_482 = arith.constant dense<0.000000e+00> : vector<2x32xf32>
    %1085 = tpu.matmul %358, %738, %cst_482 {dimension_numbers = #tpu.dot_dimension_numbers<[1], [0], [0], [1], [0, 0, 1, 1], [], []>} : vector<2x32xf32>, vector<32x32xf32>, vector<2x32xf32> -> vector<2x32xf32>
    %1086 = vector.broadcast %756 : vector<1x32xf32> to vector<2x32xf32>
    %1087 = arith.addf %1086, %1085 : vector<2x32xf32>
    %cst_483 = arith.constant dense<0.000000e+00> : vector<2x32xf32>
    %1088 = tpu.matmul %484, %744, %cst_483 {dimension_numbers = #tpu.dot_dimension_numbers<[1], [0], [0], [1], [0, 0, 1, 1], [], []>} : vector<2x32xf32>, vector<32x32xf32>, vector<2x32xf32> -> vector<2x32xf32>
    %1089 = arith.addf %1087, %1088 : vector<2x32xf32>
    %cst_484 = arith.constant dense<0.000000e+00> : vector<2x32xf32>
    %1090 = tpu.matmul %1084, %750, %cst_484 {dimension_numbers = #tpu.dot_dimension_numbers<[1], [0], [0], [1], [0, 0, 1, 1], [], []>} : vector<2x32xf32>, vector<32x32xf32>, vector<2x32xf32> -> vector<2x32xf32>
    %1091 = vector.broadcast %762 : vector<1x32xf32> to vector<2x32xf32>
    %1092 = arith.addf %1090, %1091 : vector<2x32xf32>
    %1093 = arith.addf %1089, %1092 : vector<2x32xf32>
    %cst_485 = arith.constant 5.000000e-01 : f32
    %1094 = vector.broadcast %cst_485 : f32 to vector<2x32xf32>
    %1095 = arith.mulf %1094, %1093 : vector<2x32xf32>
    %1096 = math.tanh %1095 : vector<2x32xf32>
    %cst_486 = arith.constant 1.000000e+00 : f32
    %1097 = vector.broadcast %cst_486 : f32 to vector<2x32xf32>
    %1098 = arith.addf %1096, %1097 : vector<2x32xf32>
    %cst_487 = arith.constant 5.000000e-01 : f32
    %1099 = vector.broadcast %cst_487 : f32 to vector<2x32xf32>
    %1100 = arith.mulf %1099, %1098 : vector<2x32xf32>
    %cst_488 = arith.constant dense<0.000000e+00> : vector<2x32xf32>
    %1101 = tpu.matmul %358, %740, %cst_488 {dimension_numbers = #tpu.dot_dimension_numbers<[1], [0], [0], [1], [0, 0, 1, 1], [], []>} : vector<2x32xf32>, vector<32x32xf32>, vector<2x32xf32> -> vector<2x32xf32>
    %1102 = vector.broadcast %758 : vector<1x32xf32> to vector<2x32xf32>
    %1103 = arith.addf %1102, %1101 : vector<2x32xf32>
    %cst_489 = arith.constant dense<0.000000e+00> : vector<2x32xf32>
    %1104 = tpu.matmul %484, %746, %cst_489 {dimension_numbers = #tpu.dot_dimension_numbers<[1], [0], [0], [1], [0, 0, 1, 1], [], []>} : vector<2x32xf32>, vector<32x32xf32>, vector<2x32xf32> -> vector<2x32xf32>
    %1105 = arith.addf %1103, %1104 : vector<2x32xf32>
    %cst_490 = arith.constant dense<0.000000e+00> : vector<2x32xf32>
    %1106 = tpu.matmul %1084, %752, %cst_490 {dimension_numbers = #tpu.dot_dimension_numbers<[1], [0], [0], [1], [0, 0, 1, 1], [], []>} : vector<2x32xf32>, vector<32x32xf32>, vector<2x32xf32> -> vector<2x32xf32>
    %1107 = vector.broadcast %764 : vector<1x32xf32> to vector<2x32xf32>
    %1108 = arith.addf %1106, %1107 : vector<2x32xf32>
    %1109 = arith.addf %1105, %1108 : vector<2x32xf32>
    %cst_491 = arith.constant 5.000000e-01 : f32
    %1110 = vector.broadcast %cst_491 : f32 to vector<2x32xf32>
    %1111 = arith.mulf %1110, %1109 : vector<2x32xf32>
    %1112 = math.tanh %1111 : vector<2x32xf32>
    %cst_492 = arith.constant 1.000000e+00 : f32
    %1113 = vector.broadcast %cst_492 : f32 to vector<2x32xf32>
    %1114 = arith.addf %1112, %1113 : vector<2x32xf32>
    %cst_493 = arith.constant 5.000000e-01 : f32
    %1115 = vector.broadcast %cst_493 : f32 to vector<2x32xf32>
    %1116 = arith.mulf %1115, %1114 : vector<2x32xf32>
    %cst_494 = arith.constant dense<0.000000e+00> : vector<2x32xf32>
    %1117 = tpu.matmul %358, %742, %cst_494 {dimension_numbers = #tpu.dot_dimension_numbers<[1], [0], [0], [1], [0, 0, 1, 1], [], []>} : vector<2x32xf32>, vector<32x32xf32>, vector<2x32xf32> -> vector<2x32xf32>
    %1118 = vector.broadcast %760 : vector<1x32xf32> to vector<2x32xf32>
    %1119 = arith.addf %1118, %1117 : vector<2x32xf32>
    %cst_495 = arith.constant dense<0.000000e+00> : vector<2x32xf32>
    %1120 = tpu.matmul %484, %748, %cst_495 {dimension_numbers = #tpu.dot_dimension_numbers<[1], [0], [0], [1], [0, 0, 1, 1], [], []>} : vector<2x32xf32>, vector<32x32xf32>, vector<2x32xf32> -> vector<2x32xf32>
    %1121 = arith.addf %1119, %1120 : vector<2x32xf32>
    %cst_496 = arith.constant dense<0.000000e+00> : vector<2x32xf32>
    %1122 = tpu.matmul %1084, %754, %cst_496 {dimension_numbers = #tpu.dot_dimension_numbers<[1], [0], [0], [1], [0, 0, 1, 1], [], []>} : vector<2x32xf32>, vector<32x32xf32>, vector<2x32xf32> -> vector<2x32xf32>
    %1123 = vector.broadcast %766 : vector<1x32xf32> to vector<2x32xf32>
    %1124 = arith.addf %1122, %1123 : vector<2x32xf32>
    %1125 = arith.mulf %1100, %1124 : vector<2x32xf32>
    %1126 = arith.addf %1121, %1125 : vector<2x32xf32>
    %1127 = math.tanh %1126 : vector<2x32xf32>
    %cst_497 = arith.constant 1.000000e+00 : f32
    %1128 = vector.broadcast %cst_497 : f32 to vector<2x32xf32>
    %1129 = arith.subf %1128, %1116 : vector<2x32xf32>
    %1130 = arith.mulf %1129, %1127 : vector<2x32xf32>
    %1131 = arith.mulf %1116, %1084 : vector<2x32xf32>
    %1132 = arith.addf %1130, %1131 : vector<2x32xf32>
    %cst_498 = arith.constant dense<0.000000e+00> : vector<2x32xf32>
    %1133 = tpu.matmul %400, %738, %cst_498 {dimension_numbers = #tpu.dot_dimension_numbers<[1], [0], [0], [1], [0, 0, 1, 1], [], []>} : vector<2x32xf32>, vector<32x32xf32>, vector<2x32xf32> -> vector<2x32xf32>
    %1134 = vector.broadcast %756 : vector<1x32xf32> to vector<2x32xf32>
    %1135 = arith.addf %1134, %1133 : vector<2x32xf32>
    %cst_499 = arith.constant dense<0.000000e+00> : vector<2x32xf32>
    %1136 = tpu.matmul %442, %744, %cst_499 {dimension_numbers = #tpu.dot_dimension_numbers<[1], [0], [0], [1], [0, 0, 1, 1], [], []>} : vector<2x32xf32>, vector<32x32xf32>, vector<2x32xf32> -> vector<2x32xf32>
    %1137 = arith.addf %1135, %1136 : vector<2x32xf32>
    %cst_500 = arith.constant dense<0.000000e+00> : vector<2x32xf32>
    %1138 = tpu.matmul %1132, %750, %cst_500 {dimension_numbers = #tpu.dot_dimension_numbers<[1], [0], [0], [1], [0, 0, 1, 1], [], []>} : vector<2x32xf32>, vector<32x32xf32>, vector<2x32xf32> -> vector<2x32xf32>
    %1139 = vector.broadcast %762 : vector<1x32xf32> to vector<2x32xf32>
    %1140 = arith.addf %1138, %1139 : vector<2x32xf32>
    %1141 = arith.addf %1137, %1140 : vector<2x32xf32>
    %cst_501 = arith.constant 5.000000e-01 : f32
    %1142 = vector.broadcast %cst_501 : f32 to vector<2x32xf32>
    %1143 = arith.mulf %1142, %1141 : vector<2x32xf32>
    %1144 = math.tanh %1143 : vector<2x32xf32>
    %cst_502 = arith.constant 1.000000e+00 : f32
    %1145 = vector.broadcast %cst_502 : f32 to vector<2x32xf32>
    %1146 = arith.addf %1144, %1145 : vector<2x32xf32>
    %cst_503 = arith.constant 5.000000e-01 : f32
    %1147 = vector.broadcast %cst_503 : f32 to vector<2x32xf32>
    %1148 = arith.mulf %1147, %1146 : vector<2x32xf32>
    %cst_504 = arith.constant dense<0.000000e+00> : vector<2x32xf32>
    %1149 = tpu.matmul %400, %740, %cst_504 {dimension_numbers = #tpu.dot_dimension_numbers<[1], [0], [0], [1], [0, 0, 1, 1], [], []>} : vector<2x32xf32>, vector<32x32xf32>, vector<2x32xf32> -> vector<2x32xf32>
    %1150 = vector.broadcast %758 : vector<1x32xf32> to vector<2x32xf32>
    %1151 = arith.addf %1150, %1149 : vector<2x32xf32>
    %cst_505 = arith.constant dense<0.000000e+00> : vector<2x32xf32>
    %1152 = tpu.matmul %442, %746, %cst_505 {dimension_numbers = #tpu.dot_dimension_numbers<[1], [0], [0], [1], [0, 0, 1, 1], [], []>} : vector<2x32xf32>, vector<32x32xf32>, vector<2x32xf32> -> vector<2x32xf32>
    %1153 = arith.addf %1151, %1152 : vector<2x32xf32>
    %cst_506 = arith.constant dense<0.000000e+00> : vector<2x32xf32>
    %1154 = tpu.matmul %1132, %752, %cst_506 {dimension_numbers = #tpu.dot_dimension_numbers<[1], [0], [0], [1], [0, 0, 1, 1], [], []>} : vector<2x32xf32>, vector<32x32xf32>, vector<2x32xf32> -> vector<2x32xf32>
    %1155 = vector.broadcast %764 : vector<1x32xf32> to vector<2x32xf32>
    %1156 = arith.addf %1154, %1155 : vector<2x32xf32>
    %1157 = arith.addf %1153, %1156 : vector<2x32xf32>
    %cst_507 = arith.constant 5.000000e-01 : f32
    %1158 = vector.broadcast %cst_507 : f32 to vector<2x32xf32>
    %1159 = arith.mulf %1158, %1157 : vector<2x32xf32>
    %1160 = math.tanh %1159 : vector<2x32xf32>
    %cst_508 = arith.constant 1.000000e+00 : f32
    %1161 = vector.broadcast %cst_508 : f32 to vector<2x32xf32>
    %1162 = arith.addf %1160, %1161 : vector<2x32xf32>
    %cst_509 = arith.constant 5.000000e-01 : f32
    %1163 = vector.broadcast %cst_509 : f32 to vector<2x32xf32>
    %1164 = arith.mulf %1163, %1162 : vector<2x32xf32>
    %cst_510 = arith.constant dense<0.000000e+00> : vector<2x32xf32>
    %1165 = tpu.matmul %400, %742, %cst_510 {dimension_numbers = #tpu.dot_dimension_numbers<[1], [0], [0], [1], [0, 0, 1, 1], [], []>} : vector<2x32xf32>, vector<32x32xf32>, vector<2x32xf32> -> vector<2x32xf32>
    %1166 = vector.broadcast %760 : vector<1x32xf32> to vector<2x32xf32>
    %1167 = arith.addf %1166, %1165 : vector<2x32xf32>
    %cst_511 = arith.constant dense<0.000000e+00> : vector<2x32xf32>
    %1168 = tpu.matmul %442, %748, %cst_511 {dimension_numbers = #tpu.dot_dimension_numbers<[1], [0], [0], [1], [0, 0, 1, 1], [], []>} : vector<2x32xf32>, vector<32x32xf32>, vector<2x32xf32> -> vector<2x32xf32>
    %1169 = arith.addf %1167, %1168 : vector<2x32xf32>
    %cst_512 = arith.constant dense<0.000000e+00> : vector<2x32xf32>
    %1170 = tpu.matmul %1132, %754, %cst_512 {dimension_numbers = #tpu.dot_dimension_numbers<[1], [0], [0], [1], [0, 0, 1, 1], [], []>} : vector<2x32xf32>, vector<32x32xf32>, vector<2x32xf32> -> vector<2x32xf32>
    %1171 = vector.broadcast %766 : vector<1x32xf32> to vector<2x32xf32>
    %1172 = arith.addf %1170, %1171 : vector<2x32xf32>
    %1173 = arith.mulf %1148, %1172 : vector<2x32xf32>
    %1174 = arith.addf %1169, %1173 : vector<2x32xf32>
    %1175 = math.tanh %1174 : vector<2x32xf32>
    %cst_513 = arith.constant 1.000000e+00 : f32
    %1176 = vector.broadcast %cst_513 : f32 to vector<2x32xf32>
    %1177 = arith.subf %1176, %1164 : vector<2x32xf32>
    %1178 = arith.mulf %1177, %1175 : vector<2x32xf32>
    %1179 = arith.mulf %1164, %1132 : vector<2x32xf32>
    %1180 = arith.addf %1178, %1179 : vector<2x32xf32>
    %cst_514 = arith.constant dense<0.000000e+00> : vector<2x32xf32>
    %1181 = tpu.matmul %400, %768, %cst_514 {dimension_numbers = #tpu.dot_dimension_numbers<[1], [0], [0], [1], [0, 0, 1, 1], [], []>} : vector<2x32xf32>, vector<32x32xf32>, vector<2x32xf32> -> vector<2x32xf32>
    %1182 = vector.broadcast %786 : vector<1x32xf32> to vector<2x32xf32>
    %1183 = arith.addf %1182, %1181 : vector<2x32xf32>
    %cst_515 = arith.constant dense<0.000000e+00> : vector<2x32xf32>
    %1184 = tpu.matmul %442, %774, %cst_515 {dimension_numbers = #tpu.dot_dimension_numbers<[1], [0], [0], [1], [0, 0, 1, 1], [], []>} : vector<2x32xf32>, vector<32x32xf32>, vector<2x32xf32> -> vector<2x32xf32>
    %1185 = arith.addf %1183, %1184 : vector<2x32xf32>
    %cst_516 = arith.constant dense<0.000000e+00> : vector<2x32xf32>
    %1186 = tpu.matmul %16, %780, %cst_516 {dimension_numbers = #tpu.dot_dimension_numbers<[1], [0], [0], [1], [0, 0, 1, 1], [], []>} : vector<2x32xf32>, vector<32x32xf32>, vector<2x32xf32> -> vector<2x32xf32>
    %1187 = vector.broadcast %792 : vector<1x32xf32> to vector<2x32xf32>
    %1188 = arith.addf %1186, %1187 : vector<2x32xf32>
    %1189 = arith.addf %1185, %1188 : vector<2x32xf32>
    %cst_517 = arith.constant 5.000000e-01 : f32
    %1190 = vector.broadcast %cst_517 : f32 to vector<2x32xf32>
    %1191 = arith.mulf %1190, %1189 : vector<2x32xf32>
    %1192 = math.tanh %1191 : vector<2x32xf32>
    %cst_518 = arith.constant 1.000000e+00 : f32
    %1193 = vector.broadcast %cst_518 : f32 to vector<2x32xf32>
    %1194 = arith.addf %1192, %1193 : vector<2x32xf32>
    %cst_519 = arith.constant 5.000000e-01 : f32
    %1195 = vector.broadcast %cst_519 : f32 to vector<2x32xf32>
    %1196 = arith.mulf %1195, %1194 : vector<2x32xf32>
    %cst_520 = arith.constant dense<0.000000e+00> : vector<2x32xf32>
    %1197 = tpu.matmul %400, %770, %cst_520 {dimension_numbers = #tpu.dot_dimension_numbers<[1], [0], [0], [1], [0, 0, 1, 1], [], []>} : vector<2x32xf32>, vector<32x32xf32>, vector<2x32xf32> -> vector<2x32xf32>
    %1198 = vector.broadcast %788 : vector<1x32xf32> to vector<2x32xf32>
    %1199 = arith.addf %1198, %1197 : vector<2x32xf32>
    %cst_521 = arith.constant dense<0.000000e+00> : vector<2x32xf32>
    %1200 = tpu.matmul %442, %776, %cst_521 {dimension_numbers = #tpu.dot_dimension_numbers<[1], [0], [0], [1], [0, 0, 1, 1], [], []>} : vector<2x32xf32>, vector<32x32xf32>, vector<2x32xf32> -> vector<2x32xf32>
    %1201 = arith.addf %1199, %1200 : vector<2x32xf32>
    %cst_522 = arith.constant dense<0.000000e+00> : vector<2x32xf32>
    %1202 = tpu.matmul %16, %782, %cst_522 {dimension_numbers = #tpu.dot_dimension_numbers<[1], [0], [0], [1], [0, 0, 1, 1], [], []>} : vector<2x32xf32>, vector<32x32xf32>, vector<2x32xf32> -> vector<2x32xf32>
    %1203 = vector.broadcast %794 : vector<1x32xf32> to vector<2x32xf32>
    %1204 = arith.addf %1202, %1203 : vector<2x32xf32>
    %1205 = arith.addf %1201, %1204 : vector<2x32xf32>
    %cst_523 = arith.constant 5.000000e-01 : f32
    %1206 = vector.broadcast %cst_523 : f32 to vector<2x32xf32>
    %1207 = arith.mulf %1206, %1205 : vector<2x32xf32>
    %1208 = math.tanh %1207 : vector<2x32xf32>
    %cst_524 = arith.constant 1.000000e+00 : f32
    %1209 = vector.broadcast %cst_524 : f32 to vector<2x32xf32>
    %1210 = arith.addf %1208, %1209 : vector<2x32xf32>
    %cst_525 = arith.constant 5.000000e-01 : f32
    %1211 = vector.broadcast %cst_525 : f32 to vector<2x32xf32>
    %1212 = arith.mulf %1211, %1210 : vector<2x32xf32>
    %cst_526 = arith.constant dense<0.000000e+00> : vector<2x32xf32>
    %1213 = tpu.matmul %400, %772, %cst_526 {dimension_numbers = #tpu.dot_dimension_numbers<[1], [0], [0], [1], [0, 0, 1, 1], [], []>} : vector<2x32xf32>, vector<32x32xf32>, vector<2x32xf32> -> vector<2x32xf32>
    %1214 = vector.broadcast %790 : vector<1x32xf32> to vector<2x32xf32>
    %1215 = arith.addf %1214, %1213 : vector<2x32xf32>
    %cst_527 = arith.constant dense<0.000000e+00> : vector<2x32xf32>
    %1216 = tpu.matmul %442, %778, %cst_527 {dimension_numbers = #tpu.dot_dimension_numbers<[1], [0], [0], [1], [0, 0, 1, 1], [], []>} : vector<2x32xf32>, vector<32x32xf32>, vector<2x32xf32> -> vector<2x32xf32>
    %1217 = arith.addf %1215, %1216 : vector<2x32xf32>
    %cst_528 = arith.constant dense<0.000000e+00> : vector<2x32xf32>
    %1218 = tpu.matmul %16, %784, %cst_528 {dimension_numbers = #tpu.dot_dimension_numbers<[1], [0], [0], [1], [0, 0, 1, 1], [], []>} : vector<2x32xf32>, vector<32x32xf32>, vector<2x32xf32> -> vector<2x32xf32>
    %1219 = vector.broadcast %796 : vector<1x32xf32> to vector<2x32xf32>
    %1220 = arith.addf %1218, %1219 : vector<2x32xf32>
    %1221 = arith.mulf %1196, %1220 : vector<2x32xf32>
    %1222 = arith.addf %1217, %1221 : vector<2x32xf32>
    %1223 = math.tanh %1222 : vector<2x32xf32>
    %cst_529 = arith.constant 1.000000e+00 : f32
    %1224 = vector.broadcast %cst_529 : f32 to vector<2x32xf32>
    %1225 = arith.subf %1224, %1212 : vector<2x32xf32>
    %1226 = arith.mulf %1225, %1223 : vector<2x32xf32>
    %1227 = arith.mulf %1212, %16 : vector<2x32xf32>
    %1228 = arith.addf %1226, %1227 : vector<2x32xf32>
    %cst_530 = arith.constant dense<0.000000e+00> : vector<2x32xf32>
    %1229 = tpu.matmul %358, %768, %cst_530 {dimension_numbers = #tpu.dot_dimension_numbers<[1], [0], [0], [1], [0, 0, 1, 1], [], []>} : vector<2x32xf32>, vector<32x32xf32>, vector<2x32xf32> -> vector<2x32xf32>
    %1230 = vector.broadcast %786 : vector<1x32xf32> to vector<2x32xf32>
    %1231 = arith.addf %1230, %1229 : vector<2x32xf32>
    %cst_531 = arith.constant dense<0.000000e+00> : vector<2x32xf32>
    %1232 = tpu.matmul %484, %774, %cst_531 {dimension_numbers = #tpu.dot_dimension_numbers<[1], [0], [0], [1], [0, 0, 1, 1], [], []>} : vector<2x32xf32>, vector<32x32xf32>, vector<2x32xf32> -> vector<2x32xf32>
    %1233 = arith.addf %1231, %1232 : vector<2x32xf32>
    %cst_532 = arith.constant dense<0.000000e+00> : vector<2x32xf32>
    %1234 = tpu.matmul %1228, %780, %cst_532 {dimension_numbers = #tpu.dot_dimension_numbers<[1], [0], [0], [1], [0, 0, 1, 1], [], []>} : vector<2x32xf32>, vector<32x32xf32>, vector<2x32xf32> -> vector<2x32xf32>
    %1235 = vector.broadcast %792 : vector<1x32xf32> to vector<2x32xf32>
    %1236 = arith.addf %1234, %1235 : vector<2x32xf32>
    %1237 = arith.addf %1233, %1236 : vector<2x32xf32>
    %cst_533 = arith.constant 5.000000e-01 : f32
    %1238 = vector.broadcast %cst_533 : f32 to vector<2x32xf32>
    %1239 = arith.mulf %1238, %1237 : vector<2x32xf32>
    %1240 = math.tanh %1239 : vector<2x32xf32>
    %cst_534 = arith.constant 1.000000e+00 : f32
    %1241 = vector.broadcast %cst_534 : f32 to vector<2x32xf32>
    %1242 = arith.addf %1240, %1241 : vector<2x32xf32>
    %cst_535 = arith.constant 5.000000e-01 : f32
    %1243 = vector.broadcast %cst_535 : f32 to vector<2x32xf32>
    %1244 = arith.mulf %1243, %1242 : vector<2x32xf32>
    %cst_536 = arith.constant dense<0.000000e+00> : vector<2x32xf32>
    %1245 = tpu.matmul %358, %770, %cst_536 {dimension_numbers = #tpu.dot_dimension_numbers<[1], [0], [0], [1], [0, 0, 1, 1], [], []>} : vector<2x32xf32>, vector<32x32xf32>, vector<2x32xf32> -> vector<2x32xf32>
    %1246 = vector.broadcast %788 : vector<1x32xf32> to vector<2x32xf32>
    %1247 = arith.addf %1246, %1245 : vector<2x32xf32>
    %cst_537 = arith.constant dense<0.000000e+00> : vector<2x32xf32>
    %1248 = tpu.matmul %484, %776, %cst_537 {dimension_numbers = #tpu.dot_dimension_numbers<[1], [0], [0], [1], [0, 0, 1, 1], [], []>} : vector<2x32xf32>, vector<32x32xf32>, vector<2x32xf32> -> vector<2x32xf32>
    %1249 = arith.addf %1247, %1248 : vector<2x32xf32>
    %cst_538 = arith.constant dense<0.000000e+00> : vector<2x32xf32>
    %1250 = tpu.matmul %1228, %782, %cst_538 {dimension_numbers = #tpu.dot_dimension_numbers<[1], [0], [0], [1], [0, 0, 1, 1], [], []>} : vector<2x32xf32>, vector<32x32xf32>, vector<2x32xf32> -> vector<2x32xf32>
    %1251 = vector.broadcast %794 : vector<1x32xf32> to vector<2x32xf32>
    %1252 = arith.addf %1250, %1251 : vector<2x32xf32>
    %1253 = arith.addf %1249, %1252 : vector<2x32xf32>
    %cst_539 = arith.constant 5.000000e-01 : f32
    %1254 = vector.broadcast %cst_539 : f32 to vector<2x32xf32>
    %1255 = arith.mulf %1254, %1253 : vector<2x32xf32>
    %1256 = math.tanh %1255 : vector<2x32xf32>
    %cst_540 = arith.constant 1.000000e+00 : f32
    %1257 = vector.broadcast %cst_540 : f32 to vector<2x32xf32>
    %1258 = arith.addf %1256, %1257 : vector<2x32xf32>
    %cst_541 = arith.constant 5.000000e-01 : f32
    %1259 = vector.broadcast %cst_541 : f32 to vector<2x32xf32>
    %1260 = arith.mulf %1259, %1258 : vector<2x32xf32>
    %cst_542 = arith.constant dense<0.000000e+00> : vector<2x32xf32>
    %1261 = tpu.matmul %358, %772, %cst_542 {dimension_numbers = #tpu.dot_dimension_numbers<[1], [0], [0], [1], [0, 0, 1, 1], [], []>} : vector<2x32xf32>, vector<32x32xf32>, vector<2x32xf32> -> vector<2x32xf32>
    %1262 = vector.broadcast %790 : vector<1x32xf32> to vector<2x32xf32>
    %1263 = arith.addf %1262, %1261 : vector<2x32xf32>
    %cst_543 = arith.constant dense<0.000000e+00> : vector<2x32xf32>
    %1264 = tpu.matmul %484, %778, %cst_543 {dimension_numbers = #tpu.dot_dimension_numbers<[1], [0], [0], [1], [0, 0, 1, 1], [], []>} : vector<2x32xf32>, vector<32x32xf32>, vector<2x32xf32> -> vector<2x32xf32>
    %1265 = arith.addf %1263, %1264 : vector<2x32xf32>
    %cst_544 = arith.constant dense<0.000000e+00> : vector<2x32xf32>
    %1266 = tpu.matmul %1228, %784, %cst_544 {dimension_numbers = #tpu.dot_dimension_numbers<[1], [0], [0], [1], [0, 0, 1, 1], [], []>} : vector<2x32xf32>, vector<32x32xf32>, vector<2x32xf32> -> vector<2x32xf32>
    %1267 = vector.broadcast %796 : vector<1x32xf32> to vector<2x32xf32>
    %1268 = arith.addf %1266, %1267 : vector<2x32xf32>
    %1269 = arith.mulf %1244, %1268 : vector<2x32xf32>
    %1270 = arith.addf %1265, %1269 : vector<2x32xf32>
    %1271 = math.tanh %1270 : vector<2x32xf32>
    %cst_545 = arith.constant 1.000000e+00 : f32
    %1272 = vector.broadcast %cst_545 : f32 to vector<2x32xf32>
    %1273 = arith.subf %1272, %1260 : vector<2x32xf32>
    %1274 = arith.mulf %1273, %1271 : vector<2x32xf32>
    %1275 = arith.mulf %1260, %1228 : vector<2x32xf32>
    %1276 = arith.addf %1274, %1275 : vector<2x32xf32>
    %cst_546 = arith.constant dense<0.000000e+00> : vector<2x32xf32>
    %1277 = tpu.matmul %316, %768, %cst_546 {dimension_numbers = #tpu.dot_dimension_numbers<[1], [0], [0], [1], [0, 0, 1, 1], [], []>} : vector<2x32xf32>, vector<32x32xf32>, vector<2x32xf32> -> vector<2x32xf32>
    %1278 = vector.broadcast %786 : vector<1x32xf32> to vector<2x32xf32>
    %1279 = arith.addf %1278, %1277 : vector<2x32xf32>
    %cst_547 = arith.constant dense<0.000000e+00> : vector<2x32xf32>
    %1280 = tpu.matmul %526, %774, %cst_547 {dimension_numbers = #tpu.dot_dimension_numbers<[1], [0], [0], [1], [0, 0, 1, 1], [], []>} : vector<2x32xf32>, vector<32x32xf32>, vector<2x32xf32> -> vector<2x32xf32>
    %1281 = arith.addf %1279, %1280 : vector<2x32xf32>
    %cst_548 = arith.constant dense<0.000000e+00> : vector<2x32xf32>
    %1282 = tpu.matmul %1276, %780, %cst_548 {dimension_numbers = #tpu.dot_dimension_numbers<[1], [0], [0], [1], [0, 0, 1, 1], [], []>} : vector<2x32xf32>, vector<32x32xf32>, vector<2x32xf32> -> vector<2x32xf32>
    %1283 = vector.broadcast %792 : vector<1x32xf32> to vector<2x32xf32>
    %1284 = arith.addf %1282, %1283 : vector<2x32xf32>
    %1285 = arith.addf %1281, %1284 : vector<2x32xf32>
    %cst_549 = arith.constant 5.000000e-01 : f32
    %1286 = vector.broadcast %cst_549 : f32 to vector<2x32xf32>
    %1287 = arith.mulf %1286, %1285 : vector<2x32xf32>
    %1288 = math.tanh %1287 : vector<2x32xf32>
    %cst_550 = arith.constant 1.000000e+00 : f32
    %1289 = vector.broadcast %cst_550 : f32 to vector<2x32xf32>
    %1290 = arith.addf %1288, %1289 : vector<2x32xf32>
    %cst_551 = arith.constant 5.000000e-01 : f32
    %1291 = vector.broadcast %cst_551 : f32 to vector<2x32xf32>
    %1292 = arith.mulf %1291, %1290 : vector<2x32xf32>
    %cst_552 = arith.constant dense<0.000000e+00> : vector<2x32xf32>
    %1293 = tpu.matmul %316, %770, %cst_552 {dimension_numbers = #tpu.dot_dimension_numbers<[1], [0], [0], [1], [0, 0, 1, 1], [], []>} : vector<2x32xf32>, vector<32x32xf32>, vector<2x32xf32> -> vector<2x32xf32>
    %1294 = vector.broadcast %788 : vector<1x32xf32> to vector<2x32xf32>
    %1295 = arith.addf %1294, %1293 : vector<2x32xf32>
    %cst_553 = arith.constant dense<0.000000e+00> : vector<2x32xf32>
    %1296 = tpu.matmul %526, %776, %cst_553 {dimension_numbers = #tpu.dot_dimension_numbers<[1], [0], [0], [1], [0, 0, 1, 1], [], []>} : vector<2x32xf32>, vector<32x32xf32>, vector<2x32xf32> -> vector<2x32xf32>
    %1297 = arith.addf %1295, %1296 : vector<2x32xf32>
    %cst_554 = arith.constant dense<0.000000e+00> : vector<2x32xf32>
    %1298 = tpu.matmul %1276, %782, %cst_554 {dimension_numbers = #tpu.dot_dimension_numbers<[1], [0], [0], [1], [0, 0, 1, 1], [], []>} : vector<2x32xf32>, vector<32x32xf32>, vector<2x32xf32> -> vector<2x32xf32>
    %1299 = vector.broadcast %794 : vector<1x32xf32> to vector<2x32xf32>
    %1300 = arith.addf %1298, %1299 : vector<2x32xf32>
    %1301 = arith.addf %1297, %1300 : vector<2x32xf32>
    %cst_555 = arith.constant 5.000000e-01 : f32
    %1302 = vector.broadcast %cst_555 : f32 to vector<2x32xf32>
    %1303 = arith.mulf %1302, %1301 : vector<2x32xf32>
    %1304 = math.tanh %1303 : vector<2x32xf32>
    %cst_556 = arith.constant 1.000000e+00 : f32
    %1305 = vector.broadcast %cst_556 : f32 to vector<2x32xf32>
    %1306 = arith.addf %1304, %1305 : vector<2x32xf32>
    %cst_557 = arith.constant 5.000000e-01 : f32
    %1307 = vector.broadcast %cst_557 : f32 to vector<2x32xf32>
    %1308 = arith.mulf %1307, %1306 : vector<2x32xf32>
    %cst_558 = arith.constant dense<0.000000e+00> : vector<2x32xf32>
    %1309 = tpu.matmul %316, %772, %cst_558 {dimension_numbers = #tpu.dot_dimension_numbers<[1], [0], [0], [1], [0, 0, 1, 1], [], []>} : vector<2x32xf32>, vector<32x32xf32>, vector<2x32xf32> -> vector<2x32xf32>
    %1310 = vector.broadcast %790 : vector<1x32xf32> to vector<2x32xf32>
    %1311 = arith.addf %1310, %1309 : vector<2x32xf32>
    %cst_559 = arith.constant dense<0.000000e+00> : vector<2x32xf32>
    %1312 = tpu.matmul %526, %778, %cst_559 {dimension_numbers = #tpu.dot_dimension_numbers<[1], [0], [0], [1], [0, 0, 1, 1], [], []>} : vector<2x32xf32>, vector<32x32xf32>, vector<2x32xf32> -> vector<2x32xf32>
    %1313 = arith.addf %1311, %1312 : vector<2x32xf32>
    %cst_560 = arith.constant dense<0.000000e+00> : vector<2x32xf32>
    %1314 = tpu.matmul %1276, %784, %cst_560 {dimension_numbers = #tpu.dot_dimension_numbers<[1], [0], [0], [1], [0, 0, 1, 1], [], []>} : vector<2x32xf32>, vector<32x32xf32>, vector<2x32xf32> -> vector<2x32xf32>
    %1315 = vector.broadcast %796 : vector<1x32xf32> to vector<2x32xf32>
    %1316 = arith.addf %1314, %1315 : vector<2x32xf32>
    %1317 = arith.mulf %1292, %1316 : vector<2x32xf32>
    %1318 = arith.addf %1313, %1317 : vector<2x32xf32>
    %1319 = math.tanh %1318 : vector<2x32xf32>
    %cst_561 = arith.constant 1.000000e+00 : f32
    %1320 = vector.broadcast %cst_561 : f32 to vector<2x32xf32>
    %1321 = arith.subf %1320, %1308 : vector<2x32xf32>
    %1322 = arith.mulf %1321, %1319 : vector<2x32xf32>
    %1323 = arith.mulf %1308, %1276 : vector<2x32xf32>
    %1324 = arith.addf %1322, %1323 : vector<2x32xf32>
    %cst_562 = arith.constant dense<0.000000e+00> : vector<2x32xf32>
    %1325 = tpu.matmul %274, %768, %cst_562 {dimension_numbers = #tpu.dot_dimension_numbers<[1], [0], [0], [1], [0, 0, 1, 1], [], []>} : vector<2x32xf32>, vector<32x32xf32>, vector<2x32xf32> -> vector<2x32xf32>
    %1326 = vector.broadcast %786 : vector<1x32xf32> to vector<2x32xf32>
    %1327 = arith.addf %1326, %1325 : vector<2x32xf32>
    %cst_563 = arith.constant dense<0.000000e+00> : vector<2x32xf32>
    %1328 = tpu.matmul %568, %774, %cst_563 {dimension_numbers = #tpu.dot_dimension_numbers<[1], [0], [0], [1], [0, 0, 1, 1], [], []>} : vector<2x32xf32>, vector<32x32xf32>, vector<2x32xf32> -> vector<2x32xf32>
    %1329 = arith.addf %1327, %1328 : vector<2x32xf32>
    %cst_564 = arith.constant dense<0.000000e+00> : vector<2x32xf32>
    %1330 = tpu.matmul %1324, %780, %cst_564 {dimension_numbers = #tpu.dot_dimension_numbers<[1], [0], [0], [1], [0, 0, 1, 1], [], []>} : vector<2x32xf32>, vector<32x32xf32>, vector<2x32xf32> -> vector<2x32xf32>
    %1331 = vector.broadcast %792 : vector<1x32xf32> to vector<2x32xf32>
    %1332 = arith.addf %1330, %1331 : vector<2x32xf32>
    %1333 = arith.addf %1329, %1332 : vector<2x32xf32>
    %cst_565 = arith.constant 5.000000e-01 : f32
    %1334 = vector.broadcast %cst_565 : f32 to vector<2x32xf32>
    %1335 = arith.mulf %1334, %1333 : vector<2x32xf32>
    %1336 = math.tanh %1335 : vector<2x32xf32>
    %cst_566 = arith.constant 1.000000e+00 : f32
    %1337 = vector.broadcast %cst_566 : f32 to vector<2x32xf32>
    %1338 = arith.addf %1336, %1337 : vector<2x32xf32>
    %cst_567 = arith.constant 5.000000e-01 : f32
    %1339 = vector.broadcast %cst_567 : f32 to vector<2x32xf32>
    %1340 = arith.mulf %1339, %1338 : vector<2x32xf32>
    %cst_568 = arith.constant dense<0.000000e+00> : vector<2x32xf32>
    %1341 = tpu.matmul %274, %770, %cst_568 {dimension_numbers = #tpu.dot_dimension_numbers<[1], [0], [0], [1], [0, 0, 1, 1], [], []>} : vector<2x32xf32>, vector<32x32xf32>, vector<2x32xf32> -> vector<2x32xf32>
    %1342 = vector.broadcast %788 : vector<1x32xf32> to vector<2x32xf32>
    %1343 = arith.addf %1342, %1341 : vector<2x32xf32>
    %cst_569 = arith.constant dense<0.000000e+00> : vector<2x32xf32>
    %1344 = tpu.matmul %568, %776, %cst_569 {dimension_numbers = #tpu.dot_dimension_numbers<[1], [0], [0], [1], [0, 0, 1, 1], [], []>} : vector<2x32xf32>, vector<32x32xf32>, vector<2x32xf32> -> vector<2x32xf32>
    %1345 = arith.addf %1343, %1344 : vector<2x32xf32>
    %cst_570 = arith.constant dense<0.000000e+00> : vector<2x32xf32>
    %1346 = tpu.matmul %1324, %782, %cst_570 {dimension_numbers = #tpu.dot_dimension_numbers<[1], [0], [0], [1], [0, 0, 1, 1], [], []>} : vector<2x32xf32>, vector<32x32xf32>, vector<2x32xf32> -> vector<2x32xf32>
    %1347 = vector.broadcast %794 : vector<1x32xf32> to vector<2x32xf32>
    %1348 = arith.addf %1346, %1347 : vector<2x32xf32>
    %1349 = arith.addf %1345, %1348 : vector<2x32xf32>
    %cst_571 = arith.constant 5.000000e-01 : f32
    %1350 = vector.broadcast %cst_571 : f32 to vector<2x32xf32>
    %1351 = arith.mulf %1350, %1349 : vector<2x32xf32>
    %1352 = math.tanh %1351 : vector<2x32xf32>
    %cst_572 = arith.constant 1.000000e+00 : f32
    %1353 = vector.broadcast %cst_572 : f32 to vector<2x32xf32>
    %1354 = arith.addf %1352, %1353 : vector<2x32xf32>
    %cst_573 = arith.constant 5.000000e-01 : f32
    %1355 = vector.broadcast %cst_573 : f32 to vector<2x32xf32>
    %1356 = arith.mulf %1355, %1354 : vector<2x32xf32>
    %cst_574 = arith.constant dense<0.000000e+00> : vector<2x32xf32>
    %1357 = tpu.matmul %274, %772, %cst_574 {dimension_numbers = #tpu.dot_dimension_numbers<[1], [0], [0], [1], [0, 0, 1, 1], [], []>} : vector<2x32xf32>, vector<32x32xf32>, vector<2x32xf32> -> vector<2x32xf32>
    %1358 = vector.broadcast %790 : vector<1x32xf32> to vector<2x32xf32>
    %1359 = arith.addf %1358, %1357 : vector<2x32xf32>
    %cst_575 = arith.constant dense<0.000000e+00> : vector<2x32xf32>
    %1360 = tpu.matmul %568, %778, %cst_575 {dimension_numbers = #tpu.dot_dimension_numbers<[1], [0], [0], [1], [0, 0, 1, 1], [], []>} : vector<2x32xf32>, vector<32x32xf32>, vector<2x32xf32> -> vector<2x32xf32>
    %1361 = arith.addf %1359, %1360 : vector<2x32xf32>
    %cst_576 = arith.constant dense<0.000000e+00> : vector<2x32xf32>
    %1362 = tpu.matmul %1324, %784, %cst_576 {dimension_numbers = #tpu.dot_dimension_numbers<[1], [0], [0], [1], [0, 0, 1, 1], [], []>} : vector<2x32xf32>, vector<32x32xf32>, vector<2x32xf32> -> vector<2x32xf32>
    %1363 = vector.broadcast %796 : vector<1x32xf32> to vector<2x32xf32>
    %1364 = arith.addf %1362, %1363 : vector<2x32xf32>
    %1365 = arith.mulf %1340, %1364 : vector<2x32xf32>
    %1366 = arith.addf %1361, %1365 : vector<2x32xf32>
    %1367 = math.tanh %1366 : vector<2x32xf32>
    %cst_577 = arith.constant 1.000000e+00 : f32
    %1368 = vector.broadcast %cst_577 : f32 to vector<2x32xf32>
    %1369 = arith.subf %1368, %1356 : vector<2x32xf32>
    %1370 = arith.mulf %1369, %1367 : vector<2x32xf32>
    %1371 = arith.mulf %1356, %1324 : vector<2x32xf32>
    %1372 = arith.addf %1370, %1371 : vector<2x32xf32>
    %cst_578 = arith.constant dense<0.000000e+00> : vector<2x32xf32>
    %1373 = tpu.matmul %232, %768, %cst_578 {dimension_numbers = #tpu.dot_dimension_numbers<[1], [0], [0], [1], [0, 0, 1, 1], [], []>} : vector<2x32xf32>, vector<32x32xf32>, vector<2x32xf32> -> vector<2x32xf32>
    %1374 = vector.broadcast %786 : vector<1x32xf32> to vector<2x32xf32>
    %1375 = arith.addf %1374, %1373 : vector<2x32xf32>
    %cst_579 = arith.constant dense<0.000000e+00> : vector<2x32xf32>
    %1376 = tpu.matmul %610, %774, %cst_579 {dimension_numbers = #tpu.dot_dimension_numbers<[1], [0], [0], [1], [0, 0, 1, 1], [], []>} : vector<2x32xf32>, vector<32x32xf32>, vector<2x32xf32> -> vector<2x32xf32>
    %1377 = arith.addf %1375, %1376 : vector<2x32xf32>
    %cst_580 = arith.constant dense<0.000000e+00> : vector<2x32xf32>
    %1378 = tpu.matmul %1372, %780, %cst_580 {dimension_numbers = #tpu.dot_dimension_numbers<[1], [0], [0], [1], [0, 0, 1, 1], [], []>} : vector<2x32xf32>, vector<32x32xf32>, vector<2x32xf32> -> vector<2x32xf32>
    %1379 = vector.broadcast %792 : vector<1x32xf32> to vector<2x32xf32>
    %1380 = arith.addf %1378, %1379 : vector<2x32xf32>
    %1381 = arith.addf %1377, %1380 : vector<2x32xf32>
    %cst_581 = arith.constant 5.000000e-01 : f32
    %1382 = vector.broadcast %cst_581 : f32 to vector<2x32xf32>
    %1383 = arith.mulf %1382, %1381 : vector<2x32xf32>
    %1384 = math.tanh %1383 : vector<2x32xf32>
    %cst_582 = arith.constant 1.000000e+00 : f32
    %1385 = vector.broadcast %cst_582 : f32 to vector<2x32xf32>
    %1386 = arith.addf %1384, %1385 : vector<2x32xf32>
    %cst_583 = arith.constant 5.000000e-01 : f32
    %1387 = vector.broadcast %cst_583 : f32 to vector<2x32xf32>
    %1388 = arith.mulf %1387, %1386 : vector<2x32xf32>
    %cst_584 = arith.constant dense<0.000000e+00> : vector<2x32xf32>
    %1389 = tpu.matmul %232, %770, %cst_584 {dimension_numbers = #tpu.dot_dimension_numbers<[1], [0], [0], [1], [0, 0, 1, 1], [], []>} : vector<2x32xf32>, vector<32x32xf32>, vector<2x32xf32> -> vector<2x32xf32>
    %1390 = vector.broadcast %788 : vector<1x32xf32> to vector<2x32xf32>
    %1391 = arith.addf %1390, %1389 : vector<2x32xf32>
    %cst_585 = arith.constant dense<0.000000e+00> : vector<2x32xf32>
    %1392 = tpu.matmul %610, %776, %cst_585 {dimension_numbers = #tpu.dot_dimension_numbers<[1], [0], [0], [1], [0, 0, 1, 1], [], []>} : vector<2x32xf32>, vector<32x32xf32>, vector<2x32xf32> -> vector<2x32xf32>
    %1393 = arith.addf %1391, %1392 : vector<2x32xf32>
    %cst_586 = arith.constant dense<0.000000e+00> : vector<2x32xf32>
    %1394 = tpu.matmul %1372, %782, %cst_586 {dimension_numbers = #tpu.dot_dimension_numbers<[1], [0], [0], [1], [0, 0, 1, 1], [], []>} : vector<2x32xf32>, vector<32x32xf32>, vector<2x32xf32> -> vector<2x32xf32>
    %1395 = vector.broadcast %794 : vector<1x32xf32> to vector<2x32xf32>
    %1396 = arith.addf %1394, %1395 : vector<2x32xf32>
    %1397 = arith.addf %1393, %1396 : vector<2x32xf32>
    %cst_587 = arith.constant 5.000000e-01 : f32
    %1398 = vector.broadcast %cst_587 : f32 to vector<2x32xf32>
    %1399 = arith.mulf %1398, %1397 : vector<2x32xf32>
    %1400 = math.tanh %1399 : vector<2x32xf32>
    %cst_588 = arith.constant 1.000000e+00 : f32
    %1401 = vector.broadcast %cst_588 : f32 to vector<2x32xf32>
    %1402 = arith.addf %1400, %1401 : vector<2x32xf32>
    %cst_589 = arith.constant 5.000000e-01 : f32
    %1403 = vector.broadcast %cst_589 : f32 to vector<2x32xf32>
    %1404 = arith.mulf %1403, %1402 : vector<2x32xf32>
    %cst_590 = arith.constant dense<0.000000e+00> : vector<2x32xf32>
    %1405 = tpu.matmul %232, %772, %cst_590 {dimension_numbers = #tpu.dot_dimension_numbers<[1], [0], [0], [1], [0, 0, 1, 1], [], []>} : vector<2x32xf32>, vector<32x32xf32>, vector<2x32xf32> -> vector<2x32xf32>
    %1406 = vector.broadcast %790 : vector<1x32xf32> to vector<2x32xf32>
    %1407 = arith.addf %1406, %1405 : vector<2x32xf32>
    %cst_591 = arith.constant dense<0.000000e+00> : vector<2x32xf32>
    %1408 = tpu.matmul %610, %778, %cst_591 {dimension_numbers = #tpu.dot_dimension_numbers<[1], [0], [0], [1], [0, 0, 1, 1], [], []>} : vector<2x32xf32>, vector<32x32xf32>, vector<2x32xf32> -> vector<2x32xf32>
    %1409 = arith.addf %1407, %1408 : vector<2x32xf32>
    %cst_592 = arith.constant dense<0.000000e+00> : vector<2x32xf32>
    %1410 = tpu.matmul %1372, %784, %cst_592 {dimension_numbers = #tpu.dot_dimension_numbers<[1], [0], [0], [1], [0, 0, 1, 1], [], []>} : vector<2x32xf32>, vector<32x32xf32>, vector<2x32xf32> -> vector<2x32xf32>
    %1411 = vector.broadcast %796 : vector<1x32xf32> to vector<2x32xf32>
    %1412 = arith.addf %1410, %1411 : vector<2x32xf32>
    %1413 = arith.mulf %1388, %1412 : vector<2x32xf32>
    %1414 = arith.addf %1409, %1413 : vector<2x32xf32>
    %1415 = math.tanh %1414 : vector<2x32xf32>
    %cst_593 = arith.constant 1.000000e+00 : f32
    %1416 = vector.broadcast %cst_593 : f32 to vector<2x32xf32>
    %1417 = arith.subf %1416, %1404 : vector<2x32xf32>
    %1418 = arith.mulf %1417, %1415 : vector<2x32xf32>
    %1419 = arith.mulf %1404, %1372 : vector<2x32xf32>
    %1420 = arith.addf %1418, %1419 : vector<2x32xf32>
    %cst_594 = arith.constant dense<0.000000e+00> : vector<2x32xf32>
    %1421 = tpu.matmul %190, %768, %cst_594 {dimension_numbers = #tpu.dot_dimension_numbers<[1], [0], [0], [1], [0, 0, 1, 1], [], []>} : vector<2x32xf32>, vector<32x32xf32>, vector<2x32xf32> -> vector<2x32xf32>
    %1422 = vector.broadcast %786 : vector<1x32xf32> to vector<2x32xf32>
    %1423 = arith.addf %1422, %1421 : vector<2x32xf32>
    %cst_595 = arith.constant dense<0.000000e+00> : vector<2x32xf32>
    %1424 = tpu.matmul %652, %774, %cst_595 {dimension_numbers = #tpu.dot_dimension_numbers<[1], [0], [0], [1], [0, 0, 1, 1], [], []>} : vector<2x32xf32>, vector<32x32xf32>, vector<2x32xf32> -> vector<2x32xf32>
    %1425 = arith.addf %1423, %1424 : vector<2x32xf32>
    %cst_596 = arith.constant dense<0.000000e+00> : vector<2x32xf32>
    %1426 = tpu.matmul %1420, %780, %cst_596 {dimension_numbers = #tpu.dot_dimension_numbers<[1], [0], [0], [1], [0, 0, 1, 1], [], []>} : vector<2x32xf32>, vector<32x32xf32>, vector<2x32xf32> -> vector<2x32xf32>
    %1427 = vector.broadcast %792 : vector<1x32xf32> to vector<2x32xf32>
    %1428 = arith.addf %1426, %1427 : vector<2x32xf32>
    %1429 = arith.addf %1425, %1428 : vector<2x32xf32>
    %cst_597 = arith.constant 5.000000e-01 : f32
    %1430 = vector.broadcast %cst_597 : f32 to vector<2x32xf32>
    %1431 = arith.mulf %1430, %1429 : vector<2x32xf32>
    %1432 = math.tanh %1431 : vector<2x32xf32>
    %cst_598 = arith.constant 1.000000e+00 : f32
    %1433 = vector.broadcast %cst_598 : f32 to vector<2x32xf32>
    %1434 = arith.addf %1432, %1433 : vector<2x32xf32>
    %cst_599 = arith.constant 5.000000e-01 : f32
    %1435 = vector.broadcast %cst_599 : f32 to vector<2x32xf32>
    %1436 = arith.mulf %1435, %1434 : vector<2x32xf32>
    %cst_600 = arith.constant dense<0.000000e+00> : vector<2x32xf32>
    %1437 = tpu.matmul %190, %770, %cst_600 {dimension_numbers = #tpu.dot_dimension_numbers<[1], [0], [0], [1], [0, 0, 1, 1], [], []>} : vector<2x32xf32>, vector<32x32xf32>, vector<2x32xf32> -> vector<2x32xf32>
    %1438 = vector.broadcast %788 : vector<1x32xf32> to vector<2x32xf32>
    %1439 = arith.addf %1438, %1437 : vector<2x32xf32>
    %cst_601 = arith.constant dense<0.000000e+00> : vector<2x32xf32>
    %1440 = tpu.matmul %652, %776, %cst_601 {dimension_numbers = #tpu.dot_dimension_numbers<[1], [0], [0], [1], [0, 0, 1, 1], [], []>} : vector<2x32xf32>, vector<32x32xf32>, vector<2x32xf32> -> vector<2x32xf32>
    %1441 = arith.addf %1439, %1440 : vector<2x32xf32>
    %cst_602 = arith.constant dense<0.000000e+00> : vector<2x32xf32>
    %1442 = tpu.matmul %1420, %782, %cst_602 {dimension_numbers = #tpu.dot_dimension_numbers<[1], [0], [0], [1], [0, 0, 1, 1], [], []>} : vector<2x32xf32>, vector<32x32xf32>, vector<2x32xf32> -> vector<2x32xf32>
    %1443 = vector.broadcast %794 : vector<1x32xf32> to vector<2x32xf32>
    %1444 = arith.addf %1442, %1443 : vector<2x32xf32>
    %1445 = arith.addf %1441, %1444 : vector<2x32xf32>
    %cst_603 = arith.constant 5.000000e-01 : f32
    %1446 = vector.broadcast %cst_603 : f32 to vector<2x32xf32>
    %1447 = arith.mulf %1446, %1445 : vector<2x32xf32>
    %1448 = math.tanh %1447 : vector<2x32xf32>
    %cst_604 = arith.constant 1.000000e+00 : f32
    %1449 = vector.broadcast %cst_604 : f32 to vector<2x32xf32>
    %1450 = arith.addf %1448, %1449 : vector<2x32xf32>
    %cst_605 = arith.constant 5.000000e-01 : f32
    %1451 = vector.broadcast %cst_605 : f32 to vector<2x32xf32>
    %1452 = arith.mulf %1451, %1450 : vector<2x32xf32>
    %cst_606 = arith.constant dense<0.000000e+00> : vector<2x32xf32>
    %1453 = tpu.matmul %190, %772, %cst_606 {dimension_numbers = #tpu.dot_dimension_numbers<[1], [0], [0], [1], [0, 0, 1, 1], [], []>} : vector<2x32xf32>, vector<32x32xf32>, vector<2x32xf32> -> vector<2x32xf32>
    %1454 = vector.broadcast %790 : vector<1x32xf32> to vector<2x32xf32>
    %1455 = arith.addf %1454, %1453 : vector<2x32xf32>
    %cst_607 = arith.constant dense<0.000000e+00> : vector<2x32xf32>
    %1456 = tpu.matmul %652, %778, %cst_607 {dimension_numbers = #tpu.dot_dimension_numbers<[1], [0], [0], [1], [0, 0, 1, 1], [], []>} : vector<2x32xf32>, vector<32x32xf32>, vector<2x32xf32> -> vector<2x32xf32>
    %1457 = arith.addf %1455, %1456 : vector<2x32xf32>
    %cst_608 = arith.constant dense<0.000000e+00> : vector<2x32xf32>
    %1458 = tpu.matmul %1420, %784, %cst_608 {dimension_numbers = #tpu.dot_dimension_numbers<[1], [0], [0], [1], [0, 0, 1, 1], [], []>} : vector<2x32xf32>, vector<32x32xf32>, vector<2x32xf32> -> vector<2x32xf32>
    %1459 = vector.broadcast %796 : vector<1x32xf32> to vector<2x32xf32>
    %1460 = arith.addf %1458, %1459 : vector<2x32xf32>
    %1461 = arith.mulf %1436, %1460 : vector<2x32xf32>
    %1462 = arith.addf %1457, %1461 : vector<2x32xf32>
    %1463 = math.tanh %1462 : vector<2x32xf32>
    %cst_609 = arith.constant 1.000000e+00 : f32
    %1464 = vector.broadcast %cst_609 : f32 to vector<2x32xf32>
    %1465 = arith.subf %1464, %1452 : vector<2x32xf32>
    %1466 = arith.mulf %1465, %1463 : vector<2x32xf32>
    %1467 = arith.mulf %1452, %1420 : vector<2x32xf32>
    %1468 = arith.addf %1466, %1467 : vector<2x32xf32>
    %cst_610 = arith.constant dense<0.000000e+00> : vector<2x32xf32>
    %1469 = tpu.matmul %148, %768, %cst_610 {dimension_numbers = #tpu.dot_dimension_numbers<[1], [0], [0], [1], [0, 0, 1, 1], [], []>} : vector<2x32xf32>, vector<32x32xf32>, vector<2x32xf32> -> vector<2x32xf32>
    %1470 = vector.broadcast %786 : vector<1x32xf32> to vector<2x32xf32>
    %1471 = arith.addf %1470, %1469 : vector<2x32xf32>
    %cst_611 = arith.constant dense<0.000000e+00> : vector<2x32xf32>
    %1472 = tpu.matmul %694, %774, %cst_611 {dimension_numbers = #tpu.dot_dimension_numbers<[1], [0], [0], [1], [0, 0, 1, 1], [], []>} : vector<2x32xf32>, vector<32x32xf32>, vector<2x32xf32> -> vector<2x32xf32>
    %1473 = arith.addf %1471, %1472 : vector<2x32xf32>
    %cst_612 = arith.constant dense<0.000000e+00> : vector<2x32xf32>
    %1474 = tpu.matmul %1468, %780, %cst_612 {dimension_numbers = #tpu.dot_dimension_numbers<[1], [0], [0], [1], [0, 0, 1, 1], [], []>} : vector<2x32xf32>, vector<32x32xf32>, vector<2x32xf32> -> vector<2x32xf32>
    %1475 = vector.broadcast %792 : vector<1x32xf32> to vector<2x32xf32>
    %1476 = arith.addf %1474, %1475 : vector<2x32xf32>
    %1477 = arith.addf %1473, %1476 : vector<2x32xf32>
    %cst_613 = arith.constant 5.000000e-01 : f32
    %1478 = vector.broadcast %cst_613 : f32 to vector<2x32xf32>
    %1479 = arith.mulf %1478, %1477 : vector<2x32xf32>
    %1480 = math.tanh %1479 : vector<2x32xf32>
    %cst_614 = arith.constant 1.000000e+00 : f32
    %1481 = vector.broadcast %cst_614 : f32 to vector<2x32xf32>
    %1482 = arith.addf %1480, %1481 : vector<2x32xf32>
    %cst_615 = arith.constant 5.000000e-01 : f32
    %1483 = vector.broadcast %cst_615 : f32 to vector<2x32xf32>
    %1484 = arith.mulf %1483, %1482 : vector<2x32xf32>
    %cst_616 = arith.constant dense<0.000000e+00> : vector<2x32xf32>
    %1485 = tpu.matmul %148, %770, %cst_616 {dimension_numbers = #tpu.dot_dimension_numbers<[1], [0], [0], [1], [0, 0, 1, 1], [], []>} : vector<2x32xf32>, vector<32x32xf32>, vector<2x32xf32> -> vector<2x32xf32>
    %1486 = vector.broadcast %788 : vector<1x32xf32> to vector<2x32xf32>
    %1487 = arith.addf %1486, %1485 : vector<2x32xf32>
    %cst_617 = arith.constant dense<0.000000e+00> : vector<2x32xf32>
    %1488 = tpu.matmul %694, %776, %cst_617 {dimension_numbers = #tpu.dot_dimension_numbers<[1], [0], [0], [1], [0, 0, 1, 1], [], []>} : vector<2x32xf32>, vector<32x32xf32>, vector<2x32xf32> -> vector<2x32xf32>
    %1489 = arith.addf %1487, %1488 : vector<2x32xf32>
    %cst_618 = arith.constant dense<0.000000e+00> : vector<2x32xf32>
    %1490 = tpu.matmul %1468, %782, %cst_618 {dimension_numbers = #tpu.dot_dimension_numbers<[1], [0], [0], [1], [0, 0, 1, 1], [], []>} : vector<2x32xf32>, vector<32x32xf32>, vector<2x32xf32> -> vector<2x32xf32>
    %1491 = vector.broadcast %794 : vector<1x32xf32> to vector<2x32xf32>
    %1492 = arith.addf %1490, %1491 : vector<2x32xf32>
    %1493 = arith.addf %1489, %1492 : vector<2x32xf32>
    %cst_619 = arith.constant 5.000000e-01 : f32
    %1494 = vector.broadcast %cst_619 : f32 to vector<2x32xf32>
    %1495 = arith.mulf %1494, %1493 : vector<2x32xf32>
    %1496 = math.tanh %1495 : vector<2x32xf32>
    %cst_620 = arith.constant 1.000000e+00 : f32
    %1497 = vector.broadcast %cst_620 : f32 to vector<2x32xf32>
    %1498 = arith.addf %1496, %1497 : vector<2x32xf32>
    %cst_621 = arith.constant 5.000000e-01 : f32
    %1499 = vector.broadcast %cst_621 : f32 to vector<2x32xf32>
    %1500 = arith.mulf %1499, %1498 : vector<2x32xf32>
    %cst_622 = arith.constant dense<0.000000e+00> : vector<2x32xf32>
    %1501 = tpu.matmul %148, %772, %cst_622 {dimension_numbers = #tpu.dot_dimension_numbers<[1], [0], [0], [1], [0, 0, 1, 1], [], []>} : vector<2x32xf32>, vector<32x32xf32>, vector<2x32xf32> -> vector<2x32xf32>
    %1502 = vector.broadcast %790 : vector<1x32xf32> to vector<2x32xf32>
    %1503 = arith.addf %1502, %1501 : vector<2x32xf32>
    %cst_623 = arith.constant dense<0.000000e+00> : vector<2x32xf32>
    %1504 = tpu.matmul %694, %778, %cst_623 {dimension_numbers = #tpu.dot_dimension_numbers<[1], [0], [0], [1], [0, 0, 1, 1], [], []>} : vector<2x32xf32>, vector<32x32xf32>, vector<2x32xf32> -> vector<2x32xf32>
    %1505 = arith.addf %1503, %1504 : vector<2x32xf32>
    %cst_624 = arith.constant dense<0.000000e+00> : vector<2x32xf32>
    %1506 = tpu.matmul %1468, %784, %cst_624 {dimension_numbers = #tpu.dot_dimension_numbers<[1], [0], [0], [1], [0, 0, 1, 1], [], []>} : vector<2x32xf32>, vector<32x32xf32>, vector<2x32xf32> -> vector<2x32xf32>
    %1507 = vector.broadcast %796 : vector<1x32xf32> to vector<2x32xf32>
    %1508 = arith.addf %1506, %1507 : vector<2x32xf32>
    %1509 = arith.mulf %1484, %1508 : vector<2x32xf32>
    %1510 = arith.addf %1505, %1509 : vector<2x32xf32>
    %1511 = math.tanh %1510 : vector<2x32xf32>
    %cst_625 = arith.constant 1.000000e+00 : f32
    %1512 = vector.broadcast %cst_625 : f32 to vector<2x32xf32>
    %1513 = arith.subf %1512, %1500 : vector<2x32xf32>
    %1514 = arith.mulf %1513, %1511 : vector<2x32xf32>
    %1515 = arith.mulf %1500, %1468 : vector<2x32xf32>
    %1516 = arith.addf %1514, %1515 : vector<2x32xf32>
    %cst_626 = arith.constant dense<0.000000e+00> : vector<2x32xf32>
    %1517 = tpu.matmul %106, %768, %cst_626 {dimension_numbers = #tpu.dot_dimension_numbers<[1], [0], [0], [1], [0, 0, 1, 1], [], []>} : vector<2x32xf32>, vector<32x32xf32>, vector<2x32xf32> -> vector<2x32xf32>
    %1518 = vector.broadcast %786 : vector<1x32xf32> to vector<2x32xf32>
    %1519 = arith.addf %1518, %1517 : vector<2x32xf32>
    %cst_627 = arith.constant dense<0.000000e+00> : vector<2x32xf32>
    %1520 = tpu.matmul %736, %774, %cst_627 {dimension_numbers = #tpu.dot_dimension_numbers<[1], [0], [0], [1], [0, 0, 1, 1], [], []>} : vector<2x32xf32>, vector<32x32xf32>, vector<2x32xf32> -> vector<2x32xf32>
    %1521 = arith.addf %1519, %1520 : vector<2x32xf32>
    %cst_628 = arith.constant dense<0.000000e+00> : vector<2x32xf32>
    %1522 = tpu.matmul %1516, %780, %cst_628 {dimension_numbers = #tpu.dot_dimension_numbers<[1], [0], [0], [1], [0, 0, 1, 1], [], []>} : vector<2x32xf32>, vector<32x32xf32>, vector<2x32xf32> -> vector<2x32xf32>
    %1523 = vector.broadcast %792 : vector<1x32xf32> to vector<2x32xf32>
    %1524 = arith.addf %1522, %1523 : vector<2x32xf32>
    %1525 = arith.addf %1521, %1524 : vector<2x32xf32>
    %cst_629 = arith.constant 5.000000e-01 : f32
    %1526 = vector.broadcast %cst_629 : f32 to vector<2x32xf32>
    %1527 = arith.mulf %1526, %1525 : vector<2x32xf32>
    %1528 = math.tanh %1527 : vector<2x32xf32>
    %cst_630 = arith.constant 1.000000e+00 : f32
    %1529 = vector.broadcast %cst_630 : f32 to vector<2x32xf32>
    %1530 = arith.addf %1528, %1529 : vector<2x32xf32>
    %cst_631 = arith.constant 5.000000e-01 : f32
    %1531 = vector.broadcast %cst_631 : f32 to vector<2x32xf32>
    %1532 = arith.mulf %1531, %1530 : vector<2x32xf32>
    %cst_632 = arith.constant dense<0.000000e+00> : vector<2x32xf32>
    %1533 = tpu.matmul %106, %770, %cst_632 {dimension_numbers = #tpu.dot_dimension_numbers<[1], [0], [0], [1], [0, 0, 1, 1], [], []>} : vector<2x32xf32>, vector<32x32xf32>, vector<2x32xf32> -> vector<2x32xf32>
    %1534 = vector.broadcast %788 : vector<1x32xf32> to vector<2x32xf32>
    %1535 = arith.addf %1534, %1533 : vector<2x32xf32>
    %cst_633 = arith.constant dense<0.000000e+00> : vector<2x32xf32>
    %1536 = tpu.matmul %736, %776, %cst_633 {dimension_numbers = #tpu.dot_dimension_numbers<[1], [0], [0], [1], [0, 0, 1, 1], [], []>} : vector<2x32xf32>, vector<32x32xf32>, vector<2x32xf32> -> vector<2x32xf32>
    %1537 = arith.addf %1535, %1536 : vector<2x32xf32>
    %cst_634 = arith.constant dense<0.000000e+00> : vector<2x32xf32>
    %1538 = tpu.matmul %1516, %782, %cst_634 {dimension_numbers = #tpu.dot_dimension_numbers<[1], [0], [0], [1], [0, 0, 1, 1], [], []>} : vector<2x32xf32>, vector<32x32xf32>, vector<2x32xf32> -> vector<2x32xf32>
    %1539 = vector.broadcast %794 : vector<1x32xf32> to vector<2x32xf32>
    %1540 = arith.addf %1538, %1539 : vector<2x32xf32>
    %1541 = arith.addf %1537, %1540 : vector<2x32xf32>
    %cst_635 = arith.constant 5.000000e-01 : f32
    %1542 = vector.broadcast %cst_635 : f32 to vector<2x32xf32>
    %1543 = arith.mulf %1542, %1541 : vector<2x32xf32>
    %1544 = math.tanh %1543 : vector<2x32xf32>
    %cst_636 = arith.constant 1.000000e+00 : f32
    %1545 = vector.broadcast %cst_636 : f32 to vector<2x32xf32>
    %1546 = arith.addf %1544, %1545 : vector<2x32xf32>
    %cst_637 = arith.constant 5.000000e-01 : f32
    %1547 = vector.broadcast %cst_637 : f32 to vector<2x32xf32>
    %1548 = arith.mulf %1547, %1546 : vector<2x32xf32>
    %cst_638 = arith.constant dense<0.000000e+00> : vector<2x32xf32>
    %1549 = tpu.matmul %106, %772, %cst_638 {dimension_numbers = #tpu.dot_dimension_numbers<[1], [0], [0], [1], [0, 0, 1, 1], [], []>} : vector<2x32xf32>, vector<32x32xf32>, vector<2x32xf32> -> vector<2x32xf32>
    %1550 = vector.broadcast %790 : vector<1x32xf32> to vector<2x32xf32>
    %1551 = arith.addf %1550, %1549 : vector<2x32xf32>
    %cst_639 = arith.constant dense<0.000000e+00> : vector<2x32xf32>
    %1552 = tpu.matmul %736, %778, %cst_639 {dimension_numbers = #tpu.dot_dimension_numbers<[1], [0], [0], [1], [0, 0, 1, 1], [], []>} : vector<2x32xf32>, vector<32x32xf32>, vector<2x32xf32> -> vector<2x32xf32>
    %1553 = arith.addf %1551, %1552 : vector<2x32xf32>
    %cst_640 = arith.constant dense<0.000000e+00> : vector<2x32xf32>
    %1554 = tpu.matmul %1516, %784, %cst_640 {dimension_numbers = #tpu.dot_dimension_numbers<[1], [0], [0], [1], [0, 0, 1, 1], [], []>} : vector<2x32xf32>, vector<32x32xf32>, vector<2x32xf32> -> vector<2x32xf32>
    %1555 = vector.broadcast %796 : vector<1x32xf32> to vector<2x32xf32>
    %1556 = arith.addf %1554, %1555 : vector<2x32xf32>
    %1557 = arith.mulf %1532, %1556 : vector<2x32xf32>
    %1558 = arith.addf %1553, %1557 : vector<2x32xf32>
    %1559 = math.tanh %1558 : vector<2x32xf32>
    %cst_641 = arith.constant 1.000000e+00 : f32
    %1560 = vector.broadcast %cst_641 : f32 to vector<2x32xf32>
    %1561 = arith.subf %1560, %1548 : vector<2x32xf32>
    %1562 = arith.mulf %1561, %1559 : vector<2x32xf32>
    %1563 = arith.mulf %1548, %1516 : vector<2x32xf32>
    %1564 = arith.addf %1562, %1563 : vector<2x32xf32>
    %c0_642 = arith.constant 0 : index
    %c0_643 = arith.constant 0 : index
    %1565 = vector.load %arg19[%c0_642, %c0_643] : memref<32x64xf32, #tpu.memory_space<vmem>>, vector<32x64xf32>
    %cst_644 = arith.constant dense<0.000000e+00> : vector<2x64xf32>
    %1566 = tpu.matmul %1180, %1565, %cst_644 {dimension_numbers = #tpu.dot_dimension_numbers<[1], [0], [0], [1], [0, 0, 1, 1], [], []>} : vector<2x32xf32>, vector<32x64xf32>, vector<2x64xf32> -> vector<2x64xf32>
    %c0_645 = arith.constant 0 : index
    %c0_646 = arith.constant 0 : index
    %1567 = vector.load %arg20[%c0_645, %c0_646] : memref<32x64xf32, #tpu.memory_space<vmem>>, vector<32x64xf32>
    %cst_647 = arith.constant dense<0.000000e+00> : vector<2x64xf32>
    %1568 = tpu.matmul %1564, %1567, %cst_647 {dimension_numbers = #tpu.dot_dimension_numbers<[1], [0], [0], [1], [0, 0, 1, 1], [], []>} : vector<2x32xf32>, vector<32x64xf32>, vector<2x64xf32> -> vector<2x64xf32>
    %1569 = arith.addf %1566, %1568 : vector<2x64xf32>
    %c0_648 = arith.constant 0 : index
    %c0_649 = arith.constant 0 : index
    %1570 = vector.load %arg21[%c0_648, %c0_649] : memref<1x64xf32, #tpu.memory_space<vmem>>, vector<1x64xf32>
    %1571 = vector.broadcast %1570 : vector<1x64xf32> to vector<2x64xf32>
    %1572 = arith.addf %1569, %1571 : vector<2x64xf32>
    %cst_650 = arith.constant 0.000000e+00 : f32
    %1573 = vector.broadcast %cst_650 : f32 to vector<2x64xf32>
    %1574 = arith.maximumf %1572, %1573 : vector<2x64xf32>
    %c0_651 = arith.constant 0 : index
    %c0_652 = arith.constant 0 : index
    %1575 = vector.load %arg22[%c0_651, %c0_652] : memref<64x32xf32, #tpu.memory_space<vmem>>, vector<64x32xf32>
    %cst_653 = arith.constant dense<0.000000e+00> : vector<2x32xf32>
    %1576 = tpu.matmul %1574, %1575, %cst_653 {dimension_numbers = #tpu.dot_dimension_numbers<[1], [0], [0], [1], [0, 0, 1, 1], [], []>} : vector<2x64xf32>, vector<64x32xf32>, vector<2x32xf32> -> vector<2x32xf32>
    %c0_654 = arith.constant 0 : index
    %c0_655 = arith.constant 0 : index
    %1577 = vector.load %arg23[%c0_654, %c0_655] : memref<1x32xf32, #tpu.memory_space<vmem>>, vector<1x32xf32>
    %1578 = vector.broadcast %1577 : vector<1x32xf32> to vector<2x32xf32>
    %1579 = arith.addf %1576, %1578 : vector<2x32xf32>
    %c0_656 = arith.constant 0 : index
    %c0_657 = arith.constant 0 : index
    %1580 = vector.load %arg30[%c0_656, %c0_657] : memref<2x32xf32, #tpu.memory_space<vmem>>, vector<2x32xf32>
    tpu.vector_store %arg30[%c0_656, %c0_657], %1579 {strides = array<i32>} : memref<2x32xf32, #tpu.memory_space<vmem>>, vector<2x32xf32>,
    %c0_658 = arith.constant 0 : index
    %c0_659 = arith.constant 0 : index
    %1581 = vector.load %arg24[%c0_658, %c0_659] : memref<32x64xf32, #tpu.memory_space<vmem>>, vector<32x64xf32>
    %c0_660 = arith.constant 0 : index
    %c0_661 = arith.constant 0 : index
    %1582 = vector.load %arg25[%c0_660, %c0_661] : memref<32x64xf32, #tpu.memory_space<vmem>>, vector<32x64xf32>
    %c0_662 = arith.constant 0 : index
    %c0_663 = arith.constant 0 : index
    %1583 = vector.load %arg26[%c0_662, %c0_663] : memref<1x64xf32, #tpu.memory_space<vmem>>, vector<1x64xf32>
    %c0_664 = arith.constant 0 : index
    %c0_665 = arith.constant 0 : index
    %1584 = vector.load %arg27[%c0_664, %c0_665] : memref<64x32xf32, #tpu.memory_space<vmem>>, vector<64x32xf32>
    %c0_666 = arith.constant 0 : index
    %c0_667 = arith.constant 0 : index
    %1585 = vector.load %arg28[%c0_666, %c0_667] : memref<1x32xf32, #tpu.memory_space<vmem>>, vector<1x32xf32>
    %cst_668 = arith.constant dense<0.000000e+00> : vector<2x64xf32>
    %1586 = tpu.matmul %844, %1581, %cst_668 {dimension_numbers = #tpu.dot_dimension_numbers<[1], [0], [0], [1], [0, 0, 1, 1], [], []>} : vector<2x32xf32>, vector<32x64xf32>, vector<2x64xf32> -> vector<2x64xf32>
    %cst_669 = arith.constant dense<0.000000e+00> : vector<2x64xf32>
    %1587 = tpu.matmul %1564, %1582, %cst_669 {dimension_numbers = #tpu.dot_dimension_numbers<[1], [0], [0], [1], [0, 0, 1, 1], [], []>} : vector<2x32xf32>, vector<32x64xf32>, vector<2x64xf32> -> vector<2x64xf32>
    %1588 = arith.addf %1586, %1587 : vector<2x64xf32>
    %1589 = vector.broadcast %1583 : vector<1x64xf32> to vector<2x64xf32>
    %1590 = arith.addf %1588, %1589 : vector<2x64xf32>
    %cst_670 = arith.constant 0.000000e+00 : f32
    %1591 = vector.broadcast %cst_670 : f32 to vector<2x64xf32>
    %1592 = arith.maximumf %1590, %1591 : vector<2x64xf32>
    %cst_671 = arith.constant dense<0.000000e+00> : vector<2x32xf32>
    %1593 = tpu.matmul %1592, %1584, %cst_671 {dimension_numbers = #tpu.dot_dimension_numbers<[1], [0], [0], [1], [0, 0, 1, 1], [], []>} : vector<2x64xf32>, vector<64x32xf32>, vector<2x32xf32> -> vector<2x32xf32>
    %1594 = vector.broadcast %1585 : vector<1x32xf32> to vector<2x32xf32>
    %1595 = arith.addf %1593, %1594 : vector<2x32xf32>
    %c0_672 = arith.constant 0 : index
    %c0_673 = arith.constant 0 : index
    %c0_674 = arith.constant 0 : index
    %1596 = vector.load %arg29[%c0_672, %c0_673, %c0_674] : memref<8x2x32xf32, #tpu.memory_space<vmem>>, vector<1x2x32xf32>
    %1597 = vector.shape_cast %1596 : vector<1x2x32xf32> to vector<2x32xf32>
    %1598 = vector.shape_cast %1595 : vector<2x32xf32> to vector<1x2x32xf32>
    tpu.vector_store %arg29[%c0_672, %c0_673, %c0_674], %1598 {strides = array<i32>} : memref<8x2x32xf32, #tpu.memory_space<vmem>>, vector<1x2x32xf32>,
    %cst_675 = arith.constant dense<0.000000e+00> : vector<2x64xf32>
    %1599 = tpu.matmul %892, %1581, %cst_675 {dimension_numbers = #tpu.dot_dimension_numbers<[1], [0], [0], [1], [0, 0, 1, 1], [], []>} : vector<2x32xf32>, vector<32x64xf32>, vector<2x64xf32> -> vector<2x64xf32>
    %cst_676 = arith.constant dense<0.000000e+00> : vector<2x64xf32>
    %1600 = tpu.matmul %1516, %1582, %cst_676 {dimension_numbers = #tpu.dot_dimension_numbers<[1], [0], [0], [1], [0, 0, 1, 1], [], []>} : vector<2x32xf32>, vector<32x64xf32>, vector<2x64xf32> -> vector<2x64xf32>
    %1601 = arith.addf %1599, %1600 : vector<2x64xf32>
    %1602 = vector.broadcast %1583 : vector<1x64xf32> to vector<2x64xf32>
    %1603 = arith.addf %1601, %1602 : vector<2x64xf32>
    %cst_677 = arith.constant 0.000000e+00 : f32
    %1604 = vector.broadcast %cst_677 : f32 to vector<2x64xf32>
    %1605 = arith.maximumf %1603, %1604 : vector<2x64xf32>
    %cst_678 = arith.constant dense<0.000000e+00> : vector<2x32xf32>
    %1606 = tpu.matmul %1605, %1584, %cst_678 {dimension_numbers = #tpu.dot_dimension_numbers<[1], [0], [0], [1], [0, 0, 1, 1], [], []>} : vector<2x64xf32>, vector<64x32xf32>, vector<2x32xf32> -> vector<2x32xf32>
    %1607 = vector.broadcast %1585 : vector<1x32xf32> to vector<2x32xf32>
    %1608 = arith.addf %1606, %1607 : vector<2x32xf32>
    %c1_679 = arith.constant 1 : index
    %c0_680 = arith.constant 0 : index
    %c0_681 = arith.constant 0 : index
    %1609 = vector.load %arg29[%c1_679, %c0_680, %c0_681] : memref<8x2x32xf32, #tpu.memory_space<vmem>>, vector<1x2x32xf32>
    %1610 = vector.shape_cast %1609 : vector<1x2x32xf32> to vector<2x32xf32>
    %1611 = vector.shape_cast %1608 : vector<2x32xf32> to vector<1x2x32xf32>
    tpu.vector_store %arg29[%c1_679, %c0_680, %c0_681], %1611 {strides = array<i32>} : memref<8x2x32xf32, #tpu.memory_space<vmem>>, vector<1x2x32xf32>,
    %cst_682 = arith.constant dense<0.000000e+00> : vector<2x64xf32>
    %1612 = tpu.matmul %940, %1581, %cst_682 {dimension_numbers = #tpu.dot_dimension_numbers<[1], [0], [0], [1], [0, 0, 1, 1], [], []>} : vector<2x32xf32>, vector<32x64xf32>, vector<2x64xf32> -> vector<2x64xf32>
    %cst_683 = arith.constant dense<0.000000e+00> : vector<2x64xf32>
    %1613 = tpu.matmul %1468, %1582, %cst_683 {dimension_numbers = #tpu.dot_dimension_numbers<[1], [0], [0], [1], [0, 0, 1, 1], [], []>} : vector<2x32xf32>, vector<32x64xf32>, vector<2x64xf32> -> vector<2x64xf32>
    %1614 = arith.addf %1612, %1613 : vector<2x64xf32>
    %1615 = vector.broadcast %1583 : vector<1x64xf32> to vector<2x64xf32>
    %1616 = arith.addf %1614, %1615 : vector<2x64xf32>
    %cst_684 = arith.constant 0.000000e+00 : f32
    %1617 = vector.broadcast %cst_684 : f32 to vector<2x64xf32>
    %1618 = arith.maximumf %1616, %1617 : vector<2x64xf32>
    %cst_685 = arith.constant dense<0.000000e+00> : vector<2x32xf32>
    %1619 = tpu.matmul %1618, %1584, %cst_685 {dimension_numbers = #tpu.dot_dimension_numbers<[1], [0], [0], [1], [0, 0, 1, 1], [], []>} : vector<2x64xf32>, vector<64x32xf32>, vector<2x32xf32> -> vector<2x32xf32>
    %1620 = vector.broadcast %1585 : vector<1x32xf32> to vector<2x32xf32>
    %1621 = arith.addf %1619, %1620 : vector<2x32xf32>
    %c2_686 = arith.constant 2 : index
    %c0_687 = arith.constant 0 : index
    %c0_688 = arith.constant 0 : index
    %1622 = vector.load %arg29[%c2_686, %c0_687, %c0_688] : memref<8x2x32xf32, #tpu.memory_space<vmem>>, vector<1x2x32xf32>
    %1623 = vector.shape_cast %1622 : vector<1x2x32xf32> to vector<2x32xf32>
    %1624 = vector.shape_cast %1621 : vector<2x32xf32> to vector<1x2x32xf32>
    tpu.vector_store %arg29[%c2_686, %c0_687, %c0_688], %1624 {strides = array<i32>} : memref<8x2x32xf32, #tpu.memory_space<vmem>>, vector<1x2x32xf32>,
    %cst_689 = arith.constant dense<0.000000e+00> : vector<2x64xf32>
    %1625 = tpu.matmul %988, %1581, %cst_689 {dimension_numbers = #tpu.dot_dimension_numbers<[1], [0], [0], [1], [0, 0, 1, 1], [], []>} : vector<2x32xf32>, vector<32x64xf32>, vector<2x64xf32> -> vector<2x64xf32>
    %cst_690 = arith.constant dense<0.000000e+00> : vector<2x64xf32>
    %1626 = tpu.matmul %1420, %1582, %cst_690 {dimension_numbers = #tpu.dot_dimension_numbers<[1], [0], [0], [1], [0, 0, 1, 1], [], []>} : vector<2x32xf32>, vector<32x64xf32>, vector<2x64xf32> -> vector<2x64xf32>
    %1627 = arith.addf %1625, %1626 : vector<2x64xf32>
    %1628 = vector.broadcast %1583 : vector<1x64xf32> to vector<2x64xf32>
    %1629 = arith.addf %1627, %1628 : vector<2x64xf32>
    %cst_691 = arith.constant 0.000000e+00 : f32
    %1630 = vector.broadcast %cst_691 : f32 to vector<2x64xf32>
    %1631 = arith.maximumf %1629, %1630 : vector<2x64xf32>
    %cst_692 = arith.constant dense<0.000000e+00> : vector<2x32xf32>
    %1632 = tpu.matmul %1631, %1584, %cst_692 {dimension_numbers = #tpu.dot_dimension_numbers<[1], [0], [0], [1], [0, 0, 1, 1], [], []>} : vector<2x64xf32>, vector<64x32xf32>, vector<2x32xf32> -> vector<2x32xf32>
    %1633 = vector.broadcast %1585 : vector<1x32xf32> to vector<2x32xf32>
    %1634 = arith.addf %1632, %1633 : vector<2x32xf32>
    %c3_693 = arith.constant 3 : index
    %c0_694 = arith.constant 0 : index
    %c0_695 = arith.constant 0 : index
    %1635 = vector.load %arg29[%c3_693, %c0_694, %c0_695] : memref<8x2x32xf32, #tpu.memory_space<vmem>>, vector<1x2x32xf32>
    %1636 = vector.shape_cast %1635 : vector<1x2x32xf32> to vector<2x32xf32>
    %1637 = vector.shape_cast %1634 : vector<2x32xf32> to vector<1x2x32xf32>
    tpu.vector_store %arg29[%c3_693, %c0_694, %c0_695], %1637 {strides = array<i32>} : memref<8x2x32xf32, #tpu.memory_space<vmem>>, vector<1x2x32xf32>,
    %cst_696 = arith.constant dense<0.000000e+00> : vector<2x64xf32>
    %1638 = tpu.matmul %1036, %1581, %cst_696 {dimension_numbers = #tpu.dot_dimension_numbers<[1], [0], [0], [1], [0, 0, 1, 1], [], []>} : vector<2x32xf32>, vector<32x64xf32>, vector<2x64xf32> -> vector<2x64xf32>
    %cst_697 = arith.constant dense<0.000000e+00> : vector<2x64xf32>
    %1639 = tpu.matmul %1372, %1582, %cst_697 {dimension_numbers = #tpu.dot_dimension_numbers<[1], [0], [0], [1], [0, 0, 1, 1], [], []>} : vector<2x32xf32>, vector<32x64xf32>, vector<2x64xf32> -> vector<2x64xf32>
    %1640 = arith.addf %1638, %1639 : vector<2x64xf32>
    %1641 = vector.broadcast %1583 : vector<1x64xf32> to vector<2x64xf32>
    %1642 = arith.addf %1640, %1641 : vector<2x64xf32>
    %cst_698 = arith.constant 0.000000e+00 : f32
    %1643 = vector.broadcast %cst_698 : f32 to vector<2x64xf32>
    %1644 = arith.maximumf %1642, %1643 : vector<2x64xf32>
    %cst_699 = arith.constant dense<0.000000e+00> : vector<2x32xf32>
    %1645 = tpu.matmul %1644, %1584, %cst_699 {dimension_numbers = #tpu.dot_dimension_numbers<[1], [0], [0], [1], [0, 0, 1, 1], [], []>} : vector<2x64xf32>, vector<64x32xf32>, vector<2x32xf32> -> vector<2x32xf32>
    %1646 = vector.broadcast %1585 : vector<1x32xf32> to vector<2x32xf32>
    %1647 = arith.addf %1645, %1646 : vector<2x32xf32>
    %c4_700 = arith.constant 4 : index
    %c0_701 = arith.constant 0 : index
    %c0_702 = arith.constant 0 : index
    %1648 = vector.load %arg29[%c4_700, %c0_701, %c0_702] : memref<8x2x32xf32, #tpu.memory_space<vmem>>, vector<1x2x32xf32>
    %1649 = vector.shape_cast %1648 : vector<1x2x32xf32> to vector<2x32xf32>
    %1650 = vector.shape_cast %1647 : vector<2x32xf32> to vector<1x2x32xf32>
    tpu.vector_store %arg29[%c4_700, %c0_701, %c0_702], %1650 {strides = array<i32>} : memref<8x2x32xf32, #tpu.memory_space<vmem>>, vector<1x2x32xf32>,
    %cst_703 = arith.constant dense<0.000000e+00> : vector<2x64xf32>
    %1651 = tpu.matmul %1084, %1581, %cst_703 {dimension_numbers = #tpu.dot_dimension_numbers<[1], [0], [0], [1], [0, 0, 1, 1], [], []>} : vector<2x32xf32>, vector<32x64xf32>, vector<2x64xf32> -> vector<2x64xf32>
    %cst_704 = arith.constant dense<0.000000e+00> : vector<2x64xf32>
    %1652 = tpu.matmul %1324, %1582, %cst_704 {dimension_numbers = #tpu.dot_dimension_numbers<[1], [0], [0], [1], [0, 0, 1, 1], [], []>} : vector<2x32xf32>, vector<32x64xf32>, vector<2x64xf32> -> vector<2x64xf32>
    %1653 = arith.addf %1651, %1652 : vector<2x64xf32>
    %1654 = vector.broadcast %1583 : vector<1x64xf32> to vector<2x64xf32>
    %1655 = arith.addf %1653, %1654 : vector<2x64xf32>
    %cst_705 = arith.constant 0.000000e+00 : f32
    %1656 = vector.broadcast %cst_705 : f32 to vector<2x64xf32>
    %1657 = arith.maximumf %1655, %1656 : vector<2x64xf32>
    %cst_706 = arith.constant dense<0.000000e+00> : vector<2x32xf32>
    %1658 = tpu.matmul %1657, %1584, %cst_706 {dimension_numbers = #tpu.dot_dimension_numbers<[1], [0], [0], [1], [0, 0, 1, 1], [], []>} : vector<2x64xf32>, vector<64x32xf32>, vector<2x32xf32> -> vector<2x32xf32>
    %1659 = vector.broadcast %1585 : vector<1x32xf32> to vector<2x32xf32>
    %1660 = arith.addf %1658, %1659 : vector<2x32xf32>
    %c5_707 = arith.constant 5 : index
    %c0_708 = arith.constant 0 : index
    %c0_709 = arith.constant 0 : index
    %1661 = vector.load %arg29[%c5_707, %c0_708, %c0_709] : memref<8x2x32xf32, #tpu.memory_space<vmem>>, vector<1x2x32xf32>
    %1662 = vector.shape_cast %1661 : vector<1x2x32xf32> to vector<2x32xf32>
    %1663 = vector.shape_cast %1660 : vector<2x32xf32> to vector<1x2x32xf32>
    tpu.vector_store %arg29[%c5_707, %c0_708, %c0_709], %1663 {strides = array<i32>} : memref<8x2x32xf32, #tpu.memory_space<vmem>>, vector<1x2x32xf32>,
    %cst_710 = arith.constant dense<0.000000e+00> : vector<2x64xf32>
    %1664 = tpu.matmul %1132, %1581, %cst_710 {dimension_numbers = #tpu.dot_dimension_numbers<[1], [0], [0], [1], [0, 0, 1, 1], [], []>} : vector<2x32xf32>, vector<32x64xf32>, vector<2x64xf32> -> vector<2x64xf32>
    %cst_711 = arith.constant dense<0.000000e+00> : vector<2x64xf32>
    %1665 = tpu.matmul %1276, %1582, %cst_711 {dimension_numbers = #tpu.dot_dimension_numbers<[1], [0], [0], [1], [0, 0, 1, 1], [], []>} : vector<2x32xf32>, vector<32x64xf32>, vector<2x64xf32> -> vector<2x64xf32>
    %1666 = arith.addf %1664, %1665 : vector<2x64xf32>
    %1667 = vector.broadcast %1583 : vector<1x64xf32> to vector<2x64xf32>
    %1668 = arith.addf %1666, %1667 : vector<2x64xf32>
    %cst_712 = arith.constant 0.000000e+00 : f32
    %1669 = vector.broadcast %cst_712 : f32 to vector<2x64xf32>
    %1670 = arith.maximumf %1668, %1669 : vector<2x64xf32>
    %cst_713 = arith.constant dense<0.000000e+00> : vector<2x32xf32>
    %1671 = tpu.matmul %1670, %1584, %cst_713 {dimension_numbers = #tpu.dot_dimension_numbers<[1], [0], [0], [1], [0, 0, 1, 1], [], []>} : vector<2x64xf32>, vector<64x32xf32>, vector<2x32xf32> -> vector<2x32xf32>
    %1672 = vector.broadcast %1585 : vector<1x32xf32> to vector<2x32xf32>
    %1673 = arith.addf %1671, %1672 : vector<2x32xf32>
    %c6_714 = arith.constant 6 : index
    %c0_715 = arith.constant 0 : index
    %c0_716 = arith.constant 0 : index
    %1674 = vector.load %arg29[%c6_714, %c0_715, %c0_716] : memref<8x2x32xf32, #tpu.memory_space<vmem>>, vector<1x2x32xf32>
    %1675 = vector.shape_cast %1674 : vector<1x2x32xf32> to vector<2x32xf32>
    %1676 = vector.shape_cast %1673 : vector<2x32xf32> to vector<1x2x32xf32>
    tpu.vector_store %arg29[%c6_714, %c0_715, %c0_716], %1676 {strides = array<i32>} : memref<8x2x32xf32, #tpu.memory_space<vmem>>, vector<1x2x32xf32>,
    %cst_717 = arith.constant dense<0.000000e+00> : vector<2x64xf32>
    %1677 = tpu.matmul %1180, %1581, %cst_717 {dimension_numbers = #tpu.dot_dimension_numbers<[1], [0], [0], [1], [0, 0, 1, 1], [], []>} : vector<2x32xf32>, vector<32x64xf32>, vector<2x64xf32> -> vector<2x64xf32>
    %cst_718 = arith.constant dense<0.000000e+00> : vector<2x64xf32>
    %1678 = tpu.matmul %1228, %1582, %cst_718 {dimension_numbers = #tpu.dot_dimension_numbers<[1], [0], [0], [1], [0, 0, 1, 1], [], []>} : vector<2x32xf32>, vector<32x64xf32>, vector<2x64xf32> -> vector<2x64xf32>
    %1679 = arith.addf %1677, %1678 : vector<2x64xf32>
    %1680 = vector.broadcast %1583 : vector<1x64xf32> to vector<2x64xf32>
    %1681 = arith.addf %1679, %1680 : vector<2x64xf32>
    %cst_719 = arith.constant 0.000000e+00 : f32
    %1682 = vector.broadcast %cst_719 : f32 to vector<2x64xf32>
    %1683 = arith.maximumf %1681, %1682 : vector<2x64xf32>
    %cst_720 = arith.constant dense<0.000000e+00> : vector<2x32xf32>
    %1684 = tpu.matmul %1683, %1584, %cst_720 {dimension_numbers = #tpu.dot_dimension_numbers<[1], [0], [0], [1], [0, 0, 1, 1], [], []>} : vector<2x64xf32>, vector<64x32xf32>, vector<2x32xf32> -> vector<2x32xf32>
    %1685 = vector.broadcast %1585 : vector<1x32xf32> to vector<2x32xf32>
    %1686 = arith.addf %1684, %1685 : vector<2x32xf32>
    %c7_721 = arith.constant 7 : index
    %c0_722 = arith.constant 0 : index
    %c0_723 = arith.constant 0 : index
    %1687 = vector.load %arg29[%c7_721, %c0_722, %c0_723] : memref<8x2x32xf32, #tpu.memory_space<vmem>>, vector<1x2x32xf32>
    %1688 = vector.shape_cast %1687 : vector<1x2x32xf32> to vector<2x32xf32>
    %1689 = vector.shape_cast %1686 : vector<2x32xf32> to vector<1x2x32xf32>
    tpu.vector_store %arg29[%c7_721, %c0_722, %c0_723], %1689 {strides = array<i32>} : memref<8x2x32xf32, #tpu.memory_space<vmem>>, vector<1x2x32xf32>,
    return
  }
}

</mosaic_0001>

<bundles_post_ra>
// kernel: tpu_custom_call.1
= control target key start
LH: loop header
LB: loop body
LE: loop exit
PB: predicated region body
PF: predicated region fallthrough
CT: control target
= control target key end

     0   :  { %s8231_s6 = smov 1   ;;  %s8232_s10 = smov 2   ;;  %s10780_s0 = inlined_call_operand.smem [shape: u32[31], index: -1, kind: input, shape index: {}] }
   0x1   :  { %s8298_s5 = sld [smem:[%s10780_s0]]   ;;  %s8233_s14 = smov 3  }
   0x2   :  { %s8303_s9 = sld [smem:[%s10780_s0 + %s8231_s6]]   ;;  %s8234_s18 = smov 4  }
   0x3   :  { %s8308_s13 = sld [smem:[%s10780_s0 + %s8232_s10]]   ;;  %s8235_s22 = smov 5  }
   0x4   :  { %s8313_s17 = sld [smem:[%s10780_s0 + %s8233_s14]]   ;;  %s8236_s26 = smov 6  }
   0x5   :  { %s8318_s21 = sld [smem:[%s10780_s0 + %s8234_s18]]   ;;  %s8237_s30 = smov 7  }
   0x6   :  { %s8323_s25 = sld [smem:[%s10780_s0 + %s8235_s22]]   ;;  %s8238_s4 = smov 8  }
   0x7   :  { %s8328_s29 = sld [smem:[%s10780_s0 + %s8236_s26]]   ;;  %s8239_s10 = smov 9  }
   0x8   :  { %10845 = sst [smem:[#allocation50_spill]] %s8303_s9  ;;  %s8240_s15 = smov 10  }
   0x9   :  { %10846 = sst [smem:[#allocation51_spill]] %s8308_s13  ;;  %s8241_s20 = smov 11  }
   0xa   :  { %s8333_s3 = sld [smem:[%s10780_s0 + %s8237_s30]]   ;;  %s8242_s26 = smov 12  }
   0xb   :  { %s8338_s8 = sld [smem:[%s10780_s0 + %s8238_s4]]   ;;  %s8243_s1 = smov 13  }
   0xc   :  { %s8343_s14 = sld [smem:[%s10780_s0 + %s8239_s10]]   ;;  %s8244_s7 = smov 14  }
   0xd   :  { %s8348_s19 = sld [smem:[%s10780_s0 + %s8240_s15]]   ;;  %s8245_s15 = smov 15  }
   0xe   :  { %s8353_s24 = sld [smem:[%s10780_s0 + %s8241_s20]]   ;;  %s8246_s22 = smov 16  }
   0xf   :  { %s8358_s30 = sld [smem:[%s10780_s0 + %s8242_s26]]   ;;  %s8247_s28 = smov 17  }
  0x10   :  { %s8363_s6 = sld [smem:[%s10780_s0 + %s8243_s1]]  }
  0x11   :  { %s8368_s12 = sld [smem:[%s10780_s0 + %s8244_s7]]   ;;  %s8248_s7 = smov 18  }
  0x12   :  { %s8373_s20 = sld [smem:[%s10780_s0 + %s8245_s15]]   ;;  %s8249_s15 = smov 19  }
  0x13   :  { %s8378_s27 = sld [smem:[%s10780_s0 + %s8246_s22]]   ;;  %s8250_s22 = smov 20  }
  0x14   :  { %s8383_s4 = sld [smem:[%s10780_s0 + %s8247_s28]]   ;;  %s8251_s28 = smov 21  }
  0x15   :  { %10847 = sst [smem:[#allocation52_spill]] %s8358_s30 }
  0x16   :  { %s8388_s13 = sld [smem:[%s10780_s0 + %s8248_s7]]   ;;  %s8252_s7 = smov 22  }
  0x17   :  { %10848 = sst [smem:[#allocation53_spill]] %s8368_s12 }
  0x18   :  { %s8393_s9 = sld [smem:[%s10780_s0 + %s8249_s15]]   ;;  %s8253_s15 = smov 23  }
  0x19   :  { %10849 = sst [smem:[#allocation54_spill]] %s8378_s27 }
  0x1a   :  { %s8398_s27 = sld [smem:[%s10780_s0 + %s8250_s22]]   ;;  %s8254_s22 = smov 24  }
  0x1b   :  { %s8403_s12 = sld [smem:[%s10780_s0 + %s8251_s28]]   ;;  %s8255_s28 = smov 25  }
  0x1c   :  { %10850 = sst [smem:[#allocation55_spill]] %s8388_s13 }
  0x1d   :  { %s8408_s13 = sld [smem:[%s10780_s0 + %s8252_s7]]   ;;  %s8256_s7 = smov 26  }
  0x1e   :  { %10851 = sst [smem:[#allocation56_spill]] %s8393_s9 }
  0x1f   :  { %s8413_s9 = sld [smem:[%s10780_s0 + %s8253_s15]]   ;;  %s8257_s15 = smov 27  }
  0x20   :  { %s8418_s30 = sld [smem:[%s10780_s0 + %s8254_s22]]   ;;  %s8258_s22 = smov 28  }
  0x21   :  { %10852 = sst [smem:[#allocation57_spill]] %s8403_s12 }
  0x22   :  { %s8423_s12 = sld [smem:[%s10780_s0 + %s8255_s28]]   ;;  %s8259_s28 = smov 29  }
  0x23   :  { %10853 = sst [smem:[#allocation58_spill]] %s8408_s13 }
  0x24   :  { %s8428_s13 = sld [smem:[%s10780_s0 + %s8256_s7]]   ;;  %s8260_s7 = smov 30  }
  0x25   :  { %10854 = sst [smem:[#allocation59_spill]] %s8413_s9 }
  0x26   :  { %10855 = sst [smem:[#allocation60_spill]] %s8418_s30 }
  0x27   :  { %s8433_s9 = sld [smem:[%s10780_s0 + %s8257_s15]]  }
  0x28   :  { %10856 = sst [smem:[#allocation61_spill]] %s8423_s12 }
  0x29   :  { %s8438_s30 = sld [smem:[%s10780_s0 + %s8258_s22]]  }
  0x2a   :  { %10857 = sst [smem:[#allocation62_spill]] %s8428_s13 }
  0x2b   :  { %s8443_s12 = sld [smem:[%s10780_s0 + %s8259_s28]]  }
  0x2c   :  { %s8448_s13 = sld [smem:[%s10780_s0 + %s8260_s7]]  }
  0x2d   :  { %67 = vsyncpa [#allocation3], 0 }
  0x2e   :  { %68 = vsyncpa [#allocation6], 0 }
  0x2f   :  { %69 = vsyncpa [#allocation9], 0 }
  0x30   :  { %70 = vsyncpa [#allocation12], 0 }
  0x31   :  { %71 = vsyncpa [#allocation15], 0 }
  0x32   :  { %72 = vsyncpa [#allocation18], 0 }
  0x33   :  { %73 = vsyncpa [#allocation21], 0 }
  0x34   :  { %74 = vsyncpa [#allocation24], 0 }
  0x35   :  { %75 = vsyncpa [#allocation27], 0 }
  0x36   :  { %76 = vsyncpa [#allocation30], 0 }
  0x37   :  { %77 = vsyncpa [#allocation33], 0 }
  0x38   :  { %78 = vsyncpa [#allocation4], 0  ;;  %s101_s15 = sshll.u32 %s8313_s17, 4  ;;  %s102_s15 = int_to_ptr.hbm [resolvable:$true] %s101_s15 }
  0x39   :  { %79 = vsyncpa [#allocation36], 0  ;;  %s8261_s0 = smov [#allocation5]   ;;  %s127_s18 = sshll.u32 %s8323_s25, 4  ;;  %s128_s18 = int_to_ptr.hbm [resolvable:$true] %s127_s18 }
  0x3a   :  { %s103_s16 = sshll.u32 %s8261_s0, 4  ;;  %s7677_s22 = sshra.s32 %s102_s15, 4  ;;  %s104_s16 = int_to_ptr.vmem [resolvable:$true] %s103_s16  ;;  %s7678_s22 = int_to_ptr.hbm [resolvable:$true] %s7677_s22 }
  0x3b   :  { %s7679_s23 = scalar_lea.hbm %s7678_s22, 3  ;;  %s7681_s26 = scalar_lea.hbm %s8313_s17, 3 }
  0x3c   :  { %p7680_p0 = scmp.ne.s32.totalorder %s7678_s22, %s7679_s23  ;;  %p7682_p1 = scmp.lt.s32.totalorder %s7678_s22, %s8313_s17 }
  0x3d   :  { %p7683_p2 = scmp.lt.s32.totalorder %s7681_s26, %s7679_s23 }
  0x3f   :  { %p7684_p3 = por %p7683_p2, %p7682_p1 }
  0x41   :  { %p7685_p4 = pnand %p7684_p3, %p7680_p0 }
  0x43   :  { %7688 = shalt.err (!%p7685_p4)
}
  0x44   :  { %s8262_s28 = smov 16   ;;  %s8263_s1 = smov 1  }
  0x45   :  { %109 = dma.hbm_to_vmem [thread:$0]  %s102_s15, 48, %s104_s16, [#allocation6], %s8262_s28, %s8262_s28, %s8263_s1  }
  0x46   :  { %s8264_s2 = smov [#allocation8]   ;;  %s7701_s10 = sshra.s32 %s128_s18, 4  ;;  %s7702_s10 = int_to_ptr.hbm [resolvable:$true] %s7701_s10 }
  0x47   :  { %s129_s7 = sshll.u32 %s8264_s2, 4  ;;  %s7703_s11 = scalar_lea.hbm %s7702_s10, 48  ;;  %s130_s7 = int_to_ptr.vmem [resolvable:$true] %s129_s7 }
  0x48   :  { %p7704_p5 = scmp.ne.s32.totalorder %s7702_s10, %s7703_s11  ;;  %s7705_s17 = scalar_lea.hbm %s8323_s25, 48 }
  0x49   :  { %p7706_p6 = scmp.lt.s32.totalorder %s7702_s10, %s8323_s25  ;;  %p7707_p7 = scmp.lt.s32.totalorder %s7705_s17, %s7703_s11 }
  0x4b   :  { %p7708_p8 = por %p7707_p7, %p7706_p6 }
  0x4d   :  { %p7709_p9 = pnand %p7708_p8, %p7704_p5 }
  0x4f   :  { %7712 = shalt.err (!%p7709_p9)
}
  0x50   :  { %s8265_s0 = smov 128   ;;  %s8266_s15 = smov 8  }
  0x51   :  { %135 = dma.hbm_to_vmem [thread:$0]  %s128_s18, 768, %s130_s7, [#allocation9], %s8265_s0, %s8265_s0, %s8266_s15  }
  0x52   :  { %s153_s16 = sshll.u32 %s8333_s3, 4  ;;  %s8267_s22 = smov [#allocation11]   ;;  %s154_s16 = int_to_ptr.hbm [resolvable:$true] %s153_s16 }
  0x53   :  { %s155_s23 = sshll.u32 %s8267_s22, 4  ;;  %s179_s25 = sshll.u32 %s8343_s14, 4  ;;  %s156_s23 = int_to_ptr.vmem [resolvable:$true] %s155_s23  ;;  %s180_s25 = int_to_ptr.hbm [resolvable:$true] %s179_s25 }
  0x54   :  { %s7725_s26 = sshra.s32 %s154_s16, 4  ;;  %s7729_s10 = scalar_lea.hbm %s8333_s3, 3  ;;  %s7726_s26 = int_to_ptr.hbm [resolvable:$true] %s7725_s26 }
  0x55   :  { %s7727_s2 = scalar_lea.hbm %s7726_s26, 3  ;;  %p7730_p11 = scmp.lt.s32.totalorder %s7726_s26, %s8333_s3 }
  0x56   :  { %p7728_p10 = scmp.ne.s32.totalorder %s7726_s26, %s7727_s2  ;;  %p7731_p12 = scmp.lt.s32.totalorder %s7729_s10, %s7727_s2 }
  0x58   :  { %p7732_p13 = por %p7731_p12, %p7730_p11 }
  0x5a   :  { %p7733_p0 = pnand %p7732_p13, %p7728_p10 }
  0x5c   :  { %7736 = shalt.err (!%p7733_p0)
}
  0x5d   :  { %161 = dma.hbm_to_vmem [thread:$0]  %s154_s16, 48, %s156_s23, [#allocation12], %s8262_s28, %s8262_s28, %s8263_s1  }
  0x5e   :  { %s8268_s18 = smov [#allocation14]   ;;  %s205_s11 = sshll.u32 %s8353_s24, 4  ;;  %s8470_s11 = int_to_ptr.hbm [resolvable:$true] %s205_s11 }
  0x5f   :  { %s181_s7 = sshll.u32 %s8268_s18, 4  ;;  %s7749_s17 = sshra.s32 %s180_s25, 4  ;;  %s182_s7 = int_to_ptr.vmem [resolvable:$true] %s181_s7  ;;  %s7750_s17 = int_to_ptr.hbm [resolvable:$true] %s7749_s17 }
  0x60   :  { %s7751_s3 = scalar_lea.hbm %s7750_s17, 96  ;;  %s7753_s22 = scalar_lea.hbm %s8343_s14, 96 }
  0x61   :  { %p7752_p1 = scmp.ne.s32.totalorder %s7750_s17, %s7751_s3  ;;  %p7754_p2 = scmp.lt.s32.totalorder %s7750_s17, %s8343_s14 }
  0x62   :  { %p7755_p3 = scmp.lt.s32.totalorder %s7753_s22, %s7751_s3 }
  0x64   :  { %p7756_p4 = por %p7755_p3, %p7754_p2 }
  0x66   :  { %p7757_p5 = pnand %p7756_p4, %p7752_p1 }
  0x68   :  { %7760 = shalt.err (!%p7757_p5)
}
  0x69   :  { %187 = dma.hbm_to_vmem [thread:$0]  %s180_s25, 1536, %s182_s7, [#allocation15], %s8265_s0, %s8265_s0, %s8266_s15  }
  0x6a   :  { %s231_s16 = sshll.u32 %s8363_s6, 4  ;;  %s8269_s23 = smov [#allocation17]   ;;  %s8478_s16 = int_to_ptr.hbm [resolvable:$true] %s231_s16 }
  0x6b   :  { %s207_s26 = sshll.u32 %s8269_s23, 4  ;;  %s7773_s2 = sshra.s32 %s8470_s11, 4  ;;  %s208_s26 = int_to_ptr.vmem [resolvable:$true] %s207_s26  ;;  %s7774_s2 = int_to_ptr.hbm [resolvable:$true] %s7773_s2 }
  0x6c   :  { %s7775_s14 = scalar_lea.hbm %s7774_s2, 96  ;;  %s7777_s10 = scalar_lea.hbm %s8353_s24, 96 }
  0x6d   :  { %p7776_p6 = scmp.ne.s32.totalorder %s7774_s2, %s7775_s14  ;;  %p7778_p7 = scmp.lt.s32.totalorder %s7774_s2, %s8353_s24 }
  0x6e   :  { %p7779_p8 = scmp.lt.s32.totalorder %s7777_s10, %s7775_s14 }
  0x70   :  { %p7780_p9 = por %p7779_p8, %p7778_p7 }
  0x72   :  { %p7781_p10 = pnand %p7780_p9, %p7776_p6 }
  0x74   :  { %7784 = shalt.err (!%p7781_p10)
}
  0x75   :  { %213 = dma.hbm_to_vmem [thread:$0]  %s8470_s11, 1536, %s208_s26, [#allocation18], %s8265_s0, %s8265_s0, %s8266_s15  }
  0x76   :  { %s8270_s25 = smov [#allocation20]   ;;  %s257_s7 = sshll.u32 %s8373_s20, 4  ;;  %s8488_s7 = int_to_ptr.hbm [resolvable:$true] %s257_s7 }
  0x77   :  { %s233_s18 = sshll.u32 %s8270_s25, 4  ;;  %s7797_s24 = sshra.s32 %s8478_s16, 4  ;;  %s234_s18 = int_to_ptr.vmem [resolvable:$true] %s233_s18  ;;  %s7798_s24 = int_to_ptr.hbm [resolvable:$true] %s7797_s24 }
  0x78   :  { %s7799_s17 = scalar_lea.hbm %s7798_s24, 3  ;;  %s7801_s3 = scalar_lea.hbm %s8363_s6, 3 }
  0x79   :  { %p7800_p11 = scmp.ne.s32.totalorder %s7798_s24, %s7799_s17  ;;  %p7802_p12 = scmp.lt.s32.totalorder %s7798_s24, %s8363_s6 }
  0x7a   :  { %p7803_p13 = scmp.lt.s32.totalorder %s7801_s3, %s7799_s17 }
  0x7c   :  { %p7804_p0 = por %p7803_p13, %p7802_p12 }
  0x7e   :  { %p7805_p1 = pnand %p7804_p0, %p7800_p11 }
  0x80   :  { %7808 = shalt.err (!%p7805_p1)
}
  0x81   :  { %239 = dma.hbm_to_vmem [thread:$0]  %s8478_s16, 48, %s234_s18, [#allocation21], %s8262_s28, %s8262_s28, %s8263_s1  }
  0x82   :  { %s283_s11 = sshll.u32 %s8383_s4, 4  ;;  %s8271_s22 = smov [#allocation23]   ;;  %s8498_s11 = int_to_ptr.hbm [resolvable:$true] %s283_s11 }
  0x83   :  { %s259_s23 = sshll.u32 %s8271_s22, 4  ;;  %s7821_s6 = sshra.s32 %s8488_s7, 4  ;;  %s260_s23 = int_to_ptr.vmem [resolvable:$true] %s259_s23  ;;  %s7822_s6 = int_to_ptr.hbm [resolvable:$true] %s7821_s6 }
  0x84   :  { %s7823_s26 = scalar_lea.hbm %s7822_s6, 96  ;;  %s7825_s2 = scalar_lea.hbm %s8373_s20, 96 }
  0x85   :  { %p7824_p2 = scmp.ne.s32.totalorder %s7822_s6, %s7823_s26  ;;  %p7826_p3 = scmp.lt.s32.totalorder %s7822_s6, %s8373_s20 }
  0x86   :  { %p7827_p4 = scmp.lt.s32.totalorder %s7825_s2, %s7823_s26 }
  0x88   :  { %p7828_p5 = por %p7827_p4, %p7826_p3 }
  0x8a   :  { %p7829_p6 = pnand %p7828_p5, %p7824_p2 }
  0x8c   :  { %7832 = shalt.err (!%p7829_p6)
}
  0x8d   :  { %265 = dma.hbm_to_vmem [thread:$0]  %s8488_s7, 1536, %s260_s23, [#allocation24], %s8265_s0, %s8265_s0, %s8266_s15  }
  0x8e   :  { %s8272_s16 = smov [#allocation26]   ;;  %s311_s10 = sshll.u32 %s8398_s27, 4  ;;  %s8508_s10 = int_to_ptr.hbm [resolvable:$true] %s311_s10 }
  0x8f   :  { %s285_s14 = sshll.u32 %s8272_s16, 4  ;;  %s7845_s20 = sshra.s32 %s8498_s11, 4  ;;  %s286_s14 = int_to_ptr.vmem [resolvable:$true] %s285_s14  ;;  %s7846_s20 = int_to_ptr.hbm [resolvable:$true] %s7845_s20 }
  0x90   :  { %s7847_s25 = scalar_lea.hbm %s7846_s20, 3  ;;  %s7849_s18 = scalar_lea.hbm %s8383_s4, 3 }
  0x91   :  { %p7848_p7 = scmp.ne.s32.totalorder %s7846_s20, %s7847_s25  ;;  %p7850_p8 = scmp.lt.s32.totalorder %s7846_s20, %s8383_s4 }
  0x92   :  { %p7851_p9 = scmp.lt.s32.totalorder %s7849_s18, %s7847_s25 }
  0x94   :  { %p7852_p10 = por %p7851_p9, %p7850_p8 }
  0x96   :  { %p7853_p11 = pnand %p7852_p10, %p7848_p7 }
  0x98   :  { %7856 = shalt.err (!%p7853_p11)
}
  0x99   :  { %291 = dma.hbm_to_vmem [thread:$0]  %s8498_s11, 48, %s286_s14, [#allocation27], %s8262_s28, %s8262_s28, %s8263_s1  }
  0x9a   :  { %s84_s7 = sshll.u32 %s8298_s5, 4  ;;  %s8273_s24 = smov [#allocation29]   ;;  %s8518_s7 = int_to_ptr.hbm [resolvable:$true] %s84_s7 }
  0x9b   :  { %s313_s17 = sshll.u32 %s8273_s24, 4  ;;  %s7869_s4 = sshra.s32 %s8508_s10, 4  ;;  %s314_s17 = int_to_ptr.vmem [resolvable:$true] %s313_s17  ;;  %s7870_s4 = int_to_ptr.hbm [resolvable:$true] %s7869_s4 }
  0x9c   :  { %s7871_s3 = scalar_lea.hbm %s7870_s4, 32  ;;  %s7873_s22 = scalar_lea.hbm %s8398_s27, 32 }
  0x9d   :  { %p7872_p12 = scmp.ne.s32.totalorder %s7870_s4, %s7871_s3  ;;  %p7874_p13 = scmp.lt.s32.totalorder %s7870_s4, %s8398_s27 }
  0x9e   :  { %p7875_p0 = scmp.lt.s32.totalorder %s7873_s22, %s7871_s3 }
  0xa0   :  { %p7876_p1 = por %p7875_p0, %p7874_p13 }
  0xa2   :  { %p7877_p2 = pnand %p7876_p1, %p7872_p12 }
  0xa4   :  { %7880 = shalt.err (!%p7877_p2)
}
  0xa5   :  { %319 = dma.hbm_to_vmem [thread:$0]  %s8508_s10, 512, %s314_s17, [#allocation30], %s8265_s0, %s8265_s0, %s8266_s15  }
  0xa6   :  { %s8274_s11 = smov [#allocation2]   ;;  %s7893_s6 = sshra.s32 %s8518_s7, 4  ;;  %s7894_s6 = int_to_ptr.hbm [resolvable:$true] %s7893_s6 }
  0xa7   :  { %s86_s23 = sshll.u32 %s8274_s11, 4  ;;  %s7895_s26 = scalar_lea.hbm %s7894_s6, 16  ;;  %s87_s23 = int_to_ptr.vmem [resolvable:$true] %s86_s23 }
  0xa8   :  { %p7896_p3 = scmp.ne.s32.totalorder %s7894_s6, %s7895_s26  ;;  %s7897_s27 = scalar_lea.hbm %s8298_s5, 16 }
  0xa9   :  { %p7898_p4 = scmp.lt.s32.totalorder %s7894_s6, %s8298_s5  ;;  %p7899_p5 = scmp.lt.s32.totalorder %s7897_s27, %s7895_s26 }
  0xab   :  { %p7900_p6 = por %p7899_p5, %p7898_p4 }
  0xad   :  { %p7901_p7 = pnand %p7900_p6, %p7896_p3 }
  0xaf   :  { %7904 = shalt.err (!%p7901_p7)
}
  0xb0   :  { %s8275_s2 = smov 32   ;;  %s8276_s16 = smov 2  }
  0xb1   :  { %92 = dma.hbm_to_vmem [thread:$0]  %s8518_s7, 256, %s87_s23, [#allocation3], %s8275_s2, %s8275_s2, %s8276_s16  }
  0xb2   :  { %s114_s14 = sshll.u32 %s8318_s21, 4  ;;  %s8277_s10 = smov [#allocation7]   ;;  %s115_s14 = int_to_ptr.hbm [resolvable:$true] %s114_s14 }
  0xb3   :  { %s116_s20 = sshll.u32 %s8277_s10, 4  ;;  %s140_s5 = sshll.u32 %s8328_s29, 4  ;;  %s117_s20 = int_to_ptr.vmem [resolvable:$true] %s116_s20  ;;  %s141_s5 = int_to_ptr.hbm [resolvable:$true] %s140_s5 }
  0xb4   :  { %s7917_s25 = sshra.s32 %s115_s14, 4  ;;  %s7921_s24 = scalar_lea.hbm %s8318_s21, 3  ;;  %s7918_s25 = int_to_ptr.hbm [resolvable:$true] %s7917_s25 }
  0xb5   :  { %s7919_s18 = scalar_lea.hbm %s7918_s25, 3  ;;  %p7922_p9 = scmp.lt.s32.totalorder %s7918_s25, %s8318_s21 }
  0xb6   :  { %p7920_p8 = scmp.ne.s32.totalorder %s7918_s25, %s7919_s18  ;;  %p7923_p10 = scmp.lt.s32.totalorder %s7921_s24, %s7919_s18 }
  0xb8   :  { %p7924_p11 = por %p7923_p10, %p7922_p9 }
  0xba   :  { %p7925_p12 = pnand %p7924_p11, %p7920_p8 }
  0xbc   :  { %7928 = shalt.err (!%p7925_p12)
}
  0xbd   :  { %122 = dma.hbm_to_vmem [thread:$0]  %s115_s14, 48, %s117_s20, [#allocation6], %s8262_s28, %s8262_s28, %s8263_s1  }
  0xbe   :  { %s8278_s7 = smov [#allocation10]   ;;  %s166_s4 = sshll.u32 %s8338_s8, 4  ;;  %s8542_s4 = int_to_ptr.hbm [resolvable:$true] %s166_s4 }
  0xbf   :  { %s142_s17 = sshll.u32 %s8278_s7, 4  ;;  %s7941_s3 = sshra.s32 %s141_s5, 4  ;;  %s143_s17 = int_to_ptr.vmem [resolvable:$true] %s142_s17  ;;  %s7942_s3 = int_to_ptr.hbm [resolvable:$true] %s7941_s3 }
  0xc0   :  { %s7943_s21 = scalar_lea.hbm %s7942_s3, 96  ;;  %s7945_s22 = scalar_lea.hbm %s8328_s29, 96 }
  0xc1   :  { %p7944_p13 = scmp.ne.s32.totalorder %s7942_s3, %s7943_s21  ;;  %p7946_p0 = scmp.lt.s32.totalorder %s7942_s3, %s8328_s29 }
  0xc2   :  { %p7947_p1 = scmp.lt.s32.totalorder %s7945_s22, %s7943_s21 }
  0xc4   :  { %p7948_p2 = por %p7947_p1, %p7946_p0 }
  0xc6   :  { %p7949_p3 = pnand %p7948_p2, %p7944_p13 }
  0xc8   :  { %7952 = shalt.err (!%p7949_p3)
}
  0xc9   :  { %148 = dma.hbm_to_vmem [thread:$0]  %s141_s5, 1536, %s143_s17, [#allocation9], %s8265_s0, %s8265_s0, %s8266_s15  }
  0xca   :  { %s192_s11 = sshll.u32 %s8348_s19, 4  ;;  %s8279_s23 = smov [#allocation13]   ;;  %s8550_s11 = int_to_ptr.hbm [resolvable:$true] %s192_s11 }
  0xcb   :  { %s168_s6 = sshll.u32 %s8279_s23, 4  ;;  %s7965_s26 = sshra.s32 %s8542_s4, 4  ;;  %s169_s6 = int_to_ptr.vmem [resolvable:$true] %s168_s6  ;;  %s7966_s26 = int_to_ptr.hbm [resolvable:$true] %s7965_s26 }
  0xcc   :  { %s7967_s29 = scalar_lea.hbm %s7966_s26, 3  ;;  %s7969_s27 = scalar_lea.hbm %s8338_s8, 3 }
  0xcd   :  { %p7968_p4 = scmp.ne.s32.totalorder %s7966_s26, %s7967_s29  ;;  %p7970_p5 = scmp.lt.s32.totalorder %s7966_s26, %s8338_s8 }
  0xce   :  { %p7971_p6 = scmp.lt.s32.totalorder %s7969_s27, %s7967_s29 }
  0xd0   :  { %p7972_p7 = por %p7971_p6, %p7970_p5 }
  0xd2   :  { %p7973_p8 = pnand %p7972_p7, %p7968_p4 }
  0xd4   :  { %7976 = shalt.err (!%p7973_p8)
}
  0xd5   :  { %s10858_s14 = sld [smem:[#allocation52_spill]]  ;;  %s8280_s10 = smov [#allocation16]  }
  0xd6   :  { %174 = dma.hbm_to_vmem [thread:$0]  %s8542_s4, 48, %s169_s6, [#allocation12], %s8262_s28, %s8262_s28, %s8263_s1  }
  0xd7   :  { %s194_s20 = sshll.u32 %s8280_s10, 4  ;;  %s7989_s8 = sshra.s32 %s8550_s11, 4  ;;  %s195_s20 = int_to_ptr.vmem [resolvable:$true] %s194_s20  ;;  %s7990_s8 = int_to_ptr.hbm [resolvable:$true] %s7989_s8 }
  0xd8   :  { %s7991_s25 = scalar_lea.hbm %s7990_s8, 96  ;;  %s7993_s18 = scalar_lea.hbm %s8348_s19, 96 }
  0xd9   :  { %p7992_p9 = scmp.ne.s32.totalorder %s7990_s8, %s7991_s25  ;;  %p7994_p10 = scmp.lt.s32.totalorder %s7990_s8, %s8348_s19 }
  0xda   :  { %p7995_p11 = scmp.lt.s32.totalorder %s7993_s18, %s7991_s25 }
  0xdb   :  { %s218_s5 = sshll.u32 %s10858_s14, 4  ;;  %s8560_s5 = int_to_ptr.hbm [resolvable:$true] %s218_s5 }
  0xdc   :  { %p7996_p12 = por %p7995_p11, %p7994_p10 }
  0xde   :  { %p7997_p13 = pnand %p7996_p12, %p7992_p9 }
  0xe0   :  { %8000 = shalt.err (!%p7997_p13)
}
  0xe1   :  { %s10859_s24 = sld [smem:[#allocation53_spill]]  ;;  %s8281_s17 = smov [#allocation19]  }
  0xe2   :  { %200 = dma.hbm_to_vmem [thread:$0]  %s8550_s11, 1536, %s195_s20, [#allocation15], %s8265_s0, %s8265_s0, %s8266_s15  }
  0xe3   :  { %s220_s4 = sshll.u32 %s8281_s17, 4  ;;  %s8013_s19 = sshra.s32 %s8560_s5, 4  ;;  %s221_s4 = int_to_ptr.vmem [resolvable:$true] %s220_s4  ;;  %s8014_s19 = int_to_ptr.hbm [resolvable:$true] %s8013_s19 }
  0xe4   :  { %s8015_s3 = scalar_lea.hbm %s8014_s19, 3  ;;  %s8017_s21 = scalar_lea.hbm %s10858_s14, 3 }
  0xe5   :  { %p8016_p0 = scmp.ne.s32.totalorder %s8014_s19, %s8015_s3  ;;  %p8018_p1 = scmp.lt.s32.totalorder %s8014_s19, %s10858_s14 }
  0xe6   :  { %p8019_p2 = scmp.lt.s32.totalorder %s8017_s21, %s8015_s3 }
  0xe7   :  { %s244_s7 = sshll.u32 %s10859_s24, 4  ;;  %s8570_s7 = int_to_ptr.hbm [resolvable:$true] %s244_s7 }
  0xe8   :  { %p8020_p3 = por %p8019_p2, %p8018_p1 }
  0xea   :  { %p8021_p4 = pnand %p8020_p3, %p8016_p0 }
  0xec   :  { %8024 = shalt.err (!%p8021_p4)
}
  0xed   :  { %s10860_s22 = sld [smem:[#allocation54_spill]]  ;;  %s8282_s11 = smov [#allocation22]  }
  0xee   :  { %226 = dma.hbm_to_vmem [thread:$0]  %s8560_s5, 48, %s221_s4, [#allocation18], %s8262_s28, %s8262_s28, %s8263_s1  }
  0xef   :  { %s246_s23 = sshll.u32 %s8282_s11, 4  ;;  %s8037_s26 = sshra.s32 %s8570_s7, 4  ;;  %s247_s23 = int_to_ptr.vmem [resolvable:$true] %s246_s23  ;;  %s8038_s26 = int_to_ptr.hbm [resolvable:$true] %s8037_s26 }
  0xf0   :  { %s8039_s29 = scalar_lea.hbm %s8038_s26, 96  ;;  %s8041_s27 = scalar_lea.hbm %s10859_s24, 96 }
  0xf1   :  { %p8040_p5 = scmp.ne.s32.totalorder %s8038_s26, %s8039_s29  ;;  %p8042_p6 = scmp.lt.s32.totalorder %s8038_s26, %s10859_s24 }
  0xf2   :  { %p8043_p7 = scmp.lt.s32.totalorder %s8041_s27, %s8039_s29 }
  0xf3   :  { %s270_s6 = sshll.u32 %s10860_s22, 4  ;;  %s8580_s6 = int_to_ptr.hbm [resolvable:$true] %s270_s6 }
  0xf4   :  { %p8044_p8 = por %p8043_p7, %p8042_p6 }
  0xf6   :  { %p8045_p9 = pnand %p8044_p8, %p8040_p5 }
  0xf8   :  { %8048 = shalt.err (!%p8045_p9)
}
  0xf9   :  { %s10861_s14 = sld [smem:[#allocation55_spill]]  ;;  %s8283_s20 = smov [#allocation25]  }
  0xfa   :  { %252 = dma.hbm_to_vmem [thread:$0]  %s8570_s7, 1536, %s247_s23, [#allocation21], %s8265_s0, %s8265_s0, %s8266_s15  }
  0xfb   :  { %s272_s5 = sshll.u32 %s8283_s20, 4  ;;  %s8061_s8 = sshra.s32 %s8580_s6, 4  ;;  %s273_s5 = int_to_ptr.vmem [resolvable:$true] %s272_s5  ;;  %s8062_s8 = int_to_ptr.hbm [resolvable:$true] %s8061_s8 }
  0xfc   :  { %s8063_s25 = scalar_lea.hbm %s8062_s8, 96  ;;  %s8065_s18 = scalar_lea.hbm %s10860_s22, 96 }
  0xfd   :  { %p8064_p10 = scmp.ne.s32.totalorder %s8062_s8, %s8063_s25  ;;  %p8066_p11 = scmp.lt.s32.totalorder %s8062_s8, %s10860_s22 }
  0xfe   :  { %p8067_p12 = scmp.lt.s32.totalorder %s8065_s18, %s8063_s25 }
  0xff   :  { %s296_s10 = sshll.u32 %s10861_s14, 4  ;;  %s8590_s10 = int_to_ptr.hbm [resolvable:$true] %s296_s10 }
 0x100   :  { %p8068_p13 = por %p8067_p12, %p8066_p11 }
 0x102   :  { %p8069_p0 = pnand %p8068_p13, %p8064_p10 }
 0x104   :  { %8072 = shalt.err (!%p8069_p0)
}
 0x105   :  { %s10862_s24 = sld [smem:[#allocation60_spill]]  ;;  %s8284_s7 = smov [#allocation28]  }
 0x106   :  { %278 = dma.hbm_to_vmem [thread:$0]  %s8580_s6, 1536, %s273_s5, [#allocation24], %s8265_s0, %s8265_s0, %s8266_s15  }
 0x107   :  { %s298_s17 = sshll.u32 %s8284_s7, 4  ;;  %s8085_s19 = sshra.s32 %s8590_s10, 4  ;;  %s299_s17 = int_to_ptr.vmem [resolvable:$true] %s298_s17  ;;  %s8086_s19 = int_to_ptr.hbm [resolvable:$true] %s8085_s19 }
 0x108   :  { %s8087_s3 = scalar_lea.hbm %s8086_s19, 3  ;;  %s8089_s21 = scalar_lea.hbm %s10861_s14, 3 }
 0x109   :  { %p8088_p1 = scmp.ne.s32.totalorder %s8086_s19, %s8087_s3  ;;  %p8090_p2 = scmp.lt.s32.totalorder %s8086_s19, %s10861_s14 }
 0x10a   :  { %p8091_p3 = scmp.lt.s32.totalorder %s8089_s21, %s8087_s3 }
 0x10b   :  { %s330_s4 = sshll.u32 %s10862_s24, 4  ;;  %s8600_s4 = int_to_ptr.hbm [resolvable:$true] %s330_s4 }
 0x10c   :  { %p8092_p4 = por %p8091_p3, %p8090_p2 }
 0x10e   :  { %p8093_p5 = pnand %p8092_p4, %p8088_p1 }
 0x110   :  { %8096 = shalt.err (!%p8093_p5)
}
 0x111   :  { %s10863_s22 = sld [smem:[#allocation61_spill]]  ;;  %s8285_s23 = smov [#allocation31]  }
 0x112   :  { %304 = dma.hbm_to_vmem [thread:$0]  %s8590_s10, 48, %s299_s17, [#allocation27], %s8262_s28, %s8262_s28, %s8263_s1  }
 0x113   :  { %s332_s6 = sshll.u32 %s8285_s23, 4  ;;  %s8109_s26 = sshra.s32 %s8600_s4, 4  ;;  %s333_s6 = int_to_ptr.vmem [resolvable:$true] %s332_s6  ;;  %s8110_s26 = int_to_ptr.hbm [resolvable:$true] %s8109_s26 }
 0x114   :  { %s8111_s29 = scalar_lea.hbm %s8110_s26, 32  ;;  %s8113_s27 = scalar_lea.hbm %s10862_s24, 32 }
 0x115   :  { %p8112_p6 = scmp.ne.s32.totalorder %s8110_s26, %s8111_s29  ;;  %p8114_p7 = scmp.lt.s32.totalorder %s8110_s26, %s10862_s24 }
 0x116   :  { %p8115_p8 = scmp.lt.s32.totalorder %s8113_s27, %s8111_s29 }
 0x117   :  { %s343_s11 = sshll.u32 %s10863_s22, 4  ;;  %s8610_s11 = int_to_ptr.hbm [resolvable:$true] %s343_s11 }
 0x118   :  { %p8116_p9 = por %p8115_p8, %p8114_p7 }
 0x11a   :  { %p8117_p10 = pnand %p8116_p9, %p8112_p6 }
 0x11c   :  { %8120 = shalt.err (!%p8117_p10)
}
 0x11d   :  { %338 = dma.hbm_to_vmem [thread:$0]  %s8600_s4, 512, %s333_s6, [#allocation30], %s8265_s0, %s8265_s0, %s8266_s15  }
 0x11e   :  { %s8286_s28 = smov [#allocation32]   ;;  %s8133_s14 = sshra.s32 %s8610_s11, 4  ;;  %s8134_s14 = int_to_ptr.hbm [resolvable:$true] %s8133_s14 }
 0x11f   :  { %s345_s1 = sshll.u32 %s8286_s28, 4  ;;  %s8135_s10 = scalar_lea.hbm %s8134_s14, 32  ;;  %s346_s1 = int_to_ptr.vmem [resolvable:$true] %s345_s1 }
 0x120   :  { %p8136_p11 = scmp.ne.s32.totalorder %s8134_s14, %s8135_s10  ;;  %s8137_s20 = scalar_lea.hbm %s10863_s22, 32 }
 0x121   :  { %p8138_p12 = scmp.lt.s32.totalorder %s8134_s14, %s10863_s22  ;;  %p8139_p13 = scmp.lt.s32.totalorder %s8137_s20, %s8135_s10 }
 0x123   :  { %p8140_p0 = por %p8139_p13, %p8138_p12 }
 0x125   :  { %p8141_p1 = pnand %p8140_p0, %p8136_p11 }
 0x127   :  { %8144 = shalt.err (!%p8141_p1)
}
 0x128   :  { %351 = dma.hbm_to_vmem [thread:$0]  %s8610_s11, 512, %s346_s1, [#allocation33], %s8265_s0, %s8265_s0, %s8266_s15  }
 0x129   :  { %8205 = dma.done.wait [#allocation3], 256  }
 0x12a   :  { %8206 = vsyncadd [#allocation3], 4294967040 }
 0x12b   :  { %8207 = dma.done.wait [#allocation6], 96  }
 0x12c   :  { %8208 = vsyncadd [#allocation6], 4294967200 }
 0x12d   :  { %8209 = dma.done.wait [#allocation9], 2304  }
 0x12e   :  { %8210 = vsyncadd [#allocation9], 4294964992 }
 0x12f   :  { %8211 = dma.done.wait [#allocation12], 96  }
 0x130   :  { %8212 = vsyncadd [#allocation12], 4294967200 }
 0x131   :  { %8213 = dma.done.wait [#allocation15], 3072  }
 0x132   :  { %8214 = vsyncadd [#allocation15], 4294964224 }
 0x133   :  { %8215 = dma.done.wait [#allocation18], 1584  }
 0x134   :  { %8216 = vsyncadd [#allocation18], 4294965712 }
 0x135   :  { %8217 = dma.done.wait [#allocation21], 1584  }
 0x136   :  { %8218 = vsyncadd [#allocation21], 4294965712 }
 0x137   :  { %8219 = dma.done.wait [#allocation24], 3072  }
 0x138   :  { %8220 = vsyncadd [#allocation24], 4294964224 }
 0x139   :  { %8221 = dma.done.wait [#allocation27], 96  }
 0x13a   :  { %8222 = vsyncadd [#allocation27], 4294967200 }
 0x13b   :  { %8223 = dma.done.wait [#allocation30], 1024  }
 0x13c   :  { %8224 = vsyncadd [#allocation30], 4294966272 }
 0x13d   :  { %8225 = dma.done.wait [#allocation33], 512  }
 0x13e   :  { %8226 = vsyncadd [#allocation33], 4294966784  ;;  %s10864_s0 = sld [smem:[#allocation50_spill]]  ;;  %v8640_v4 = vld [vmem:[#allocation2] sm:$0x3]  ;;  %vm517_vm0 = vcmask 130048  }
 0x13f   :  { %s10865_s15 = sld [smem:[#allocation51_spill]]  ;;  %v8643_v5 = vld [vmem:[#allocation2 + $0x2] sm:$0x3]  ;;  %v10791_v15 = vmov 0.0   ;;  %v8722_v21 = vld [vmem:[#allocation2 + $0x4] sm:$0x3] }
 0x140   :  { %v8741_v22 = vld [vmem:[#allocation2 + $0x6] sm:$0x3]  ;;  %v8771_v23 = vld [vmem:[#allocation2 + $0x8] sm:$0x3]  ;;  %v8781_v24 = vld [vmem:[#allocation2 + $0xa] sm:$0x3] }
 0x141   :  { %v450_v25 = vld [vmem:[#allocation2 + $0xc] sm:$0x3]  ;;  %v452_v26 = vld [vmem:[#allocation2 + $0xe] sm:$0x3]  ;;  %v8806_v27 = vld [vmem:[#allocation8 + $0x18] sm:$0xff]  ;;  %vm548_vm1 = vcmask 261120  }
 0x142   :  { %v8811_v28 = vld [vmem:[#allocation8 + $0x10] sm:$0xff]  ;;  %v8816_v29 = vld [vmem:[#allocation8 + $0x8] sm:$0xff]  ;;  %v8819_v30 = vld [vmem:[#allocation8] sm:$0xff]  ;;  %s10945_s5 = sld [smem:[#allocation56_spill]]  ;;  %vm6372_vm2 = vcmask 523264   ;;  %s8288_s24 = smov [#allocation35]  }
 0x143   :  { %v8826_v31 = vld [vmem:[#allocation8 + $0x28] sm:$0xff]  ;;  %v8829_v32 = vld [vmem:[#allocation8 + $0x20] sm:$0xff]  ;;  %v8868_v33 = vld [vmem:[#allocation5] ss:$0 sm:$0xff]  ;;  %s10952_s8 = sld [smem:[#allocation58_spill]]  ;;  %s6975_s7 = sshll.u32 %s8288_s24, 4  ;;  %s6976_s7 = int_to_ptr.vmem [resolvable:$true] %s6975_s7 }
 0x144   :  { %v8627_v0 = vld [vmem:[%s10864_s0 + $0x8] sm:$0xff]  ;;  %v8633_v2 = vld [vmem:[%s10864_s0] sm:$0xff]  ;;  %v8660_v9 = vld [vmem:[%s10864_s0 + $0x18] sm:$0xff]  ;;  %s10957_s25 = sld [smem:[#allocation57_spill]]  ;;  %s6977_s17 = sshll.u32 %s8448_s13, 4  ;;  %vm6396_vm3 = vcmask 254976   ;;  %s6978_s17 = int_to_ptr.hbm [resolvable:$true] %s6977_s17 }
 0x145   :  { %v8630_v1 = vld [vmem:[%s10865_s15 + $0x18] sm:$0xff]  ;;  %535 = vmatpush.msra.mxu0 %v8627_v0  ;;  %v8638_v3 = vld [vmem:[%s10865_s15 + $0x10] sm:$0xff]  ;;  %700 = vmatpush.msra.mxu1 %v8627_v0  ;;  %v8646_v6 = vld [vmem:[%s10865_s15 + $0x8] sm:$0xff]  ;;  %s10958_s18 = sld [smem:[#allocation62_spill]]  ;;  %s8169_s4 = sshra.s32 %s6978_s17, 4  ;;  %s8170_s4 = int_to_ptr.hbm [resolvable:$true] %s8169_s4 }
 0x146   :  { %564 = vmatpush.msra.mxu3 %v8630_v1  ;;  %v8651_v7 = vld [vmem:[%s10864_s0 + $0x28] sm:$0xff]  ;;  %v8657_v8 = vld [vmem:[%s10865_s15] sm:$0xff]  ;;  %v8669_v11 = vld [vmem:[%s10865_s15 + $0x38] sm:$0xff]  ;;  %591 = vmatpush.msra.mxu2 %v8660_v9  ;;  %s8171_s19 = scalar_lea.hbm %s8170_s4, 2  ;;  %s8173_s3 = scalar_lea.hbm %s8448_s13, 2 }
 0x147   :  { %536 = vmatpush.msra.mxu0 %v8633_v2  ;;  %701 = vmatpush.msra.mxu1 %v8633_v2  ;;  %v8666_v10 = vld [vmem:[%s10864_s0 + $0x20] sm:$0xff]  ;;  %v8674_v12 = vld [vmem:[%s10865_s15 + $0x30] sm:$0xff]  ;;  %v8682_v14 = vld [vmem:[%s10865_s15 + $0x58] sm:$0xff]  ;;  %p8172_p2 = scmp.ne.s32.totalorder %s8170_s4, %s8171_s19  ;;  %p8174_p3 = scmp.lt.s32.totalorder %s8170_s4, %s8448_s13 }
 0x148   :  { %565 = vmatpush.msra.mxu3 %v8638_v3  ;;  %7044 = vmatmul.msk.f32.vlgmr.msra.gmra.mxu0 %vm517_vm0, %v8640_v4  ;;  %v8677_v13 = vld [vmem:[%s10864_s0 + $0x10] sm:$0xff]  ;;  %v8687_v16 = vld [vmem:[%s10865_s15 + $0x28] sm:$0xff]  ;;  %v8696_v18 = vld [vmem:[%s10865_s15 + $0x20] sm:$0xff]  ;;  %p8175_p4 = scmp.lt.s32.totalorder %s8173_s3, %s8171_s19 }
 0x149   :  { %7047 = vmatmul.msk.f32.vlgmr.msra.gmra.mxu1 %vm517_vm0, %v8643_v5  ;;  %643 = vmatpush.msrb.mxu0 %v8651_v7  ;;  %v8692_v17 = vld [vmem:[%s10865_s15 + $0x50] sm:$0xff]  ;;  %v8706_v19 = vld [vmem:[%s10865_s15 + $0x48] sm:$0xff]  ;;  %v8712_v20 = vld [vmem:[%s10865_s15 + $0x40] sm:$0xff] }
 0x14a   :  { %566 = vmatpush.msra.mxu3 %v8646_v6  ;;  %795 = vmatpush.msrb.mxu1 %v8651_v7  ;;  %v8872_v34 = vld [vmem:[#allocation7] ss:$0 sm:$0xff]  ;;  %v8882_v40 = vld [vmem:[#allocation5 + $0x1] ss:$0 sm:$0xff]  ;;  %v8886_v43 = vld [vmem:[#allocation7 + $0x1] ss:$0 sm:$0xff]  ;;  %p8176_p5 = por %p8175_p4, %p8174_p3 }
 0x14b   :  { %644 = vmatpush.msrb.mxu0 %v8666_v10  ;;  %592 = vmatpush.msra.mxu2 %v8677_v13  ;;  %v8895_v47 = vld [vmem:[#allocation7 + $0x2] ss:$0 sm:$0xff]  ;;  %v8899_v50 = vld [vmem:[#allocation5 + $0x2] ss:$0 sm:$0xff] }
 0x14c   :  { %567 = vmatpush.msra.mxu3 %v8657_v8  ;;  %796 = vmatpush.msrb.mxu1 %v8666_v10  ;;  %p8177_p6 = pnand %p8176_p5, %p8172_p2 }
 0x14d   :  { %568 = vmatmul.f32.vlgmr.msra.gmra.mxu3 %v10791_v15  ;;  %749 = vmatpush.msra.mxu0 %v8660_v9 }
 0x14e   :  { %616 = vmatpush.msrb.mxu3 %v8669_v11  ;;  %7045 = vmatmul.msk.f32.vlgmr.msra.gmra.mxu2 %vm517_vm0, %v8640_v4 }
 0x14f   :  { %668 = vmatpush.msrb.mxu2 %v8682_v14  ;;  %895 = vmatpush.msra.mxu1 %v8660_v9 }
 0x150   :  { %617 = vmatpush.msrb.mxu3 %v8674_v12  ;;  %7046 = vmatmul.msk.f32.vlgmr.msrb.gmra.mxu0 %vm517_vm0, %v8640_v4 }
 0x151   :  { %7051 = vmatmul.msk.f32.vlgmr.msrb.gmra.mxu1 %vm517_vm0, %v8643_v5  ;;  %669 = vmatpush.msrb.mxu2 %v8692_v17 }
 0x152   :  { %618 = vmatpush.msrb.mxu3 %v8687_v16  ;;  %750 = vmatpush.msra.mxu0 %v8677_v13 }
 0x153   :  { %670 = vmatpush.msrb.mxu2 %v8706_v19  ;;  %896 = vmatpush.msra.mxu1 %v8677_v13 }
 0x154   :  { %619 = vmatpush.msrb.mxu3 %v8696_v18  ;;  %846 = vmatpush.msrb.mxu0 %v8627_v0 }
 0x155   :  { %620 = vmatmul.f32.vlgmr.msrb.gmra.mxu3 %v10791_v15  ;;  %671 = vmatpush.msrb.mxu2 %v8712_v20 }
 0x156   :  { %992 = vmatpush.msrb.mxu1 %v8627_v0  ;;  %672 = vmatmul.f32.vlgmr.msrb.gmra.mxu2 %v10791_v15 }
 0x157   :  { %847 = vmatpush.msrb.mxu0 %v8633_v2  ;;  %722 = vmatpush.msra.mxu3 %v8630_v1 }
 0x158   :  { %7049 = vmatmul.msk.f32.vlgmr.msra.gmra.mxu0 %vm517_vm0, %v8643_v5  ;;  %993 = vmatpush.msrb.mxu1 %v8633_v2 }
 0x159   :  { %7055 = vmatmul.msk.f32.vlgmr.msra.gmra.mxu1 %vm517_vm0, %v8722_v21  ;;  %941 = vmatpush.msra.mxu0 %v8651_v7 }
 0x15a   :  { %1087 = vmatpush.msra.mxu1 %v8651_v7  ;;  %768 = vmatpush.msra.mxu2 %v8669_v11 }
 0x15b   :  { %942 = vmatpush.msra.mxu0 %v8666_v10  ;;  %723 = vmatpush.msra.mxu3 %v8638_v3 }
 0x15c   :  { %1088 = vmatpush.msra.mxu1 %v8666_v10  ;;  %769 = vmatpush.msra.mxu2 %v8674_v12 }
 0x15d   :  { %724 = vmatpush.msra.mxu3 %v8646_v6 }
 0x15e   :  { %770 = vmatpush.msra.mxu2 %v8687_v16 }
 0x15f   :  { %725 = vmatpush.msra.mxu3 %v8657_v8 }
 0x160   :  { %7053 = vmatmul.msk.f32.vlgmr.msrb.gmra.mxu0 %vm517_vm0, %v8722_v21  ;;  %771 = vmatpush.msra.mxu2 %v8696_v18 }
 0x161   :  { %7059 = vmatmul.msk.f32.vlgmr.msrb.gmra.mxu1 %vm517_vm0, %v8741_v22  ;;  %1041 = vmatpush.msrb.mxu0 %v8660_v9 }
 0x162   :  { %1187 = vmatpush.msrb.mxu1 %v8660_v9  ;;  %814 = vmatpush.msrb.mxu3 %v8682_v14 }
 0x163   :  { %1042 = vmatpush.msrb.mxu0 %v8677_v13  ;;  %868 = vmatpush.msrb.mxu2 %v8630_v1 }
 0x164   :  { %1188 = vmatpush.msrb.mxu1 %v8677_v13  ;;  %815 = vmatpush.msrb.mxu3 %v8692_v17 }
 0x165   :  { %869 = vmatpush.msrb.mxu2 %v8638_v3 }
 0x166   :  { %816 = vmatpush.msrb.mxu3 %v8706_v19 }
 0x167   :  { %870 = vmatpush.msrb.mxu2 %v8646_v6 }
 0x168   :  { %7057 = vmatmul.msk.f32.vlgmr.msra.gmra.mxu0 %vm517_vm0, %v8722_v21  ;;  %817 = vmatpush.msrb.mxu3 %v8712_v20 }
 0x169   :  { %7063 = vmatmul.msk.f32.vlgmr.msra.gmra.mxu1 %vm517_vm0, %v8741_v22  ;;  %1138 = vmatpush.msra.mxu0 %v8627_v0 }
 0x16a   :  { %1284 = vmatpush.msra.mxu1 %v8627_v0  ;;  %871 = vmatpush.msrb.mxu2 %v8657_v8 }
 0x16b   :  { %1139 = vmatpush.msra.mxu0 %v8633_v2 }
 0x16c   :  { %1285 = vmatpush.msra.mxu1 %v8633_v2 }
 0x170   :  { %7061 = vmatmul.msk.f32.vlgmr.msrb.gmra.mxu0 %vm517_vm0, %v8741_v22 }
 0x171   :  { %7067 = vmatmul.msk.f32.vlgmr.msrb.gmra.mxu1 %vm517_vm0, %v8771_v23  ;;  %1233 = vmatpush.msrb.mxu0 %v8651_v7 }
 0x172   :  { %1379 = vmatpush.msrb.mxu1 %v8651_v7 }
 0x173   :  { %1234 = vmatpush.msrb.mxu0 %v8666_v10 }
 0x174   :  { %1380 = vmatpush.msrb.mxu1 %v8666_v10 }
 0x178   :  { %7065 = vmatmul.msk.f32.vlgmr.msra.gmra.mxu0 %vm517_vm0, %v8771_v23 }
 0x179   :  { %7071 = vmatmul.msk.f32.vlgmr.msra.gmra.mxu1 %vm517_vm0, %v8781_v24  ;;  %1333 = vmatpush.msra.mxu0 %v8660_v9 }
 0x17a   :  { %1479 = vmatpush.msra.mxu1 %v8660_v9 }
 0x17b   :  { %1334 = vmatpush.msra.mxu0 %v8677_v13 }
 0x17c   :  { %1480 = vmatpush.msra.mxu1 %v8677_v13 }
 0x180   :  { %7069 = vmatmul.msk.f32.vlgmr.msrb.gmra.mxu0 %vm517_vm0, %v8771_v23 }
 0x181   :  { %7075 = vmatmul.msk.f32.vlgmr.msrb.gmra.mxu1 %vm517_vm0, %v8781_v24  ;;  %1430 = vmatpush.msrb.mxu0 %v8627_v0 }
 0x182   :  { %1576 = vmatpush.msrb.mxu1 %v8627_v0 }
 0x183   :  { %1431 = vmatpush.msrb.mxu0 %v8633_v2 }
 0x184   :  { %1577 = vmatpush.msrb.mxu1 %v8633_v2 }
 0x188   :  { %7073 = vmatmul.msk.f32.vlgmr.msra.gmra.mxu0 %vm517_vm0, %v8781_v24 }
 0x189   :  { %7079 = vmatmul.msk.f32.vlgmr.msra.gmra.mxu1 %vm517_vm0, %v450_v25  ;;  %1525 = vmatpush.msra.mxu0 %v8651_v7 }
 0x18a   :  { %1671 = vmatpush.msra.mxu1 %v8651_v7 }
 0x18b   :  { %1526 = vmatpush.msra.mxu0 %v8666_v10 }
 0x18c   :  { %1672 = vmatpush.msra.mxu1 %v8666_v10  ;;  %v2895_v10 = vld [vmem:[#allocation17 + $0x18] sm:$0xff] }
 0x190   :  { %7077 = vmatmul.msk.f32.vlgmr.msrb.gmra.mxu0 %vm517_vm0, %v450_v25 }
 0x191   :  { %7083 = vmatmul.msk.f32.vlgmr.msrb.gmra.mxu1 %vm517_vm0, %v452_v26  ;;  %1625 = vmatpush.msrb.mxu0 %v8660_v9 }
 0x192   :  { %1771 = vmatpush.msrb.mxu1 %v8806_v27 }
 0x193   :  { %1626 = vmatpush.msrb.mxu0 %v8677_v13  ;;  %v2894_v13 = vld [vmem:[#allocation17 + $0x10] sm:$0xff] }
 0x194   :  { %1772 = vmatpush.msrb.mxu1 %v8811_v28 }
 0x198   :  { %7081 = vmatmul.msk.f32.vlgmr.msra.gmra.mxu0 %vm517_vm0, %v450_v25 }
 0x199   :  { %7087 = vmatmul.msk.f32.vlgmr.msra.gmra.mxu1 %vm517_vm0, %v452_v26  ;;  %1719 = vmatpush.msra.mxu0 %v8816_v29 }
 0x19a   :  { %1877 = vmatpush.msra.mxu1 %v8816_v29 }
 0x19b   :  { %1720 = vmatpush.msra.mxu0 %v8819_v30 }
 0x19c   :  { %1878 = vmatpush.msra.mxu1 %v8819_v30 }
 0x1a0   :  { %7085 = vmatmul.msk.f32.vlgmr.msrb.gmra.mxu0 %vm517_vm0, %v452_v26 }
 0x1a1   :  { %7090 = vmatmul.msk.f32.vlgmr.msrb.gmra.mxu1 %vm517_vm0, %v452_v26  ;;  %1823 = vmatpush.msrb.mxu0 %v8826_v31 }
 0x1a2   :  { %1972 = vmatpush.msrb.mxu1 %v8826_v31 }
 0x1a3   :  { %1824 = vmatpush.msrb.mxu0 %v8829_v32 }
 0x1a4   :  { %1973 = vmatpush.msrb.mxu1 %v8829_v32 }
 0x1a8   :  { %7089 = vmatmul.msk.f32.vlgmr.msra.gmra.mxu0 %vm517_vm0, %v452_v26 }
 0x1a9   :  { %7092 = vmatmul.msk.f32.vlgmr.msra.gmra.mxu1 %vm517_vm0, %v450_v25  ;;  %1926 = vmatpush.msra.mxu0 %v8806_v27 }
 0x1aa   :  { %2069 = vmatpush.msra.mxu1 %v8806_v27 }
 0x1ab   :  { %1927 = vmatpush.msra.mxu0 %v8811_v28 }
 0x1ac   :  { %2070 = vmatpush.msra.mxu1 %v8811_v28 }
 0x1b0   :  { %7091 = vmatmul.msk.f32.vlgmr.msrb.gmra.mxu0 %vm517_vm0, %v452_v26  ;;  %v2876_v26 = vld [vmem:[#allocation14 + $0x50] sm:$0xff] }
 0x1b1   :  { %7096 = vmatmul.msk.f32.vlgmr.msrb.gmra.mxu1 %vm517_vm0, %v450_v25  ;;  %2020 = vmatpush.msrb.mxu0 %v8816_v29 }
 0x1b2   :  { %2163 = vmatpush.msrb.mxu1 %v8816_v29 }
 0x1b3   :  { %2021 = vmatpush.msrb.mxu0 %v8819_v30 }
 0x1b4   :  { %2164 = vmatpush.msrb.mxu1 %v8819_v30 }
 0x1b8   :  { %7094 = vmatmul.msk.f32.vlgmr.msra.gmra.mxu0 %vm517_vm0, %v450_v25  ;;  %v2866_v25 = vld [vmem:[#allocation14 + $0x10] sm:$0xff] }
 0x1b9   :  { %7100 = vmatmul.msk.f32.vlgmr.msra.gmra.mxu1 %vm517_vm0, %v8781_v24  ;;  %2115 = vmatpush.msra.mxu0 %v8826_v31 }
 0x1ba   :  { %2258 = vmatpush.msra.mxu1 %v8826_v31 }
 0x1bb   :  { %2116 = vmatpush.msra.mxu0 %v8829_v32 }
 0x1bc   :  { %2259 = vmatpush.msra.mxu1 %v8829_v32 }
 0x1c0   :  { %7098 = vmatmul.msk.f32.vlgmr.msrb.gmra.mxu0 %vm517_vm0, %v8781_v24 }
 0x1c1   :  { %7104 = vmatmul.msk.f32.vlgmr.msrb.gmra.mxu1 %vm517_vm0, %v8771_v23  ;;  %2212 = vmatpush.msrb.mxu0 %v8806_v27 }
 0x1c2   :  { %2355 = vmatpush.msrb.mxu1 %v8806_v27 }
 0x1c3   :  { %2213 = vmatpush.msrb.mxu0 %v8811_v28 }
 0x1c4   :  { %2356 = vmatpush.msrb.mxu1 %v8811_v28 }
 0x1c5   :  { %v538_v35 = vpop.f32.mrf.mxu0 }
 0x1c6   :  { %v544_v36 = vadd.f32 %v8868_v33, %v538_v35 }
 0x1c8   :  { %7102 = vmatmul.msk.f32.vlgmr.msra.gmra.mxu0 %vm517_vm0, %v8781_v24  ;;  %v2877_v24 = vld [vmem:[#allocation14 + $0x58] sm:$0xff] }
 0x1c9   :  { %7108 = vmatmul.msk.f32.vlgmr.msra.gmra.mxu1 %vm517_vm0, %v8771_v23  ;;  %2306 = vmatpush.msra.mxu0 %v8816_v29 }
 0x1ca   :  { %2449 = vmatpush.msra.mxu1 %v8816_v29 }
 0x1cb   :  { %2307 = vmatpush.msra.mxu0 %v8819_v30 }
 0x1cc   :  { %2450 = vmatpush.msra.mxu1 %v8819_v30 }
 0x1cd   :  { %v646_v55 = vpop.f32.mrf.mxu0 }
 0x1ce   :  { %v652_v56 = vadd.f32 %v8899_v50, %v646_v55 }
 0x1d0   :  { %v569_v37 = vpop.f32.mrf.mxu3  ;;  %7106 = vmatmul.msk.f32.vlgmr.msrb.gmra.mxu0 %vm517_vm0, %v8771_v23  ;;  %v2867_v23 = vld [vmem:[#allocation14 + $0x18] sm:$0xff] }
 0x1d1   :  { %v570_v38 = vadd.f32 %v8872_v34, %v569_v37  ;;  %7112 = vmatmul.msk.f32.vlgmr.msrb.gmra.mxu1 %vm517_vm0, %v8741_v22  ;;  %2401 = vmatpush.msrb.mxu0 %v8826_v31  ;;  %v594_v41 = vpop.f32.mrf.mxu2 }
 0x1d2   :  { %2544 = vmatpush.msrb.mxu1 %v8826_v31  ;;  %v600_v44 = vadd.f32 %v8882_v40, %v594_v41 }
 0x1d3   :  { %v572_v39 = vadd.f32 %v570_v38, %v544_v36  ;;  %2402 = vmatpush.msrb.mxu0 %v8829_v32 }
 0x1d4   :  { %2545 = vmatpush.msrb.mxu1 %v8829_v32 }
 0x1d5   :  { %v573_v42 = vmul.f32 0.5, %v572_v39 }
 0x1d7   :  { %7386 = vtanh.f32 %v573_v42 }
 0x1d8   :  { %v621_v45 = vpop.f32.mrf.mxu3  ;;  %7110 = vmatmul.msk.f32.vlgmr.msra.gmra.mxu0 %vm517_vm0, %v8741_v22 }
 0x1d9   :  { %v622_v46 = vadd.f32 %v8886_v43, %v621_v45  ;;  %7116 = vmatmul.msk.f32.vlgmr.msra.gmra.mxu1 %vm517_vm0, %v8722_v21  ;;  %2498 = vmatpush.msra.mxu0 %v8806_v27  ;;  %v673_v49 = vpop.f32.mrf.mxu2 }
 0x1da   :  { %2641 = vmatpush.msra.mxu1 %v8806_v27  ;;  %v674_v54 = vadd.f32 %v8895_v47, %v673_v49 }
 0x1db   :  { %v624_v48 = vadd.f32 %v622_v46, %v600_v44  ;;  %2499 = vmatpush.msra.mxu0 %v8811_v28 }
 0x1dc   :  { %2642 = vmatpush.msra.mxu1 %v8811_v28 }
 0x1dd   :  { %v7387_v51 = vpop.eup %7386  ;;  %v625_v52 = vmul.f32 0.5, %v624_v48 }
 0x1de   :  { %v575_v53 = vadd.f32 1.0, %v7387_v51 }
 0x1df   :  { %7388 = vtanh.f32 %v625_v52 }
 0x1e0   :  { %v576_v57 = vmul.f32 0.5, %v575_v53  ;;  %7114 = vmatmul.msk.f32.vlgmr.msrb.gmra.mxu0 %vm517_vm0, %v8741_v22  ;;  %v2892_v22 = vld [vmem:[#allocation17] sm:$0xff] }
 0x1e1   :  { %7120 = vmatmul.msk.f32.vlgmr.msrb.gmra.mxu1 %vm517_vm0, %v8722_v21  ;;  %2592 = vmatpush.msrb.mxu0 %v8816_v29 }
 0x1e2   :  { %v676_v58 = vmul.f32 %v674_v54, %v576_v57  ;;  %2735 = vmatpush.msrb.mxu1 %v8816_v29  ;;  %v2864_v29 = vld [vmem:[#allocation14] sm:$0xff] }
 0x1e3   :  { %2593 = vmatpush.msrb.mxu0 %v8819_v30 }
 0x1e4   :  { %v677_v59 = vadd.f32 %v676_v58, %v652_v56  ;;  %2736 = vmatpush.msrb.mxu1 %v8819_v30  ;;  %v2874_v30 = vld [vmem:[#allocation14 + $0x40] sm:$0xff] }
 0x1e5   :  { %v7389_v60 = vpop.eup %7388 }
 0x1e6   :  { %v627_v61 = vadd.f32 1.0, %v7389_v60  ;;  %7390 = vtanh.f32 %v677_v59 }
 0x1e8   :  { %v628_v62 = vmul.f32 0.5, %v627_v61  ;;  %7118 = vmatmul.msk.f32.vlgmr.msra.gmra.mxu0 %vm517_vm0, %v8722_v21  ;;  %v2893_v21 = vld [vmem:[#allocation17 + $0x8] sm:$0xff] }
 0x1e9   :  { %7124 = vmatmul.msk.f32.vlgmr.msra.gmra.mxu1 %vm517_vm0, %v8643_v5  ;;  %2687 = vmatpush.msra.mxu0 %v8826_v31 }
 0x1ea   :  { %v679_v63 = vsub.f32 1.0, %v628_v62  ;;  %2830 = vmatpush.msra.mxu1 %v8826_v31  ;;  %v681_v2 = vmul.f32 0.0, %v628_v62  ;;  %v752_v31 = vpop.f32.mrf.mxu0 }
 0x1eb   :  { %2688 = vmatpush.msra.mxu0 %v8829_v32  ;;  %v755_v35 = vadd.f32 %v8882_v40, %v752_v31 }
 0x1ec   :  { %v7391_v0 = vpop.eup %7390  ;;  %2831 = vmatpush.msra.mxu1 %v8829_v32 }
 0x1ed   :  { %v680_v7 = vmul.f32 %v7391_v0, %v679_v63 }
 0x1ef   :  { %v8921_v9 = vadd.f32 %v681_v2, %v680_v7 }
 0x1f0   :  { %7122 = vmatmul.msk.f32.vlgmr.msrb.gmra.mxu0 %vm517_vm0, %v8643_v5 }
 0x1f1   :  { %10866 = vst [vmem:[#allocation63_spill] sm:$0xff] %v8921_v9  ;;  %7048 = vmatmul.msk.f32.vlgmr.msra.gmra.mxu3 %vm548_vm1, %v8921_v9  ;;  %7050 = vmatmul.msk.f32.vlgmr.msra.gmra.mxu2 %vm548_vm1, %v8921_v9 }
 0x1f2   :  { %7128 = vmatmul.msk.f32.vlgmr.msrb.gmra.mxu1 %vm517_vm0, %v8640_v4  ;;  %2784 = vmatpush.msrb.mxu0 %v8806_v27  ;;  %v2865_v27 = vld [vmem:[#allocation14 + $0x8] sm:$0xff]  ;;  %v849_v2 = vpop.f32.mrf.mxu0 }
 0x1f3   :  { %3031 = vmatpush.msrb.mxu1 %v2895_v10  ;;  %914 = vmatpush.msra.mxu3 %v8669_v11  ;;  %v852_v10 = vadd.f32 %v8868_v33, %v849_v2 }
 0x1f4   :  { %960 = vmatpush.msra.mxu2 %v8682_v14  ;;  %2785 = vmatpush.msrb.mxu0 %v8811_v28  ;;  %v2875_v28 = vld [vmem:[#allocation14 + $0x48] sm:$0xff] }
 0x1f5   :  { %3032 = vmatpush.msrb.mxu1 %v2894_v13  ;;  %915 = vmatpush.msra.mxu3 %v8674_v12 }
 0x1f6   :  { %961 = vmatpush.msra.mxu2 %v8692_v17 }
 0x1f7   :  { %3033 = vmatpush.msrb.mxu1 %v2893_v21  ;;  %916 = vmatpush.msra.mxu3 %v8687_v16 }
 0x1f8   :  { %962 = vmatpush.msra.mxu2 %v8706_v19  ;;  %7126 = vmatmul.msk.f32.vlgmr.msra.gmra.mxu0 %vm517_vm0, %v8643_v5  ;;  %v703_v5 = vpop.f32.mrf.mxu1 }
 0x1f9   :  { %7052 = vmatmul.msk.f32.vlgmr.msrb.gmra.mxu3 %vm548_vm1, %v8921_v9  ;;  %3034 = vmatpush.msrb.mxu1 %v2892_v22  ;;  %v706_v32 = vadd.f32 %v8868_v33, %v703_v5 }
 0x1fa   :  { %7132 = vmatmul.msk.f32.vlgmr.msra.gmra.mxu1 %vm517_vm0, %v8640_v4  ;;  %2980 = vmatpush.msra.mxu0 %v2867_v23  ;;  %v944_v5 = vpop.f32.mrf.mxu0 }
 0x1fb   :  { %3129 = vmatpush.msra.mxu1 %v2877_v24  ;;  %917 = vmatpush.msra.mxu3 %v8696_v18 }
 0x1fc   :  { %963 = vmatpush.msra.mxu2 %v8712_v20  ;;  %2981 = vmatpush.msra.mxu0 %v2866_v25 }
 0x1fd   :  { %3130 = vmatpush.msra.mxu1 %v2876_v26  ;;  %1014 = vmatpush.msrb.mxu3 %v8630_v1 }
 0x1fe   :  { %2982 = vmatpush.msra.mxu0 %v2865_v27 }
 0x1ff   :  { %3131 = vmatpush.msra.mxu1 %v2875_v28  ;;  %1015 = vmatpush.msrb.mxu3 %v8638_v3 }
 0x200   :  { %2983 = vmatpush.msra.mxu0 %v2864_v29  ;;  %v798_v49 = vpop.f32.mrf.mxu1 }
 0x201   :  { %3132 = vmatpush.msra.mxu1 %v2874_v30  ;;  %7130 = vmatmul.msk.f32.vlgmr.msrb.gmra.mxu0 %vm517_vm0, %v8640_v4  ;;  %v801_v52 = vadd.f32 %v8899_v50, %v798_v49 }
 0x202   :  { %3035 = vmatmul.f32.vlgmr.msrb.gmra.mxu1 %v10791_v15  ;;  %1016 = vmatpush.msrb.mxu3 %v8646_v6  ;;  %v1044_v49 = vpop.f32.mrf.mxu0 }
 0x204   :  { %1017 = vmatpush.msrb.mxu3 %v8657_v8 }
 0x208   :  { %v898_v0 = vpop.f32.mrf.mxu1 }
 0x209   :  { %7134 = vmatmul.msk.f32.vlgmr.msra.gmra.mxu0 %vm548_vm1, %v8921_v9  ;;  %v901_v7 = vadd.f32 %v8882_v40, %v898_v0 }
 0x20a   :  { %7138 = vmatmul.msk.f32.vlgmr.msra.gmra.mxu1 %vm548_vm1, %v8921_v9 }
 0x274   :  { %v727_v36 = vpop.f32.mrf.mxu3  ;;  %v773_v4 = vpop.f32.mrf.mxu2 }
 0x275   :  { %v728_v37 = vadd.f32 %v8872_v34, %v727_v36  ;;  %v774_v38 = vadd.f32 %v8886_v43, %v773_v4 }
 0x277   :  { %v730_v39 = vadd.f32 %v728_v37, %v706_v32  ;;  %v776_v41 = vadd.f32 %v774_v38, %v755_v35  ;;  %v947_v32 = vadd.f32 %v8899_v50, %v944_v5 }
 0x279   :  { %v731_v42 = vmul.f32 0.5, %v730_v39  ;;  %v777_v44 = vmul.f32 0.5, %v776_v41 }
 0x27b   :  { %7392 = vtanh.f32 %v731_v42 }
 0x27c   :  { %7394 = vtanh.f32 %v777_v44  ;;  %v819_v46 = vpop.f32.mrf.mxu3 }
 0x27d   :  { %v820_v54 = vadd.f32 %v8895_v47, %v819_v46 }
 0x281   :  { %v7393_v45 = vpop.eup %7392 }
 0x282   :  { %v733_v48 = vadd.f32 1.0, %v7393_v45  ;;  %v7395_v51 = vpop.eup %7394 }
 0x283   :  { %v779_v56 = vadd.f32 1.0, %v7395_v51 }
 0x284   :  { %v734_v53 = vmul.f32 0.5, %v733_v48  ;;  %v995_v48 = vpop.f32.mrf.mxu1 }
 0x285   :  { %v780_v58 = vmul.f32 0.5, %v779_v56  ;;  %v998_v51 = vadd.f32 %v8868_v33, %v995_v48 }
 0x286   :  { %v822_v55 = vmul.f32 %v820_v54, %v734_v53 }
 0x287   :  { %v825_v59 = vsub.f32 1.0, %v780_v58  ;;  %v827_v61 = vmul.f32 %v780_v58, %v8921_v9 }
 0x288   :  { %v823_v57 = vadd.f32 %v822_v55, %v801_v52  ;;  %v1047_v52 = vadd.f32 %v8882_v40, %v1044_v49 }
 0x28a   :  { %7396 = vtanh.f32 %v823_v57 }
 0x28c   :  { %v1090_v2 = vpop.f32.mrf.mxu1 }
 0x290   :  { %v7397_v60 = vpop.eup %7396 }
 0x291   :  { %v826_v62 = vmul.f32 %v7397_v60, %v825_v59 }
 0x293   :  { %v8965_v63 = vadd.f32 %v827_v61, %v826_v62 }
 0x294   :  { %v1190_v5 = vpop.f32.mrf.mxu1 }
 0x295   :  { %10867 = vst [vmem:[#allocation64_spill] sm:$0xff] %v8965_v63  ;;  %7054 = vmatmul.msk.f32.vlgmr.msrb.gmra.mxu2 %vm548_vm1, %v8965_v63  ;;  %7056 = vmatmul.msk.f32.vlgmr.msra.gmra.mxu3 %vm548_vm1, %v8965_v63 }
 0x296   :  { %1060 = vmatpush.msrb.mxu2 %v8669_v11  ;;  %1106 = vmatpush.msra.mxu3 %v8682_v14 }
 0x298   :  { %1061 = vmatpush.msrb.mxu2 %v8674_v12  ;;  %1107 = vmatpush.msra.mxu3 %v8692_v17 }
 0x29a   :  { %1062 = vmatpush.msrb.mxu2 %v8687_v16  ;;  %1108 = vmatpush.msra.mxu3 %v8706_v19 }
 0x29c   :  { %1063 = vmatpush.msrb.mxu2 %v8696_v18  ;;  %1109 = vmatpush.msra.mxu3 %v8712_v20 }
 0x29d   :  { %7058 = vmatmul.msk.f32.vlgmr.msra.gmra.mxu2 %vm548_vm1, %v8965_v63 }
 0x29e   :  { %1160 = vmatpush.msra.mxu2 %v8630_v1 }
 0x2a0   :  { %1161 = vmatpush.msra.mxu2 %v8638_v3 }
 0x2a2   :  { %1162 = vmatpush.msra.mxu2 %v8646_v6 }
 0x2a4   :  { %1163 = vmatpush.msra.mxu2 %v8657_v8 }
 0x318   :  { %v873_v13 = vpop.f32.mrf.mxu2  ;;  %v919_v21 = vpop.f32.mrf.mxu3 }
 0x319   :  { %v874_v22 = vadd.f32 %v8872_v34, %v873_v13  ;;  %v920_v23 = vadd.f32 %v8886_v43, %v919_v21 }
 0x31b   :  { %v876_v24 = vadd.f32 %v874_v22, %v852_v10  ;;  %v922_v25 = vadd.f32 %v920_v23, %v901_v7  ;;  %v1093_v10 = vadd.f32 %v8899_v50, %v1090_v2 }
 0x31d   :  { %v877_v26 = vmul.f32 0.5, %v876_v24  ;;  %v923_v27 = vmul.f32 0.5, %v922_v25 }
 0x31f   :  { %7398 = vtanh.f32 %v877_v26 }
 0x320   :  { %7400 = vtanh.f32 %v923_v27  ;;  %v965_v29 = vpop.f32.mrf.mxu2 }
 0x321   :  { %v966_v36 = vadd.f32 %v8895_v47, %v965_v29 }
 0x325   :  { %v7399_v28 = vpop.eup %7398 }
 0x326   :  { %v879_v30 = vadd.f32 1.0, %v7399_v28  ;;  %v7401_v31 = vpop.eup %7400 }
 0x327   :  { %v925_v37 = vadd.f32 1.0, %v7401_v31  ;;  %v1141_v31 = vpop.f32.mrf.mxu0 }
 0x328   :  { %v880_v35 = vmul.f32 0.5, %v879_v30 }
 0x329   :  { %v926_v39 = vmul.f32 0.5, %v925_v37 }
 0x32a   :  { %v968_v4 = vmul.f32 %v966_v36, %v880_v35  ;;  %v1144_v35 = vadd.f32 %v8868_v33, %v1141_v31 }
 0x32b   :  { %v971_v41 = vsub.f32 1.0, %v926_v39  ;;  %v973_v44 = vmul.f32 %v926_v39, %v8965_v63 }
 0x32c   :  { %v969_v38 = vadd.f32 %v968_v4, %v947_v32  ;;  %v1193_v32 = vadd.f32 %v8882_v40, %v1190_v5 }
 0x32e   :  { %7402 = vtanh.f32 %v969_v38 }
 0x334   :  { %v7403_v42 = vpop.eup %7402 }
 0x335   :  { %v972_v45 = vmul.f32 %v7403_v42, %v971_v41 }
 0x337   :  { %v8992_v46 = vadd.f32 %v973_v44, %v972_v45 }
 0x339   :  { %10868 = vst [vmem:[#allocation65_spill] sm:$0xff] %v8992_v46  ;;  %7060 = vmatmul.msk.f32.vlgmr.msrb.gmra.mxu3 %vm548_vm1, %v8992_v46  ;;  %7062 = vmatmul.msk.f32.vlgmr.msrb.gmra.mxu2 %vm548_vm1, %v8992_v46 }
 0x33a   :  { %1206 = vmatpush.msrb.mxu3 %v8669_v11  ;;  %1252 = vmatpush.msrb.mxu2 %v8682_v14 }
 0x33c   :  { %1207 = vmatpush.msrb.mxu3 %v8674_v12  ;;  %1253 = vmatpush.msrb.mxu2 %v8692_v17 }
 0x33e   :  { %1208 = vmatpush.msrb.mxu3 %v8687_v16  ;;  %1254 = vmatpush.msrb.mxu2 %v8706_v19 }
 0x340   :  { %1209 = vmatpush.msrb.mxu3 %v8696_v18  ;;  %1255 = vmatpush.msrb.mxu2 %v8712_v20 }
 0x341   :  { %7064 = vmatmul.msk.f32.vlgmr.msra.gmra.mxu3 %vm548_vm1, %v8992_v46 }
 0x342   :  { %1306 = vmatpush.msra.mxu3 %v8630_v1 }
 0x344   :  { %1307 = vmatpush.msra.mxu3 %v8638_v3 }
 0x346   :  { %1308 = vmatpush.msra.mxu3 %v8646_v6 }
 0x348   :  { %1309 = vmatpush.msra.mxu3 %v8657_v8 }
 0x3bc   :  { %v1019_v53 = vpop.f32.mrf.mxu3  ;;  %v1065_v54 = vpop.f32.mrf.mxu2 }
 0x3bd   :  { %v1020_v55 = vadd.f32 %v8872_v34, %v1019_v53  ;;  %v1066_v56 = vadd.f32 %v8886_v43, %v1065_v54 }
 0x3bf   :  { %v1022_v57 = vadd.f32 %v1020_v55, %v998_v51  ;;  %v1068_v58 = vadd.f32 %v1066_v56, %v1047_v52  ;;  %v1236_v51 = vpop.f32.mrf.mxu0 }
 0x3c0   :  { %v1239_v53 = vadd.f32 %v8899_v50, %v1236_v51 }
 0x3c1   :  { %v1023_v59 = vmul.f32 0.5, %v1022_v57  ;;  %v1069_v60 = vmul.f32 0.5, %v1068_v58 }
 0x3c3   :  { %7404 = vtanh.f32 %v1023_v59 }
 0x3c4   :  { %7406 = vtanh.f32 %v1069_v60  ;;  %v1111_v62 = vpop.f32.mrf.mxu3 }
 0x3c5   :  { %v1112_v21 = vadd.f32 %v8895_v47, %v1111_v62 }
 0x3c9   :  { %v7405_v61 = vpop.eup %7404 }
 0x3ca   :  { %v1025_v0 = vadd.f32 1.0, %v7405_v61  ;;  %v7407_v7 = vpop.eup %7406 }
 0x3cb   :  { %v1071_v23 = vadd.f32 1.0, %v7407_v7 }
 0x3cc   :  { %v1026_v13 = vmul.f32 0.5, %v1025_v0 }
 0x3cd   :  { %v1072_v25 = vmul.f32 0.5, %v1071_v23 }
 0x3ce   :  { %v1114_v22 = vmul.f32 %v1112_v21, %v1026_v13 }
 0x3cf   :  { %v1117_v26 = vsub.f32 1.0, %v1072_v25  ;;  %v1119_v28 = vmul.f32 %v1072_v25, %v8992_v46 }
 0x3d0   :  { %v1115_v24 = vadd.f32 %v1114_v22, %v1093_v10 }
 0x3d2   :  { %7408 = vtanh.f32 %v1115_v24 }
 0x3d8   :  { %v7409_v27 = vpop.eup %7408 }
 0x3d9   :  { %v1118_v29 = vmul.f32 %v7409_v27, %v1117_v26 }
 0x3db   :  { %v9019_v30 = vadd.f32 %v1119_v28, %v1118_v29 }
 0x3dd   :  { %10869 = vst [vmem:[#allocation66_spill] sm:$0xff] %v9019_v30  ;;  %7066 = vmatmul.msk.f32.vlgmr.msra.gmra.mxu2 %vm548_vm1, %v9019_v30  ;;  %7068 = vmatmul.msk.f32.vlgmr.msrb.gmra.mxu3 %vm548_vm1, %v9019_v30 }
 0x3de   :  { %1352 = vmatpush.msra.mxu2 %v8669_v11  ;;  %1398 = vmatpush.msrb.mxu3 %v8682_v14 }
 0x3e0   :  { %1353 = vmatpush.msra.mxu2 %v8674_v12  ;;  %1399 = vmatpush.msrb.mxu3 %v8692_v17 }
 0x3e2   :  { %1354 = vmatpush.msra.mxu2 %v8687_v16  ;;  %1400 = vmatpush.msrb.mxu3 %v8706_v19 }
 0x3e4   :  { %1355 = vmatpush.msra.mxu2 %v8696_v18  ;;  %1401 = vmatpush.msrb.mxu3 %v8712_v20 }
 0x3e5   :  { %7070 = vmatmul.msk.f32.vlgmr.msrb.gmra.mxu2 %vm548_vm1, %v9019_v30 }
 0x3e6   :  { %1452 = vmatpush.msrb.mxu2 %v8630_v1 }
 0x3e8   :  { %1453 = vmatpush.msrb.mxu2 %v8638_v3 }
 0x3ea   :  { %1454 = vmatpush.msrb.mxu2 %v8646_v6 }
 0x3ec   :  { %1455 = vmatpush.msrb.mxu2 %v8657_v8 }
 0x460   :  { %v1165_v36 = vpop.f32.mrf.mxu2  ;;  %v1211_v4 = vpop.f32.mrf.mxu3 }
 0x461   :  { %v1166_v37 = vadd.f32 %v8872_v34, %v1165_v36  ;;  %v1212_v38 = vadd.f32 %v8886_v43, %v1211_v4 }
 0x463   :  { %v1168_v39 = vadd.f32 %v1166_v37, %v1144_v35  ;;  %v1214_v41 = vadd.f32 %v1212_v38, %v1193_v32 }
 0x465   :  { %v1169_v42 = vmul.f32 0.5, %v1168_v39  ;;  %v1215_v44 = vmul.f32 0.5, %v1214_v41 }
 0x467   :  { %7410 = vtanh.f32 %v1169_v42  ;;  %v7578_v42 = vld [vmem:[%s10865_s15 + $0x38] sm:$0xff] }
 0x468   :  { %7412 = vtanh.f32 %v1215_v44  ;;  %v1257_v48 = vpop.f32.mrf.mxu2  ;;  %v7579_v44 = vld [vmem:[%s10865_s15 + $0x58] sm:$0xff] }
 0x469   :  { %v1258_v55 = vadd.f32 %v8895_v47, %v1257_v48 }
 0x46d   :  { %v7411_v45 = vpop.eup %7410 }
 0x46e   :  { %v1171_v49 = vadd.f32 1.0, %v7411_v45  ;;  %v7413_v52 = vpop.eup %7412  ;;  %v7580_v45 = vld [vmem:[%s10865_s15 + $0x30] sm:$0xff] }
 0x46f   :  { %v1217_v57 = vadd.f32 1.0, %v7413_v52 }
 0x470   :  { %v1172_v54 = vmul.f32 0.5, %v1171_v49 }
 0x471   :  { %v1218_v59 = vmul.f32 0.5, %v1217_v57 }
 0x472   :  { %v1260_v56 = vmul.f32 %v1258_v55, %v1172_v54 }
 0x473   :  { %v1263_v60 = vsub.f32 1.0, %v1218_v59  ;;  %v1265_v62 = vmul.f32 %v1218_v59, %v9019_v30 }
 0x474   :  { %v1261_v58 = vadd.f32 %v1260_v56, %v1239_v53  ;;  %v9098_v56 = vld [vmem:[#allocation10 + $0x8] sm:$0xff] }
 0x476   :  { %7414 = vtanh.f32 %v1261_v58 }
 0x47c   :  { %v7415_v61 = vpop.eup %7414 }
 0x47d   :  { %v1264_v0 = vmul.f32 %v7415_v61, %v1263_v60 }
 0x47f   :  { %v9046_v2 = vadd.f32 %v1265_v62, %v1264_v0 }
 0x481   :  { %10870 = vst [vmem:[#allocation67_spill] sm:$0xff] %v9046_v2  ;;  %7072 = vmatmul.msk.f32.vlgmr.msra.gmra.mxu3 %vm548_vm1, %v9046_v2  ;;  %7074 = vmatmul.msk.f32.vlgmr.msra.gmra.mxu2 %vm548_vm1, %v9046_v2 }
 0x482   :  { %1498 = vmatpush.msra.mxu3 %v8669_v11  ;;  %1544 = vmatpush.msra.mxu2 %v8682_v14  ;;  %v1287_v11 = vpop.f32.mrf.mxu1 }
 0x483   :  { %v1290_v14 = vadd.f32 %v8868_v33, %v1287_v11 }
 0x484   :  { %1499 = vmatpush.msra.mxu3 %v8674_v12  ;;  %1545 = vmatpush.msra.mxu2 %v8692_v17  ;;  %v1336_v12 = vpop.f32.mrf.mxu0 }
 0x485   :  { %v1339_v7 = vadd.f32 %v8882_v40, %v1336_v12 }
 0x486   :  { %1500 = vmatpush.msra.mxu3 %v8687_v16  ;;  %1546 = vmatpush.msra.mxu2 %v8706_v19 }
 0x488   :  { %1501 = vmatpush.msra.mxu3 %v8696_v18  ;;  %1547 = vmatpush.msra.mxu2 %v8712_v20 }
 0x489   :  { %7076 = vmatmul.msk.f32.vlgmr.msrb.gmra.mxu3 %vm548_vm1, %v9046_v2 }
 0x48a   :  { %1598 = vmatpush.msrb.mxu3 %v8630_v1  ;;  %v1382_v26 = vpop.f32.mrf.mxu1 }
 0x48b   :  { %v1385_v28 = vadd.f32 %v8899_v50, %v1382_v26 }
 0x48c   :  { %1599 = vmatpush.msrb.mxu3 %v8638_v3  ;;  %v1433_v49 = vpop.f32.mrf.mxu0 }
 0x48d   :  { %v1436_v52 = vadd.f32 %v8868_v33, %v1433_v49  ;;  %v9101_v33 = vld [vmem:[#allocation10] sm:$0xff] }
 0x48e   :  { %1600 = vmatpush.msrb.mxu3 %v8646_v6 }
 0x490   :  { %1601 = vmatpush.msrb.mxu3 %v8657_v8 }
 0x492   :  { %v1482_v48 = vpop.f32.mrf.mxu1 }
 0x493   :  { %v1485_v51 = vadd.f32 %v8882_v40, %v1482_v48 }
 0x494   :  { %v1528_v59 = vpop.f32.mrf.mxu0 }
 0x495   :  { %v1531_v61 = vadd.f32 %v8899_v50, %v1528_v59  ;;  %v9120_v50 = vld [vmem:[#allocation10 + $0x50] sm:$0xff] }
 0x49a   :  { %v9159_v26 = vpop.f32.mrf.mxu1 }
 0x49b   :  { %10873 = vst [vmem:[#allocation70_spill] sm:$0xff] %v9159_v26 }
 0x504   :  { %v1311_v10 = vpop.f32.mrf.mxu3  ;;  %v1357_v13 = vpop.f32.mrf.mxu2 }
 0x505   :  { %v1312_v21 = vadd.f32 %v8872_v34, %v1311_v10  ;;  %v1358_v22 = vadd.f32 %v8886_v43, %v1357_v13 }
 0x507   :  { %v1314_v23 = vadd.f32 %v1312_v21, %v1290_v14  ;;  %v1360_v1 = vadd.f32 %v1358_v22, %v1339_v7 }
 0x509   :  { %v1315_v24 = vmul.f32 0.5, %v1314_v23  ;;  %v1361_v3 = vmul.f32 0.5, %v1360_v1  ;;  %v9110_v1 = vld [vmem:[#allocation10 + $0x38] sm:$0xff] }
 0x50b   :  { %7416 = vtanh.f32 %v1315_v24  ;;  %v9112_v24 = vld [vmem:[#allocation10 + $0x58] sm:$0xff] }
 0x50c   :  { %7418 = vtanh.f32 %v1361_v3  ;;  %v1403_v8 = vpop.f32.mrf.mxu3  ;;  %v9124_v3 = vld [vmem:[#allocation10 + $0x28] sm:$0xff] }
 0x50d   :  { %v1404_v5 = vadd.f32 %v8895_v47, %v1403_v8  ;;  %v9130_v8 = vld [vmem:[#allocation10 + $0x20] sm:$0xff] }
 0x511   :  { %v7417_v6 = vpop.eup %7416 }
 0x512   :  { %v1317_v25 = vadd.f32 1.0, %v7417_v6  ;;  %v7419_v27 = vpop.eup %7418  ;;  %v9126_v6 = vld [vmem:[#allocation10 + $0x48] sm:$0xff] }
 0x513   :  { %v1363_v32 = vadd.f32 1.0, %v7419_v27  ;;  %v9161_v27 = vpop.f32.mrf.mxu0 }
 0x514   :  { %v1318_v29 = vmul.f32 0.5, %v1317_v25  ;;  %v9132_v25 = vld [vmem:[#allocation10 + $0x40] sm:$0xff]  ;;  %10874 = vst [vmem:[#allocation71_spill] sm:$0xff] %v9161_v27 }
 0x515   :  { %v1364_v36 = vmul.f32 0.5, %v1363_v32  ;;  %v9171_v32 = vld [vmem:[#allocation13] ss:$0 sm:$0xff] }
 0x516   :  { %v1406_v31 = vmul.f32 %v1404_v5, %v1318_v29  ;;  %v9167_v5 = vld [vmem:[#allocation11] ss:$0 sm:$0xff] }
 0x517   :  { %v1409_v4 = vsub.f32 1.0, %v1364_v36  ;;  %v1411_v38 = vmul.f32 %v1364_v36, %v9046_v2 }
 0x518   :  { %v1407_v35 = vadd.f32 %v1406_v31, %v1385_v28  ;;  %v9169_v31 = vpop.f32.mrf.mxu1 }
 0x519   :  { %10877 = vst [vmem:[#allocation74_spill] sm:$0xff] %v9169_v31 }
 0x51a   :  { %7420 = vtanh.f32 %v1407_v35 }
 0x51b   :  { %v1722_v35 = vpop.f32.mrf.mxu0 }
 0x51c   :  { %v1728_v36 = vadd.f32 %v9167_v5, %v1722_v35 }
 0x520   :  { %v7421_v37 = vpop.eup %7420  ;;  %v1774_v48 = vpop.f32.mrf.mxu1 }
 0x521   :  { %v1410_v39 = vmul.f32 %v7421_v37, %v1409_v4 }
 0x523   :  { %v9073_v41 = vadd.f32 %v1411_v38, %v1410_v39  ;;  %v9177_v39 = vld [vmem:[#allocation11 + $0x1] ss:$0 sm:$0xff] }
 0x524   :  { %v1780_v49 = vadd.f32 %v9177_v39, %v1774_v48 }
 0x525   :  { %10871 = vst [vmem:[#allocation68_spill] sm:$0xff] %v9073_v41  ;;  %7078 = vmatmul.msk.f32.vlgmr.msrb.gmra.mxu2 %vm548_vm1, %v9073_v41  ;;  %7080 = vmatmul.msk.f32.vlgmr.msra.gmra.mxu3 %vm548_vm1, %v9073_v41 }
 0x526   :  { %1644 = vmatpush.msrb.mxu2 %v7578_v42  ;;  %1690 = vmatpush.msra.mxu3 %v7579_v44 }
 0x528   :  { %1645 = vmatpush.msrb.mxu2 %v7580_v45  ;;  %1691 = vmatpush.msra.mxu3 %v8692_v17  ;;  %v9179_v45 = vld [vmem:[#allocation13 + $0x1] ss:$0 sm:$0xff] }
 0x52a   :  { %1646 = vmatpush.msrb.mxu2 %v8687_v16  ;;  %1692 = vmatpush.msra.mxu3 %v8706_v19  ;;  %v9093_v19 = vld [vmem:[#allocation10 + $0x18] sm:$0xff] }
 0x52c   :  { %1647 = vmatpush.msrb.mxu2 %v8696_v18  ;;  %1693 = vmatpush.msra.mxu3 %v8712_v20  ;;  %v9095_v18 = vld [vmem:[#allocation10 + $0x10] sm:$0xff] }
 0x52d   :  { %7082 = vmatmul.msk.f32.vlgmr.msra.gmra.mxu2 %vm548_vm1, %v9073_v41 }
 0x52e   :  { %1744 = vmatpush.msra.mxu2 %v9093_v19 }
 0x530   :  { %1745 = vmatpush.msra.mxu2 %v9095_v18 }
 0x532   :  { %1746 = vmatpush.msra.mxu2 %v9098_v56 }
 0x534   :  { %1747 = vmatpush.msra.mxu2 %v9101_v33 }
 0x5a8   :  { %v1457_v53 = vpop.f32.mrf.mxu2  ;;  %v1503_v54 = vpop.f32.mrf.mxu3 }
 0x5a9   :  { %v1458_v17 = vadd.f32 %v8872_v34, %v1457_v53  ;;  %v1504_v16 = vadd.f32 %v8886_v43, %v1503_v54  ;;  %v9183_v53 = vld [vmem:[#allocation13 + $0x2] ss:$0 sm:$0xff] }
 0x5ab   :  { %v1460_v20 = vadd.f32 %v1458_v17, %v1436_v52  ;;  %v1506_v55 = vadd.f32 %v1504_v16, %v1485_v51  ;;  %v9185_v16 = vld [vmem:[#allocation11 + $0x2] ss:$0 sm:$0xff] }
 0x5ad   :  { %v1461_v40 = vmul.f32 0.5, %v1460_v20  ;;  %v1507_v57 = vmul.f32 0.5, %v1506_v55 }
 0x5af   :  { %7422 = vtanh.f32 %v1461_v40 }
 0x5b0   :  { %7424 = vtanh.f32 %v1507_v57  ;;  %v1549_v43 = vpop.f32.mrf.mxu2 }
 0x5b1   :  { %v1550_v0 = vadd.f32 %v8895_v47, %v1549_v43  ;;  %v9118_v47 = vld [vmem:[#allocation10 + $0x30] sm:$0xff] }
 0x5b5   :  { %v7423_v34 = vpop.eup %7422 }
 0x5b6   :  { %v1463_v58 = vadd.f32 1.0, %v7423_v34  ;;  %v7425_v60 = vpop.eup %7424  ;;  %v1826_v34 = vpop.f32.mrf.mxu0 }
 0x5b7   :  { %v1509_v12 = vadd.f32 1.0, %v7425_v60  ;;  %v1832_v43 = vadd.f32 %v9185_v16, %v1826_v34 }
 0x5b8   :  { %v1464_v62 = vmul.f32 0.5, %v1463_v58 }
 0x5b9   :  { %v1510_v7 = vmul.f32 0.5, %v1509_v12 }
 0x5ba   :  { %v1552_v11 = vmul.f32 %v1550_v0, %v1464_v62 }
 0x5bb   :  { %v1555_v10 = vsub.f32 1.0, %v1510_v7  ;;  %v1557_v21 = vmul.f32 %v1510_v7, %v9073_v41 }
 0x5bc   :  { %v1553_v14 = vadd.f32 %v1552_v11, %v1531_v61 }
 0x5be   :  { %7426 = vtanh.f32 %v1553_v14 }
 0x5c4   :  { %v7427_v13 = vpop.eup %7426 }
 0x5c5   :  { %v1556_v22 = vmul.f32 %v7427_v13, %v1555_v10  ;;  %v1880_v13 = vpop.f32.mrf.mxu1 }
 0x5c7   :  { %v9108_v23 = vadd.f32 %v1557_v21, %v1556_v22  ;;  %v1929_v21 = vpop.f32.mrf.mxu0  ;;  %v1883_v22 = vadd.f32 %v9167_v5, %v1880_v13 }
 0x5c8   :  { %v1932_v35 = vadd.f32 %v9177_v39, %v1929_v21 }
 0x5c9   :  { %10872 = vst [vmem:[#allocation69_spill] sm:$0xff] %v9108_v23  ;;  %7084 = vmatmul.msk.f32.vlgmr.msrb.gmra.mxu3 %vm548_vm1, %v9108_v23  ;;  %7086 = vmatmul.msk.f32.vlgmr.msrb.gmra.mxu2 %vm548_vm1, %v9108_v23 }
 0x5ca   :  { %1796 = vmatpush.msrb.mxu3 %v9110_v1  ;;  %1848 = vmatpush.msrb.mxu2 %v9112_v24 }
 0x5cc   :  { %1797 = vmatpush.msrb.mxu3 %v9118_v47  ;;  %1849 = vmatpush.msrb.mxu2 %v9120_v50 }
 0x5ce   :  { %1798 = vmatpush.msrb.mxu3 %v9124_v3  ;;  %1850 = vmatpush.msrb.mxu2 %v9126_v6 }
 0x5d0   :  { %1799 = vmatpush.msrb.mxu3 %v9130_v8  ;;  %1851 = vmatpush.msrb.mxu2 %v9132_v25 }
 0x5d1   :  { %7088 = vmatmul.msk.f32.vlgmr.msra.gmra.mxu3 %vm548_vm1, %v9108_v23  ;;  %1748 = vmatmul.f32.vlgmr.msra.gmra.mxu2 %v10791_v15  ;;  %v9546_v23 = vld [vmem:[#allocation19 + $0x2] ss:$0 sm:$0xff] }
 0x5d2   :  { %1899 = vmatpush.msra.mxu3 %v9093_v19  ;;  %1945 = vmatpush.msra.mxu2 %v9110_v1 }
 0x5d4   :  { %1900 = vmatpush.msra.mxu3 %v9095_v18  ;;  %1946 = vmatpush.msra.mxu2 %v9118_v47 }
 0x5d6   :  { %1901 = vmatpush.msra.mxu3 %v9098_v56  ;;  %1947 = vmatpush.msra.mxu2 %v9124_v3 }
 0x5d8   :  { %1902 = vmatpush.msra.mxu3 %v9101_v33  ;;  %1948 = vmatpush.msra.mxu2 %v9130_v8 }
 0x5d9   :  { %1800 = vmatmul.f32.vlgmr.msrb.gmra.mxu3 %v10791_v15  ;;  %1852 = vmatmul.f32.vlgmr.msrb.gmra.mxu2 %v10791_v15 }
 0x5da   :  { %1991 = vmatpush.msrb.mxu3 %v9112_v24  ;;  %2042 = vmatpush.msrb.mxu2 %v9093_v19 }
 0x5dc   :  { %1992 = vmatpush.msrb.mxu3 %v9120_v50  ;;  %2043 = vmatpush.msrb.mxu2 %v9095_v18 }
 0x5de   :  { %1993 = vmatpush.msrb.mxu3 %v9126_v6  ;;  %2044 = vmatpush.msrb.mxu2 %v9098_v56 }
 0x5e0   :  { %1994 = vmatpush.msrb.mxu3 %v9132_v25  ;;  %2045 = vmatpush.msrb.mxu2 %v9101_v33 }
 0x64c   :  { %v9163_v28 = vpop.f32.mrf.mxu3  ;;  %v9165_v29 = vpop.f32.mrf.mxu2 }
 0x64d   :  { %10875 = vst [vmem:[#allocation72_spill] sm:$0xff] %v9163_v28 }
 0x64e   :  { %10876 = vst [vmem:[#allocation73_spill] sm:$0xff] %v9165_v29 }
 0x654   :  { %v9174_v4 = vpop.f32.mrf.mxu3  ;;  %v1749_v37 = vpop.f32.mrf.mxu2 }
 0x655   :  { %10878 = vst [vmem:[#allocation75_spill] sm:$0xff] %v9174_v4  ;;  %v1750_v38 = vadd.f32 %v9171_v32, %v1749_v37 }
 0x657   :  { %v1752_v42 = vadd.f32 %v1750_v38, %v1728_v36 }
 0x659   :  { %v1753_v44 = vmul.f32 0.5, %v1752_v42 }
 0x65b   :  { %7428 = vtanh.f32 %v1753_v44 }
 0x65c   :  { %v1801_v51 = vpop.f32.mrf.mxu3  ;;  %v1853_v17 = vpop.f32.mrf.mxu2 }
 0x65d   :  { %v1802_v52 = vadd.f32 %v9179_v45, %v1801_v51  ;;  %v1854_v57 = vadd.f32 %v9183_v53, %v1853_v17 }
 0x65f   :  { %v1804_v54 = vadd.f32 %v1802_v52, %v1780_v49 }
 0x661   :  { %v7429_v20 = vpop.eup %7428  ;;  %v1805_v55 = vmul.f32 0.5, %v1804_v54 }
 0x662   :  { %v1755_v40 = vadd.f32 1.0, %v7429_v20  ;;  %v1975_v20 = vpop.f32.mrf.mxu1 }
 0x663   :  { %7430 = vtanh.f32 %v1805_v55 }
 0x664   :  { %v1756_v58 = vmul.f32 0.5, %v1755_v40  ;;  %v1978_v40 = vadd.f32 %v9185_v16, %v1975_v20 }
 0x666   :  { %v1856_v59 = vmul.f32 %v1854_v57, %v1756_v58 }
 0x668   :  { %v1857_v60 = vadd.f32 %v1856_v59, %v1832_v43 }
 0x669   :  { %v7431_v61 = vpop.eup %7430 }
 0x66a   :  { %v1807_v62 = vadd.f32 1.0, %v7431_v61  ;;  %7432 = vtanh.f32 %v1857_v60 }
 0x66c   :  { %v1808_v0 = vmul.f32 0.5, %v1807_v62 }
 0x66e   :  { %v1859_v11 = vsub.f32 1.0, %v1808_v0  ;;  %v1861_v14 = vmul.f32 0.0, %v1808_v0 }
 0x670   :  { %v7433_v12 = vpop.eup %7432 }
 0x671   :  { %v1860_v7 = vmul.f32 %v7433_v12, %v1859_v11 }
 0x673   :  { %v9189_v10 = vadd.f32 %v1861_v14, %v1860_v7  ;;  %v2072_v14 = vpop.f32.mrf.mxu1  ;;  %v2023_v7 = vpop.f32.mrf.mxu0 }
 0x674   :  { %v2075_v13 = vadd.f32 %v9177_v39, %v2072_v14  ;;  %v2026_v21 = vadd.f32 %v9167_v5, %v2023_v7 }
 0x675   :  { %10879 = vst [vmem:[#allocation76_spill] sm:$0xff] %v9189_v10  ;;  %7093 = vmatmul.msk.f32.vlgmr.msra.gmra.mxu3 %vm548_vm1, %v9189_v10  ;;  %7095 = vmatmul.msk.f32.vlgmr.msra.gmra.mxu2 %vm548_vm1, %v9189_v10 }
 0x676   :  { %2088 = vmatpush.msra.mxu3 %v9110_v1  ;;  %2134 = vmatpush.msra.mxu2 %v9112_v24 }
 0x678   :  { %2089 = vmatpush.msra.mxu3 %v9118_v47  ;;  %2135 = vmatpush.msra.mxu2 %v9120_v50 }
 0x67a   :  { %2090 = vmatpush.msra.mxu3 %v9124_v3  ;;  %2136 = vmatpush.msra.mxu2 %v9126_v6 }
 0x67c   :  { %2091 = vmatpush.msra.mxu3 %v9130_v8  ;;  %2137 = vmatpush.msra.mxu2 %v9132_v25 }
 0x67d   :  { %7097 = vmatmul.msk.f32.vlgmr.msrb.gmra.mxu3 %vm548_vm1, %v9189_v10 }
 0x67e   :  { %2185 = vmatpush.msrb.mxu3 %v9093_v19 }
 0x680   :  { %2186 = vmatpush.msrb.mxu3 %v9095_v18 }
 0x682   :  { %2187 = vmatpush.msrb.mxu3 %v9098_v56 }
 0x684   :  { %2188 = vmatpush.msrb.mxu3 %v9101_v33 }
 0x6f8   :  { %v1904_v36 = vpop.f32.mrf.mxu3  ;;  %v1950_v37 = vpop.f32.mrf.mxu2 }
 0x6f9   :  { %v1905_v38 = vadd.f32 %v9171_v32, %v1904_v36  ;;  %v1951_v42 = vadd.f32 %v9179_v45, %v1950_v37 }
 0x6fb   :  { %v1907_v44 = vadd.f32 %v1905_v38, %v1883_v22  ;;  %v1953_v48 = vadd.f32 %v1951_v42, %v1932_v35 }
 0x6fd   :  { %v1908_v49 = vmul.f32 0.5, %v1907_v44  ;;  %v1954_v51 = vmul.f32 0.5, %v1953_v48 }
 0x6ff   :  { %7434 = vtanh.f32 %v1908_v49 }
 0x700   :  { %7436 = vtanh.f32 %v1954_v51  ;;  %v1996_v54 = vpop.f32.mrf.mxu3 }
 0x701   :  { %v1997_v34 = vadd.f32 %v9183_v53, %v1996_v54  ;;  %v2118_v54 = vpop.f32.mrf.mxu0 }
 0x702   :  { %v2121_v20 = vadd.f32 %v9185_v16, %v2118_v54 }
 0x705   :  { %v7435_v52 = vpop.eup %7434 }
 0x706   :  { %v1910_v17 = vadd.f32 1.0, %v7435_v52  ;;  %v7437_v55 = vpop.eup %7436 }
 0x707   :  { %v1956_v58 = vadd.f32 1.0, %v7437_v55 }
 0x708   :  { %v1911_v57 = vmul.f32 0.5, %v1910_v17 }
 0x709   :  { %v1957_v60 = vmul.f32 0.5, %v1956_v58  ;;  %v2215_v14 = vpop.f32.mrf.mxu0 }
 0x70a   :  { %v1999_v43 = vmul.f32 %v1997_v34, %v1911_v57 }
 0x70b   :  { %v2002_v61 = vsub.f32 1.0, %v1957_v60  ;;  %v2004_v0 = vmul.f32 %v1957_v60, %v9189_v10 }
 0x70c   :  { %v2000_v59 = vadd.f32 %v1999_v43, %v1978_v40 }
 0x70e   :  { %7438 = vtanh.f32 %v2000_v59 }
 0x714   :  { %v7439_v62 = vpop.eup %7438 }
 0x715   :  { %v2003_v11 = vmul.f32 %v7439_v62, %v2002_v61 }
 0x717   :  { %v9216_v12 = vadd.f32 %v2004_v0, %v2003_v11  ;;  %v2166_v11 = vpop.f32.mrf.mxu1 }
 0x718   :  { %v2169_v7 = vadd.f32 %v9167_v5, %v2166_v11 }
 0x719   :  { %10880 = vst [vmem:[#allocation77_spill] sm:$0xff] %v9216_v12  ;;  %7099 = vmatmul.msk.f32.vlgmr.msrb.gmra.mxu2 %vm548_vm1, %v9216_v12  ;;  %7101 = vmatmul.msk.f32.vlgmr.msra.gmra.mxu3 %vm548_vm1, %v9216_v12 }
 0x71a   :  { %2231 = vmatpush.msrb.mxu2 %v9110_v1  ;;  %2277 = vmatpush.msra.mxu3 %v9112_v24 }
 0x71c   :  { %2232 = vmatpush.msrb.mxu2 %v9118_v47  ;;  %2278 = vmatpush.msra.mxu3 %v9120_v50 }
 0x71e   :  { %2233 = vmatpush.msrb.mxu2 %v9124_v3  ;;  %2279 = vmatpush.msra.mxu3 %v9126_v6 }
 0x720   :  { %2234 = vmatpush.msrb.mxu2 %v9130_v8  ;;  %2280 = vmatpush.msra.mxu3 %v9132_v25 }
 0x721   :  { %7103 = vmatmul.msk.f32.vlgmr.msra.gmra.mxu2 %vm548_vm1, %v9216_v12 }
 0x722   :  { %2328 = vmatpush.msra.mxu2 %v9093_v19 }
 0x724   :  { %2329 = vmatpush.msra.mxu2 %v9095_v18 }
 0x726   :  { %2330 = vmatpush.msra.mxu2 %v9098_v56 }
 0x728   :  { %2331 = vmatpush.msra.mxu2 %v9101_v33 }
 0x79c   :  { %v2047_v22 = vpop.f32.mrf.mxu2  ;;  %v2093_v35 = vpop.f32.mrf.mxu3 }
 0x79d   :  { %v2048_v36 = vadd.f32 %v9171_v32, %v2047_v22  ;;  %v2094_v37 = vadd.f32 %v9179_v45, %v2093_v35 }
 0x79f   :  { %v2050_v38 = vadd.f32 %v2048_v36, %v2026_v21  ;;  %v2096_v42 = vadd.f32 %v2094_v37, %v2075_v13  ;;  %v2218_v13 = vadd.f32 %v9177_v39, %v2215_v14  ;;  %v2309_v14 = vpop.f32.mrf.mxu0 }
 0x7a1   :  { %v2051_v44 = vmul.f32 0.5, %v2050_v38  ;;  %v2097_v48 = vmul.f32 0.5, %v2096_v42 }
 0x7a3   :  { %7440 = vtanh.f32 %v2051_v44 }
 0x7a4   :  { %7442 = vtanh.f32 %v2097_v48  ;;  %v2139_v51 = vpop.f32.mrf.mxu2 }
 0x7a5   :  { %v2140_v40 = vadd.f32 %v9183_v53, %v2139_v51 }
 0x7a9   :  { %v7441_v49 = vpop.eup %7440 }
 0x7aa   :  { %v2053_v52 = vadd.f32 1.0, %v7441_v49  ;;  %v7443_v17 = vpop.eup %7442 }
 0x7ab   :  { %v2099_v34 = vadd.f32 1.0, %v7443_v17 }
 0x7ac   :  { %v2054_v55 = vmul.f32 0.5, %v2053_v52  ;;  %v2261_v52 = vpop.f32.mrf.mxu1 }
 0x7ad   :  { %v2100_v58 = vmul.f32 0.5, %v2099_v34  ;;  %v2264_v17 = vadd.f32 %v9185_v16, %v2261_v52  ;;  %v2404_v52 = vpop.f32.mrf.mxu0 }
 0x7ae   :  { %v2142_v57 = vmul.f32 %v2140_v40, %v2054_v55 }
 0x7af   :  { %v2145_v59 = vsub.f32 1.0, %v2100_v58  ;;  %v2147_v61 = vmul.f32 %v2100_v58, %v9216_v12 }
 0x7b0   :  { %v2143_v43 = vadd.f32 %v2142_v57, %v2121_v20 }
 0x7b2   :  { %7444 = vtanh.f32 %v2143_v43 }
 0x7b4   :  { %v2358_v11 = vpop.f32.mrf.mxu1 }
 0x7b8   :  { %v7445_v60 = vpop.eup %7444 }
 0x7b9   :  { %v2146_v62 = vmul.f32 %v7445_v60, %v2145_v59 }
 0x7bb   :  { %v9243_v0 = vadd.f32 %v2147_v61, %v2146_v62 }
 0x7bd   :  { %10881 = vst [vmem:[#allocation78_spill] sm:$0xff] %v9243_v0  ;;  %7105 = vmatmul.msk.f32.vlgmr.msrb.gmra.mxu3 %vm548_vm1, %v9243_v0  ;;  %7107 = vmatmul.msk.f32.vlgmr.msrb.gmra.mxu2 %vm548_vm1, %v9243_v0 }
 0x7be   :  { %2374 = vmatpush.msrb.mxu3 %v9110_v1  ;;  %2420 = vmatpush.msrb.mxu2 %v9112_v24 }
 0x7c0   :  { %2375 = vmatpush.msrb.mxu3 %v9118_v47  ;;  %2421 = vmatpush.msrb.mxu2 %v9120_v50 }
 0x7c2   :  { %2376 = vmatpush.msrb.mxu3 %v9124_v3  ;;  %2422 = vmatpush.msrb.mxu2 %v9126_v6 }
 0x7c4   :  { %2377 = vmatpush.msrb.mxu3 %v9130_v8  ;;  %2423 = vmatpush.msrb.mxu2 %v9132_v25 }
 0x7c5   :  { %7109 = vmatmul.msk.f32.vlgmr.msra.gmra.mxu3 %vm548_vm1, %v9243_v0 }
 0x7c6   :  { %2471 = vmatpush.msra.mxu3 %v9093_v19 }
 0x7c8   :  { %2472 = vmatpush.msra.mxu3 %v9095_v18 }
 0x7ca   :  { %2473 = vmatpush.msra.mxu3 %v9098_v56 }
 0x7cc   :  { %2474 = vmatpush.msra.mxu3 %v9101_v33 }
 0x840   :  { %v2190_v21 = vpop.f32.mrf.mxu3  ;;  %v2236_v22 = vpop.f32.mrf.mxu2 }
 0x841   :  { %v2191_v35 = vadd.f32 %v9171_v32, %v2190_v21  ;;  %v2237_v36 = vadd.f32 %v9179_v45, %v2236_v22 }
 0x843   :  { %v2193_v37 = vadd.f32 %v2191_v35, %v2169_v7  ;;  %v2239_v38 = vadd.f32 %v2237_v36, %v2218_v13  ;;  %v2361_v7 = vadd.f32 %v9177_v39, %v2358_v11  ;;  %v2312_v13 = vadd.f32 %v9167_v5, %v2309_v14  ;;  %v2452_v14 = vpop.f32.mrf.mxu1 }
 0x845   :  { %v2194_v42 = vmul.f32 0.5, %v2193_v37  ;;  %v2240_v44 = vmul.f32 0.5, %v2239_v38 }
 0x847   :  { %7446 = vtanh.f32 %v2194_v42 }
 0x848   :  { %7448 = vtanh.f32 %v2240_v44  ;;  %v2282_v49 = vpop.f32.mrf.mxu3 }
 0x849   :  { %v2283_v55 = vadd.f32 %v9183_v53, %v2282_v49 }
 0x84d   :  { %v7447_v48 = vpop.eup %7446 }
 0x84e   :  { %v2196_v51 = vadd.f32 1.0, %v7447_v48  ;;  %v7449_v54 = vpop.eup %7448 }
 0x84f   :  { %v2242_v57 = vadd.f32 1.0, %v7449_v54 }
 0x850   :  { %v2197_v20 = vmul.f32 0.5, %v2196_v51 }
 0x851   :  { %v2243_v43 = vmul.f32 0.5, %v2242_v57 }
 0x852   :  { %v2285_v40 = vmul.f32 %v2283_v55, %v2197_v20 }
 0x853   :  { %v2288_v58 = vsub.f32 1.0, %v2243_v43  ;;  %v2290_v60 = vmul.f32 %v2243_v43, %v9243_v0 }
 0x854   :  { %v2286_v34 = vadd.f32 %v2285_v40, %v2264_v17  ;;  %v2407_v17 = vadd.f32 %v9185_v16, %v2404_v52 }
 0x856   :  { %7450 = vtanh.f32 %v2286_v34 }
 0x85c   :  { %v7451_v59 = vpop.eup %7450 }
 0x85d   :  { %v2289_v61 = vmul.f32 %v7451_v59, %v2288_v58 }
 0x85f   :  { %v9270_v62 = vadd.f32 %v2290_v60, %v2289_v61 }
 0x861   :  { %10882 = vst [vmem:[#allocation79_spill] sm:$0xff] %v9270_v62  ;;  %7111 = vmatmul.msk.f32.vlgmr.msra.gmra.mxu2 %vm548_vm1, %v9270_v62  ;;  %7113 = vmatmul.msk.f32.vlgmr.msrb.gmra.mxu3 %vm548_vm1, %v9270_v62 }
 0x862   :  { %2517 = vmatpush.msra.mxu2 %v9110_v1  ;;  %2563 = vmatpush.msrb.mxu3 %v9112_v24 }
 0x864   :  { %2518 = vmatpush.msra.mxu2 %v9118_v47  ;;  %2564 = vmatpush.msrb.mxu3 %v9120_v50 }
 0x866   :  { %2519 = vmatpush.msra.mxu2 %v9124_v3  ;;  %2565 = vmatpush.msrb.mxu3 %v9126_v6 }
 0x868   :  { %2520 = vmatpush.msra.mxu2 %v9130_v8  ;;  %2566 = vmatpush.msrb.mxu3 %v9132_v25 }
 0x869   :  { %7115 = vmatmul.msk.f32.vlgmr.msrb.gmra.mxu2 %vm548_vm1, %v9270_v62 }
 0x86a   :  { %2614 = vmatpush.msrb.mxu2 %v9093_v19 }
 0x86c   :  { %2615 = vmatpush.msrb.mxu2 %v9095_v18 }
 0x86e   :  { %2616 = vmatpush.msrb.mxu2 %v9098_v56 }
 0x870   :  { %2617 = vmatpush.msrb.mxu2 %v9101_v33 }
 0x8e4   :  { %v2333_v21 = vpop.f32.mrf.mxu2  ;;  %v2379_v22 = vpop.f32.mrf.mxu3 }
 0x8e5   :  { %v2334_v35 = vadd.f32 %v9171_v32, %v2333_v21  ;;  %v2380_v36 = vadd.f32 %v9179_v45, %v2379_v22 }
 0x8e7   :  { %v2336_v37 = vadd.f32 %v2334_v35, %v2312_v13  ;;  %v2382_v38 = vadd.f32 %v2380_v36, %v2361_v7  ;;  %v2501_v7 = vpop.f32.mrf.mxu0  ;;  %v2455_v13 = vadd.f32 %v9167_v5, %v2452_v14 }
 0x8e8   :  { %v2504_v21 = vadd.f32 %v9177_v39, %v2501_v7 }
 0x8e9   :  { %v2337_v42 = vmul.f32 0.5, %v2336_v37  ;;  %v2383_v44 = vmul.f32 0.5, %v2382_v38 }
 0x8eb   :  { %7452 = vtanh.f32 %v2337_v42 }
 0x8ec   :  { %7454 = vtanh.f32 %v2383_v44  ;;  %v2425_v49 = vpop.f32.mrf.mxu2 }
 0x8ed   :  { %v2426_v55 = vadd.f32 %v9183_v53, %v2425_v49 }
 0x8f1   :  { %v7453_v48 = vpop.eup %7452 }
 0x8f2   :  { %v2339_v51 = vadd.f32 1.0, %v7453_v48  ;;  %v7455_v54 = vpop.eup %7454  ;;  %v2547_v48 = vpop.f32.mrf.mxu1 }
 0x8f3   :  { %v2385_v57 = vadd.f32 1.0, %v7455_v54 }
 0x8f4   :  { %v2340_v20 = vmul.f32 0.5, %v2339_v51  ;;  %v2550_v51 = vadd.f32 %v9185_v16, %v2547_v48 }
 0x8f5   :  { %v2386_v43 = vmul.f32 0.5, %v2385_v57 }
 0x8f6   :  { %v2428_v40 = vmul.f32 %v2426_v55, %v2340_v20 }
 0x8f7   :  { %v2431_v58 = vsub.f32 1.0, %v2386_v43  ;;  %v2433_v60 = vmul.f32 %v2386_v43, %v9270_v62 }
 0x8f8   :  { %v2429_v34 = vadd.f32 %v2428_v40, %v2407_v17 }
 0x8fa   :  { %7456 = vtanh.f32 %v2429_v34 }
 0x900   :  { %v7457_v59 = vpop.eup %7456 }
 0x901   :  { %v2432_v61 = vmul.f32 %v7457_v59, %v2431_v58 }
 0x903   :  { %v9297_v11 = vadd.f32 %v2433_v60, %v2432_v61  ;;  %v9340_v60 = vld [vmem:[#allocation16 + $0x18] sm:$0xff] }
 0x904   :  { %3225 = vmatpush.msrb.mxu1 %v9340_v60 }
 0x905   :  { %10883 = vst [vmem:[#allocation80_spill] sm:$0xff] %v9297_v11  ;;  %7117 = vmatmul.msk.f32.vlgmr.msra.gmra.mxu3 %vm548_vm1, %v9297_v11  ;;  %7119 = vmatmul.msk.f32.vlgmr.msra.gmra.mxu2 %vm548_vm1, %v9297_v11 }
 0x906   :  { %2660 = vmatpush.msra.mxu3 %v9110_v1  ;;  %2706 = vmatpush.msra.mxu2 %v9112_v24 }
 0x908   :  { %2661 = vmatpush.msra.mxu3 %v9118_v47  ;;  %2707 = vmatpush.msra.mxu2 %v9120_v50 }
 0x90a   :  { %2662 = vmatpush.msra.mxu3 %v9124_v3  ;;  %2708 = vmatpush.msra.mxu2 %v9126_v6 }
 0x90c   :  { %2663 = vmatpush.msra.mxu3 %v9130_v8  ;;  %2709 = vmatpush.msra.mxu2 %v9132_v25 }
 0x90d   :  { %7121 = vmatmul.msk.f32.vlgmr.msrb.gmra.mxu3 %vm548_vm1, %v9297_v11 }
 0x90e   :  { %2757 = vmatpush.msrb.mxu3 %v9093_v19 }
 0x910   :  { %2758 = vmatpush.msrb.mxu3 %v9095_v18 }
 0x912   :  { %2759 = vmatpush.msrb.mxu3 %v9098_v56 }
 0x914   :  { %2760 = vmatpush.msrb.mxu3 %v9101_v33 }
 0x988   :  { %v2476_v22 = vpop.f32.mrf.mxu3  ;;  %v2522_v35 = vpop.f32.mrf.mxu2 }
 0x989   :  { %v2477_v36 = vadd.f32 %v9171_v32, %v2476_v22  ;;  %v2523_v37 = vadd.f32 %v9179_v45, %v2522_v35 }
 0x98b   :  { %v2479_v38 = vadd.f32 %v2477_v36, %v2455_v13  ;;  %v2525_v19 = vadd.f32 %v2523_v37, %v2504_v21 }
 0x98d   :  { %v2480_v42 = vmul.f32 0.5, %v2479_v38  ;;  %v2526_v18 = vmul.f32 0.5, %v2525_v19 }
 0x98f   :  { %7458 = vtanh.f32 %v2480_v42 }
 0x990   :  { %7460 = vtanh.f32 %v2526_v18  ;;  %v2568_v33 = vpop.f32.mrf.mxu3 }
 0x991   :  { %v2569_v54 = vadd.f32 %v9183_v53, %v2568_v33 }
 0x995   :  { %v7459_v56 = vpop.eup %7458 }
 0x996   :  { %v2482_v44 = vadd.f32 1.0, %v7459_v56  ;;  %v7461_v49 = vpop.eup %7460 }
 0x997   :  { %v2528_v20 = vadd.f32 1.0, %v7461_v49 }
 0x998   :  { %v2483_v52 = vmul.f32 0.5, %v2482_v44 }
 0x999   :  { %v2529_v40 = vmul.f32 0.5, %v2528_v20 }
 0x99a   :  { %v2571_v17 = vmul.f32 %v2569_v54, %v2483_v52 }
 0x99b   :  { %v2574_v57 = vsub.f32 1.0, %v2529_v40  ;;  %v2576_v43 = vmul.f32 %v2529_v40, %v9297_v11  ;;  %v9365_v40 = vld [vmem:[#allocation14 + $0x38] sm:$0xff] }
 0x99c   :  { %v2572_v55 = vadd.f32 %v2571_v17, %v2550_v51 }
 0x99e   :  { %7462 = vtanh.f32 %v2572_v55 }
 0x9a4   :  { %v7463_v34 = vpop.eup %7462 }
 0x9a5   :  { %v2575_v58 = vmul.f32 %v7463_v34, %v2574_v57  ;;  %v9371_v57 = vld [vmem:[#allocation14 + $0x30] sm:$0xff]  ;;  %v9376_v34 = vld [vmem:[#allocation14 + $0x28] sm:$0xff] }
 0x9a7   :  { %v9324_v59 = vadd.f32 %v2576_v43, %v2575_v58  ;;  %v9379_v43 = vld [vmem:[#allocation14 + $0x20] sm:$0xff]  ;;  %v9387_v58 = vld [vmem:[#allocation16 + $0x38] sm:$0xff] }
 0x9a8   :  { %3080 = vmatpush.msrb.mxu0 %v9387_v58 }
 0x9a9   :  { %10884 = vst [vmem:[#allocation81_spill] sm:$0xff] %v9324_v59  ;;  %7123 = vmatmul.msk.f32.vlgmr.msrb.gmra.mxu2 %vm548_vm1, %v9324_v59  ;;  %7125 = vmatmul.msk.f32.vlgmr.msra.gmra.mxu3 %vm548_vm1, %v9324_v59 }
 0x9aa   :  { %2803 = vmatpush.msrb.mxu2 %v9110_v1  ;;  %2849 = vmatpush.msra.mxu3 %v9112_v24  ;;  %v9344_v1 = vld [vmem:[#allocation16 + $0x10] sm:$0xff]  ;;  %v2644_v24 = vpop.f32.mrf.mxu1 }
 0x9ab   :  { %3226 = vmatpush.msrb.mxu1 %v9344_v1 }
 0x9ac   :  { %2804 = vmatpush.msrb.mxu2 %v9118_v47  ;;  %2850 = vmatpush.msra.mxu3 %v9120_v50  ;;  %v2595_v47 = vpop.f32.mrf.mxu0  ;;  %v9348_v50 = vld [vmem:[#allocation16 + $0x8] sm:$0xff] }
 0x9ad   :  { %3227 = vmatpush.msrb.mxu1 %v9348_v50 }
 0x9ae   :  { %2805 = vmatpush.msrb.mxu2 %v9124_v3  ;;  %2851 = vmatpush.msra.mxu3 %v9126_v6  ;;  %v2647_v3 = vadd.f32 %v9177_v39, %v2644_v24  ;;  %v2598_v6 = vadd.f32 %v9167_v5, %v2595_v47  ;;  %v9389_v24 = vld [vmem:[#allocation16 + $0x58] sm:$0xff]  ;;  %v9393_v47 = vld [vmem:[#allocation16 + $0x30] sm:$0xff] }
 0x9af   :  { %3081 = vmatpush.msrb.mxu0 %v9393_v47 }
 0x9b0   :  { %2806 = vmatpush.msrb.mxu2 %v9130_v8  ;;  %2852 = vmatpush.msra.mxu3 %v9132_v25  ;;  %v9353_v8 = vld [vmem:[#allocation16] sm:$0xff] }
 0x9b1   :  { %7127 = vmatmul.msk.f32.vlgmr.msra.gmra.mxu2 %vm548_vm1, %v9324_v59  ;;  %3228 = vmatpush.msrb.mxu1 %v9353_v8 }
 0x9b2   :  { %3007 = vmatpush.msra.mxu2 %v9340_v60 }
 0x9b4   :  { %3008 = vmatpush.msra.mxu2 %v9344_v1  ;;  %v2690_v19 = vpop.f32.mrf.mxu0 }
 0x9b5   :  { %v2693_v18 = vadd.f32 %v9185_v16, %v2690_v19  ;;  %v9419_v19 = vld [vmem:[#allocation17 + $0x30] sm:$0xff] }
 0x9b6   :  { %3009 = vmatpush.msra.mxu2 %v9348_v50 }
 0x9b8   :  { %3010 = vmatpush.msra.mxu2 %v9353_v8 }
 0xa2c   :  { %v2619_v25 = vpop.f32.mrf.mxu2  ;;  %v2665_v61 = vpop.f32.mrf.mxu3 }
 0xa2d   :  { %v2620_v14 = vadd.f32 %v9171_v32, %v2619_v25  ;;  %v2666_v7 = vadd.f32 %v9179_v45, %v2665_v61  ;;  %v2787_v25 = vpop.f32.mrf.mxu0  ;;  %v9399_v61 = vld [vmem:[#allocation16 + $0x28] sm:$0xff] }
 0xa2e   :  { %3082 = vmatpush.msrb.mxu0 %v9399_v61 }
 0xa2f   :  { %v2622_v13 = vadd.f32 %v2620_v14, %v2598_v6  ;;  %v2668_v21 = vadd.f32 %v2666_v7, %v2647_v3  ;;  %v9395_v3 = vld [vmem:[#allocation16 + $0x50] sm:$0xff]  ;;  %v2738_v6 = vpop.f32.mrf.mxu1  ;;  %v9401_v14 = vld [vmem:[#allocation16 + $0x48] sm:$0xff] }
 0xa30   :  { %v2741_v7 = vadd.f32 %v9167_v5, %v2738_v6  ;;  %v9415_v5 = vld [vmem:[#allocation17 + $0x38] sm:$0xff] }
 0xa31   :  { %v2623_v22 = vmul.f32 0.5, %v2622_v13  ;;  %v2669_v35 = vmul.f32 0.5, %v2668_v21  ;;  %v2790_v13 = vadd.f32 %v9177_v39, %v2787_v25  ;;  %v9407_v21 = vld [vmem:[#allocation16 + $0x20] sm:$0xff]  ;;  %v9417_v39 = vld [vmem:[#allocation17 + $0x58] sm:$0xff]  ;;  %3316 = vmatpush.msra.mxu1 %v9415_v5 }
 0xa32   :  { %3083 = vmatpush.msrb.mxu0 %v9407_v21 }
 0xa33   :  { %7464 = vtanh.f32 %v2623_v22  ;;  %v9409_v22 = vld [vmem:[#allocation16 + $0x40] sm:$0xff]  ;;  %3317 = vmatpush.msra.mxu1 %v9419_v19 }
 0xa34   :  { %7466 = vtanh.f32 %v2669_v35  ;;  %v2711_v37 = vpop.f32.mrf.mxu2  ;;  %3177 = vmatpush.msra.mxu0 %v9417_v39 }
 0xa35   :  { %v2712_v33 = vadd.f32 %v9183_v53, %v2711_v37 }
 0xa39   :  { %v7465_v36 = vpop.eup %7464 }
 0xa3a   :  { %v2625_v38 = vadd.f32 1.0, %v7465_v36  ;;  %v7467_v42 = vpop.eup %7466 }
 0xa3b   :  { %v2671_v48 = vadd.f32 1.0, %v7467_v42  ;;  %v9421_v42 = vld [vmem:[#allocation17 + $0x18] sm:$0xff] }
 0xa3c   :  { %v2626_v56 = vmul.f32 0.5, %v2625_v38 }
 0xa3d   :  { %v2672_v51 = vmul.f32 0.5, %v2671_v48 }
 0xa3e   :  { %v2714_v44 = vmul.f32 %v2712_v33, %v2626_v56  ;;  %v9430_v33 = vld [vmem:[#allocation17 + $0x48] sm:$0xff] }
 0xa3f   :  { %v2717_v52 = vsub.f32 1.0, %v2672_v51  ;;  %v2719_v17 = vmul.f32 %v2672_v51, %v9324_v59  ;;  %v9438_v51 = vld [vmem:[#allocation17 + $0x20] sm:$0xff] }
 0xa40   :  { %v2715_v49 = vadd.f32 %v2714_v44, %v2693_v18  ;;  %v9433_v44 = vld [vmem:[#allocation17 + $0x10] sm:$0xff] }
 0xa42   :  { %7468 = vtanh.f32 %v2715_v49 }
 0xa48   :  { %v7469_v54 = vpop.eup %7468 }
 0xa49   :  { %v2718_v20 = vmul.f32 %v7469_v54, %v2717_v52  ;;  %v9440_v52 = vld [vmem:[#allocation17 + $0x40] sm:$0xff]  ;;  %v9443_v54 = vld [vmem:[#allocation17 + $0x8] sm:$0xff] }
 0xa4b   :  { %v9363_v55 = vadd.f32 %v2719_v17, %v2718_v20  ;;  %v9449_v17 = vld [vmem:[#allocation17] sm:$0xff]  ;;  %v9455_v20 = vld [vmem:[#allocation14 + $0x18] sm:$0xff] }
 0xa4d   :  { %10885 = vst [vmem:[#allocation82_spill] sm:$0xff] %v9363_v55  ;;  %7129 = vmatmul.msk.f32.vlgmr.msrb.gmra.mxu3 %vm548_vm1, %v9363_v55  ;;  %7131 = vmatmul.msk.f32.vlgmr.msrb.gmra.mxu2 %vm548_vm1, %v9363_v55 }
 0xa4e   :  { %7141 = vmatmul.msk.f32.vlgmr.msrb.gmra.mxu1 %vm548_vm1, %v9363_v55  ;;  %3056 = vmatpush.msrb.mxu3 %v9365_v40 }
 0xa4f   :  { %3104 = vmatpush.msrb.mxu2 %v9415_v5 }
 0xa50   :  { %3057 = vmatpush.msrb.mxu3 %v9371_v57 }
 0xa51   :  { %3105 = vmatpush.msrb.mxu2 %v9419_v19 }
 0xa52   :  { %3058 = vmatpush.msrb.mxu3 %v9376_v34 }
 0xa54   :  { %3059 = vmatpush.msrb.mxu3 %v9379_v43 }
 0xa55   :  { %7133 = vmatmul.msk.f32.vlgmr.msra.gmra.mxu3 %vm548_vm1, %v9363_v55 }
 0xa56   :  { %3153 = vmatpush.msra.mxu3 %v9389_v24 }
 0xa58   :  { %3154 = vmatpush.msra.mxu3 %v9395_v3 }
 0xa5a   :  { %3155 = vmatpush.msra.mxu3 %v9401_v14 }
 0xa5c   :  { %3156 = vmatpush.msra.mxu3 %v9409_v22 }
 0xa5d   :  { %7136 = vmatmul.msk.f32.vlgmr.msrb.gmra.mxu3 %vm548_vm1, %v8921_v9 }
 0xa5e   :  { %3249 = vmatpush.msrb.mxu3 %v9421_v42 }
 0xa60   :  { %3250 = vmatpush.msrb.mxu3 %v9433_v44 }
 0xa62   :  { %3251 = vmatpush.msrb.mxu3 %v9443_v54 }
 0xa64   :  { %3252 = vmatpush.msrb.mxu3 %v9449_v17 }
 0xad0   :  { %v2762_v35 = vpop.f32.mrf.mxu3  ;;  %v2808_v36 = vpop.f32.mrf.mxu2 }
 0xad1   :  { %v2763_v37 = vadd.f32 %v9171_v32, %v2762_v35  ;;  %v2809_v38 = vadd.f32 %v9179_v45, %v2808_v36  ;;  %v9426_v32 = vld [vmem:[#allocation17 + $0x50] sm:$0xff]  ;;  %v9428_v45 = vld [vmem:[#allocation17 + $0x28] sm:$0xff]  ;;  %v2833_v35 = vpop.f32.mrf.mxu1 }
 0xad2   :  { %3178 = vmatpush.msra.mxu0 %v9426_v32  ;;  %3106 = vmatpush.msrb.mxu2 %v9428_v45  ;;  %v9461_v36 = vld [vmem:[#allocation14 + $0x8] sm:$0xff] }
 0xad3   :  { %v2765_v18 = vadd.f32 %v2763_v37, %v2741_v7  ;;  %v2811_v56 = vadd.f32 %v2809_v38, %v2790_v13  ;;  %3318 = vmatpush.msra.mxu1 %v9428_v45  ;;  %v9458_v7 = vld [vmem:[#allocation14 + $0x10] sm:$0xff]  ;;  %v2836_v38 = vadd.f32 %v9185_v16, %v2833_v35  ;;  %v2985_v16 = vpop.f32.mrf.mxu0 }
 0xad4   :  { %3179 = vmatpush.msra.mxu0 %v9430_v33  ;;  %3107 = vmatpush.msrb.mxu2 %v9438_v51 }
 0xad5   :  { %v2766_v48 = vmul.f32 0.5, %v2765_v18  ;;  %v2812_v49 = vmul.f32 0.5, %v2811_v56  ;;  %3319 = vmatpush.msra.mxu1 %v9438_v51 }
 0xad6   :  { %3180 = vmatpush.msra.mxu0 %v9440_v52 }
 0xad7   :  { %7470 = vtanh.f32 %v2766_v48  ;;  %3410 = vmatpush.msrb.mxu1 %v9455_v20  ;;  %v9466_v48 = vld [vmem:[#allocation14] sm:$0xff] }
 0xad8   :  { %7472 = vtanh.f32 %v2812_v49  ;;  %v2854_v25 = vpop.f32.mrf.mxu3 }
 0xad9   :  { %3411 = vmatpush.msrb.mxu1 %v9458_v7  ;;  %v2855_v56 = vadd.f32 %v9183_v53, %v2854_v25  ;;  %v9532_v53 = vld [vmem:[#allocation20] ss:$0 sm:$0xff]  ;;  %v3036_v25 = vpop.f32.mrf.mxu1 }
 0xada   :  { %10888 = vst [vmem:[#allocation84_spill] sm:$0xff] %v9532_v53 }
 0xadb   :  { %3412 = vmatpush.msrb.mxu1 %v9461_v36 }
 0xadd   :  { %v7471_v6 = vpop.eup %7470  ;;  %3413 = vmatpush.msrb.mxu1 %v9466_v48 }
 0xade   :  { %v2768_v13 = vadd.f32 1.0, %v7471_v6  ;;  %v7473_v37 = vpop.eup %7472 }
 0xadf   :  { %v2814_v15 = vadd.f32 1.0, %v7473_v37 }
 0xae0   :  { %v2769_v18 = vmul.f32 0.5, %v2768_v13  ;;  %v3037_v13 = vadd.f32 %v9532_v53, %v3036_v25  ;;  %v9544_v25 = vld [vmem:[#allocation20 + $0x2] ss:$0 sm:$0xff] }
 0xae1   :  { %v2815_v6 = vmul.f32 0.5, %v2814_v15  ;;  %v9480_v15 = vld [vmem:[#allocation14 + $0x58] sm:$0xff] }
 0xae2   :  { %v2857_v49 = vmul.f32 %v2855_v56, %v2769_v18  ;;  %v9538_v18 = vld [vmem:[#allocation19 + $0x1] ss:$0 sm:$0xff] }
 0xae3   :  { %v2860_v10 = vsub.f32 1.0, %v2815_v6  ;;  %v2862_v4 = vmul.f32 %v2815_v6, %v9363_v55  ;;  %10889 = vst [vmem:[#allocation85_spill] sm:$0xff] %v9538_v18  ;;  %v3061_v6 = vpop.f32.mrf.mxu3 }
 0xae4   :  { %v2858_v9 = vadd.f32 %v2857_v49, %v2836_v38 }
 0xae6   :  { %7474 = vtanh.f32 %v2858_v9  ;;  %v9485_v9 = vld [vmem:[#allocation14 + $0x50] sm:$0xff] }
 0xaec   :  { %v7475_v31 = vpop.eup %7474 }
 0xaed   :  { %v2861_v29 = vmul.f32 %v7475_v31, %v2860_v10  ;;  %v10887_v31 = vmov 0.0   ;;  %v9534_v10 = vld [vmem:[#allocation19] ss:$0 sm:$0xff] }
 0xaee   :  { %v2991_v35 = vadd.f32 %v9534_v10, %v2985_v16 }
 0xaef   :  { %v9470_v27 = vadd.f32 %v2862_v4, %v2861_v29  ;;  %v9490_v29 = vld [vmem:[#allocation14 + $0x48] sm:$0xff]  ;;  %v9499_v4 = vld [vmem:[#allocation14 + $0x40] sm:$0xff] }
 0xaf1   :  { %10886 = vst [vmem:[#allocation83_spill] sm:$0xff] %v9470_v27  ;;  %7135 = vmatmul.msk.f32.vlgmr.msra.gmra.mxu2 %vm548_vm1, %v9470_v27  ;;  %7137 = vmatmul.msk.f32.vlgmr.msrb.gmra.mxu0 %vm548_vm1, %v9470_v27 }
 0xaf2   :  { %7139 = vmatmul.msk.f32.vlgmr.msra.gmra.mxu3 %vm548_vm1, %v9470_v27  ;;  %3204 = vmatpush.msra.mxu2 %v9455_v20 }
 0xaf3   :  { %3274 = vmatpush.msrb.mxu0 %v9365_v40  ;;  %3341 = vmatpush.msra.mxu3 %v9480_v15 }
 0xaf4   :  { %3205 = vmatpush.msra.mxu2 %v9458_v7 }
 0xaf5   :  { %3275 = vmatpush.msrb.mxu0 %v9371_v57  ;;  %3342 = vmatpush.msra.mxu3 %v9485_v9 }
 0xaf6   :  { %3206 = vmatpush.msra.mxu2 %v9461_v36 }
 0xaf7   :  { %3276 = vmatpush.msrb.mxu0 %v9376_v34  ;;  %3343 = vmatpush.msra.mxu3 %v9490_v29 }
 0xaf8   :  { %3207 = vmatpush.msra.mxu2 %v9466_v48 }
 0xaf9   :  { %3108 = vmatmul.f32.vlgmr.msrb.gmra.mxu2 %v10887_v31  ;;  %3181 = vmatmul.f32.vlgmr.msra.gmra.mxu0 %v10887_v31  ;;  %v3067_v31 = vadd.f32 %v9538_v18, %v3061_v6 }
 0xafa   :  { %3277 = vmatpush.msrb.mxu0 %v9379_v43  ;;  %3295 = vmatpush.msrb.mxu2 %v9387_v58 }
 0xafb   :  { %3344 = vmatpush.msra.mxu3 %v9499_v4 }
 0xafc   :  { %3362 = vmatpush.msra.mxu0 %v9389_v24  ;;  %3296 = vmatpush.msrb.mxu2 %v9393_v47 }
 0xafe   :  { %3363 = vmatpush.msra.mxu0 %v9395_v3  ;;  %3297 = vmatpush.msrb.mxu2 %v9399_v61 }
 0xb00   :  { %3364 = vmatpush.msra.mxu0 %v9401_v14  ;;  %3298 = vmatpush.msrb.mxu2 %v9407_v21 }
 0xb01   :  { %7140 = vmatmul.msk.f32.vlgmr.msra.gmra.mxu2 %vm548_vm1, %v8965_v63  ;;  %7143 = vmatmul.msk.f32.vlgmr.msrb.gmra.mxu0 %vm548_vm1, %v8965_v63 }
 0xb02   :  { %3365 = vmatpush.msra.mxu0 %v9409_v22  ;;  %3383 = vmatpush.msra.mxu2 %v9417_v39 }
 0xb04   :  { %3455 = vmatpush.msrb.mxu0 %v9421_v42  ;;  %3384 = vmatpush.msra.mxu2 %v9426_v32 }
 0xb06   :  { %3456 = vmatpush.msrb.mxu0 %v9433_v44  ;;  %3385 = vmatpush.msra.mxu2 %v9430_v33 }
 0xb08   :  { %3457 = vmatpush.msrb.mxu0 %v9443_v54  ;;  %3386 = vmatpush.msra.mxu2 %v9440_v52 }
 0xb09   :  { %7144 = vmatmul.msk.f32.vlgmr.msrb.gmra.mxu2 %vm548_vm1, %v9363_v55  ;;  %7147 = vmatmul.msk.f32.vlgmr.msra.gmra.mxu0 %vm548_vm1, %v9363_v55  ;;  %v9540_v55 = vld [vmem:[#allocation20 + $0x1] ss:$0 sm:$0xff] }
 0xb0a   :  { %3480 = vmatpush.msrb.mxu2 %v9365_v40  ;;  %3458 = vmatpush.msrb.mxu0 %v9449_v17 }
 0xb0c   :  { %3547 = vmatpush.msra.mxu0 %v9480_v15  ;;  %3481 = vmatpush.msrb.mxu2 %v9371_v57 }
 0xb0e   :  { %3548 = vmatpush.msra.mxu0 %v9485_v9  ;;  %3482 = vmatpush.msrb.mxu2 %v9376_v34 }
 0xb10   :  { %3549 = vmatpush.msra.mxu0 %v9490_v29  ;;  %3483 = vmatpush.msrb.mxu2 %v9379_v43 }
 0xb12   :  { %3550 = vmatpush.msra.mxu0 %v9499_v4 }
 0xb6e   :  { %v3085_v56 = vpop.f32.mrf.mxu0 }
 0xb6f   :  { %v3088_v26 = vadd.f32 %v3085_v56, %v3067_v31 }
 0xb74   :  { %v3012_v37 = vpop.f32.mrf.mxu2 }
 0xb75   :  { %v3015_v38 = vadd.f32 %v3012_v37, %v2991_v35  ;;  %v3134_v37 = vpop.f32.mrf.mxu1  ;;  %v3158_v41 = vpop.f32.mrf.mxu3 }
 0xb76   :  { %v3182_v0 = vpop.f32.mrf.mxu0 }
 0xb77   :  { %v3039_v49 = vadd.f32 %v3037_v13, %v3015_v38 }
 0xb79   :  { %v3040_v27 = vmul.f32 0.5, %v3039_v49  ;;  %v3183_v49 = vadd.f32 %v9544_v25, %v3182_v0 }
 0xb7b   :  { %7476 = vtanh.f32 %v3040_v27  ;;  %v3140_v27 = vadd.f32 %v9546_v23, %v3134_v37 }
 0xb7c   :  { %v3109_v28 = vpop.f32.mrf.mxu2 }
 0xb7d   :  { %v3110_v12 = vadd.f32 %v9540_v55, %v3109_v28  ;;  %v3161_v31 = vadd.f32 %v3158_v41, %v3140_v27 }
 0xb7e   :  { %v3279_v41 = vpop.f32.mrf.mxu0 }
 0xb7f   :  { %v3112_v16 = vadd.f32 %v3110_v12, %v3088_v26 }
 0xb81   :  { %v7477_v35 = vpop.eup %7476  ;;  %v3113_v13 = vmul.f32 0.5, %v3112_v16 }
 0xb82   :  { %v3042_v38 = vadd.f32 1.0, %v7477_v35 }
 0xb83   :  { %7478 = vtanh.f32 %v3113_v13 }
 0xb84   :  { %v3043_v6 = vmul.f32 0.5, %v3042_v38 }
 0xb86   :  { %v3185_v56 = vmul.f32 %v3183_v49, %v3043_v6  ;;  %v10891_v49 = vld [vmem:[#allocation84_spill] sm:$0xff] }
 0xb88   :  { %v3186_v28 = vadd.f32 %v3185_v56, %v3161_v31 }
 0xb89   :  { %v7479_v62 = vpop.eup %7478 }
 0xb8a   :  { %7480 = vtanh.f32 %v3186_v28  ;;  %v3115_v26 = vadd.f32 1.0, %v7479_v62 }
 0xb8c   :  { %v3116_v12 = vmul.f32 0.5, %v3115_v26 }
 0xb8e   :  { %v3188_v2 = vsub.f32 1.0, %v3116_v12  ;;  %v3190_v53 = vmul.f32 0.0, %v3116_v12 }
 0xb90   :  { %v7481_v11 = vpop.eup %7480 }
 0xb91   :  { %v3189_v30 = vmul.f32 %v7481_v11, %v3188_v2  ;;  %v3209_v2 = vpop.f32.mrf.mxu2 }
 0xb92   :  { %v3212_v62 = vadd.f32 %v9534_v10, %v3209_v2 }
 0xb93   :  { %v9550_v16 = vadd.f32 %v3190_v53, %v3189_v30  ;;  %v3230_v30 = vpop.f32.mrf.mxu1  ;;  %v3282_v53 = vadd.f32 %v9538_v18, %v3279_v41 }
 0xb94   :  { %v3233_v38 = vadd.f32 %v3230_v30, %v3212_v62 }
 0xb95   :  { %10890 = vst [vmem:[#allocation86_spill] sm:$0xff] %v9550_v16  ;;  %7142 = vmatmul.msk.f32.vlgmr.msrb.gmra.mxu3 %vm548_vm1, %v9550_v16  ;;  %7145 = vmatmul.msk.f32.vlgmr.msra.gmra.mxu1 %vm548_vm1, %v9550_v16 }
 0xb96   :  { %7148 = vmatmul.msk.f32.vlgmr.msra.gmra.mxu2 %vm548_vm1, %v9550_v16  ;;  %3431 = vmatpush.msrb.mxu3 %v9340_v60 }
 0xb97   :  { %3501 = vmatpush.msra.mxu1 %v9387_v58  ;;  %3568 = vmatpush.msra.mxu2 %v9389_v24 }
 0xb98   :  { %3432 = vmatpush.msrb.mxu3 %v9344_v1 }
 0xb99   :  { %3502 = vmatpush.msra.mxu1 %v9393_v47  ;;  %3569 = vmatpush.msra.mxu2 %v9395_v3  ;;  %v3300_v11 = vpop.f32.mrf.mxu2 }
 0xb9a   :  { %3433 = vmatpush.msrb.mxu3 %v9348_v50  ;;  %v3303_v37 = vadd.f32 %v3300_v11, %v3282_v53  ;;  %v3367_v11 = vpop.f32.mrf.mxu0 }
 0xb9b   :  { %3503 = vmatpush.msra.mxu1 %v9399_v61  ;;  %3570 = vmatpush.msra.mxu2 %v9401_v14 }
 0xb9c   :  { %3434 = vmatpush.msrb.mxu3 %v9353_v8 }
 0xb9d   :  { %7146 = vmatmul.msk.f32.vlgmr.msra.gmra.mxu3 %vm548_vm1, %v8965_v63  ;;  %7149 = vmatmul.msk.f32.vlgmr.msrb.gmra.mxu1 %vm548_vm1, %v8992_v46 }
 0xb9e   :  { %7152 = vmatmul.msk.f32.vlgmr.msrb.gmra.mxu2 %vm548_vm1, %v8992_v46  ;;  %3504 = vmatpush.msra.mxu1 %v9407_v21 }
 0xb9f   :  { %3571 = vmatpush.msra.mxu2 %v9409_v22  ;;  %3522 = vmatpush.msra.mxu3 %v9415_v5 }
 0xba0   :  { %3589 = vmatpush.msrb.mxu1 %v9417_v39 }
 0xba1   :  { %3661 = vmatpush.msrb.mxu2 %v9421_v42  ;;  %3523 = vmatpush.msra.mxu3 %v9419_v19 }
 0xba2   :  { %3590 = vmatpush.msrb.mxu1 %v9426_v32 }
 0xba3   :  { %3662 = vmatpush.msrb.mxu2 %v9433_v44  ;;  %3524 = vmatpush.msra.mxu3 %v9428_v45 }
 0xba4   :  { %3591 = vmatpush.msrb.mxu1 %v9430_v33 }
 0xba5   :  { %3663 = vmatpush.msrb.mxu2 %v9443_v54  ;;  %7150 = vmatmul.msk.f32.vlgmr.msrb.gmra.mxu3 %vm548_vm1, %v9324_v59 }
 0xba6   :  { %7153 = vmatmul.msk.f32.vlgmr.msra.gmra.mxu1 %vm548_vm1, %v9324_v59  ;;  %7156 = vmatmul.msk.f32.vlgmr.msra.gmra.mxu2 %vm548_vm1, %v9324_v59 }
 0xba7   :  { %3525 = vmatpush.msra.mxu3 %v9438_v51  ;;  %3592 = vmatpush.msrb.mxu1 %v9440_v52 }
 0xba8   :  { %3664 = vmatpush.msrb.mxu2 %v9449_v17 }
 0xba9   :  { %3616 = vmatpush.msrb.mxu3 %v9455_v20  ;;  %3686 = vmatpush.msra.mxu1 %v9365_v40 }
 0xbaa   :  { %3753 = vmatpush.msra.mxu2 %v9480_v15 }
 0xbab   :  { %3617 = vmatpush.msrb.mxu3 %v9458_v7  ;;  %3687 = vmatpush.msra.mxu1 %v9371_v57 }
 0xbac   :  { %3754 = vmatpush.msra.mxu2 %v9485_v9 }
 0xbad   :  { %3618 = vmatpush.msrb.mxu3 %v9461_v36  ;;  %3688 = vmatpush.msra.mxu1 %v9376_v34 }
 0xbae   :  { %3755 = vmatpush.msra.mxu2 %v9490_v29 }
 0xbaf   :  { %3619 = vmatpush.msrb.mxu3 %v9466_v48  ;;  %3689 = vmatpush.msra.mxu1 %v9379_v43 }
 0xbb0   :  { %3756 = vmatpush.msra.mxu2 %v9499_v4 }
 0xc12   :  { %v3321_v0 = vpop.f32.mrf.mxu1 }
 0xc13   :  { %v3322_v35 = vadd.f32 %v9540_v55, %v3321_v0 }
 0xc15   :  { %v3324_v6 = vadd.f32 %v3322_v35, %v3303_v37 }
 0xc17   :  { %v3325_v28 = vmul.f32 0.5, %v3324_v6 }
 0xc18   :  { %v3254_v13 = vpop.f32.mrf.mxu3 }
 0xc19   :  { %v3255_v27 = vadd.f32 %v10891_v49, %v3254_v13  ;;  %v3388_v63 = vpop.f32.mrf.mxu2 }
 0xc1a   :  { %v3389_v0 = vadd.f32 %v9544_v25, %v3388_v63  ;;  %v10893_v63 = vld [vmem:[#allocation66_spill] sm:$0xff] }
 0xc1b   :  { %v3257_v31 = vadd.f32 %v3255_v27, %v3233_v38 }
 0xc1d   :  { %v3258_v56 = vmul.f32 0.5, %v3257_v31 }
 0xc1f   :  { %7482 = vtanh.f32 %v3258_v56 }
 0xc20   :  { %7484 = vtanh.f32 %v3325_v28  ;;  %v3346_v26 = vpop.f32.mrf.mxu3 }
 0xc21   :  { %v3349_v59 = vadd.f32 %v9546_v23, %v3346_v26  ;;  %v3485_v26 = vpop.f32.mrf.mxu2 }
 0xc23   :  { %v3370_v62 = vadd.f32 %v3367_v11, %v3349_v59  ;;  %v10894_v59 = vld [vmem:[#allocation80_spill] sm:$0xff] }
 0xc25   :  { %v7483_v12 = vpop.eup %7482 }
 0xc26   :  { %v3260_v2 = vadd.f32 1.0, %v7483_v12  ;;  %v7485_v41 = vpop.eup %7484 }
 0xc27   :  { %v3327_v53 = vadd.f32 1.0, %v7485_v41 }
 0xc28   :  { %v3261_v18 = vmul.f32 0.5, %v3260_v2  ;;  %v3436_v56 = vpop.f32.mrf.mxu3 }
 0xc29   :  { %v3328_v37 = vmul.f32 0.5, %v3327_v53 }
 0xc2a   :  { %v3391_v30 = vmul.f32 %v3389_v0, %v3261_v18  ;;  %v3415_v18 = vpop.f32.mrf.mxu1  ;;  %v10895_v0 = vld [vmem:[#allocation85_spill] sm:$0xff] }
 0xc2b   :  { %v3394_v13 = vsub.f32 1.0, %v3328_v37  ;;  %v3396_v27 = vmul.f32 %v3328_v37, %v9550_v16  ;;  %v3418_v28 = vadd.f32 %v9534_v10, %v3415_v18  ;;  %v3488_v11 = vadd.f32 %v10895_v0, %v3485_v26 }
 0xc2c   :  { %v3392_v35 = vadd.f32 %v3391_v30, %v3370_v62 }
 0xc2d   :  { %v3439_v2 = vadd.f32 %v3436_v56, %v3418_v28 }
 0xc2e   :  { %7486 = vtanh.f32 %v3392_v35 }
 0xc32   :  { %v3506_v62 = vpop.f32.mrf.mxu1 }
 0xc33   :  { %v3509_v37 = vadd.f32 %v3506_v62, %v3488_v11 }
 0xc34   :  { %v7487_v38 = vpop.eup %7486 }
 0xc35   :  { %v3395_v6 = vmul.f32 %v7487_v38, %v3394_v13 }
 0xc37   :  { %v9613_v31 = vadd.f32 %v3396_v27, %v3395_v6 }
 0xc39   :  { %10892 = vst [vmem:[#allocation84_spill] sm:$0xff] %v9613_v31  ;;  %7151 = vmatmul.msk.f32.vlgmr.msrb.gmra.mxu0 %vm548_vm1, %v9613_v31  ;;  %7154 = vmatmul.msk.f32.vlgmr.msra.gmra.mxu3 %vm548_vm1, %v9613_v31 }
 0xc3a   :  { %7157 = vmatmul.msk.f32.vlgmr.msrb.gmra.mxu1 %vm548_vm1, %v9613_v31  ;;  %3637 = vmatpush.msrb.mxu0 %v9340_v60 }
 0xc3b   :  { %3707 = vmatpush.msra.mxu3 %v9387_v58  ;;  %3774 = vmatpush.msrb.mxu1 %v9389_v24 }
 0xc3c   :  { %3638 = vmatpush.msrb.mxu0 %v9344_v1 }
 0xc3d   :  { %3708 = vmatpush.msra.mxu3 %v9393_v47  ;;  %3775 = vmatpush.msrb.mxu1 %v9395_v3 }
 0xc3e   :  { %3639 = vmatpush.msrb.mxu0 %v9348_v50 }
 0xc3f   :  { %3709 = vmatpush.msra.mxu3 %v9399_v61  ;;  %3776 = vmatpush.msrb.mxu1 %v9401_v14 }
 0xc40   :  { %3640 = vmatpush.msrb.mxu0 %v9353_v8 }
 0xc41   :  { %7155 = vmatmul.msk.f32.vlgmr.msra.gmra.mxu0 %vm548_vm1, %v8992_v46  ;;  %7158 = vmatmul.msk.f32.vlgmr.msrb.gmra.mxu3 %vm548_vm1, %v10893_v63 }
 0xc42   :  { %7161 = vmatmul.msk.f32.vlgmr.msra.gmra.mxu1 %vm548_vm1, %v10893_v63  ;;  %3710 = vmatpush.msra.mxu3 %v9407_v21 }
 0xc43   :  { %3777 = vmatpush.msrb.mxu1 %v9409_v22  ;;  %3728 = vmatpush.msra.mxu0 %v9415_v5 }
 0xc44   :  { %3795 = vmatpush.msrb.mxu3 %v9417_v39 }
 0xc45   :  { %3867 = vmatpush.msra.mxu1 %v9421_v42  ;;  %3729 = vmatpush.msra.mxu0 %v9419_v19 }
 0xc46   :  { %3796 = vmatpush.msrb.mxu3 %v9426_v32 }
 0xc47   :  { %3868 = vmatpush.msra.mxu1 %v9433_v44  ;;  %3730 = vmatpush.msra.mxu0 %v9428_v45 }
 0xc48   :  { %3797 = vmatpush.msrb.mxu3 %v9430_v33 }
 0xc49   :  { %3869 = vmatpush.msra.mxu1 %v9443_v54  ;;  %7159 = vmatmul.msk.f32.vlgmr.msrb.gmra.mxu0 %vm548_vm1, %v10894_v59 }
 0xc4a   :  { %7162 = vmatmul.msk.f32.vlgmr.msra.gmra.mxu3 %vm548_vm1, %v10894_v59  ;;  %7165 = vmatmul.msk.f32.vlgmr.msrb.gmra.mxu1 %vm548_vm1, %v10894_v59 }
 0xc4b   :  { %3731 = vmatpush.msra.mxu0 %v9438_v51  ;;  %3798 = vmatpush.msrb.mxu3 %v9440_v52 }
 0xc4c   :  { %3870 = vmatpush.msra.mxu1 %v9449_v17 }
 0xc4d   :  { %3822 = vmatpush.msrb.mxu0 %v9455_v20  ;;  %3892 = vmatpush.msra.mxu3 %v9365_v40 }
 0xc4e   :  { %3959 = vmatpush.msrb.mxu1 %v9480_v15 }
 0xc4f   :  { %3823 = vmatpush.msrb.mxu0 %v9458_v7  ;;  %3893 = vmatpush.msra.mxu3 %v9371_v57 }
 0xc50   :  { %3960 = vmatpush.msrb.mxu1 %v9485_v9 }
 0xc51   :  { %3824 = vmatpush.msrb.mxu0 %v9461_v36  ;;  %3894 = vmatpush.msra.mxu3 %v9376_v34 }
 0xc52   :  { %3961 = vmatpush.msrb.mxu1 %v9490_v29 }
 0xc53   :  { %3825 = vmatpush.msrb.mxu0 %v9466_v48  ;;  %3895 = vmatpush.msra.mxu3 %v9379_v43 }
 0xc54   :  { %3962 = vmatpush.msrb.mxu1 %v9499_v4 }
 0xcb6   :  { %v3460_v12 = vpop.f32.mrf.mxu0 }
 0xcb7   :  { %v3461_v41 = vadd.f32 %v10891_v49, %v3460_v12  ;;  %v3594_v18 = vpop.f32.mrf.mxu1  ;;  %v3573_v12 = vpop.f32.mrf.mxu2 }
 0xcb8   :  { %v3595_v26 = vadd.f32 %v9544_v25, %v3594_v18 }
 0xcb9   :  { %v3463_v30 = vadd.f32 %v3461_v41, %v3439_v2 }
 0xcbb   :  { %v3464_v53 = vmul.f32 0.5, %v3463_v30 }
 0xcbc   :  { %v3527_v35 = vpop.f32.mrf.mxu3 }
 0xcbd   :  { %7488 = vtanh.f32 %v3464_v53  ;;  %v3528_v13 = vadd.f32 %v9540_v55, %v3527_v35 }
 0xcbe   :  { %v3552_v6 = vpop.f32.mrf.mxu0 }
 0xcbf   :  { %v3530_v38 = vadd.f32 %v3528_v13, %v3509_v37  ;;  %v3555_v56 = vadd.f32 %v9546_v23, %v3552_v6 }
 0xcc1   :  { %v3531_v27 = vmul.f32 0.5, %v3530_v38  ;;  %v3576_v41 = vadd.f32 %v3573_v12, %v3555_v56  ;;  %v3691_v56 = vpop.f32.mrf.mxu1 }
 0xcc3   :  { %v7489_v16 = vpop.eup %7488  ;;  %7490 = vtanh.f32 %v3531_v27 }
 0xcc4   :  { %v3466_v46 = vadd.f32 1.0, %v7489_v16  ;;  %v10898_v16 = vld [vmem:[#allocation79_spill] sm:$0xff]  ;;  %v3621_v6 = vpop.f32.mrf.mxu3 }
 0xcc6   :  { %v3467_v28 = vmul.f32 0.5, %v3466_v46  ;;  %v10897_v46 = vld [vmem:[#allocation67_spill] sm:$0xff]  ;;  %v3642_v18 = vpop.f32.mrf.mxu0 }
 0xcc8   :  { %v3597_v2 = vmul.f32 %v3595_v26, %v3467_v28  ;;  %v3624_v26 = vadd.f32 %v9534_v10, %v3621_v6 }
 0xcc9   :  { %v7491_v30 = vpop.eup %7490 }
 0xcca   :  { %v3533_v11 = vadd.f32 1.0, %v7491_v30  ;;  %v3598_v62 = vadd.f32 %v3597_v2, %v3576_v41  ;;  %v3694_v2 = vadd.f32 %v10895_v0, %v3691_v56 }
 0xccc   :  { %7492 = vtanh.f32 %v3598_v62  ;;  %v3534_v53 = vmul.f32 0.5, %v3533_v11  ;;  %v3645_v62 = vadd.f32 %v3642_v18, %v3624_v26 }
 0xccd   :  { %v3712_v12 = vpop.f32.mrf.mxu3 }
 0xcce   :  { %v3600_v35 = vsub.f32 1.0, %v3534_v53  ;;  %v3602_v13 = vmul.f32 %v3534_v53, %v9613_v31  ;;  %v3715_v30 = vadd.f32 %v3712_v12, %v3694_v2  ;;  %v3779_v12 = vpop.f32.mrf.mxu1 }
 0xcd2   :  { %v7493_v37 = vpop.eup %7492 }
 0xcd3   :  { %v3601_v38 = vmul.f32 %v7493_v37, %v3600_v35 }
 0xcd5   :  { %v9676_v27 = vadd.f32 %v3602_v13, %v3601_v38 }
 0xcd7   :  { %10896 = vst [vmem:[#allocation87_spill] sm:$0xff] %v9676_v27  ;;  %7160 = vmatmul.msk.f32.vlgmr.msrb.gmra.mxu2 %vm548_vm1, %v9676_v27  ;;  %7163 = vmatmul.msk.f32.vlgmr.msra.gmra.mxu0 %vm548_vm1, %v9676_v27 }
 0xcd8   :  { %7166 = vmatmul.msk.f32.vlgmr.msrb.gmra.mxu3 %vm548_vm1, %v9676_v27  ;;  %3843 = vmatpush.msrb.mxu2 %v9340_v60 }
 0xcd9   :  { %3913 = vmatpush.msra.mxu0 %v9387_v58  ;;  %3980 = vmatpush.msrb.mxu3 %v9389_v24 }
 0xcda   :  { %3844 = vmatpush.msrb.mxu2 %v9344_v1 }
 0xcdb   :  { %3914 = vmatpush.msra.mxu0 %v9393_v47  ;;  %3981 = vmatpush.msrb.mxu3 %v9395_v3 }
 0xcdc   :  { %3845 = vmatpush.msrb.mxu2 %v9348_v50 }
 0xcdd   :  { %3915 = vmatpush.msra.mxu0 %v9399_v61  ;;  %3982 = vmatpush.msrb.mxu3 %v9401_v14 }
 0xcde   :  { %3846 = vmatpush.msrb.mxu2 %v9353_v8 }
 0xcdf   :  { %7164 = vmatmul.msk.f32.vlgmr.msra.gmra.mxu2 %vm548_vm1, %v10893_v63  ;;  %7167 = vmatmul.msk.f32.vlgmr.msrb.gmra.mxu0 %vm548_vm1, %v10897_v46 }
 0xce0   :  { %7170 = vmatmul.msk.f32.vlgmr.msra.gmra.mxu3 %vm548_vm1, %v10897_v46  ;;  %3916 = vmatpush.msra.mxu0 %v9407_v21 }
 0xce1   :  { %3983 = vmatpush.msrb.mxu3 %v9409_v22  ;;  %3934 = vmatpush.msra.mxu2 %v9415_v5 }
 0xce2   :  { %4001 = vmatpush.msrb.mxu0 %v9417_v39 }
 0xce3   :  { %4073 = vmatpush.msra.mxu3 %v9421_v42  ;;  %3935 = vmatpush.msra.mxu2 %v9419_v19 }
 0xce4   :  { %4002 = vmatpush.msrb.mxu0 %v9426_v32 }
 0xce5   :  { %4074 = vmatpush.msra.mxu3 %v9433_v44  ;;  %3936 = vmatpush.msra.mxu2 %v9428_v45 }
 0xce6   :  { %4003 = vmatpush.msrb.mxu0 %v9430_v33 }
 0xce7   :  { %4075 = vmatpush.msra.mxu3 %v9443_v54  ;;  %7168 = vmatmul.msk.f32.vlgmr.msrb.gmra.mxu2 %vm548_vm1, %v10898_v16 }
 0xce8   :  { %7171 = vmatmul.msk.f32.vlgmr.msra.gmra.mxu0 %vm548_vm1, %v10898_v16  ;;  %7174 = vmatmul.msk.f32.vlgmr.msrb.gmra.mxu3 %vm548_vm1, %v10898_v16 }
 0xce9   :  { %3937 = vmatpush.msra.mxu2 %v9438_v51  ;;  %4004 = vmatpush.msrb.mxu0 %v9440_v52 }
 0xcea   :  { %4076 = vmatpush.msra.mxu3 %v9449_v17 }
 0xceb   :  { %4028 = vmatpush.msrb.mxu2 %v9455_v20  ;;  %4098 = vmatpush.msra.mxu0 %v9365_v40 }
 0xcec   :  { %4165 = vmatpush.msrb.mxu3 %v9480_v15 }
 0xced   :  { %4029 = vmatpush.msrb.mxu2 %v9458_v7  ;;  %4099 = vmatpush.msra.mxu0 %v9371_v57 }
 0xcee   :  { %4166 = vmatpush.msrb.mxu3 %v9485_v9 }
 0xcef   :  { %4030 = vmatpush.msrb.mxu2 %v9461_v36  ;;  %4100 = vmatpush.msra.mxu0 %v9376_v34 }
 0xcf0   :  { %4167 = vmatpush.msrb.mxu3 %v9490_v29 }
 0xcf1   :  { %4031 = vmatpush.msrb.mxu2 %v9466_v48  ;;  %4101 = vmatpush.msra.mxu0 %v9379_v43 }
 0xcf2   :  { %4168 = vmatpush.msrb.mxu3 %v9499_v4 }
 0xd54   :  { %v3733_v28 = vpop.f32.mrf.mxu0 }
 0xd55   :  { %v3734_v41 = vadd.f32 %v9540_v55, %v3733_v28 }
 0xd57   :  { %v3736_v35 = vadd.f32 %v3734_v41, %v3715_v30 }
 0xd59   :  { %v3737_v38 = vmul.f32 0.5, %v3736_v35 }
 0xd5a   :  { %v3666_v11 = vpop.f32.mrf.mxu2 }
 0xd5b   :  { %v3667_v53 = vadd.f32 %v10891_v49, %v3666_v11  ;;  %v3800_v63 = vpop.f32.mrf.mxu3 }
 0xd5c   :  { %v3801_v28 = vadd.f32 %v9544_v25, %v3800_v63 }
 0xd5d   :  { %v3669_v37 = vadd.f32 %v3667_v53, %v3645_v62 }
 0xd5f   :  { %v3670_v13 = vmul.f32 0.5, %v3669_v37 }
 0xd61   :  { %7494 = vtanh.f32 %v3670_v13 }
 0xd62   :  { %7496 = vtanh.f32 %v3737_v38  ;;  %v3758_v31 = vpop.f32.mrf.mxu2 }
 0xd63   :  { %v3761_v16 = vadd.f32 %v9546_v23, %v3758_v31  ;;  %v3897_v31 = vpop.f32.mrf.mxu3 }
 0xd65   :  { %v3782_v26 = vadd.f32 %v3779_v12, %v3761_v16 }
 0xd67   :  { %v7495_v59 = vpop.eup %7494 }
 0xd68   :  { %v3672_v6 = vadd.f32 1.0, %v7495_v59  ;;  %v7497_v56 = vpop.eup %7496 }
 0xd69   :  { %v3739_v2 = vadd.f32 1.0, %v7497_v56 }
 0xd6a   :  { %v3673_v0 = vmul.f32 0.5, %v3672_v6 }
 0xd6b   :  { %v3740_v30 = vmul.f32 0.5, %v3739_v2 }
 0xd6c   :  { %v3803_v18 = vmul.f32 %v3801_v28, %v3673_v0  ;;  %v10902_v0 = vld [vmem:[#allocation85_spill] sm:$0xff] }
 0xd6d   :  { %v3806_v11 = vsub.f32 1.0, %v3740_v30  ;;  %v3808_v53 = vmul.f32 %v3740_v30, %v9676_v27  ;;  %v3900_v16 = vadd.f32 %v10902_v0, %v3897_v31 }
 0xd6e   :  { %v3804_v41 = vadd.f32 %v3803_v18, %v3782_v26 }
 0xd70   :  { %7498 = vtanh.f32 %v3804_v41 }
 0xd76   :  { %v7499_v62 = vpop.eup %7498 }
 0xd77   :  { %v3807_v35 = vmul.f32 %v7499_v62, %v3806_v11 }
 0xd79   :  { %v9739_v37 = vadd.f32 %v3808_v53, %v3807_v35  ;;  %v3985_v53 = vpop.f32.mrf.mxu3 }
 0xd7b   :  { %10899 = vst [vmem:[#allocation88_spill] sm:$0xff] %v9739_v37  ;;  %7169 = vmatmul.msk.f32.vlgmr.msra.gmra.mxu1 %vm548_vm1, %v9739_v37  ;;  %7172 = vmatmul.msk.f32.vlgmr.msra.gmra.mxu2 %vm548_vm1, %v9739_v37 }
 0xd7c   :  { %7175 = vmatmul.msk.f32.vlgmr.msrb.gmra.mxu0 %vm548_vm1, %v9739_v37  ;;  %4049 = vmatpush.msra.mxu1 %v9340_v60  ;;  %v10900_v60 = vld [vmem:[#allocation68_spill] sm:$0xff] }
 0xd7d   :  { %4119 = vmatpush.msra.mxu2 %v9387_v58  ;;  %4186 = vmatpush.msrb.mxu0 %v9389_v24 }
 0xd7e   :  { %4050 = vmatpush.msra.mxu1 %v9344_v1  ;;  %v10901_v1 = vld [vmem:[#allocation78_spill] sm:$0xff] }
 0xd7f   :  { %4120 = vmatpush.msra.mxu2 %v9393_v47  ;;  %4187 = vmatpush.msrb.mxu0 %v9395_v3 }
 0xd80   :  { %4051 = vmatpush.msra.mxu1 %v9348_v50  ;;  %v3827_v50 = vpop.f32.mrf.mxu0 }
 0xd81   :  { %4121 = vmatpush.msra.mxu2 %v9399_v61  ;;  %4188 = vmatpush.msrb.mxu0 %v9401_v14 }
 0xd82   :  { %4052 = vmatpush.msra.mxu1 %v9353_v8  ;;  %v3848_v8 = vpop.f32.mrf.mxu2 }
 0xd83   :  { %7173 = vmatmul.msk.f32.vlgmr.msrb.gmra.mxu1 %vm548_vm1, %v10897_v46  ;;  %7176 = vmatmul.msk.f32.vlgmr.msrb.gmra.mxu2 %vm548_vm1, %v10900_v60 }
 0xd84   :  { %7179 = vmatmul.msk.f32.vlgmr.msra.gmra.mxu0 %vm548_vm1, %v10900_v60  ;;  %4122 = vmatpush.msra.mxu2 %v9407_v21 }
 0xd85   :  { %4189 = vmatpush.msrb.mxu0 %v9409_v22  ;;  %4140 = vmatpush.msrb.mxu1 %v9415_v5 }
 0xd86   :  { %4207 = vmatpush.msrb.mxu2 %v9417_v39 }
 0xd87   :  { %4279 = vmatpush.msra.mxu0 %v9421_v42  ;;  %4141 = vmatpush.msrb.mxu1 %v9419_v19 }
 0xd88   :  { %4208 = vmatpush.msrb.mxu2 %v9426_v32  ;;  %v3918_v13 = vpop.f32.mrf.mxu0 }
 0xd89   :  { %4280 = vmatpush.msra.mxu0 %v9433_v44  ;;  %4142 = vmatpush.msrb.mxu1 %v9428_v45  ;;  %v3921_v56 = vadd.f32 %v3918_v13, %v3900_v16 }
 0xd8a   :  { %4209 = vmatpush.msrb.mxu2 %v9430_v33 }
 0xd8b   :  { %4281 = vmatpush.msra.mxu0 %v9443_v54  ;;  %7177 = vmatmul.msk.f32.vlgmr.msra.gmra.mxu1 %vm548_vm1, %v10901_v1 }
 0xd8c   :  { %7180 = vmatmul.msk.f32.vlgmr.msra.gmra.mxu2 %vm548_vm1, %v10901_v1  ;;  %7183 = vmatmul.msk.f32.vlgmr.msrb.gmra.mxu0 %vm548_vm1, %v10901_v1 }
 0xd8d   :  { %4143 = vmatpush.msrb.mxu1 %v9438_v51  ;;  %4210 = vmatpush.msrb.mxu2 %v9440_v52 }
 0xd8e   :  { %4282 = vmatpush.msra.mxu0 %v9449_v17 }
 0xd8f   :  { %4234 = vmatpush.msra.mxu1 %v9455_v20  ;;  %4304 = vmatpush.msra.mxu2 %v9365_v40  ;;  %v3830_v40 = vadd.f32 %v9534_v10, %v3827_v50 }
 0xd90   :  { %4371 = vmatpush.msrb.mxu0 %v9480_v15 }
 0xd91   :  { %4235 = vmatpush.msra.mxu1 %v9458_v7  ;;  %4305 = vmatpush.msra.mxu2 %v9371_v57  ;;  %v3851_v63 = vadd.f32 %v3848_v8, %v3830_v40 }
 0xd92   :  { %4372 = vmatpush.msrb.mxu0 %v9485_v9 }
 0xd93   :  { %4236 = vmatpush.msra.mxu1 %v9461_v36  ;;  %4306 = vmatpush.msra.mxu2 %v9376_v34 }
 0xd94   :  { %4373 = vmatpush.msrb.mxu0 %v9490_v29 }
 0xd95   :  { %4237 = vmatpush.msra.mxu1 %v9466_v48  ;;  %4307 = vmatpush.msra.mxu2 %v9379_v43 }
 0xd96   :  { %4374 = vmatpush.msrb.mxu0 %v9499_v4 }
 0xdf8   :  { %v3872_v57 = vpop.f32.mrf.mxu1 }
 0xdf9   :  { %v3873_v59 = vadd.f32 %v10891_v49, %v3872_v57  ;;  %v4006_v2 = vpop.f32.mrf.mxu0 }
 0xdfa   :  { %v4007_v62 = vadd.f32 %v9544_v25, %v4006_v2  ;;  %v10909_v2 = vld [vmem:[#allocation73_spill] sm:$0xff] }
 0xdfb   :  { %v3875_v34 = vadd.f32 %v3873_v59, %v3851_v63 }
 0xdfd   :  { %v3876_v38 = vmul.f32 0.5, %v3875_v34 }
 0xdfe   :  { %v3939_v6 = vpop.f32.mrf.mxu2 }
 0xdff   :  { %7500 = vtanh.f32 %v3876_v38  ;;  %v3940_v43 = vadd.f32 %v9540_v55, %v3939_v6  ;;  %v9810_v38 = vld [vmem:[#allocation16 + $0x18] sm:$0xff]  ;;  %v9815_v6 = vld [vmem:[#allocation16 + $0x10] sm:$0xff] }
 0xe00   :  { %v3964_v18 = vpop.f32.mrf.mxu1 }
 0xe01   :  { %v3942_v28 = vadd.f32 %v3940_v43, %v3921_v56  ;;  %v3967_v30 = vadd.f32 %v9546_v23, %v3964_v18  ;;  %v9820_v56 = vld [vmem:[#allocation16 + $0x8] sm:$0xff]  ;;  %v9825_v43 = vld [vmem:[#allocation16] sm:$0xff] }
 0xe03   :  { %v3943_v12 = vmul.f32 0.5, %v3942_v28  ;;  %v3988_v50 = vadd.f32 %v3985_v53, %v3967_v30  ;;  %v7603_v28 = vld [vmem:[#allocation5 + $0x1] ss:$0 sm:$0xff] }
 0xe05   :  { %v7501_v26 = vpop.eup %7500  ;;  %7502 = vtanh.f32 %v3943_v12  ;;  %v10908_v12 = vld [vmem:[#allocation71_spill] sm:$0xff] }
 0xe06   :  { %v3878_v41 = vadd.f32 1.0, %v7501_v26  ;;  %v1631_v18 = vadd.f32 %v7603_v28, %v10908_v12  ;;  %v7604_v26 = vld [vmem:[#allocation7 + $0x1] ss:$0 sm:$0xff]  ;;  %v7611_v28 = vld [vmem:[#allocation16 + $0x28] sm:$0xff] }
 0xe07   :  { %v7614_v12 = vld [vmem:[#allocation16 + $0x40] sm:$0xff] }
 0xe08   :  { %v3879_v11 = vmul.f32 0.5, %v3878_v41  ;;  %v1650_v41 = vadd.f32 %v7604_v26, %v10909_v2  ;;  %v7615_v26 = vld [vmem:[#allocation17 + $0x38] sm:$0xff]  ;;  %v9901_v2 = vld [vmem:[#allocation25 + $0x8] sm:$0xff] }
 0xe0a   :  { %v4009_v35 = vmul.f32 %v4007_v62, %v3879_v11 }
 0xe0b   :  { %v7503_v8 = vpop.eup %7502 }
 0xe0c   :  { %v3945_v40 = vadd.f32 1.0, %v7503_v8  ;;  %v4010_v31 = vadd.f32 %v4009_v35, %v3988_v50 }
 0xe0e   :  { %7504 = vtanh.f32 %v4010_v31  ;;  %v3946_v57 = vmul.f32 0.5, %v3945_v40 }
 0xe10   :  { %v4012_v63 = vsub.f32 1.0, %v3946_v57  ;;  %v4014_v16 = vmul.f32 %v3946_v57, %v9739_v37  ;;  %v7605_v57 = vld [vmem:[#allocation7 + $0x2] ss:$0 sm:$0xff] }
 0xe14   :  { %v7505_v59 = vpop.eup %7504 }
 0xe15   :  { %v4013_v34 = vmul.f32 %v7505_v59, %v4012_v63  ;;  %v10910_v63 = vld [vmem:[#allocation75_spill] sm:$0xff] }
 0xe16   :  { %v1696_v59 = vadd.f32 %v7605_v57, %v10910_v63  ;;  %v9929_v57 = vld [vmem:[#allocation23 + $0x10] sm:$0xff]  ;;  %v9932_v63 = vld [vmem:[#allocation23 + $0x8] sm:$0xff] }
 0xe17   :  { %v9802_v13 = vadd.f32 %v4014_v16, %v4013_v34 }
 0xe19   :  { %10903 = vst [vmem:[#allocation68_spill] sm:$0xff] %v9802_v13  ;;  %7178 = vmatmul.msk.f32.vlgmr.msra.gmra.mxu3 %vm548_vm1, %v9802_v13  ;;  %7181 = vmatmul.msk.f32.vlgmr.msrb.gmra.mxu1 %vm548_vm1, %v9802_v13 }
 0xe1a   :  { %7184 = vmatmul.msk.f32.vlgmr.msrb.gmra.mxu2 %vm548_vm1, %v9802_v13  ;;  %4255 = vmatpush.msra.mxu3 %v9810_v38 }
 0xe1b   :  { %4325 = vmatpush.msrb.mxu1 %v9387_v58  ;;  %4392 = vmatpush.msrb.mxu2 %v9389_v24  ;;  %v10904_v58 = vld [vmem:[#allocation69_spill] sm:$0xff] }
 0xe1c   :  { %4256 = vmatpush.msra.mxu3 %v9815_v6  ;;  %v10905_v24 = vld [vmem:[#allocation77_spill] sm:$0xff] }
 0xe1d   :  { %4326 = vmatpush.msrb.mxu1 %v9393_v47  ;;  %4393 = vmatpush.msrb.mxu2 %v9395_v3  ;;  %v7597_v47 = vld [vmem:[#allocation14 + $0x38] sm:$0xff]  ;;  %v7598_v3 = vld [vmem:[#allocation14 + $0x30] sm:$0xff] }
 0xe1e   :  { %4257 = vmatpush.msra.mxu3 %v9820_v56 }
 0xe1f   :  { %4327 = vmatpush.msrb.mxu1 %v9399_v61  ;;  %4394 = vmatpush.msrb.mxu2 %v9401_v14  ;;  %v7599_v61 = vld [vmem:[#allocation14 + $0x28] sm:$0xff]  ;;  %v7600_v14 = vld [vmem:[#allocation14 + $0x20] sm:$0xff] }
 0xe20   :  { %4258 = vmatpush.msra.mxu3 %v9825_v43 }
 0xe21   :  { %7182 = vmatmul.msk.f32.vlgmr.msrb.gmra.mxu3 %vm548_vm1, %v10900_v60  ;;  %7185 = vmatmul.msk.f32.vlgmr.msra.gmra.mxu1 %vm548_vm1, %v10904_v58 }
 0xe22   :  { %7188 = vmatmul.msk.f32.vlgmr.msra.gmra.mxu2 %vm548_vm1, %v10904_v58  ;;  %4328 = vmatpush.msrb.mxu1 %v9407_v21  ;;  %v4033_v21 = vpop.f32.mrf.mxu2 }
 0xe23   :  { %4395 = vmatpush.msrb.mxu2 %v9409_v22  ;;  %4346 = vmatpush.msrb.mxu3 %v9415_v5  ;;  %v4054_v22 = vpop.f32.mrf.mxu1  ;;  %v7601_v5 = vld [vmem:[#allocation5] ss:$0 sm:$0xff] }
 0xe24   :  { %4413 = vmatpush.msra.mxu1 %v9417_v39  ;;  %v10906_v39 = vld [vmem:[#allocation70_spill] sm:$0xff] }
 0xe25   :  { %4488 = vmatpush.msra.mxu2 %v9421_v42  ;;  %4347 = vmatpush.msrb.mxu3 %v9419_v19  ;;  %v1582_v19 = vadd.f32 %v7601_v5, %v10906_v39  ;;  %v7602_v42 = vld [vmem:[#allocation7] ss:$0 sm:$0xff]  ;;  %v10911_v5 = vld [vmem:[#allocation74_spill] sm:$0xff] }
 0xe26   :  { %4414 = vmatpush.msra.mxu1 %v9426_v32  ;;  %v10907_v32 = vld [vmem:[#allocation72_spill] sm:$0xff] }
 0xe27   :  { %4489 = vmatpush.msra.mxu2 %v9433_v44  ;;  %4348 = vmatpush.msrb.mxu3 %v9428_v45  ;;  %v1604_v45 = vadd.f32 %v7602_v42, %v10907_v32  ;;  %v4103_v44 = vpop.f32.mrf.mxu0 }
 0xe28   :  { %4415 = vmatpush.msra.mxu1 %v9430_v33 }
 0xe29   :  { %4490 = vmatpush.msra.mxu2 %v9443_v54  ;;  %7186 = vmatmul.msk.f32.vlgmr.msra.gmra.mxu3 %vm548_vm1, %v10905_v24  ;;  %v1606_v33 = vadd.f32 %v1604_v45, %v1582_v19  ;;  %v4036_v54 = vadd.f32 %v9534_v10, %v4033_v21 }
 0xe2a   :  { %7189 = vmatmul.msk.f32.vlgmr.msrb.gmra.mxu1 %vm548_vm1, %v10905_v24  ;;  %7192 = vmatmul.msk.f32.vlgmr.msrb.gmra.mxu2 %vm548_vm1, %v10905_v24 }
 0xe2b   :  { %4349 = vmatpush.msrb.mxu3 %v9438_v51  ;;  %4416 = vmatpush.msra.mxu1 %v9440_v52  ;;  %v1607_v52 = vmul.f32 0.5, %v1606_v33 }
 0xe2c   :  { %4491 = vmatpush.msra.mxu2 %v9449_v17  ;;  %v4124_v17 = vpop.f32.mrf.mxu2 }
 0xe2d   :  { %4443 = vmatpush.msra.mxu3 %v9455_v20  ;;  %4513 = vmatpush.msrb.mxu1 %v7597_v47  ;;  %v4106_v20 = vadd.f32 %v10902_v0, %v4103_v44  ;;  %7506 = vtanh.f32 %v1607_v52  ;;  %v1652_v0 = vadd.f32 %v1650_v41, %v1631_v18  ;;  %v9898_v18 = vld [vmem:[#allocation25 + $0x10] sm:$0xff]  ;;  %v7617_v41 = vld [vmem:[#allocation17 + $0x30] sm:$0xff] }
 0xe2e   :  { %4580 = vmatpush.msrb.mxu2 %v9480_v15  ;;  %v4057_v15 = vadd.f32 %v4054_v22, %v4036_v54  ;;  %v7606_v22 = vld [vmem:[#allocation5 + $0x2] ss:$0 sm:$0xff] }
 0xe2f   :  { %4444 = vmatpush.msra.mxu3 %v9458_v7  ;;  %4514 = vmatpush.msrb.mxu1 %v7598_v3  ;;  %v1653_v53 = vmul.f32 0.5, %v1652_v0  ;;  %v4191_v47 = vpop.f32.mrf.mxu0  ;;  %v1677_v39 = vadd.f32 %v7606_v22, %v10911_v5  ;;  %v7620_v0 = vld [vmem:[#allocation17 + $0x48] sm:$0xff]  ;;  %v7624_v22 = vld [vmem:[#allocation20] ss:$0 sm:$0xff] }
 0xe30   :  { %4581 = vmatpush.msrb.mxu2 %v9485_v9 }
 0xe31   :  { %4445 = vmatpush.msra.mxu3 %v9461_v36  ;;  %4515 = vmatpush.msrb.mxu1 %v7599_v61  ;;  %v4127_v36 = vadd.f32 %v4124_v17, %v4106_v20 }
 0xe32   :  { %4582 = vmatpush.msrb.mxu2 %v9490_v29 }
 0xe33   :  { %4446 = vmatpush.msra.mxu3 %v9466_v48  ;;  %4516 = vmatpush.msrb.mxu1 %v7600_v14  ;;  %v7507_v11 = vpop.eup %7506 }
 0xe34   :  { %4583 = vmatpush.msrb.mxu2 %v9499_v4 }
 0xe96   :  { %v4145_v51 = vpop.f32.mrf.mxu1 }
 0xe97   :  { %v4146_v7 = vadd.f32 %v9540_v55, %v4145_v51  ;;  %v1609_v55 = vadd.f32 1.0, %v7507_v11  ;;  %v9905_v11 = vld [vmem:[#allocation25] sm:$0xff] }
 0xe99   :  { %v4148_v29 = vadd.f32 %v4146_v7, %v4127_v36  ;;  %v7607_v36 = vld [vmem:[#allocation16 + $0x38] sm:$0xff] }
 0xe9b   :  { %v4149_v30 = vmul.f32 0.5, %v4148_v29  ;;  %v7610_v29 = vld [vmem:[#allocation16 + $0x50] sm:$0xff] }
 0xe9c   :  { %v4078_v48 = vpop.f32.mrf.mxu3 }
 0xe9d   :  { %v4079_v9 = vadd.f32 %v10891_v49, %v4078_v48  ;;  %v4212_v50 = vpop.f32.mrf.mxu2  ;;  %v1610_v49 = vmul.f32 0.5, %v1609_v55  ;;  %v7608_v48 = vld [vmem:[#allocation16 + $0x58] sm:$0xff]  ;;  %v10913_v55 = vld [vmem:[#allocation76_spill] sm:$0xff] }
 0xe9e   :  { %v4213_v34 = vadd.f32 %v9544_v25, %v4212_v50  ;;  %v7622_v50 = vld [vmem:[#allocation17 + $0x40] sm:$0xff] }
 0xe9f   :  { %v4081_v4 = vadd.f32 %v4079_v9, %v4057_v15  ;;  %v1698_v3 = vmul.f32 %v1696_v59, %v1610_v49  ;;  %v7609_v9 = vld [vmem:[#allocation16 + $0x30] sm:$0xff]  ;;  %v9936_v59 = vld [vmem:[#allocation23] sm:$0xff] }
 0xea0   :  { %v9919_v49 = vld [vmem:[#allocation22 + $0x48] sm:$0xff] }
 0xea1   :  { %v4082_v10 = vmul.f32 0.5, %v4081_v4  ;;  %v1699_v32 = vadd.f32 %v1698_v3, %v1677_v39  ;;  %v9943_v39 = vld [vmem:[#allocation22 + $0x18] sm:$0xff] }
 0xea3   :  { %7508 = vtanh.f32 %v4082_v10  ;;  %v7618_v10 = vld [vmem:[#allocation17 + $0x50] sm:$0xff] }
 0xea4   :  { %7510 = vtanh.f32 %v4149_v30  ;;  %v4170_v62 = vpop.f32.mrf.mxu3  ;;  %v7619_v30 = vld [vmem:[#allocation17 + $0x28] sm:$0xff] }
 0xea5   :  { %v4173_v40 = vadd.f32 %v9546_v23, %v4170_v62  ;;  %7512 = vtanh.f32 %v1653_v53  ;;  %v9911_v62 = vld [vmem:[#allocation22 + $0x58] sm:$0xff] }
 0xea6   :  { %v7621_v53 = vld [vmem:[#allocation17 + $0x20] sm:$0xff] }
 0xea7   :  { %v4194_v14 = vadd.f32 %v4191_v47, %v4173_v40  ;;  %v9925_v40 = vld [vmem:[#allocation23 + $0x18] sm:$0xff] }
 0xea8   :  { %v7623_v47 = vld [vmem:[#allocation19] ss:$0 sm:$0xff] }
 0xea9   :  { %v7509_v35 = vpop.eup %7508 }
 0xeaa   :  { %v4084_v8 = vadd.f32 1.0, %v7509_v35  ;;  %v7511_v31 = vpop.eup %7510  ;;  %v9916_v35 = vld [vmem:[#allocation22 + $0x50] sm:$0xff] }
 0xeab   :  { %v4151_v21 = vadd.f32 1.0, %v7511_v31  ;;  %v7513_v42 = vpop.eup %7512  ;;  %v10914_v31 = vmov 0.0  }
 0xeac   :  { %v4085_v16 = vmul.f32 0.5, %v4084_v8  ;;  %v1655_v45 = vadd.f32 1.0, %v7513_v42  ;;  %v9923_v8 = vld [vmem:[#allocation22 + $0x40] sm:$0xff]  ;;  %v9947_v42 = vld [vmem:[#allocation22 + $0x10] sm:$0xff] }
 0xead   :  { %v4152_v23 = vmul.f32 0.5, %v4151_v21 }
 0xeae   :  { %v4215_v61 = vmul.f32 %v4213_v34, %v4085_v16  ;;  %v1656_v51 = vmul.f32 0.5, %v1655_v45  ;;  %v4239_v16 = vpop.f32.mrf.mxu1  ;;  %v4260_v34 = vpop.f32.mrf.mxu3 }
 0xeaf   :  { %v4218_v33 = vsub.f32 1.0, %v4152_v23  ;;  %v4220_v25 = vmul.f32 %v4152_v23, %v9802_v13  ;;  %v4242_v3 = vadd.f32 %v7623_v47, %v4239_v16  ;;  %v9967_v16 = vld [vmem:[#allocation25 + $0x38] sm:$0xff] }
 0xeb0   :  { %v4216_v19 = vadd.f32 %v4215_v61, %v4194_v14  ;;  %v1701_v20 = vsub.f32 1.0, %v1656_v51  ;;  %v1703_v15 = vmul.f32 %v1656_v51, %v10904_v58  ;;  %v4309_v61 = vpop.f32.mrf.mxu2  ;;  %v9953_v51 = vld [vmem:[#allocation22 + $0x8] sm:$0xff] }
 0xeb1   :  { %v4263_v21 = vadd.f32 %v4260_v34, %v4242_v3 }
 0xeb2   :  { %7514 = vtanh.f32 %v4216_v19  ;;  %v9945_v19 = vld [vmem:[#allocation22 + $0x38] sm:$0xff] }
 0xeb3   :  { %7516 = vtanh.f32 %v1699_v32  ;;  %v7625_v32 = vld [vmem:[#allocation19 + $0x1] ss:$0 sm:$0xff] }
 0xeb4   :  { %v4312_v23 = vadd.f32 %v7625_v32, %v4309_v61  ;;  %v9970_v61 = vld [vmem:[#allocation25 + $0x30] sm:$0xff] }
 0xeb8   :  { %v7515_v44 = vpop.eup %7514 }
 0xeb9   :  { %v4219_v52 = vmul.f32 %v7515_v44, %v4218_v33  ;;  %v7517_v17 = vpop.eup %7516  ;;  %v9951_v33 = vld [vmem:[#allocation22 + $0x30] sm:$0xff]  ;;  %v4330_v44 = vpop.f32.mrf.mxu1 }
 0xeba   :  { %v1702_v7 = vmul.f32 %v7517_v17, %v1701_v20  ;;  %v9959_v20 = vld [vmem:[#allocation22] sm:$0xff] }
 0xebb   :  { %v9875_v54 = vadd.f32 %v4220_v25, %v4219_v52  ;;  %v9955_v25 = vld [vmem:[#allocation22 + $0x28] sm:$0xff] }
 0xebc   :  { %v9887_v4 = vadd.f32 %v1703_v15, %v1702_v7  ;;  %v9961_v7 = vld [vmem:[#allocation22 + $0x20] sm:$0xff] }
 0xebd   :  { %10912 = vst [vmem:[#allocation78_spill] sm:$0xff] %v9875_v54  ;;  %7187 = vmatmul.msk.f32.vlgmr.msra.gmra.mxu0 %vm548_vm1, %v9875_v54  ;;  %7190 = vmatmul.msk.f32.vlgmr.msrb.gmra.mxu3 %vm548_vm1, %v9875_v54 }
 0xebe   :  { %7193 = vmatmul.msk.f32.vlgmr.msra.gmra.mxu1 %vm548_vm1, %v9875_v54  ;;  %4464 = vmatpush.msra.mxu0 %v9810_v38  ;;  %v7612_v38 = vld [vmem:[#allocation16 + $0x48] sm:$0xff] }
 0xebf   :  { %4534 = vmatpush.msrb.mxu3 %v7607_v36  ;;  %4601 = vmatpush.msra.mxu1 %v7608_v48  ;;  %v4333_v36 = vadd.f32 %v4330_v44, %v4312_v23  ;;  %v7626_v48 = vld [vmem:[#allocation20 + $0x1] ss:$0 sm:$0xff] }
 0xec0   :  { %4465 = vmatpush.msra.mxu0 %v9815_v6  ;;  %v9894_v6 = vld [vmem:[#allocation25 + $0x18] sm:$0xff] }
 0xec1   :  { %4535 = vmatpush.msrb.mxu3 %v7609_v9  ;;  %4602 = vmatpush.msra.mxu1 %v7610_v29 }
 0xec2   :  { %4466 = vmatpush.msra.mxu0 %v9820_v56  ;;  %v7613_v56 = vld [vmem:[#allocation16 + $0x20] sm:$0xff] }
 0xec3   :  { %4536 = vmatpush.msrb.mxu3 %v7611_v28  ;;  %4603 = vmatpush.msra.mxu1 %v7612_v38 }
 0xec4   :  { %4467 = vmatpush.msra.mxu0 %v9825_v43  ;;  %v7616_v43 = vld [vmem:[#allocation17 + $0x58] sm:$0xff] }
 0xec5   :  { %7191 = vmatmul.msk.f32.vlgmr.msrb.gmra.mxu0 %vm548_vm1, %v10904_v58  ;;  %7194 = vmatmul.msk.f32.vlgmr.msra.gmra.mxu3 %vm548_vm1, %v9887_v4 }
 0xec6   :  { %7197 = vmatmul.msk.f32.vlgmr.msrb.gmra.mxu1 %vm548_vm1, %v9887_v4  ;;  %4537 = vmatpush.msrb.mxu3 %v7613_v56 }
 0xec7   :  { %4604 = vmatpush.msra.mxu1 %v7614_v12  ;;  %4555 = vmatpush.msrb.mxu0 %v7615_v26  ;;  %v7627_v26 = vld [vmem:[#allocation19 + $0x2] ss:$0 sm:$0xff] }
 0xec8   :  { %4622 = vmatpush.msra.mxu3 %v7616_v43 }
 0xec9   :  { %4697 = vmatpush.msrb.mxu1 %v9894_v6  ;;  %4556 = vmatpush.msrb.mxu0 %v7617_v41 }
 0xeca   :  { %4623 = vmatpush.msra.mxu3 %v7618_v10  ;;  %v7628_v10 = vld [vmem:[#allocation20 + $0x2] ss:$0 sm:$0xff] }
 0xecb   :  { %4698 = vmatpush.msrb.mxu1 %v9898_v18  ;;  %4557 = vmatpush.msrb.mxu0 %v7619_v30 }
 0xecc   :  { %4624 = vmatpush.msra.mxu3 %v7620_v0  ;;  %v4397_v0 = vpop.f32.mrf.mxu2 }
 0xecd   :  { %4699 = vmatpush.msrb.mxu1 %v9901_v2  ;;  %7195 = vmatmul.msk.f32.vlgmr.msra.gmra.mxu0 %vm548_vm1, %v10913_v55 }
 0xece   :  { %7198 = vmatmul.msk.f32.vlgmr.msrb.gmra.mxu3 %vm548_vm1, %v10913_v55  ;;  %7201 = vmatmul.msk.f32.vlgmr.msra.gmra.mxu1 %vm548_vm1, %v10913_v55 }
 0xecf   :  { %4558 = vmatpush.msrb.mxu0 %v7621_v53  ;;  %4700 = vmatpush.msrb.mxu1 %v9905_v11 }
 0xed0   :  { %4625 = vmatpush.msra.mxu3 %v7622_v50 }
 0xed1   :  { %4795 = vmatpush.msra.mxu1 %v9911_v62  ;;  %4649 = vmatpush.msra.mxu0 %v9943_v39 }
 0xed2   :  { %4722 = vmatpush.msrb.mxu3 %v9945_v19 }
 0xed3   :  { %4796 = vmatpush.msra.mxu1 %v9916_v35  ;;  %4650 = vmatpush.msra.mxu0 %v9947_v42 }
 0xed4   :  { %4723 = vmatpush.msrb.mxu3 %v9951_v33 }
 0xed5   :  { %4797 = vmatpush.msra.mxu1 %v9919_v49  ;;  %4651 = vmatpush.msra.mxu0 %v9953_v51 }
 0xed6   :  { %4701 = vmatmul.f32.vlgmr.msrb.gmra.mxu1 %v10914_v31  ;;  %4724 = vmatpush.msrb.mxu3 %v9955_v25 }
 0xed7   :  { %4798 = vmatpush.msra.mxu1 %v9923_v8  ;;  %4652 = vmatpush.msra.mxu0 %v9959_v20 }
 0xed8   :  { %4725 = vmatpush.msrb.mxu3 %v9961_v7 }
 0xed9   :  { %4891 = vmatpush.msrb.mxu1 %v9925_v40 }
 0xedb   :  { %4892 = vmatpush.msrb.mxu1 %v9929_v57 }
 0xedd   :  { %4893 = vmatpush.msrb.mxu1 %v9932_v63 }
 0xede   :  { %7207 = vmatmul.msk.f32.vlgmr.msra.gmra.mxu1 %vm548_vm1, %v9887_v4 }
 0xedf   :  { %4894 = vmatpush.msrb.mxu1 %v9936_v59 }
 0xee1   :  { %4982 = vmatpush.msra.mxu1 %v9967_v16 }
 0xee3   :  { %4983 = vmatpush.msra.mxu1 %v9970_v61 }
 0xee6   :  { %7210 = vmatmul.msk.f32.vlgmr.msrb.gmra.mxu1 %vm548_vm1, %v10905_v24 }
 0xf3a   :  { %v4284_v14 = vpop.f32.mrf.mxu0 }
 0xf3b   :  { %v4285_v5 = vadd.f32 %v7624_v22, %v4284_v14  ;;  %v4418_v56 = vpop.f32.mrf.mxu1  ;;  %v9973_v14 = vld [vmem:[#allocation25 + $0x28] sm:$0xff]  ;;  %v9976_v22 = vld [vmem:[#allocation25 + $0x20] sm:$0xff] }
 0xf3c   :  { %v4419_v30 = vadd.f32 %v7628_v10, %v4418_v56  ;;  %4984 = vmatpush.msra.mxu1 %v9973_v14  ;;  %v10029_v56 = vld [vmem:[#allocation25 + $0x50] sm:$0xff] }
 0xf3d   :  { %v4287_v45 = vadd.f32 %v4285_v5, %v4263_v21 }
 0xf3e   :  { %4985 = vmatpush.msra.mxu1 %v9976_v22 }
 0xf3f   :  { %v4288_v52 = vmul.f32 0.5, %v4287_v45 }
 0xf40   :  { %v4351_v17 = vpop.f32.mrf.mxu3  ;;  %5076 = vmatpush.msrb.mxu1 %v9943_v39 }
 0xf41   :  { %7518 = vtanh.f32 %v4288_v52  ;;  %v4352_v15 = vadd.f32 %v7626_v48, %v4351_v17  ;;  %v9985_v52 = vld [vmem:[#allocation23 + $0x38] sm:$0xff]  ;;  %v9999_v48 = vld [vmem:[#allocation23 + $0x50] sm:$0xff] }
 0xf42   :  { %v4376_v28 = vpop.f32.mrf.mxu0  ;;  %5077 = vmatpush.msrb.mxu1 %v9947_v42  ;;  %v9987_v17 = vld [vmem:[#allocation23 + $0x58] sm:$0xff] }
 0xf43   :  { %v4354_v9 = vadd.f32 %v4352_v15, %v4333_v36  ;;  %v4379_v43 = vadd.f32 %v7627_v26, %v4376_v28  ;;  %v9997_v36 = vld [vmem:[#allocation23 + $0x30] sm:$0xff]  ;;  %v10004_v15 = vld [vmem:[#allocation23 + $0x28] sm:$0xff]  ;;  %v10016_v28 = vld [vmem:[#allocation23 + $0x40] sm:$0xff] }
 0xf44   :  { %5078 = vmatpush.msrb.mxu1 %v9953_v51 }
 0xf45   :  { %v4355_v29 = vmul.f32 0.5, %v4354_v9  ;;  %v4400_v50 = vadd.f32 %v4397_v0, %v4379_v43  ;;  %v10006_v9 = vld [vmem:[#allocation23 + $0x48] sm:$0xff] }
 0xf46   :  { %5079 = vmatpush.msrb.mxu1 %v9959_v20 }
 0xf47   :  { %v7519_v38 = vpop.eup %7518  ;;  %7520 = vtanh.f32 %v4355_v29  ;;  %v10013_v29 = vld [vmem:[#allocation23 + $0x20] sm:$0xff] }
 0xf48   :  { %v4290_v12 = vadd.f32 1.0, %v7519_v38  ;;  %v10022_v38 = vld [vmem:[#allocation25 + $0x58] sm:$0xff] }
 0xf4a   :  { %v4291_v41 = vmul.f32 0.5, %v4290_v12  ;;  %v10034_v12 = vld [vmem:[#allocation25 + $0x48] sm:$0xff] }
 0xf4c   :  { %v4421_v53 = vmul.f32 %v4419_v30, %v4291_v41 }
 0xf4d   :  { %v7521_v34 = vpop.eup %7520 }
 0xf4e   :  { %v4357_v47 = vadd.f32 1.0, %v7521_v34  ;;  %v4422_v3 = vadd.f32 %v4421_v53, %v4400_v50  ;;  %v10116_v50 = vld [vmem:[#allocation28] ss:$0 sm:$0xff]  ;;  %v10118_v34 = vld [vmem:[#allocation26] ss:$0 sm:$0xff] }
 0xf4f   :  { %10925 = vst [vmem:[#allocation89_spill] sm:$0xff] %v10116_v50 }
 0xf50   :  { %7522 = vtanh.f32 %v4422_v3  ;;  %v4358_v21 = vmul.f32 0.5, %v4357_v47 }
 0xf52   :  { %v4424_v5 = vsub.f32 1.0, %v4358_v21  ;;  %v4426_v23 = vmul.f32 %v4358_v21, %v9875_v54 }
 0xf56   :  { %v7523_v32 = vpop.eup %7522 }
 0xf57   :  { %v4425_v45 = vmul.f32 %v7523_v32, %v4424_v5  ;;  %v10122_v32 = vld [vmem:[#allocation26 + $0x1] ss:$0 sm:$0xff] }
 0xf58   :  { %10926 = vst [vmem:[#allocation90_spill] sm:$0xff] %v10122_v32 }
 0xf59   :  { %v9983_v44 = vadd.f32 %v4426_v23, %v4425_v45 }
 0xf5b   :  { %10915 = vst [vmem:[#allocation85_spill] sm:$0xff] %v9983_v44  ;;  %7196 = vmatmul.msk.f32.vlgmr.msra.gmra.mxu2 %vm548_vm1, %v9983_v44  ;;  %7199 = vmatmul.msk.f32.vlgmr.msrb.gmra.mxu0 %vm548_vm1, %v9983_v44 }
 0xf5c   :  { %7202 = vmatmul.msk.f32.vlgmr.msra.gmra.mxu3 %vm548_vm1, %v9983_v44  ;;  %4673 = vmatpush.msra.mxu2 %v9925_v40  ;;  %v10125_v44 = vld [vmem:[#allocation28 + $0x1] ss:$0 sm:$0xff] }
 0xf5d   :  { %4746 = vmatpush.msrb.mxu0 %v9985_v52  ;;  %4819 = vmatpush.msra.mxu3 %v9987_v17 }
 0xf5e   :  { %4674 = vmatpush.msra.mxu2 %v9929_v57 }
 0xf5f   :  { %4747 = vmatpush.msrb.mxu0 %v9997_v36  ;;  %4820 = vmatpush.msra.mxu3 %v9999_v48 }
 0xf60   :  { %4675 = vmatpush.msra.mxu2 %v9932_v63 }
 0xf61   :  { %4748 = vmatpush.msrb.mxu0 %v10004_v15  ;;  %4821 = vmatpush.msra.mxu3 %v10006_v9 }
 0xf62   :  { %4676 = vmatpush.msra.mxu2 %v9936_v59 }
 0xf63   :  { %7200 = vmatmul.msk.f32.vlgmr.msrb.gmra.mxu2 %vm548_vm1, %v9887_v4  ;;  %7203 = vmatmul.msk.f32.vlgmr.msra.gmra.mxu0 %vm548_vm1, %v9887_v4 }
 0xf64   :  { %7205 = vmatmul.msk.f32.vlgmr.msrb.gmra.mxu3 %vm548_vm1, %v9887_v4  ;;  %4749 = vmatpush.msrb.mxu0 %v10013_v29  ;;  %v10040_v4 = vld [vmem:[#allocation25 + $0x40] sm:$0xff] }
 0xf65   :  { %4822 = vmatpush.msra.mxu3 %v10016_v28  ;;  %4770 = vmatpush.msrb.mxu2 %v9967_v16 }
 0xf66   :  { %4843 = vmatpush.msra.mxu0 %v10022_v38 }
 0xf67   :  { %4915 = vmatpush.msrb.mxu3 %v9894_v6  ;;  %4771 = vmatpush.msrb.mxu2 %v9970_v61 }
 0xf68   :  { %4844 = vmatpush.msra.mxu0 %v10029_v56 }
 0xf69   :  { %4916 = vmatpush.msrb.mxu3 %v9898_v18  ;;  %4772 = vmatpush.msrb.mxu2 %v9973_v14 }
 0xf6a   :  { %4845 = vmatpush.msra.mxu0 %v10034_v12 }
 0xf6b   :  { %4917 = vmatpush.msrb.mxu3 %v9901_v2  ;;  %7204 = vmatmul.msk.f32.vlgmr.msra.gmra.mxu2 %vm548_vm1, %v10913_v55 }
 0xf6c   :  { %7206 = vmatmul.msk.f32.vlgmr.msrb.gmra.mxu0 %vm548_vm1, %v10913_v55  ;;  %7208 = vmatmul.msk.f32.vlgmr.msra.gmra.mxu3 %vm548_vm1, %v10913_v55  ;;  %v10100_v55 = vpop.f32.mrf.mxu0 }
 0xf6d   :  { %4773 = vmatpush.msrb.mxu2 %v9976_v22  ;;  %4846 = vmatpush.msra.mxu0 %v10040_v4  ;;  %10917 = vst [vmem:[#allocation77_spill] sm:$0xff] %v10100_v55 }
 0xf6e   :  { %4918 = vmatpush.msrb.mxu3 %v9905_v11 }
 0xf6f   :  { %4870 = vmatpush.msra.mxu2 %v9943_v39  ;;  %4940 = vmatpush.msrb.mxu0 %v9945_v19 }
 0xf70   :  { %5007 = vmatpush.msra.mxu3 %v9911_v62 }
 0xf71   :  { %4871 = vmatpush.msra.mxu2 %v9947_v42  ;;  %4941 = vmatpush.msrb.mxu0 %v9951_v33 }
 0xf72   :  { %5008 = vmatpush.msra.mxu3 %v9916_v35 }
 0xf73   :  { %4872 = vmatpush.msra.mxu2 %v9953_v51  ;;  %4942 = vmatpush.msrb.mxu0 %v9955_v25 }
 0xf74   :  { %4774 = vmatmul.f32.vlgmr.msrb.gmra.mxu2 %v10914_v31  ;;  %4847 = vmatmul.f32.vlgmr.msra.gmra.mxu0 %v10914_v31  ;;  %v10102_v31 = vpop.f32.mrf.mxu1 }
 0xf75   :  { %4873 = vmatpush.msra.mxu2 %v9959_v20  ;;  %4943 = vmatpush.msrb.mxu0 %v9961_v7  ;;  %10918 = vst [vmem:[#allocation70_spill] sm:$0xff] %v10102_v31 }
 0xf76   :  { %5009 = vmatpush.msra.mxu3 %v9919_v49 }
 0xf77   :  { %4961 = vmatpush.msrb.mxu2 %v9985_v52  ;;  %5028 = vmatpush.msra.mxu0 %v9987_v17 }
 0xf78   :  { %5010 = vmatpush.msra.mxu3 %v9923_v8 }
 0xf79   :  { %4962 = vmatpush.msrb.mxu2 %v9997_v36  ;;  %5029 = vmatpush.msra.mxu0 %v9999_v48 }
 0xf7b   :  { %4963 = vmatpush.msrb.mxu2 %v10004_v15  ;;  %5030 = vmatpush.msra.mxu0 %v10006_v9 }
 0xf7c   :  { %7209 = vmatmul.msk.f32.vlgmr.msra.gmra.mxu2 %vm548_vm1, %v10904_v58  ;;  %7212 = vmatmul.msk.f32.vlgmr.msrb.gmra.mxu0 %vm548_vm1, %v10904_v58  ;;  %v10110_v10 = vpop.f32.mrf.mxu1 }
 0xf7d   :  { %4964 = vmatpush.msrb.mxu2 %v10013_v29  ;;  %5031 = vmatpush.msra.mxu0 %v10016_v28  ;;  %10922 = vst [vmem:[#allocation75_spill] sm:$0xff] %v10110_v10 }
 0xf7f   :  { %5049 = vmatpush.msra.mxu2 %v10022_v38  ;;  %5121 = vmatpush.msrb.mxu0 %v9894_v6 }
 0xf81   :  { %5050 = vmatpush.msra.mxu2 %v10029_v56  ;;  %5122 = vmatpush.msrb.mxu0 %v9898_v18 }
 0xf83   :  { %5051 = vmatpush.msra.mxu2 %v10034_v12  ;;  %5123 = vmatpush.msrb.mxu0 %v9901_v2 }
 0xf84   :  { %7213 = vmatmul.msk.f32.vlgmr.msrb.gmra.mxu2 %vm548_vm1, %v10905_v24  ;;  %7216 = vmatmul.msk.f32.vlgmr.msra.gmra.mxu0 %vm548_vm1, %v10905_v24  ;;  %v10098_v24 = vpop.f32.mrf.mxu3  ;;  %v4702_v47 = vpop.f32.mrf.mxu1 }
 0xf85   :  { %5052 = vmatpush.msra.mxu2 %v10040_v4  ;;  %5124 = vmatpush.msrb.mxu0 %v9905_v11  ;;  %10916 = vst [vmem:[#allocation69_spill] sm:$0xff] %v10098_v24  ;;  %v4703_v3 = vadd.f32 %v10116_v50, %v4702_v47  ;;  %v10128_v47 = vld [vmem:[#allocation28 + $0x2] ss:$0 sm:$0xff] }
 0xf87   :  { %5146 = vmatpush.msrb.mxu2 %v9945_v19  ;;  %5213 = vmatpush.msra.mxu0 %v9911_v62 }
 0xf89   :  { %5147 = vmatpush.msrb.mxu2 %v9951_v33  ;;  %5214 = vmatpush.msra.mxu0 %v9916_v35 }
 0xf8b   :  { %5148 = vmatpush.msrb.mxu2 %v9955_v25  ;;  %5215 = vmatpush.msra.mxu0 %v9919_v49 }
 0xf8c   :  { %v10106_v43 = vpop.f32.mrf.mxu3 }
 0xf8d   :  { %5149 = vmatpush.msrb.mxu2 %v9961_v7  ;;  %5216 = vmatpush.msra.mxu0 %v9923_v8  ;;  %10920 = vst [vmem:[#allocation71_spill] sm:$0xff] %v10106_v43  ;;  %v10130_v43 = vld [vmem:[#allocation26 + $0x2] ss:$0 sm:$0xff] }
 0xfd8   :  { %v10104_v26 = vpop.f32.mrf.mxu0 }
 0xfd9   :  { %10919 = vst [vmem:[#allocation72_spill] sm:$0xff] %v10104_v26 }
 0xfde   :  { %v10108_v41 = vpop.f32.mrf.mxu2 }
 0xfdf   :  { %10921 = vst [vmem:[#allocation73_spill] sm:$0xff] %v10108_v41  ;;  %v10112_v30 = vpop.f32.mrf.mxu3 }
 0xfe0   :  { %10923 = vst [vmem:[#allocation74_spill] sm:$0xff] %v10112_v30  ;;  %v4654_v53 = vpop.f32.mrf.mxu0 }
 0xfe1   :  { %v4660_v21 = vadd.f32 %v10118_v34, %v4654_v53 }
 0xfe6   :  { %v10114_v0 = vpop.f32.mrf.mxu2 }
 0xfe7   :  { %10924 = vst [vmem:[#allocation76_spill] sm:$0xff] %v10114_v0  ;;  %v4727_v45 = vpop.f32.mrf.mxu3 }
 0xfe8   :  { %v4733_v37 = vadd.f32 %v10122_v32, %v4727_v45 }
 0xfe9   :  { %v4751_v54 = vpop.f32.mrf.mxu0 }
 0xfea   :  { %v4754_v0 = vadd.f32 %v4751_v54, %v4733_v37 }
 0xfee   :  { %v4678_v5 = vpop.f32.mrf.mxu2 }
 0xfef   :  { %v4681_v23 = vadd.f32 %v4678_v5, %v4660_v21  ;;  %v4800_v21 = vpop.f32.mrf.mxu1 }
 0xff1   :  { %v4705_v13 = vadd.f32 %v4703_v3, %v4681_v23  ;;  %v4848_v5 = vpop.f32.mrf.mxu0 }
 0xff2   :  { %v4849_v23 = vadd.f32 %v10128_v47, %v4848_v5 }
 0xff3   :  { %v4706_v27 = vmul.f32 0.5, %v4705_v13  ;;  %v4824_v13 = vpop.f32.mrf.mxu3 }
 0xff5   :  { %7524 = vtanh.f32 %v4706_v27  ;;  %v4806_v27 = vadd.f32 %v10130_v43, %v4800_v21 }
 0xff7   :  { %v4775_v10 = vpop.f32.mrf.mxu2  ;;  %v4827_v37 = vadd.f32 %v4824_v13, %v4806_v27 }
 0xff8   :  { %v4776_v30 = vadd.f32 %v10125_v44, %v4775_v10 }
 0xffa   :  { %v4778_v53 = vadd.f32 %v4776_v30, %v4754_v0 }
 0xffb   :  { %v7525_v26 = vpop.eup %7524 }
 0xffc   :  { %v4779_v31 = vmul.f32 0.5, %v4778_v53  ;;  %v4708_v3 = vadd.f32 1.0, %v7525_v26 }
 0xffe   :  { %7526 = vtanh.f32 %v4779_v31  ;;  %v4709_v45 = vmul.f32 0.5, %v4708_v3  ;;  %v10927_v3 = vld [vmem:[#allocation89_spill] sm:$0xff] }
0x1000   :  { %v4851_v54 = vmul.f32 %v4849_v23, %v4709_v45 }
0x1002   :  { %v4852_v10 = vadd.f32 %v4851_v54, %v4827_v37 }
0x1004   :  { %v7527_v55 = vpop.eup %7526  ;;  %7528 = vtanh.f32 %v4852_v10 }
0x1005   :  { %v4781_v30 = vadd.f32 1.0, %v7527_v55 }
0x1007   :  { %v4782_v0 = vmul.f32 0.5, %v4781_v30 }
0x1009   :  { %v4854_v41 = vsub.f32 1.0, %v4782_v0  ;;  %v4856_v50 = vmul.f32 0.0, %v4782_v0 }
0x100a   :  { %v7529_v24 = vpop.eup %7528 }
0x100b   :  { %v4855_v46 = vmul.f32 %v7529_v24, %v4854_v41 }
0x100d   :  { %v10134_v53 = vadd.f32 %v4856_v50, %v4855_v46  ;;  %v4896_v46 = vpop.f32.mrf.mxu1 }
0x100f   :  { %7211 = vmatmul.msk.f32.vlgmr.msrb.gmra.mxu3 %vm548_vm1, %v10134_v53  ;;  %7214 = vmatmul.msk.f32.vlgmr.msra.gmra.mxu1 %vm548_vm1, %v10134_v53 }
0x1010   :  { %7217 = vmatmul.msk.f32.vlgmr.msra.gmra.mxu2 %vm548_vm1, %v10134_v53  ;;  %5097 = vmatpush.msrb.mxu3 %v9925_v40 }
0x1011   :  { %5167 = vmatpush.msra.mxu1 %v9985_v52  ;;  %5234 = vmatpush.msra.mxu2 %v9987_v17 }
0x1012   :  { %5098 = vmatpush.msrb.mxu3 %v9929_v57 }
0x1013   :  { %5168 = vmatpush.msra.mxu1 %v9997_v36  ;;  %5235 = vmatpush.msra.mxu2 %v9999_v48 }
0x1014   :  { %5099 = vmatpush.msrb.mxu3 %v9932_v63 }
0x1015   :  { %5169 = vmatpush.msra.mxu1 %v10004_v15  ;;  %5236 = vmatpush.msra.mxu2 %v10006_v9 }
0x1016   :  { %5100 = vmatpush.msrb.mxu3 %v9936_v59 }
0x1017   :  { %7215 = vmatmul.msk.f32.vlgmr.msra.gmra.mxu3 %vm548_vm1, %v10904_v58  ;;  %7218 = vmatmul.msk.f32.vlgmr.msrb.gmra.mxu1 %vm548_vm1, %v10900_v60  ;;  %v4945_v58 = vpop.f32.mrf.mxu0 }
0x1018   :  { %7221 = vmatmul.msk.f32.vlgmr.msrb.gmra.mxu2 %vm548_vm1, %v10900_v60  ;;  %5170 = vmatpush.msra.mxu1 %v10013_v29  ;;  %v4948_v26 = vadd.f32 %v10122_v32, %v4945_v58 }
0x1019   :  { %5237 = vmatpush.msra.mxu2 %v10016_v28  ;;  %5188 = vmatpush.msra.mxu3 %v9967_v16 }
0x101a   :  { %5255 = vmatpush.msrb.mxu1 %v10022_v38 }
0x101b   :  { %5327 = vmatpush.msrb.mxu2 %v9894_v6  ;;  %5189 = vmatpush.msra.mxu3 %v9970_v61 }
0x101c   :  { %5256 = vmatpush.msrb.mxu1 %v10029_v56 }
0x101d   :  { %5328 = vmatpush.msrb.mxu2 %v9898_v18  ;;  %5190 = vmatpush.msra.mxu3 %v9973_v14 }
0x101e   :  { %5257 = vmatpush.msrb.mxu1 %v10034_v12 }
0x101f   :  { %5329 = vmatpush.msrb.mxu2 %v9901_v2  ;;  %7219 = vmatmul.msk.f32.vlgmr.msrb.gmra.mxu3 %vm548_vm1, %v10901_v1 }
0x1020   :  { %7222 = vmatmul.msk.f32.vlgmr.msra.gmra.mxu1 %vm548_vm1, %v10901_v1  ;;  %7225 = vmatmul.msk.f32.vlgmr.msra.gmra.mxu2 %vm548_vm1, %v10901_v1  ;;  %v4875_v1 = vpop.f32.mrf.mxu2 }
0x1021   :  { %5191 = vmatpush.msra.mxu3 %v9976_v22  ;;  %5258 = vmatpush.msrb.mxu1 %v10040_v4  ;;  %v4878_v55 = vadd.f32 %v10118_v34, %v4875_v1 }
0x1022   :  { %5330 = vmatpush.msrb.mxu2 %v9905_v11 }
0x1023   :  { %5282 = vmatpush.msrb.mxu3 %v9943_v39  ;;  %5352 = vmatpush.msra.mxu1 %v9945_v19  ;;  %v4899_v5 = vadd.f32 %v4896_v46, %v4878_v55 }
0x1024   :  { %5419 = vmatpush.msra.mxu2 %v9911_v62 }
0x1025   :  { %5283 = vmatpush.msrb.mxu3 %v9947_v42  ;;  %5353 = vmatpush.msra.mxu1 %v9951_v33 }
0x1026   :  { %5420 = vmatpush.msra.mxu2 %v9916_v35 }
0x1027   :  { %5284 = vmatpush.msrb.mxu3 %v9953_v51  ;;  %5354 = vmatpush.msra.mxu1 %v9955_v25 }
0x1028   :  { %5421 = vmatpush.msra.mxu2 %v9919_v49  ;;  %v4966_v31 = vpop.f32.mrf.mxu2 }
0x1029   :  { %5285 = vmatpush.msrb.mxu3 %v9959_v20  ;;  %5355 = vmatpush.msra.mxu1 %v9961_v7  ;;  %v4969_v50 = vadd.f32 %v4966_v31, %v4948_v26  ;;  %v5033_v31 = vpop.f32.mrf.mxu0 }
0x102a   :  { %5422 = vmatpush.msra.mxu2 %v9923_v8 }
0x108c   :  { %v4987_v24 = vpop.f32.mrf.mxu1 }
0x108d   :  { %v4988_v41 = vadd.f32 %v10125_v44, %v4987_v24 }
0x108f   :  { %v4990_v13 = vadd.f32 %v4988_v41, %v4969_v50 }
0x1091   :  { %v4991_v37 = vmul.f32 0.5, %v4990_v13 }
0x1092   :  { %v4920_v21 = vpop.f32.mrf.mxu3 }
0x1093   :  { %v4921_v23 = vadd.f32 %v10927_v3, %v4920_v21  ;;  %v5054_v30 = vpop.f32.mrf.mxu2 }
0x1094   :  { %v5055_v24 = vadd.f32 %v10128_v47, %v5054_v30 }
0x1095   :  { %v4923_v27 = vadd.f32 %v4921_v23, %v4899_v5 }
0x1097   :  { %v4924_v45 = vmul.f32 0.5, %v4923_v27 }
0x1099   :  { %7530 = vtanh.f32 %v4924_v45  ;;  %v5081_v45 = vpop.f32.mrf.mxu1 }
0x109a   :  { %7532 = vtanh.f32 %v4991_v37  ;;  %v5012_v54 = vpop.f32.mrf.mxu3 }
0x109b   :  { %v5015_v1 = vadd.f32 %v10130_v43, %v5012_v54  ;;  %v5084_v54 = vadd.f32 %v10118_v34, %v5081_v45 }
0x109d   :  { %v5036_v55 = vadd.f32 %v5033_v31, %v5015_v1 }
0x109f   :  { %v7531_v10 = vpop.eup %7530 }
0x10a0   :  { %v4926_v0 = vadd.f32 1.0, %v7531_v10  ;;  %v7533_v58 = vpop.eup %7532  ;;  %v5151_v10 = vpop.f32.mrf.mxu2 }
0x10a1   :  { %v4993_v26 = vadd.f32 1.0, %v7533_v58  ;;  %v10930_v58 = vld [vmem:[#allocation90_spill] sm:$0xff] }
0x10a2   :  { %v4927_v32 = vmul.f32 0.5, %v4926_v0  ;;  %v5102_v37 = vpop.f32.mrf.mxu3 }
0x10a3   :  { %v4994_v50 = vmul.f32 0.5, %v4993_v26  ;;  %v5105_v0 = vadd.f32 %v5102_v37, %v5084_v54 }
0x10a4   :  { %v5057_v46 = vmul.f32 %v5055_v24, %v4927_v32  ;;  %v10928_v32 = vld [vmem:[#allocation67_spill] sm:$0xff]  ;;  %v5154_v24 = vadd.f32 %v10930_v58, %v5151_v10 }
0x10a5   :  { %v5060_v21 = vsub.f32 1.0, %v4994_v50  ;;  %v5062_v23 = vmul.f32 %v4994_v50, %v10134_v53 }
0x10a6   :  { %v5058_v41 = vadd.f32 %v5057_v46, %v5036_v55  ;;  %v5172_v46 = vpop.f32.mrf.mxu1 }
0x10a8   :  { %7534 = vtanh.f32 %v5058_v41  ;;  %v5175_v41 = vadd.f32 %v5172_v46, %v5154_v24 }
0x10ae   :  { %v7535_v5 = vpop.eup %7534 }
0x10af   :  { %v5061_v13 = vmul.f32 %v7535_v5, %v5060_v21 }
0x10b1   :  { %v10197_v27 = vadd.f32 %v5062_v23, %v5061_v13 }
0x10b3   :  { %7220 = vmatmul.msk.f32.vlgmr.msrb.gmra.mxu0 %vm548_vm1, %v10197_v27  ;;  %7223 = vmatmul.msk.f32.vlgmr.msra.gmra.mxu3 %vm548_vm1, %v10197_v27 }
0x10b4   :  { %7226 = vmatmul.msk.f32.vlgmr.msrb.gmra.mxu1 %vm548_vm1, %v10197_v27  ;;  %5303 = vmatpush.msrb.mxu0 %v9925_v40 }
0x10b5   :  { %5373 = vmatpush.msra.mxu3 %v9985_v52  ;;  %5440 = vmatpush.msrb.mxu1 %v9987_v17 }
0x10b6   :  { %5304 = vmatpush.msrb.mxu0 %v9929_v57 }
0x10b7   :  { %5374 = vmatpush.msra.mxu3 %v9997_v36  ;;  %5441 = vmatpush.msrb.mxu1 %v9999_v48 }
0x10b8   :  { %5305 = vmatpush.msrb.mxu0 %v9932_v63 }
0x10b9   :  { %5375 = vmatpush.msra.mxu3 %v10004_v15  ;;  %5442 = vmatpush.msrb.mxu1 %v10006_v9 }
0x10ba   :  { %5306 = vmatpush.msrb.mxu0 %v9936_v59 }
0x10bb   :  { %7224 = vmatmul.msk.f32.vlgmr.msra.gmra.mxu0 %vm548_vm1, %v10900_v60  ;;  %7227 = vmatmul.msk.f32.vlgmr.msrb.gmra.mxu3 %vm548_vm1, %v10928_v32  ;;  %v10929_v60 = vld [vmem:[#allocation79_spill] sm:$0xff] }
0x10bc   :  { %7230 = vmatmul.msk.f32.vlgmr.msra.gmra.mxu1 %vm548_vm1, %v10928_v32  ;;  %5376 = vmatpush.msra.mxu3 %v10013_v29 }
0x10bd   :  { %5443 = vmatpush.msrb.mxu1 %v10016_v28  ;;  %5394 = vmatpush.msra.mxu0 %v9967_v16 }
0x10be   :  { %5461 = vmatpush.msrb.mxu3 %v10022_v38 }
0x10bf   :  { %5533 = vmatpush.msra.mxu1 %v9894_v6  ;;  %5395 = vmatpush.msra.mxu0 %v9970_v61 }
0x10c0   :  { %5462 = vmatpush.msrb.mxu3 %v10029_v56 }
0x10c1   :  { %5534 = vmatpush.msra.mxu1 %v9898_v18  ;;  %5396 = vmatpush.msra.mxu0 %v9973_v14 }
0x10c2   :  { %5463 = vmatpush.msrb.mxu3 %v10034_v12 }
0x10c3   :  { %5535 = vmatpush.msra.mxu1 %v9901_v2  ;;  %7228 = vmatmul.msk.f32.vlgmr.msrb.gmra.mxu0 %vm548_vm1, %v10929_v60 }
0x10c4   :  { %7231 = vmatmul.msk.f32.vlgmr.msra.gmra.mxu3 %vm548_vm1, %v10929_v60  ;;  %7234 = vmatmul.msk.f32.vlgmr.msrb.gmra.mxu1 %vm548_vm1, %v10929_v60 }
0x10c5   :  { %5397 = vmatpush.msra.mxu0 %v9976_v22  ;;  %5464 = vmatpush.msrb.mxu3 %v10040_v4 }
0x10c6   :  { %5536 = vmatpush.msra.mxu1 %v9905_v11 }
0x10c7   :  { %5488 = vmatpush.msrb.mxu0 %v9943_v39  ;;  %5558 = vmatpush.msra.mxu3 %v9945_v19 }
0x10c8   :  { %5625 = vmatpush.msrb.mxu1 %v9911_v62 }
0x10c9   :  { %5489 = vmatpush.msrb.mxu0 %v9947_v42  ;;  %5559 = vmatpush.msra.mxu3 %v9951_v33 }
0x10ca   :  { %5626 = vmatpush.msrb.mxu1 %v9916_v35 }
0x10cb   :  { %5490 = vmatpush.msrb.mxu0 %v9953_v51  ;;  %5560 = vmatpush.msra.mxu3 %v9955_v25 }
0x10cc   :  { %5627 = vmatpush.msrb.mxu1 %v9919_v49 }
0x10cd   :  { %5491 = vmatpush.msrb.mxu0 %v9959_v20  ;;  %5561 = vmatpush.msra.mxu3 %v9961_v7 }
0x10ce   :  { %5628 = vmatpush.msrb.mxu1 %v9923_v8 }
0x1130   :  { %v5126_v30 = vpop.f32.mrf.mxu0 }
0x1131   :  { %v5127_v1 = vadd.f32 %v10927_v3, %v5126_v30  ;;  %v5260_v60 = vpop.f32.mrf.mxu1  ;;  %v5239_v30 = vpop.f32.mrf.mxu2 }
0x1132   :  { %v5261_v10 = vadd.f32 %v10128_v47, %v5260_v60 }
0x1133   :  { %v5129_v31 = vadd.f32 %v5127_v1, %v5105_v0 }
0x1135   :  { %v5130_v55 = vmul.f32 0.5, %v5129_v31 }
0x1136   :  { %v5193_v26 = vpop.f32.mrf.mxu3 }
0x1137   :  { %7536 = vtanh.f32 %v5130_v55  ;;  %v5194_v50 = vadd.f32 %v10125_v44, %v5193_v26 }
0x1138   :  { %v5218_v23 = vpop.f32.mrf.mxu0 }
0x1139   :  { %v5196_v21 = vadd.f32 %v5194_v50, %v5175_v41  ;;  %v5221_v37 = vadd.f32 %v10130_v43, %v5218_v23  ;;  %v10931_v23 = vld [vmem:[#allocation66_spill] sm:$0xff] }
0x113b   :  { %v5197_v5 = vmul.f32 0.5, %v5196_v21  ;;  %v5242_v1 = vadd.f32 %v5239_v30, %v5221_v37 }
0x113d   :  { %v7537_v13 = vpop.eup %7536  ;;  %7538 = vtanh.f32 %v5197_v5 }
0x113e   :  { %v5132_v45 = vadd.f32 1.0, %v7537_v13 }
0x1140   :  { %v5133_v54 = vmul.f32 0.5, %v5132_v45 }
0x1142   :  { %v5263_v0 = vmul.f32 %v5261_v10, %v5133_v54 }
0x1143   :  { %v7539_v31 = vpop.eup %7538 }
0x1144   :  { %v5199_v24 = vadd.f32 1.0, %v7539_v31  ;;  %v5264_v46 = vadd.f32 %v5263_v0, %v5242_v1 }
0x1146   :  { %7540 = vtanh.f32 %v5264_v46  ;;  %v5200_v55 = vmul.f32 0.5, %v5199_v24 }
0x1148   :  { %v5266_v26 = vsub.f32 1.0, %v5200_v55  ;;  %v5268_v50 = vmul.f32 %v5200_v55, %v10197_v27 }
0x114c   :  { %v7541_v41 = vpop.eup %7540 }
0x114d   :  { %v5267_v21 = vmul.f32 %v7541_v41, %v5266_v26 }
0x114f   :  { %v10260_v5 = vadd.f32 %v5268_v50, %v5267_v21 }
0x1151   :  { %7229 = vmatmul.msk.f32.vlgmr.msrb.gmra.mxu2 %vm548_vm1, %v10260_v5  ;;  %7232 = vmatmul.msk.f32.vlgmr.msra.gmra.mxu0 %vm548_vm1, %v10260_v5 }
0x1152   :  { %7235 = vmatmul.msk.f32.vlgmr.msrb.gmra.mxu3 %vm548_vm1, %v10260_v5  ;;  %5509 = vmatpush.msrb.mxu2 %v9925_v40 }
0x1153   :  { %5579 = vmatpush.msra.mxu0 %v9985_v52  ;;  %5646 = vmatpush.msrb.mxu3 %v9987_v17 }
0x1154   :  { %5510 = vmatpush.msrb.mxu2 %v9929_v57 }
0x1155   :  { %5580 = vmatpush.msra.mxu0 %v9997_v36  ;;  %5647 = vmatpush.msrb.mxu3 %v9999_v48 }
0x1156   :  { %5511 = vmatpush.msrb.mxu2 %v9932_v63 }
0x1157   :  { %5581 = vmatpush.msra.mxu0 %v10004_v15  ;;  %5648 = vmatpush.msrb.mxu3 %v10006_v9 }
0x1158   :  { %5512 = vmatpush.msrb.mxu2 %v9936_v59 }
0x1159   :  { %7233 = vmatmul.msk.f32.vlgmr.msra.gmra.mxu2 %vm548_vm1, %v10928_v32  ;;  %7236 = vmatmul.msk.f32.vlgmr.msrb.gmra.mxu0 %vm548_vm1, %v10931_v23  ;;  %v10932_v32 = vld [vmem:[#allocation80_spill] sm:$0xff] }
0x115a   :  { %7239 = vmatmul.msk.f32.vlgmr.msra.gmra.mxu3 %vm548_vm1, %v10931_v23  ;;  %5582 = vmatpush.msra.mxu0 %v10013_v29 }
0x115b   :  { %5649 = vmatpush.msrb.mxu3 %v10016_v28  ;;  %5600 = vmatpush.msra.mxu2 %v9967_v16 }
0x115c   :  { %5667 = vmatpush.msrb.mxu0 %v10022_v38 }
0x115d   :  { %5739 = vmatpush.msra.mxu3 %v9894_v6  ;;  %5601 = vmatpush.msra.mxu2 %v9970_v61  ;;  %v5287_v6 = vpop.f32.mrf.mxu3 }
0x115e   :  { %5668 = vmatpush.msrb.mxu0 %v10029_v56 }
0x115f   :  { %5740 = vmatpush.msra.mxu3 %v9898_v18  ;;  %5602 = vmatpush.msra.mxu2 %v9973_v14  ;;  %v5308_v18 = vpop.f32.mrf.mxu0 }
0x1160   :  { %5669 = vmatpush.msrb.mxu0 %v10034_v12 }
0x1161   :  { %5741 = vmatpush.msra.mxu3 %v9901_v2  ;;  %7237 = vmatmul.msk.f32.vlgmr.msrb.gmra.mxu2 %vm548_vm1, %v10932_v32  ;;  %v5357_v2 = vpop.f32.mrf.mxu1 }
0x1162   :  { %7240 = vmatmul.msk.f32.vlgmr.msra.gmra.mxu0 %vm548_vm1, %v10932_v32  ;;  %7243 = vmatmul.msk.f32.vlgmr.msrb.gmra.mxu3 %vm548_vm1, %v10932_v32  ;;  %v5360_v60 = vadd.f32 %v10930_v58, %v5357_v2 }
0x1163   :  { %5603 = vmatpush.msra.mxu2 %v9976_v22  ;;  %5670 = vmatpush.msrb.mxu0 %v10040_v4 }
0x1164   :  { %5742 = vmatpush.msra.mxu3 %v9905_v11 }
0x1165   :  { %5694 = vmatpush.msrb.mxu2 %v9943_v39  ;;  %5764 = vmatpush.msra.mxu0 %v9945_v19  ;;  %v5378_v13 = vpop.f32.mrf.mxu3 }
0x1166   :  { %5831 = vmatpush.msrb.mxu3 %v9911_v62  ;;  %v5290_v62 = vadd.f32 %v10118_v34, %v5287_v6  ;;  %v5381_v45 = vadd.f32 %v5378_v13, %v5360_v60 }
0x1167   :  { %5695 = vmatpush.msrb.mxu2 %v9947_v42  ;;  %5765 = vmatpush.msra.mxu0 %v9951_v33 }
0x1168   :  { %5832 = vmatpush.msrb.mxu3 %v9916_v35  ;;  %v5311_v54 = vadd.f32 %v5308_v18, %v5290_v62 }
0x1169   :  { %5696 = vmatpush.msrb.mxu2 %v9953_v51  ;;  %5766 = vmatpush.msra.mxu0 %v9955_v25  ;;  %v5445_v21 = vpop.f32.mrf.mxu1 }
0x116a   :  { %5833 = vmatpush.msrb.mxu3 %v9919_v49 }
0x116b   :  { %5697 = vmatpush.msrb.mxu2 %v9959_v20  ;;  %5767 = vmatpush.msra.mxu0 %v9961_v7 }
0x116c   :  { %5834 = vmatpush.msrb.mxu3 %v9923_v8 }
0x11ce   :  { %v5399_v11 = vpop.f32.mrf.mxu0 }
0x11cf   :  { %v5400_v35 = vadd.f32 %v10125_v44, %v5399_v11 }
0x11d1   :  { %v5402_v10 = vadd.f32 %v5400_v35, %v5381_v45 }
0x11d3   :  { %v5403_v8 = vmul.f32 0.5, %v5402_v10 }
0x11d4   :  { %v5332_v37 = vpop.f32.mrf.mxu2 }
0x11d5   :  { %v5333_v49 = vadd.f32 %v10927_v3, %v5332_v37  ;;  %v5466_v24 = vpop.f32.mrf.mxu3  ;;  %v10378_v37 = vld [vmem:[#allocation22 + $0x58] sm:$0xff] }
0x11d6   :  { %v5467_v50 = vadd.f32 %v10128_v47, %v5466_v24 }
0x11d7   :  { %v5335_v30 = vadd.f32 %v5333_v49, %v5311_v54 }
0x11d9   :  { %v5336_v0 = vmul.f32 0.5, %v5335_v30 }
0x11db   :  { %7542 = vtanh.f32 %v5336_v0 }
0x11dc   :  { %7544 = vtanh.f32 %v5403_v8  ;;  %v5424_v1 = vpop.f32.mrf.mxu2 }
0x11dd   :  { %v5427_v55 = vadd.f32 %v10130_v43, %v5424_v1  ;;  %v5563_v54 = vpop.f32.mrf.mxu3 }
0x11df   :  { %v5448_v6 = vadd.f32 %v5445_v21, %v5427_v55 }
0x11e1   :  { %v7543_v31 = vpop.eup %7542 }
0x11e2   :  { %v5338_v46 = vadd.f32 1.0, %v7543_v31  ;;  %v7545_v26 = vpop.eup %7544 }
0x11e3   :  { %v5405_v18 = vadd.f32 1.0, %v7545_v26 }
0x11e4   :  { %v5339_v41 = vmul.f32 0.5, %v5338_v46 }
0x11e5   :  { %v5406_v11 = vmul.f32 0.5, %v5405_v18  ;;  %v5651_v18 = vpop.f32.mrf.mxu3 }
0x11e6   :  { %v5469_v32 = vmul.f32 %v5467_v50, %v5339_v41 }
0x11e7   :  { %v5472_v62 = vsub.f32 1.0, %v5406_v11  ;;  %v5474_v60 = vmul.f32 %v5406_v11, %v10260_v5 }
0x11e8   :  { %v5470_v2 = vadd.f32 %v5469_v32, %v5448_v6 }
0x11ea   :  { %7546 = vtanh.f32 %v5470_v2 }
0x11f0   :  { %v7547_v13 = vpop.eup %7546 }
0x11f1   :  { %v5473_v35 = vmul.f32 %v7547_v13, %v5472_v62 }
0x11f3   :  { %v10323_v45 = vadd.f32 %v5474_v60, %v5473_v35 }
0x11f5   :  { %7238 = vmatmul.msk.f32.vlgmr.msra.gmra.mxu1 %vm548_vm1, %v10323_v45  ;;  %7241 = vmatmul.msk.f32.vlgmr.msra.gmra.mxu2 %vm548_vm1, %v10323_v45 }
0x11f6   :  { %7244 = vmatmul.msk.f32.vlgmr.msrb.gmra.mxu0 %vm548_vm1, %v10323_v45  ;;  %5715 = vmatpush.msra.mxu1 %v9925_v40  ;;  %v10933_v40 = vld [vmem:[#allocation65_spill] sm:$0xff] }
0x11f7   :  { %5785 = vmatpush.msra.mxu2 %v9985_v52  ;;  %5852 = vmatpush.msrb.mxu0 %v9987_v17 }
0x11f8   :  { %5716 = vmatpush.msra.mxu1 %v9929_v57  ;;  %v10351_v57 = vld [vmem:[#allocation25 + $0x18] sm:$0xff] }
0x11f9   :  { %5786 = vmatpush.msra.mxu2 %v9997_v36  ;;  %5853 = vmatpush.msrb.mxu0 %v9999_v48 }
0x11fa   :  { %5717 = vmatpush.msra.mxu1 %v9932_v63  ;;  %v10356_v63 = vld [vmem:[#allocation25 + $0x10] sm:$0xff] }
0x11fb   :  { %5787 = vmatpush.msra.mxu2 %v10004_v15  ;;  %5854 = vmatpush.msrb.mxu0 %v10006_v9 }
0x11fc   :  { %5718 = vmatpush.msra.mxu1 %v9936_v59  ;;  %v10361_v59 = vld [vmem:[#allocation25 + $0x8] sm:$0xff] }
0x11fd   :  { %7242 = vmatmul.msk.f32.vlgmr.msrb.gmra.mxu1 %vm548_vm1, %v10931_v23  ;;  %7245 = vmatmul.msk.f32.vlgmr.msrb.gmra.mxu2 %vm548_vm1, %v10933_v40  ;;  %v10374_v23 = vld [vmem:[#allocation25] sm:$0xff] }
0x11fe   :  { %7248 = vmatmul.msk.f32.vlgmr.msra.gmra.mxu0 %vm548_vm1, %v10933_v40  ;;  %5788 = vmatpush.msra.mxu2 %v10013_v29 }
0x11ff   :  { %5855 = vmatpush.msrb.mxu0 %v10016_v28  ;;  %5806 = vmatpush.msrb.mxu1 %v9967_v16  ;;  %v10934_v16 = vld [vmem:[#allocation81_spill] sm:$0xff] }
0x1200   :  { %5873 = vmatpush.msrb.mxu2 %v10022_v38 }
0x1201   :  { %5945 = vmatpush.msra.mxu0 %v10351_v57  ;;  %5807 = vmatpush.msrb.mxu1 %v9970_v61 }
0x1202   :  { %5874 = vmatpush.msrb.mxu2 %v10029_v56 }
0x1203   :  { %5946 = vmatpush.msra.mxu0 %v10356_v63  ;;  %5808 = vmatpush.msrb.mxu1 %v9973_v14 }
0x1204   :  { %5875 = vmatpush.msrb.mxu2 %v10034_v12 }
0x1205   :  { %5947 = vmatpush.msra.mxu0 %v10361_v59  ;;  %7246 = vmatmul.msk.f32.vlgmr.msra.gmra.mxu1 %vm548_vm1, %v10934_v16 }
0x1206   :  { %7249 = vmatmul.msk.f32.vlgmr.msra.gmra.mxu2 %vm548_vm1, %v10934_v16  ;;  %7252 = vmatmul.msk.f32.vlgmr.msrb.gmra.mxu0 %vm548_vm1, %v10934_v16 }
0x1207   :  { %5809 = vmatpush.msrb.mxu1 %v9976_v22  ;;  %5876 = vmatpush.msrb.mxu2 %v10040_v4  ;;  %v10383_v22 = vld [vmem:[#allocation22 + $0x50] sm:$0xff] }
0x1208   :  { %5948 = vmatpush.msra.mxu0 %v10374_v23 }
0x1209   :  { %5900 = vmatpush.msra.mxu1 %v9943_v39  ;;  %5970 = vmatpush.msra.mxu2 %v9945_v19  ;;  %v10388_v39 = vld [vmem:[#allocation22 + $0x48] sm:$0xff]  ;;  %v10392_v19 = vld [vmem:[#allocation22 + $0x40] sm:$0xff] }
0x120a   :  { %6037 = vmatpush.msrb.mxu0 %v10378_v37 }
0x120b   :  { %5901 = vmatpush.msra.mxu1 %v9947_v42  ;;  %5971 = vmatpush.msra.mxu2 %v9951_v33  ;;  %v5493_v42 = vpop.f32.mrf.mxu0  ;;  %v5514_v33 = vpop.f32.mrf.mxu2 }
0x120c   :  { %6038 = vmatpush.msrb.mxu0 %v10383_v22 }
0x120d   :  { %5902 = vmatpush.msra.mxu1 %v9953_v51  ;;  %5972 = vmatpush.msra.mxu2 %v9955_v25  ;;  %v5496_v51 = vadd.f32 %v10118_v34, %v5493_v42 }
0x120e   :  { %6039 = vmatpush.msrb.mxu0 %v10388_v39 }
0x120f   :  { %5903 = vmatpush.msra.mxu1 %v9959_v20  ;;  %5973 = vmatpush.msra.mxu2 %v9961_v7  ;;  %v5517_v10 = vadd.f32 %v5514_v33, %v5496_v51  ;;  %v5566_v20 = vadd.f32 %v10930_v58, %v5563_v54 }
0x1210   :  { %6040 = vmatpush.msrb.mxu0 %v10392_v19 }
0x1213   :  { %v5584_v0 = vpop.f32.mrf.mxu0 }
0x1214   :  { %v5587_v7 = vadd.f32 %v5584_v0, %v5566_v20  ;;  %v10425_v20 = vld [vmem:[#allocation23] sm:$0xff] }
0x1272   :  { %v5538_v49 = vpop.f32.mrf.mxu1 }
0x1273   :  { %v5539_v25 = vadd.f32 %v10927_v3, %v5538_v49  ;;  %v5672_v41 = vpop.f32.mrf.mxu0  ;;  %v10410_v49 = vld [vmem:[#allocation23 + $0x18] sm:$0xff] }
0x1274   :  { %v5673_v6 = vadd.f32 %v10128_v47, %v5672_v41 }
0x1275   :  { %v5541_v30 = vadd.f32 %v5539_v25, %v5517_v10  ;;  %v10415_v10 = vld [vmem:[#allocation23 + $0x10] sm:$0xff]  ;;  %v10420_v25 = vld [vmem:[#allocation23 + $0x8] sm:$0xff] }
0x1277   :  { %v5542_v8 = vmul.f32 0.5, %v5541_v30 }
0x1278   :  { %v5605_v1 = vpop.f32.mrf.mxu2 }
0x1279   :  { %7548 = vtanh.f32 %v5542_v8  ;;  %v5606_v31 = vadd.f32 %v10125_v44, %v5605_v1 }
0x127a   :  { %v5630_v55 = vpop.f32.mrf.mxu1 }
0x127b   :  { %v5608_v24 = vadd.f32 %v5606_v31, %v5587_v7  ;;  %v5633_v21 = vadd.f32 %v10130_v43, %v5630_v55 }
0x127d   :  { %v5609_v46 = vmul.f32 0.5, %v5608_v24  ;;  %v5654_v11 = vadd.f32 %v5651_v18, %v5633_v21 }
0x127f   :  { %v7549_v26 = vpop.eup %7548  ;;  %7550 = vtanh.f32 %v5609_v46 }
0x1280   :  { %v5544_v50 = vadd.f32 1.0, %v7549_v26 }
0x1282   :  { %v5545_v32 = vmul.f32 0.5, %v5544_v50 }
0x1284   :  { %v5675_v2 = vmul.f32 %v5673_v6, %v5545_v32 }
0x1285   :  { %v7551_v62 = vpop.eup %7550 }
0x1286   :  { %v5611_v13 = vadd.f32 1.0, %v7551_v62  ;;  %v5676_v60 = vadd.f32 %v5675_v2, %v5654_v11 }
0x1288   :  { %7552 = vtanh.f32 %v5676_v60  ;;  %v5612_v35 = vmul.f32 0.5, %v5611_v13 }
0x128a   :  { %v5678_v16 = vsub.f32 1.0, %v5612_v35  ;;  %v5680_v33 = vmul.f32 %v5612_v35, %v10323_v45 }
0x128e   :  { %v7553_v42 = vpop.eup %7552 }
0x128f   :  { %v5679_v51 = vmul.f32 %v7553_v42, %v5678_v16 }
0x1291   :  { %v10402_v54 = vadd.f32 %v5680_v33, %v5679_v51  ;;  %v7651_v33 = vld [vmem:[#allocation23 + $0x38] sm:$0xff] }
0x1292   :  { %v7652_v51 = vld [vmem:[#allocation23 + $0x58] sm:$0xff] }
0x1293   :  { %7247 = vmatmul.msk.f32.vlgmr.msra.gmra.mxu3 %vm548_vm1, %v10402_v54  ;;  %7250 = vmatmul.msk.f32.vlgmr.msrb.gmra.mxu1 %vm548_vm1, %v10402_v54 }
0x1294   :  { %7253 = vmatmul.msk.f32.vlgmr.msrb.gmra.mxu2 %vm548_vm1, %v10402_v54  ;;  %5921 = vmatpush.msra.mxu3 %v10410_v49 }
0x1295   :  { %5991 = vmatpush.msrb.mxu1 %v9985_v52  ;;  %6058 = vmatpush.msrb.mxu2 %v9987_v17  ;;  %v10935_v52 = vld [vmem:[#allocation64_spill] sm:$0xff]  ;;  %v10436_v17 = vld [vmem:[#allocation25 + $0x38] sm:$0xff] }
0x1296   :  { %5922 = vmatpush.msra.mxu3 %v10415_v10 }
0x1297   :  { %5992 = vmatpush.msrb.mxu1 %v9997_v36  ;;  %6059 = vmatpush.msrb.mxu2 %v9999_v48  ;;  %v10936_v36 = vld [vmem:[#allocation82_spill] sm:$0xff] }
0x1298   :  { %5923 = vmatpush.msra.mxu3 %v10420_v25  ;;  %v7644_v48 = vld [vmem:[#allocation22 + $0x38] sm:$0xff] }
0x1299   :  { %5993 = vmatpush.msrb.mxu1 %v10004_v15  ;;  %6060 = vmatpush.msrb.mxu2 %v10006_v9  ;;  %v7645_v15 = vld [vmem:[#allocation22 + $0x10] sm:$0xff] }
0x129a   :  { %5924 = vmatpush.msra.mxu3 %v10425_v20  ;;  %v7646_v9 = vld [vmem:[#allocation22 + $0x30] sm:$0xff] }
0x129b   :  { %7251 = vmatmul.msk.f32.vlgmr.msrb.gmra.mxu3 %vm548_vm1, %v10933_v40  ;;  %7254 = vmatmul.msk.f32.vlgmr.msra.gmra.mxu1 %vm548_vm1, %v10935_v52  ;;  %v5769_v40 = vpop.f32.mrf.mxu0 }
0x129c   :  { %7257 = vmatmul.msk.f32.vlgmr.msra.gmra.mxu2 %vm548_vm1, %v10935_v52  ;;  %5994 = vmatpush.msrb.mxu1 %v10013_v29  ;;  %v7647_v29 = vld [vmem:[#allocation22 + $0x8] sm:$0xff] }
0x129d   :  { %6061 = vmatpush.msrb.mxu2 %v10016_v28  ;;  %6012 = vmatpush.msrb.mxu3 %v10436_v17  ;;  %v7648_v28 = vld [vmem:[#allocation22 + $0x28] sm:$0xff] }
0x129e   :  { %6079 = vmatpush.msra.mxu1 %v10022_v38  ;;  %v7649_v38 = vld [vmem:[#allocation22] sm:$0xff] }
0x129f   :  { %6151 = vmatpush.msra.mxu2 %v10351_v57  ;;  %6013 = vmatpush.msrb.mxu3 %v9970_v61  ;;  %v10453_v61 = vld [vmem:[#allocation25 + $0x20] sm:$0xff] }
0x12a0   :  { %6080 = vmatpush.msra.mxu1 %v10029_v56  ;;  %v7650_v56 = vld [vmem:[#allocation22 + $0x20] sm:$0xff] }
0x12a1   :  { %6152 = vmatpush.msra.mxu2 %v10356_v63  ;;  %6014 = vmatpush.msrb.mxu3 %v9973_v14  ;;  %v7643_v14 = vld [vmem:[#allocation22 + $0x18] sm:$0xff] }
0x12a2   :  { %6081 = vmatpush.msra.mxu1 %v10034_v12  ;;  %v5699_v12 = vpop.f32.mrf.mxu2 }
0x12a3   :  { %6153 = vmatpush.msra.mxu2 %v10361_v59  ;;  %7255 = vmatmul.msk.f32.vlgmr.msra.gmra.mxu3 %vm548_vm1, %v10936_v36  ;;  %v5702_v63 = vadd.f32 %v10118_v34, %v5699_v12  ;;  %v5857_v32 = vpop.f32.mrf.mxu0  ;;  %v7665_v12 = vld [vmem:[#allocation19] ss:$0 sm:$0xff] }
0x12a4   :  { %7258 = vmatmul.msk.f32.vlgmr.msrb.gmra.mxu1 %vm548_vm1, %v10936_v36  ;;  %7261 = vmatmul.msk.f32.vlgmr.msrb.gmra.mxu2 %vm548_vm1, %v10936_v36  ;;  %v7653_v36 = vld [vmem:[#allocation23 + $0x30] sm:$0xff] }
0x12a5   :  { %6015 = vmatpush.msrb.mxu3 %v10453_v61  ;;  %6082 = vmatpush.msra.mxu1 %v10040_v4  ;;  %v5720_v4 = vpop.f32.mrf.mxu1 }
0x12a6   :  { %6154 = vmatpush.msra.mxu2 %v10374_v23  ;;  %v5772_v23 = vadd.f32 %v10930_v58, %v5769_v40  ;;  %v5723_v0 = vadd.f32 %v5720_v4, %v5702_v63  ;;  %v10939_v4 = vld [vmem:[#allocation69_spill] sm:$0xff] }
0x12a7   :  { %6106 = vmatpush.msra.mxu3 %v7643_v14  ;;  %6176 = vmatpush.msrb.mxu1 %v7644_v48  ;;  %v7654_v14 = vld [vmem:[#allocation23 + $0x50] sm:$0xff]  ;;  %v7655_v48 = vld [vmem:[#allocation23 + $0x28] sm:$0xff]  ;;  %v4451_v40 = vadd.f32 %v7665_v12, %v10939_v4 }
0x12a8   :  { %6243 = vmatpush.msrb.mxu2 %v10378_v37  ;;  %v10940_v63 = vld [vmem:[#allocation73_spill] sm:$0xff]  ;;  %v10947_v12 = vld [vmem:[#allocation76_spill] sm:$0xff] }
0x12a9   :  { %6107 = vmatpush.msra.mxu3 %v7645_v15  ;;  %6177 = vmatpush.msrb.mxu1 %v7646_v9  ;;  %v7656_v15 = vld [vmem:[#allocation23 + $0x48] sm:$0xff]  ;;  %v7658_v9 = vld [vmem:[#allocation23 + $0x40] sm:$0xff] }
0x12aa   :  { %6244 = vmatpush.msrb.mxu2 %v10383_v22  ;;  %v5790_v59 = vpop.f32.mrf.mxu2 }
0x12ab   :  { %6108 = vmatpush.msra.mxu3 %v7647_v29  ;;  %6178 = vmatpush.msrb.mxu1 %v7648_v28  ;;  %v5793_v22 = vadd.f32 %v5790_v59, %v5772_v23  ;;  %v7660_v29 = vld [vmem:[#allocation25 + $0x30] sm:$0xff]  ;;  %v7662_v28 = vld [vmem:[#allocation25 + $0x28] sm:$0xff] }
0x12ac   :  { %6245 = vmatpush.msrb.mxu2 %v10388_v39 }
0x12ad   :  { %6109 = vmatpush.msra.mxu3 %v7649_v38  ;;  %6179 = vmatpush.msrb.mxu1 %v7650_v56  ;;  %v10938_v38 = vld [vmem:[#allocation83_spill] sm:$0xff] }
0x12ae   :  { %6246 = vmatpush.msrb.mxu2 %v10392_v19 }
0x1310   :  { %v5811_v57 = vpop.f32.mrf.mxu1 }
0x1311   :  { %v5812_v37 = vadd.f32 %v10125_v44, %v5811_v57  ;;  %v7666_v57 = vld [vmem:[#allocation20] ss:$0 sm:$0xff] }
0x1312   :  { %v4494_v59 = vadd.f32 %v7666_v57, %v10940_v63  ;;  %v10948_v63 = vld [vmem:[#allocation75_spill] sm:$0xff] }
0x1313   :  { %v5814_v8 = vadd.f32 %v5812_v37, %v5793_v22  ;;  %v10941_v37 = vld [vmem:[#allocation77_spill] sm:$0xff] }
0x1314   :  { %v4472_v22 = vadd.f32 %v10941_v37, %v4451_v40 }
0x1315   :  { %v5815_v19 = vmul.f32 0.5, %v5814_v8 }
0x1316   :  { %v5744_v30 = vpop.f32.mrf.mxu3  ;;  %v4496_v8 = vadd.f32 %v4494_v59, %v4472_v22 }
0x1317   :  { %v5745_v39 = vadd.f32 %v10927_v3, %v5744_v30  ;;  %v5878_v46 = vpop.f32.mrf.mxu2 }
0x1318   :  { %v5879_v21 = vadd.f32 %v10128_v47, %v5878_v46  ;;  %v5905_v56 = vpop.f32.mrf.mxu1 }
0x1319   :  { %v5747_v1 = vadd.f32 %v5745_v39, %v5723_v0  ;;  %v5908_v30 = vadd.f32 %v10118_v34, %v5905_v56  ;;  %v7670_v56 = vld [vmem:[#allocation19 + $0x2] ss:$0 sm:$0xff] }
0x131b   :  { %v5748_v7 = vmul.f32 0.5, %v5747_v1 }
0x131d   :  { %7554 = vtanh.f32 %v5748_v7 }
0x131e   :  { %7556 = vtanh.f32 %v5815_v19  ;;  %v5836_v31 = vpop.f32.mrf.mxu3 }
0x131f   :  { %v5839_v26 = vadd.f32 %v10130_v43, %v5836_v31  ;;  %v5975_v0 = vpop.f32.mrf.mxu2 }
0x1320   :  { %v5978_v7 = vadd.f32 %v10930_v58, %v5975_v0 }
0x1321   :  { %v5860_v18 = vadd.f32 %v5857_v32, %v5839_v26  ;;  %v5996_v31 = vpop.f32.mrf.mxu1  ;;  %v7667_v32 = vld [vmem:[#allocation19 + $0x1] ss:$0 sm:$0xff] }
0x1322   :  { %v5999_v26 = vadd.f32 %v5996_v31, %v5978_v7 }
0x1323   :  { %v7555_v24 = vpop.eup %7554 }
0x1324   :  { %v5750_v55 = vadd.f32 1.0, %v7555_v24  ;;  %v7557_v41 = vpop.eup %7556  ;;  %v4497_v24 = vmul.f32 0.5, %v4496_v8 }
0x1325   :  { %v5817_v2 = vadd.f32 1.0, %v7557_v41 }
0x1326   :  { %v5751_v50 = vmul.f32 0.5, %v5750_v55  ;;  %v5926_v23 = vpop.f32.mrf.mxu3 }
0x1327   :  { %v5818_v62 = vmul.f32 0.5, %v5817_v2  ;;  %v5929_v1 = vadd.f32 %v5926_v23, %v5908_v30  ;;  %v7668_v2 = vld [vmem:[#allocation20 + $0x1] ss:$0 sm:$0xff] }
0x1328   :  { %v5881_v6 = vmul.f32 %v5879_v21, %v5751_v50 }
0x1329   :  { %v5884_v13 = vsub.f32 1.0, %v5818_v62  ;;  %v5886_v35 = vmul.f32 %v5818_v62, %v10402_v54 }
0x132a   :  { %v5882_v11 = vadd.f32 %v5881_v6, %v5860_v18  ;;  %v10942_v6 = vld [vmem:[#allocation70_spill] sm:$0xff] }
0x132b   :  { %v4521_v18 = vadd.f32 %v7667_v32, %v10942_v6  ;;  %v10530_v32 = vld [vmem:[#allocation32 + $0x18] sm:$0xff] }
0x132c   :  { %7558 = vtanh.f32 %v5882_v11 }
0x1332   :  { %v7559_v60 = vpop.eup %7558 }
0x1333   :  { %v5885_v16 = vmul.f32 %v7559_v60, %v5884_v13  ;;  %v10944_v13 = vld [vmem:[#allocation71_spill] sm:$0xff] }
0x1334   :  { %v4542_v60 = vadd.f32 %v10944_v13, %v4521_v18 }
0x1335   :  { %v10469_v42 = vadd.f32 %v5886_v35, %v5885_v16 }
0x1337   :  { %7256 = vmatmul.msk.f32.vlgmr.msra.gmra.mxu0 %vm548_vm1, %v10469_v42  ;;  %7259 = vmatmul.msk.f32.vlgmr.msrb.gmra.mxu3 %vm548_vm1, %v10469_v42 }
0x1338   :  { %7262 = vmatmul.msk.f32.vlgmr.msra.gmra.mxu1 %vm548_vm1, %v10469_v42  ;;  %6127 = vmatpush.msra.mxu0 %v10410_v49  ;;  %v10937_v49 = vld [vmem:[#allocation63_spill] sm:$0xff] }
0x1339   :  { %6197 = vmatpush.msrb.mxu3 %v7651_v33  ;;  %6264 = vmatpush.msra.mxu1 %v7652_v51 }
0x133a   :  { %6128 = vmatpush.msra.mxu0 %v10415_v10  ;;  %v7657_v10 = vld [vmem:[#allocation23 + $0x20] sm:$0xff] }
0x133b   :  { %6198 = vmatpush.msrb.mxu3 %v7653_v36  ;;  %6265 = vmatpush.msra.mxu1 %v7654_v14  ;;  %v6063_v14 = vpop.f32.mrf.mxu2 }
0x133c   :  { %6129 = vmatpush.msra.mxu0 %v10420_v25  ;;  %v7659_v25 = vld [vmem:[#allocation25 + $0x58] sm:$0xff] }
0x133d   :  { %6199 = vmatpush.msrb.mxu3 %v7655_v48  ;;  %6266 = vmatpush.msra.mxu1 %v7656_v15 }
0x133e   :  { %6130 = vmatpush.msra.mxu0 %v10425_v20  ;;  %v7661_v20 = vld [vmem:[#allocation25 + $0x50] sm:$0xff] }
0x133f   :  { %7260 = vmatmul.msk.f32.vlgmr.msrb.gmra.mxu0 %vm548_vm1, %v10935_v52  ;;  %7263 = vmatmul.msk.f32.vlgmr.msra.gmra.mxu3 %vm548_vm1, %v10937_v49  ;;  %v7663_v52 = vld [vmem:[#allocation25 + $0x48] sm:$0xff] }
0x1340   :  { %7266 = vmatmul.msk.f32.vlgmr.msrb.gmra.mxu1 %vm548_vm1, %v10937_v49  ;;  %6200 = vmatpush.msrb.mxu3 %v7657_v10 }
0x1341   :  { %6267 = vmatpush.msra.mxu1 %v7658_v9  ;;  %6218 = vmatpush.msrb.mxu0 %v10436_v17  ;;  %v7664_v17 = vld [vmem:[#allocation25 + $0x40] sm:$0xff] }
0x1342   :  { %6285 = vmatpush.msra.mxu3 %v7659_v25 }
0x1343   :  { %6219 = vmatpush.msrb.mxu0 %v7660_v29 }
0x1344   :  { %6286 = vmatpush.msra.mxu3 %v7661_v20 }
0x1345   :  { %6220 = vmatpush.msrb.mxu0 %v7662_v28 }
0x1346   :  { %6287 = vmatpush.msra.mxu3 %v7663_v52 }
0x1347   :  { %7264 = vmatmul.msk.f32.vlgmr.msra.gmra.mxu0 %vm548_vm1, %v10938_v38  ;;  %7267 = vmatmul.msk.f32.vlgmr.msrb.gmra.mxu3 %vm548_vm1, %v10938_v38 }
0x1348   :  { %7270 = vmatmul.msk.f32.vlgmr.msra.gmra.mxu1 %vm548_vm1, %v10938_v38  ;;  %6221 = vmatpush.msrb.mxu0 %v10453_v61  ;;  %v7669_v38 = vld [vmem:[#allocation20 + $0x2] ss:$0 sm:$0xff] }
0x1349   :  { %6288 = vmatpush.msra.mxu3 %v7664_v17 }
0x134b   :  { %6428 = vmatpush.msrb.mxu3 %v10530_v32 }
0x13b4   :  { %v5950_v39 = vpop.f32.mrf.mxu0 }
0x13b5   :  { %v5951_v61 = vadd.f32 %v10927_v3, %v5950_v39  ;;  %v10943_v3 = vld [vmem:[#allocation72_spill] sm:$0xff]  ;;  %v6084_v62 = vpop.f32.mrf.mxu1 }
0x13b6   :  { %v4561_v11 = vadd.f32 %v7668_v2, %v10943_v3  ;;  %v6085_v36 = vadd.f32 %v10128_v47, %v6084_v62  ;;  %v4588_v47 = vadd.f32 %v7670_v56, %v10947_v12  ;;  %v6303_v39 = vld [vmem:[%s10945_s5 + $0x18] sm:$0xff]  ;;  %v6306_v2 = vld [vmem:[#allocation29 + $0x10] sm:$0xff] }
0x13b7   :  { %v5953_v19 = vadd.f32 %v5951_v61, %v5929_v1  ;;  %v6302_v1 = vld [vmem:[%s10945_s5 + $0x10] sm:$0xff]  ;;  %v6301_v61 = vld [vmem:[%s10945_s5 + $0x8] sm:$0xff]  ;;  %v7671_v3 = vld [vmem:[#allocation26] ss:$0 sm:$0xff] }
0x13b8   :  { %v4609_v59 = vadd.f32 %v10948_v63, %v4588_v47  ;;  %v7672_v62 = vld [vmem:[#allocation26 + $0x1] ss:$0 sm:$0xff] }
0x13b9   :  { %v5954_v46 = vmul.f32 0.5, %v5953_v19  ;;  %v6300_v19 = vld [vmem:[%s10945_s5] sm:$0xff] }
0x13ba   :  { %v6017_v55 = vpop.f32.mrf.mxu3 }
0x13bb   :  { %7560 = vtanh.f32 %v5954_v46  ;;  %v6018_v41 = vadd.f32 %v10125_v44, %v6017_v55  ;;  %v4563_v44 = vadd.f32 %v4561_v11, %v4542_v60  ;;  %v10949_v55 = vld [vmem:[#allocation85_spill] sm:$0xff]  ;;  %v7673_v60 = vld [vmem:[#allocation28 + $0x1] ss:$0 sm:$0xff] }
0x13bc   :  { %7562 = vtanh.f32 %v4497_v24  ;;  %v6042_v21 = vpop.f32.mrf.mxu0 }
0x13bd   :  { %v6020_v50 = vadd.f32 %v6018_v41, %v5999_v26  ;;  %v6045_v16 = vadd.f32 %v10130_v43, %v6042_v21  ;;  %v4564_v25 = vmul.f32 0.5, %v4563_v44  ;;  %v10946_v43 = vld [vmem:[#allocation74_spill] sm:$0xff]  ;;  %v6307_v21 = vld [vmem:[#allocation29 + $0x18] sm:$0xff]  ;;  %v6181_v6 = vpop.f32.mrf.mxu1  ;;  %v6304_v44 = vld [vmem:[#allocation29] sm:$0xff] }
0x13be   :  { %v4628_v17 = vadd.f32 %v7669_v38, %v10946_v43  ;;  %6323 = vmatpush.msra.mxu0 %v6307_v21  ;;  %v6184_v13 = vadd.f32 %v7672_v62, %v6181_v6  ;;  %v10552_v38 = vld [vmem:[#allocation31] sm:$0xff]  ;;  %v6362_v6 = vld [vmem:[%s10952_s8 + $0x10] sm:$0xff] }
0x13bf   :  { %v6021_v34 = vmul.f32 0.5, %v6020_v50  ;;  %v6066_v10 = vadd.f32 %v6063_v14, %v6045_v16  ;;  %v6305_v16 = vld [vmem:[#allocation29 + $0x8] sm:$0xff]  ;;  %v10955_v21 = vld [vmem:[#allocation68_spill] sm:$0xff] }
0x13c0   :  { %6324 = vmatpush.msra.mxu0 %v6306_v2  ;;  %v10664_v2 = vld [vmem:[%s8433_s9 + $0x20] sm:$0xff] }
0x13c1   :  { %v7561_v58 = vpop.eup %7560  ;;  %7564 = vtanh.f32 %v6021_v34  ;;  %v7382_v62 = vld [vmem:[%s10957_s25] ss:$0 sm:$0xff] }
0x13c2   :  { %v5956_v35 = vadd.f32 1.0, %v7561_v58  ;;  %v7563_v33 = vpop.eup %7562  ;;  %v6111_v50 = vpop.f32.mrf.mxu3  ;;  %6325 = vmatpush.msra.mxu0 %v6305_v16 }
0x13c3   :  { %v4499_v48 = vadd.f32 1.0, %v7563_v33  ;;  %v6114_v11 = vadd.f32 %v7671_v3, %v6111_v50  ;;  %v10536_v33 = vld [vmem:[#allocation32 + $0x8] sm:$0xff]  ;;  %v6366_v50 = vld [vmem:[%s10952_s8 + $0x30] sm:$0xff] }
0x13c4   :  { %v5957_v51 = vmul.f32 0.5, %v5956_v35  ;;  %v6132_v34 = vpop.f32.mrf.mxu0  ;;  %6326 = vmatpush.msra.mxu0 %v6304_v44  ;;  %v10673_v3 = vld [vmem:[%s8433_s9 + $0x10] sm:$0xff] }
0x13c5   :  { %v4500_v28 = vmul.f32 0.5, %v4499_v48  ;;  %v6135_v48 = vadd.f32 %v6132_v34, %v6114_v11  ;;  %v6365_v34 = vld [vmem:[%s10952_s8 + $0x28] sm:$0xff] }
0x13c6   :  { %v6087_v15 = vmul.f32 %v6085_v36, %v5957_v51  ;;  %v10539_v51 = vld [vmem:[#allocation32] sm:$0xff]  ;;  %v10678_v11 = vld [vmem:[%s8433_s9 + $0x8] sm:$0xff] }
0x13c7   :  { %v7565_v9 = vpop.eup %7564  ;;  %v4630_v4 = vmul.f32 %v4628_v17, %v4500_v28  ;;  %v10548_v28 = vld [vmem:[#allocation31 + $0x8] sm:$0xff] }
0x13c8   :  { %v6023_v29 = vadd.f32 1.0, %v7565_v9  ;;  %v6088_v20 = vadd.f32 %v6087_v15, %v6066_v10  ;;  %v7674_v15 = vld [vmem:[#allocation28] ss:$0 sm:$0xff] }
0x13c9   :  { %v4631_v30 = vadd.f32 %v4630_v4, %v4609_v59  ;;  %v10542_v9 = vld [vmem:[#allocation31 + $0x18] sm:$0xff] }
0x13ca   :  { %7566 = vtanh.f32 %v6088_v20  ;;  %v6024_v52 = vmul.f32 0.5, %v6023_v29  ;;  %v6202_v58 = vpop.f32.mrf.mxu3  ;;  %v7675_v4 = vld [vmem:[#allocation26 + $0x2] ss:$0 sm:$0xff]  ;;  %v7676_v59 = vld [vmem:[#allocation28 + $0x2] ss:$0 sm:$0xff] }
0x13cb   :  { %7568 = vtanh.f32 %v4564_v25  ;;  %v6205_v36 = vadd.f32 %v6202_v58, %v6184_v13  ;;  %v10544_v25 = vld [vmem:[#allocation31 + $0x10] sm:$0xff]  ;;  %v10683_v58 = vld [vmem:[%s8433_s9] sm:$0xff] }
0x13cc   :  { %v6090_v40 = vsub.f32 1.0, %v6024_v52  ;;  %v6092_v23 = vmul.f32 %v6024_v52, %v10469_v42  ;;  %7570 = vtanh.f32 %v4631_v30 }
0x13d0   :  { %v7567_v57 = vpop.eup %7566 }
0x13d1   :  { %v6091_v37 = vmul.f32 %v7567_v57, %v6090_v40  ;;  %v7569_v22 = vpop.eup %7568 }
0x13d2   :  { %v4566_v8 = vadd.f32 1.0, %v7569_v22  ;;  %v7571_v31 = vpop.eup %7570 }
0x13d3   :  { %v10511_v0 = vadd.f32 %v6092_v23, %v6091_v37  ;;  %v6269_v37 = vpop.f32.mrf.mxu1 }
0x13d4   :  { %v4567_v7 = vmul.f32 0.5, %v4566_v8 }
0x13d5   :  { %7265 = vmatmul.msk.f32.vlgmr.msra.gmra.mxu2 %vm548_vm1, %v10511_v0  ;;  %7268 = vmatmul.msk.f32.vlgmr.msrb.gmra.mxu0 %vm548_vm1, %v10511_v0 }
0x13d6   :  { %7271 = vmatmul.msk.f32.vlgmr.msra.gmra.mxu3 %vm548_vm1, %v10511_v0  ;;  %6346 = vmatpush.msra.mxu2 %v6303_v39  ;;  %v4633_v24 = vsub.f32 1.0, %v4567_v7  ;;  %v4635_v26 = vmul.f32 %v4567_v7, %v10949_v55 }
0x13d7   :  { %6448 = vmatpush.msrb.mxu0 %v10542_v9 }
0x13d8   :  { %6347 = vmatpush.msra.mxu2 %v6302_v1  ;;  %v4634_v46 = vmul.f32 %v7571_v31, %v4633_v24 }
0x13d9   :  { %6449 = vmatpush.msrb.mxu0 %v10544_v25 }
0x13da   :  { %6348 = vmatpush.msra.mxu2 %v6301_v61  ;;  %v10526_v41 = vadd.f32 %v4635_v26, %v4634_v46  ;;  %v10950_v46 = vld [vmem:[#allocation86_spill] sm:$0xff]  ;;  %v10951_v26 = vld [vmem:[#allocation84_spill] sm:$0xff] }
0x13db   :  { %6450 = vmatpush.msrb.mxu0 %v10548_v28 }
0x13dc   :  { %6349 = vmatpush.msra.mxu2 %v6300_v19 }
0x13dd   :  { %7269 = vmatmul.msk.f32.vlgmr.msrb.gmra.mxu2 %vm548_vm1, %v10937_v49  ;;  %v10533_v49 = vld [vmem:[#allocation32 + $0x10] sm:$0xff]  ;;  %6451 = vmatpush.msrb.mxu0 %v10552_v38 }
0x13de   :  { %6429 = vmatpush.msrb.mxu3 %v10533_v49 }
0x13e0   :  { %6430 = vmatpush.msrb.mxu3 %v10536_v33 }
0x13e2   :  { %6431 = vmatpush.msrb.mxu3 %v10539_v51 }
0x13e4   :  { %6500 = vmatpush.msra.mxu3 %v10530_v32 }
0x13e5   :  { %7273 = vmatmul.msk.f32.vlgmr.msra.gmra.mxu2 %vm548_vm1, %v10526_v41 }
0x13e6   :  { %6501 = vmatpush.msra.mxu3 %v10533_v49 }
0x13e8   :  { %6502 = vmatpush.msra.mxu3 %v10536_v33 }
0x13ea   :  { %6503 = vmatpush.msra.mxu3 %v10539_v51 }
0x1452   :  { %v6223_v18 = vpop.f32.mrf.mxu0 }
0x1453   :  { %v6224_v35 = vadd.f32 %v7673_v60, %v6223_v18  ;;  %v10654_v18 = vld [vmem:[%s8433_s9 + $0x30] sm:$0xff] }
0x1455   :  { %v6226_v29 = vadd.f32 %v6224_v35, %v6205_v36 }
0x1457   :  { %v6227_v43 = vmul.f32 0.5, %v6226_v29 }
0x1458   :  { %v6156_v14 = vpop.f32.mrf.mxu2 }
0x1459   :  { %v6157_v10 = vadd.f32 %v7674_v15, %v6156_v14  ;;  %v6290_v12 = vpop.f32.mrf.mxu3 }
0x145a   :  { %v6291_v23 = vadd.f32 %v7676_v59, %v6290_v12 }
0x145b   :  { %v6159_v20 = vadd.f32 %v6157_v10, %v6135_v48 }
0x145d   :  { %v6160_v52 = vmul.f32 0.5, %v6159_v20 }
0x145f   :  { %7572 = vtanh.f32 %v6160_v52 }
0x1460   :  { %7574 = vtanh.f32 %v6227_v43  ;;  %v6248_v17 = vpop.f32.mrf.mxu2 }
0x1461   :  { %v6251_v40 = vadd.f32 %v7675_v4, %v6248_v17 }
0x1463   :  { %v6272_v30 = vadd.f32 %v6269_v37, %v6251_v40 }
0x1465   :  { %v7573_v56 = vpop.eup %7572 }
0x1466   :  { %v6162_v47 = vadd.f32 1.0, %v7573_v56  ;;  %v7575_v57 = vpop.eup %7574 }
0x1467   :  { %v6229_v39 = vadd.f32 1.0, %v7575_v57 }
0x1468   :  { %v6163_v63 = vmul.f32 0.5, %v6162_v47  ;;  %v6351_v13 = vpop.f32.mrf.mxu2 }
0x1469   :  { %v6230_v1 = vmul.f32 0.5, %v6229_v39 }
0x146a   :  { %v6293_v22 = vmul.f32 %v6291_v23, %v6163_v63 }
0x146b   :  { %v6296_v61 = vsub.f32 1.0, %v6230_v1  ;;  %v6298_v19 = vmul.f32 %v6230_v1, %v10511_v0 }
0x146c   :  { %v6294_v8 = vadd.f32 %v6293_v22, %v6272_v30 }
0x146e   :  { %7576 = vtanh.f32 %v6294_v8 }
0x1474   :  { %v7577_v7 = vpop.eup %7576 }
0x1475   :  { %v6297_v31 = vmul.f32 %v7577_v7, %v6296_v61 }
0x1477   :  { %v6299_v24 = vadd.f32 %v6298_v19, %v6297_v31 }
0x1479   :  { %7272 = vmatmul.msk.f32.vlgmr.msra.gmra.mxu0 %vm548_vm1, %v6299_v24  ;;  %7275 = vmatmul.msk.f32.vlgmr.msrb.gmra.mxu3 %vm548_vm1, %v6299_v24 }
0x147a   :  { %6520 = vmatpush.msra.mxu0 %v10542_v9  ;;  %6567 = vmatpush.msrb.mxu3 %v10530_v32 }
0x147c   :  { %6521 = vmatpush.msra.mxu0 %v10544_v25  ;;  %6568 = vmatpush.msrb.mxu3 %v10533_v49 }
0x147e   :  { %6522 = vmatpush.msra.mxu0 %v10548_v28  ;;  %6569 = vmatpush.msrb.mxu3 %v10536_v33 }
0x1480   :  { %6523 = vmatpush.msra.mxu0 %v10552_v38  ;;  %6570 = vmatpush.msrb.mxu3 %v10539_v51 }
0x1481   :  { %7276 = vmatmul.msk.f32.vlgmr.msrb.gmra.mxu0 %vm548_vm1, %v10950_v46  ;;  %7278 = vmatmul.msk.f32.vlgmr.msra.gmra.mxu3 %vm548_vm1, %v10511_v0  ;;  %v10953_v0 = vld [vmem:[#allocation87_spill] sm:$0xff] }
0x1482   :  { %6587 = vmatpush.msrb.mxu0 %v10542_v9  ;;  %6634 = vmatpush.msra.mxu3 %v10530_v32 }
0x1484   :  { %6588 = vmatpush.msrb.mxu0 %v10544_v25  ;;  %6635 = vmatpush.msra.mxu3 %v10533_v49 }
0x1486   :  { %6589 = vmatpush.msrb.mxu0 %v10548_v28  ;;  %6636 = vmatpush.msra.mxu3 %v10536_v33 }
0x1488   :  { %6590 = vmatpush.msrb.mxu0 %v10552_v38  ;;  %6637 = vmatpush.msra.mxu3 %v10539_v51 }
0x1489   :  { %7279 = vmatmul.msk.f32.vlgmr.msra.gmra.mxu0 %vm548_vm1, %v10951_v26  ;;  %7281 = vmatmul.msk.f32.vlgmr.msrb.gmra.mxu3 %vm548_vm1, %v10469_v42  ;;  %v10954_v42 = vld [vmem:[#allocation88_spill] sm:$0xff] }
0x148a   :  { %6654 = vmatpush.msra.mxu0 %v10542_v9  ;;  %6701 = vmatpush.msrb.mxu3 %v10530_v32 }
0x148c   :  { %6655 = vmatpush.msra.mxu0 %v10544_v25  ;;  %6702 = vmatpush.msrb.mxu3 %v10533_v49 }
0x148e   :  { %6656 = vmatpush.msra.mxu0 %v10548_v28  ;;  %6703 = vmatpush.msrb.mxu3 %v10536_v33 }
0x1490   :  { %6657 = vmatpush.msra.mxu0 %v10552_v38  ;;  %6704 = vmatpush.msrb.mxu3 %v10539_v51 }
0x1491   :  { %7282 = vmatmul.msk.f32.vlgmr.msrb.gmra.mxu0 %vm548_vm1, %v10953_v0  ;;  %7284 = vmatmul.msk.f32.vlgmr.msra.gmra.mxu3 %vm548_vm1, %v10402_v54  ;;  %v6367_v54 = vld [vmem:[%s10952_s8 + $0x38] sm:$0xff] }
0x1492   :  { %6721 = vmatpush.msrb.mxu0 %v10542_v9  ;;  %6768 = vmatpush.msra.mxu3 %v10530_v32 }
0x1493   :  { %6384 = vmatpush.msrb.mxu1 %v6367_v54 }
0x1494   :  { %6722 = vmatpush.msrb.mxu0 %v10544_v25  ;;  %6769 = vmatpush.msra.mxu3 %v10533_v49 }
0x1495   :  { %6385 = vmatpush.msrb.mxu1 %v6366_v50 }
0x1496   :  { %6723 = vmatpush.msrb.mxu0 %v10548_v28  ;;  %6770 = vmatpush.msra.mxu3 %v10536_v33 }
0x1497   :  { %6386 = vmatpush.msrb.mxu1 %v6365_v34 }
0x1498   :  { %6724 = vmatpush.msrb.mxu0 %v10552_v38  ;;  %6771 = vmatpush.msra.mxu3 %v10539_v51 }
0x1499   :  { %7285 = vmatmul.msk.f32.vlgmr.msra.gmra.mxu0 %vm548_vm1, %v10954_v42  ;;  %7287 = vmatmul.msk.f32.vlgmr.msrb.gmra.mxu3 %vm548_vm1, %v10323_v45  ;;  %v6364_v45 = vld [vmem:[%s10952_s8 + $0x20] sm:$0xff] }
0x149a   :  { %6788 = vmatpush.msra.mxu0 %v10542_v9  ;;  %6835 = vmatpush.msrb.mxu3 %v10530_v32 }
0x149b   :  { %6387 = vmatpush.msrb.mxu1 %v6364_v45 }
0x149c   :  { %6789 = vmatpush.msra.mxu0 %v10544_v25  ;;  %6836 = vmatpush.msrb.mxu3 %v10533_v49 }
0x149e   :  { %6790 = vmatpush.msra.mxu0 %v10548_v28  ;;  %6837 = vmatpush.msrb.mxu3 %v10536_v33 }
0x14a0   :  { %6791 = vmatpush.msra.mxu0 %v10552_v38  ;;  %6838 = vmatpush.msrb.mxu3 %v10539_v51 }
0x14a1   :  { %7288 = vmatmul.msk.f32.vlgmr.msrb.gmra.mxu0 %vm548_vm1, %v10955_v21  ;;  %7290 = vmatmul.msk.f32.vlgmr.msra.gmra.mxu3 %vm548_vm1, %v10260_v5  ;;  %v10956_v5 = vld [vmem:[#allocation78_spill] sm:$0xff] }
0x14a2   :  { %6855 = vmatpush.msrb.mxu0 %v10542_v9  ;;  %6902 = vmatpush.msra.mxu3 %v10530_v32  ;;  %v10649_v32 = vld [vmem:[%s8433_s9 + $0x38] sm:$0xff] }
0x14a3   :  { %6475 = vmatpush.msrb.mxu2 %v10649_v32 }
0x14a4   :  { %6856 = vmatpush.msrb.mxu0 %v10544_v25  ;;  %6903 = vmatpush.msra.mxu3 %v10533_v49  ;;  %v10668_v49 = vld [vmem:[%s8433_s9 + $0x18] sm:$0xff] }
0x14a5   :  { %6476 = vmatpush.msrb.mxu2 %v10654_v18 }
0x14a6   :  { %6857 = vmatpush.msrb.mxu0 %v10548_v28  ;;  %6904 = vmatpush.msra.mxu3 %v10536_v33 }
0x14a8   :  { %6858 = vmatpush.msrb.mxu0 %v10552_v38  ;;  %6905 = vmatpush.msra.mxu3 %v10539_v51  ;;  %v10702_v51 = vld [vmem:[%s10958_s18] ss:$0 sm:$0xff] }
0x14a9   :  { %7291 = vmatmul.msk.f32.vlgmr.msra.gmra.mxu0 %vm548_vm1, %v10956_v5  ;;  %7293 = vmatmul.msk.f32.vlgmr.msrb.gmra.mxu3 %vm548_vm1, %v10197_v27  ;;  %v6363_v27 = vld [vmem:[%s10952_s8 + $0x18] sm:$0xff] }
0x14aa   :  { %6922 = vmatpush.msra.mxu0 %v10542_v9  ;;  %6388 = vmatpush.msrb.mxu1 %v6363_v27 }
0x14ac   :  { %6923 = vmatpush.msra.mxu0 %v10544_v25  ;;  %6389 = vmatpush.msrb.mxu1 %v6362_v6 }
0x14ae   :  { %6924 = vmatpush.msra.mxu0 %v10548_v28 }
0x14b0   :  { %6925 = vmatpush.msra.mxu0 %v10552_v38 }
0x14b1   :  { %7294 = vmatmul.msk.f32.vlgmr.msrb.gmra.mxu0 %vm548_vm1, %v10949_v55  ;;  %7296 = vmatmul.msk.f32.vlgmr.msra.gmra.mxu3 %vm548_vm1, %v10134_v53  ;;  %v6361_v55 = vld [vmem:[%s10952_s8 + $0x8] sm:$0xff] }
0x14b2   :  { %v10659_v53 = vld [vmem:[%s8433_s9 + $0x28] sm:$0xff]  ;;  %6390 = vmatpush.msrb.mxu1 %v6361_v55  ;;  %s10959_s9 = sld [smem:[#allocation59_spill]] }
0x14b3   :  { %6477 = vmatpush.msrb.mxu2 %v10659_v53 }
0x14b5   :  { %6478 = vmatpush.msrb.mxu2 %v10664_v2 }
0x14b7   :  { %6479 = vmatpush.msrb.mxu2 %v10668_v49 }
0x14b8   :  { %v7384_v50 = vld [vmem:[%s10959_s9] ss:$0 sm:$0xff] }
0x14b9   :  { %7297 = vmatmul.msk.f32.vlgmr.msra.gmra.mxu0 %vm548_vm1, %v10526_v41  ;;  %v6360_v41 = vld [vmem:[%s10952_s8] sm:$0xff]  ;;  %6480 = vmatpush.msrb.mxu2 %v10673_v3 }
0x14ba   :  { %6391 = vmatpush.msrb.mxu1 %v6360_v41 }
0x14bb   :  { %6481 = vmatpush.msrb.mxu2 %v10678_v11 }
0x14bc   :  { %6541 = vmatpush.msra.mxu1 %v10649_v32 }
0x14bd   :  { %6482 = vmatpush.msrb.mxu2 %v10683_v58 }
0x14be   :  { %6542 = vmatpush.msra.mxu1 %v10654_v18 }
0x14bf   :  { %6608 = vmatpush.msra.mxu2 %v10649_v32 }
0x14c0   :  { %6543 = vmatpush.msra.mxu1 %v10659_v53 }
0x14c1   :  { %6609 = vmatpush.msra.mxu2 %v10654_v18 }
0x14c2   :  { %6544 = vmatpush.msra.mxu1 %v10664_v2 }
0x14c3   :  { %6610 = vmatpush.msra.mxu2 %v10659_v53 }
0x14c4   :  { %6545 = vmatpush.msra.mxu1 %v10668_v49 }
0x14c5   :  { %6611 = vmatpush.msra.mxu2 %v10664_v2 }
0x14c6   :  { %6546 = vmatpush.msra.mxu1 %v10673_v3 }
0x14c7   :  { %6612 = vmatpush.msra.mxu2 %v10668_v49 }
0x14c8   :  { %6547 = vmatpush.msra.mxu1 %v10678_v11 }
0x14c9   :  { %6613 = vmatpush.msra.mxu2 %v10673_v3 }
0x14ca   :  { %6548 = vmatpush.msra.mxu1 %v10683_v58 }
0x14cb   :  { %6614 = vmatpush.msra.mxu2 %v10678_v11 }
0x14cd   :  { %6615 = vmatpush.msra.mxu2 %v10683_v58 }
0x14f6   :  { %v6328_v60 = vpop.f32.mrf.mxu0 }
0x14f7   :  { %v6352_v35 = vadd.f32 %v6351_v13, %v6328_v60 }
0x14f9   :  { %v6358_v16 = vadd.f32 %v7382_v62, %v6352_v35 }
0x14fb   :  { %v6359_v33 = vmax.f32 %v6358_v16, 0.0 }
0x14fc   :  { %v6433_v44 = vpop.f32.mrf.mxu3 }
0x14fd   :  { %7274 = vmatmul.msk.f32.vlgmr.msrb.gmra.mxu1 %vm6372_vm2, %v6359_v33 }
0x14fe   :  { %v6453_v36 = vpop.f32.mrf.mxu0  ;;  %6675 = vmatpush.msrb.mxu1 %v10649_v32 }
0x14ff   :  { %v6454_v14 = vadd.f32 %v6453_v36, %v6433_v44 }
0x1500   :  { %6676 = vmatpush.msrb.mxu1 %v10654_v18 }
0x1501   :  { %v6459_v48 = vadd.f32 %v10702_v51, %v6454_v14 }
0x1502   :  { %6677 = vmatpush.msrb.mxu1 %v10659_v53 }
0x1503   :  { %v6460_v15 = vmax.f32 %v6459_v48, 0.0 }
0x1504   :  { %v6505_v10 = vpop.f32.mrf.mxu3  ;;  %6678 = vmatpush.msrb.mxu1 %v10664_v2 }
0x1505   :  { %7277 = vmatmul.msk.f32.vlgmr.msrb.gmra.mxu2 %vm6372_vm2, %v6460_v15 }
0x1506   :  { %v6525_v9 = vpop.f32.mrf.mxu0  ;;  %6679 = vmatpush.msrb.mxu1 %v10668_v49  ;;  %6742 = vmatpush.msrb.mxu2 %v10649_v32 }
0x1507   :  { %v6526_v25 = vadd.f32 %v6525_v9, %v6505_v10 }
0x1508   :  { %6680 = vmatpush.msrb.mxu1 %v10673_v3  ;;  %6743 = vmatpush.msrb.mxu2 %v10654_v18 }
0x1509   :  { %v6528_v29 = vadd.f32 %v10702_v51, %v6526_v25 }
0x150a   :  { %6681 = vmatpush.msrb.mxu1 %v10678_v11  ;;  %6744 = vmatpush.msrb.mxu2 %v10659_v53 }
0x150b   :  { %v6529_v20 = vmax.f32 %v6528_v29, 0.0 }
0x150c   :  { %v6572_v28 = vpop.f32.mrf.mxu3  ;;  %6682 = vmatpush.msrb.mxu1 %v10683_v58  ;;  %6745 = vmatpush.msrb.mxu2 %v10664_v2 }
0x150d   :  { %7280 = vmatmul.msk.f32.vlgmr.msra.gmra.mxu1 %vm6372_vm2, %v6529_v20 }
0x150e   :  { %v6592_v52 = vpop.f32.mrf.mxu0  ;;  %6746 = vmatpush.msrb.mxu2 %v10668_v49  ;;  %6809 = vmatpush.msra.mxu1 %v10649_v32 }
0x150f   :  { %v6593_v38 = vadd.f32 %v6592_v52, %v6572_v28 }
0x1510   :  { %6747 = vmatpush.msrb.mxu2 %v10673_v3  ;;  %6810 = vmatpush.msra.mxu1 %v10654_v18 }
0x1511   :  { %v6595_v43 = vadd.f32 %v10702_v51, %v6593_v38 }
0x1512   :  { %6748 = vmatpush.msrb.mxu2 %v10678_v11  ;;  %6811 = vmatpush.msra.mxu1 %v10659_v53 }
0x1513   :  { %v6596_v17 = vmax.f32 %v6595_v43, 0.0 }
0x1514   :  { %v6639_v56 = vpop.f32.mrf.mxu3  ;;  %6749 = vmatpush.msrb.mxu2 %v10683_v58  ;;  %6812 = vmatpush.msra.mxu1 %v10664_v2 }
0x1515   :  { %7283 = vmatmul.msk.f32.vlgmr.msra.gmra.mxu2 %vm6372_vm2, %v6596_v17 }
0x1516   :  { %v6659_v12 = vpop.f32.mrf.mxu0  ;;  %6813 = vmatpush.msra.mxu1 %v10668_v49  ;;  %6876 = vmatpush.msra.mxu2 %v10649_v32 }
0x1517   :  { %v6660_v47 = vadd.f32 %v6659_v12, %v6639_v56 }
0x1518   :  { %6814 = vmatpush.msra.mxu1 %v10673_v3  ;;  %6877 = vmatpush.msra.mxu2 %v10654_v18 }
0x1519   :  { %v6662_v4 = vadd.f32 %v10702_v51, %v6660_v47 }
0x151a   :  { %6815 = vmatpush.msra.mxu1 %v10678_v11  ;;  %6878 = vmatpush.msra.mxu2 %v10659_v53 }
0x151b   :  { %v6663_v40 = vmax.f32 %v6662_v4, 0.0 }
0x151c   :  { %v6706_v57 = vpop.f32.mrf.mxu3  ;;  %6816 = vmatpush.msra.mxu1 %v10683_v58  ;;  %6879 = vmatpush.msra.mxu2 %v10664_v2 }
0x151d   :  { %7286 = vmatmul.msk.f32.vlgmr.msrb.gmra.mxu1 %vm6372_vm2, %v6663_v40 }
0x151e   :  { %v6726_v63 = vpop.f32.mrf.mxu0  ;;  %6880 = vmatpush.msra.mxu2 %v10668_v49  ;;  %6943 = vmatpush.msrb.mxu1 %v10649_v32 }
0x151f   :  { %v6727_v59 = vadd.f32 %v6726_v63, %v6706_v57 }
0x1520   :  { %6881 = vmatpush.msra.mxu2 %v10673_v3  ;;  %6944 = vmatpush.msrb.mxu1 %v10654_v18 }
0x1521   :  { %v6729_v23 = vadd.f32 %v10702_v51, %v6727_v59 }
0x1522   :  { %6882 = vmatpush.msra.mxu2 %v10678_v11  ;;  %6945 = vmatpush.msrb.mxu1 %v10659_v53 }
0x1523   :  { %v6730_v37 = vmax.f32 %v6729_v23, 0.0 }
0x1524   :  { %v6773_v22 = vpop.f32.mrf.mxu3  ;;  %6883 = vmatpush.msra.mxu2 %v10683_v58  ;;  %6946 = vmatpush.msrb.mxu1 %v10664_v2 }
0x1525   :  { %7289 = vmatmul.msk.f32.vlgmr.msrb.gmra.mxu2 %vm6372_vm2, %v6730_v37 }
0x1526   :  { %v6793_v30 = vpop.f32.mrf.mxu0  ;;  %6947 = vmatpush.msrb.mxu1 %v10668_v49 }
0x1527   :  { %v6794_v39 = vadd.f32 %v6793_v30, %v6773_v22 }
0x1528   :  { %6948 = vmatpush.msrb.mxu1 %v10673_v3 }
0x1529   :  { %v6796_v8 = vadd.f32 %v10702_v51, %v6794_v39 }
0x152a   :  { %6949 = vmatpush.msrb.mxu1 %v10678_v11 }
0x152b   :  { %v6797_v1 = vmax.f32 %v6796_v8, 0.0 }
0x152c   :  { %v6840_v61 = vpop.f32.mrf.mxu3  ;;  %6950 = vmatpush.msrb.mxu1 %v10683_v58 }
0x152d   :  { %7292 = vmatmul.msk.f32.vlgmr.msra.gmra.mxu1 %vm6372_vm2, %v6797_v1 }
0x152e   :  { %v6860_v7 = vpop.f32.mrf.mxu0 }
0x152f   :  { %v6861_v19 = vadd.f32 %v6860_v7, %v6840_v61 }
0x1531   :  { %v6863_v31 = vadd.f32 %v10702_v51, %v6861_v19 }
0x1533   :  { %v6864_v24 = vmax.f32 %v6863_v31, 0.0 }
0x1534   :  { %v6907_v46 = vpop.f32.mrf.mxu3 }
0x1535   :  { %7295 = vmatmul.msk.f32.vlgmr.msra.gmra.mxu2 %vm6372_vm2, %v6864_v24 }
0x1536   :  { %v6927_v26 = vpop.f32.mrf.mxu0 }
0x1537   :  { %v6928_v0 = vadd.f32 %v6927_v26, %v6907_v46 }
0x1539   :  { %v6930_v42 = vadd.f32 %v10702_v51, %v6928_v0 }
0x153b   :  { %v6931_v54 = vmax.f32 %v6930_v42, 0.0 }
0x153d   :  { %7298 = vmatmul.msk.f32.vlgmr.msrb.gmra.mxu1 %vm6372_vm2, %v6931_v54 }
0x157a   :  { %v6393_v34 = vpop.f32.mrf.mxu1 }
0x157b   :  { %v6394_v45 = vadd.f32 %v7384_v50, %v6393_v34 }
0x157d   :  { %6397 = vst.msk [vmem:[#allocation35] sm:$0x3] %vm6396_vm3, %v6394_v45 }
0x157e   :  { %8180 = shalt.err (!%p8177_p6)
}
0x157f   :  { %6980 = dma.vmem_to_hbm [thread:$0]  %s6976_s7, 32, %s6978_s17, [#allocation36]   ;;  %v7385_v21 = vld [vmem:[%s8438_s30] ss:$0 sm:$0xff] }
0x1580   :  { %s8289_s13 = smov [#allocation34]   ;;  %s6963_s21 = sshll.u32 %s8443_s12, 4  ;;  %s6964_s21 = int_to_ptr.hbm [resolvable:$true] %s6963_s21 }
0x1581   :  { %s6961_s30 = sshll.u32 %s8289_s13, 4  ;;  %s8193_s22 = sshra.s32 %s6964_s21, 4  ;;  %s6962_s30 = int_to_ptr.vmem [resolvable:$true] %s6961_s30  ;;  %s8194_s22 = int_to_ptr.hbm [resolvable:$true] %s8193_s22 }
0x1582   :  { %s8195_s11 = scalar_lea.hbm %s8194_s22, 16  ;;  %s8197_s23 = scalar_lea.hbm %s8443_s12, 16 }
0x1583   :  { %p8196_p7 = scmp.ne.s32.totalorder %s8194_s22, %s8195_s11  ;;  %p8198_p8 = scmp.lt.s32.totalorder %s8194_s22, %s8443_s12 }
0x1584   :  { %p8199_p9 = scmp.lt.s32.totalorder %s8197_s23, %s8195_s11 }
0x1586   :  { %p8200_p10 = por %p8199_p9, %p8198_p8 }
0x1588   :  { %v6484_v5 = vpop.f32.mrf.mxu2  ;;  %p8201_p11 = pnand %p8200_p10, %p8196_p7 }
0x1589   :  { %v6485_v27 = vadd.f32 %v7385_v21, %v6484_v5 }
0x158a   :  { %v6550_v32 = vpop.f32.mrf.mxu1 }
0x158b   :  { %6487 = vst.msk [vmem:[#allocation34] sm:$0x3] %vm6396_vm3, %v6485_v27  ;;  %v6551_v6 = vadd.f32 %v7385_v21, %v6550_v32 }
0x158d   :  { %6554 = vst.msk [vmem:[#allocation34 + $0x2] sm:$0x3] %vm6396_vm3, %v6551_v6 }
0x1598   :  { %v6617_v18 = vpop.f32.mrf.mxu2 }
0x1599   :  { %v6618_v55 = vadd.f32 %v7385_v21, %v6617_v18 }
0x159a   :  { %v6684_v53 = vpop.f32.mrf.mxu1 }
0x159b   :  { %6621 = vst.msk [vmem:[#allocation34 + $0x4] sm:$0x3] %vm6396_vm3, %v6618_v55  ;;  %v6685_v41 = vadd.f32 %v7385_v21, %v6684_v53 }
0x159d   :  { %6688 = vst.msk [vmem:[#allocation34 + $0x6] sm:$0x3] %vm6396_vm3, %v6685_v41 }
0x15a8   :  { %v6751_v2 = vpop.f32.mrf.mxu2 }
0x15a9   :  { %v6752_v49 = vadd.f32 %v7385_v21, %v6751_v2 }
0x15aa   :  { %v6818_v3 = vpop.f32.mrf.mxu1 }
0x15ab   :  { %6755 = vst.msk [vmem:[#allocation34 + $0x8] sm:$0x3] %vm6396_vm3, %v6752_v49  ;;  %v6819_v11 = vadd.f32 %v7385_v21, %v6818_v3 }
0x15ad   :  { %6822 = vst.msk [vmem:[#allocation34 + $0xa] sm:$0x3] %vm6396_vm3, %v6819_v11 }
0x15b8   :  { %v6885_v58 = vpop.f32.mrf.mxu2 }
0x15b9   :  { %v6886_v62 = vadd.f32 %v7385_v21, %v6885_v58 }
0x15ba   :  { %v6952_v13 = vpop.f32.mrf.mxu1 }
0x15bb   :  { %6889 = vst.msk [vmem:[#allocation34 + $0xc] sm:$0x3] %vm6396_vm3, %v6886_v62  ;;  %v6953_v60 = vadd.f32 %v7385_v21, %v6952_v13 }
0x15bd   :  { %6956 = vst.msk [vmem:[#allocation34 + $0xe] sm:$0x3] %vm6396_vm3, %v6953_v60 }
0x15be   :  { %8204 = shalt.err (!%p8201_p11)
}
0x15bf   :  { %6969 = dma.vmem_to_hbm [thread:$0]  %s6962_s30, 256, %s6964_s21, [#allocation4], %s8275_s2, %s8275_s2, %s8276_s16  }
0x15c0   :  { %8227 = dma.done.wait [#allocation4], 256  }
0x15c1   :  { %8228 = vsyncadd [#allocation4], 4294967040 }
0x15c2   :  { %8229 = dma.done.wait [#allocation36], 32  }
0x15c3   :  { %8230 = vsyncadd [#allocation36], 4294967264 }
0x15c4   :  { %6989 = vsyncpa [#allocation3], 1 }
0x15c5   :  { %6990 = vsyncpa [#allocation6], 1 }
0x15c6   :  { %6991 = vsyncpa [#allocation9], 1 }
0x15c7   :  { %6992 = vsyncpa [#allocation12], 1 }
0x15c8   :  { %6993 = vsyncpa [#allocation15], 1 }
0x15c9   :  { %6994 = vsyncpa [#allocation18], 1 }
0x15ca   :  { %6995 = vsyncpa [#allocation21], 1 }
0x15cb   :  { %6996 = vsyncpa [#allocation24], 1 }
0x15cc   :  { %6997 = vsyncpa [#allocation27], 1 }
0x15cd   :  { %6998 = vsyncpa [#allocation30], 1 }
0x15ce   :  { %6999 = vsyncpa [#allocation33], 1 }
0x15cf   :  { %7000 = vsyncpa [#allocation4], 1 }
0x15d0   :  { %7001 = vsyncpa [#allocation36], 1 }

</bundles_post_ra>
